<compile_context>
chip_gen: v5e
topology: v5e:2x2
jax: 0.10.0
libtpu: 0.0.40
codegen_flags: <defaults>
</compile_context>

<pallas_src>
import functools

import jax
import jax.numpy as jnp
from jax.experimental import pallas as pl
from jax.experimental.pallas import tpu as pltpu

# ----------------------------- configuration --------------------------------
B = 2
IN_CH = 1
IMG_SIZE = (16, 16, 16)
PATCH_SIZE = (8, 8, 8)
HIDDEN = 128            # stands in for 768
MLP_DIM = 256           # stands in for 3072
NUM_LAYERS = 2          # stands in for 12
NUM_HEADS = 8
CROSS_HEADS = 8
MERLIN_DIM = 32         # stands in for 2048
LN_EPS = 1e-5
DTYPE = jnp.float32
WDTYPE = jnp.bfloat16   # matmul-operand dtype (accumulation is always f32)

N_PATCHES = (IMG_SIZE[0] // PATCH_SIZE[0]) * (IMG_SIZE[1] // PATCH_SIZE[1]) * (
    IMG_SIZE[2] // PATCH_SIZE[2])
PATCH_DIM = PATCH_SIZE[0] * PATCH_SIZE[1] * PATCH_SIZE[2] * IN_CH
SEQ_LEN = N_PATCHES + 1
ATTN_PAD = max(128, ((MERLIN_DIM + 127) // 128) * 128)   # lane-dense attn output

_SEQ = pltpu.CompilerParams(dimension_semantics=("arbitrary",))


# --------------------------- in-kernel helpers -------------------------------
def _ln(x, g, b):
    """Row-wise LayerNorm in f32; g/b are (1, E) rows broadcast over sublanes."""
    mean = jnp.mean(x, axis=-1, keepdims=True)
    var = jnp.mean((x - mean) ** 2, axis=-1, keepdims=True)
    return (x - mean) * jax.lax.rsqrt(var + LN_EPS) * g + b


def _softmax_fast(s):
    """Stable softmax over the last axis; approx reciprocal (EUP slot)."""
    s = s - jnp.max(s, axis=-1, keepdims=True)
    p = jnp.exp(s)
    return p * pl.reciprocal(jnp.sum(p, axis=-1, keepdims=True), approx=True)


def _gelu_exact(x):
    """Exact (erf) GELU; erf via Abramowitz&Stegun 7.1.26 (|err| < 1.5e-7).

    Polynomial form avoids relying on a lax.erf lowering in Mosaic while
    staying numerically equivalent to PyTorch's exact nn.GELU at f32 precision.
    """
    z = x * (2.0 ** -0.5)
    a = jnp.abs(z)
    t = 1.0 / (1.0 + 0.3275911 * a)
    poly = t * (0.254829592 + t * (-0.284496736 + t * (1.421413741
                + t * (-1.453152027 + t * 1.061405429))))
    erf_abs = 1.0 - poly * jnp.exp(-a * a)
    erf = jnp.where(z >= 0.0, erf_abs, -erf_abs)
    return 0.5 * x * (1.0 + erf)


# ------------------------------ Pallas kernels -------------------------------
def _embed_kernel(tok_ref, w_ref, b_ref, pos_ref, cls_ref, o_ref, *, batch,
                  n_patches):
    """Patch embedding + positional embedding + cls-token prepend (fused)."""
    y = jnp.dot(tok_ref[...].astype(WDTYPE), w_ref[...],
                preferred_element_type=jnp.float32) + b_ref[...]      # (B*Np, E)
    pos = pos_ref[...]                                                # (Np, E)
    cls = cls_ref[...]                                                # (1, E)
    rows = []
    for b in range(batch):                                            # static unroll
        rows.append(cls)                                              # row b*SEQ
        rows.append(y[b * n_patches:(b + 1) * n_patches] + pos)       # patch rows
    o_ref[...] = jnp.concatenate(rows, axis=0).astype(o_ref.dtype)    # one dense store


def _vit_stack_kernel(x_ref, ln1_g, ln1_b, wqkv_ref, wout_ref, bout_ref,
                      ln2_g, ln2_b, w1_ref, b1_ref, w2_ref, b2_ref,
                      o_ref, *, num_heads, batch):
    """One transformer layer per grid step; activation carried in o_ref (VMEM)."""
    layer = pl.program_id(0)

    @pl.when(layer == 0)
    def _():
        o_ref[...] = x_ref[...]          # load the embedded sequence once

    BL, E = o_ref.shape                  # BL = batch * seq_len (batch folded)
    L = BL // batch
    Dh = E // num_heads
    scale = Dh ** -0.5

    x = o_ref[...].astype(jnp.float32)                                 # (BL, E)

    # ---- self-attention branch (MONAI SABlock, qkv_bias=False) ----
    h = _ln(x, ln1_g[0], ln1_b[0])
    qkv = jnp.dot(h.astype(WDTYPE), wqkv_ref[0],
                  preferred_element_type=jnp.float32)                  # (BL, 3E)
    q = qkv[:, :E] * scale               # softmax scale hoisted out of head loop
    k = qkv[:, E:2 * E]
    v = qkv[:, 2 * E:]

    ctx_rows = []
    for b in range(batch):               # static unroll (B=2)
        r0 = b * L
        qb, kb, vb = q[r0:r0 + L], k[r0:r0 + L], v[r0:r0 + L]
        heads = []
        for hd in range(num_heads):      # static unroll, Dh=16 lane slices
            lo = hd * Dh
            s = jnp.einsum('qd,kd->qk',
                           qb[:, lo:lo + Dh].astype(WDTYPE),
                           kb[:, lo:lo + Dh].astype(WDTYPE),
                           preferred_element_type=jnp.float32)
            p = _softmax_fast(s)
            heads.append(jnp.dot(p.astype(WDTYPE),
                                 vb[:, lo:lo + Dh].astype(WDTYPE),
                                 preferred_element_type=jnp.float32))
        ctx_rows.append(jnp.concatenate(heads, axis=-1))               # (L, E)
    ctx = jnp.concatenate(ctx_rows, axis=0)                            # (BL, E)
    # ONE full-width out-projection instead of 8 narrow per-head matmuls.
    attn_out = jnp.dot(ctx.astype(WDTYPE), wout_ref[0],
                       preferred_element_type=jnp.float32) + bout_ref[0]
    x = x + attn_out                                                   # residual 1

    # ---- MLP branch (Linear -> exact GELU -> Linear) ----
    h2 = _ln(x, ln2_g[0], ln2_b[0])
    m = jnp.dot(h2.astype(WDTYPE), w1_ref[0],
                preferred_element_type=jnp.float32) + b1_ref[0]
    m = _gelu_exact(m)
    m = jnp.dot(m.astype(WDTYPE), w2_ref[0],
                preferred_element_type=jnp.float32) + b2_ref[0]
    o_ref[...] = (x + m).astype(o_ref.dtype)                           # residual 2


def _cross_attn_kernel(x_ref, kv_ref, lnf_g, lnf_b, pkv_w, pkv_b,
                       nq_g, nq_b, nkv_g, nkv_b, wq_ref, bq_ref,
                       wkv_ref, bkv_ref, wo_ref, bo_ref, no_g, no_b,
                       out_ref, attn_ref, *, num_heads, batch):
    """Fuses: ViT final LN -> drop cls -> project_kv -> norm_q/norm_kv ->
    nn.MultiheadAttention (batch_first) -> out_proj -> norm_out(out + query)."""
    seq = x_ref.shape[0] // batch
    Lq = seq - 1
    E = x_ref.shape[1]
    M = kv_ref.shape[1]
    Mpad = attn_ref.shape[2]
    Dh = E // num_heads
    scale = Dh ** -0.5

    x = x_ref[...].astype(jnp.float32)                                  # (B*seq, E)
    # Drop the cls row of every batch element (LN is row-wise, so applying the
    # final ViT norm only to the kept patch rows is equivalent).
    feat = jnp.concatenate(
        [x[b * seq + 1:(b + 1) * seq] for b in range(batch)], axis=0)   # (B*Lq, E)
    feat = _ln(feat, lnf_g[...], lnf_b[...])          # vision_tower.norm (fused)
    qn = _ln(feat, nq_g[...], nq_b[...])              # norm_q (residual uses this)

    q = jnp.dot(qn.astype(WDTYPE), wq_ref[...],
                preferred_element_type=jnp.float32) + bq_ref[...]
    q = q * scale                                     # hoisted softmax scale

    ctx_rows = []
    for b in range(batch):                            # static unroll (B=2)
        kv_col = kv_ref[b].astype(jnp.float32)        # (M, 1) merlin features
        kv_proj = kv_col * pkv_w[...] + pkv_b[...]    # project_kv: Linear(1, E)
        kvn = _ln(kv_proj, nkv_g[...], nkv_b[...])    # norm_kv
        kvp = jnp.dot(kvn.astype(WDTYPE), wkv_ref[...],
                      preferred_element_type=jnp.float32) + bkv_ref[...]
        kb = kvp[:, :E]
        vb = kvp[:, E:]
        qb = q[b * Lq:(b + 1) * Lq]

        heads = []
        w_acc = jnp.zeros((Lq, M), jnp.float32)
        for hd in range(num_heads):
            lo = hd * Dh
            s = jnp.einsum('qd,kd->qk',
                           qb[:, lo:lo + Dh].astype(WDTYPE),
                           kb[:, lo:lo + Dh].astype(WDTYPE),
                           preferred_element_type=jnp.float32)
            # Exact softmax here: the (head-averaged) probabilities are a
            # kernel output that should be exactly normalized.
            s = s - jnp.max(s, axis=-1, keepdims=True)
            p = jnp.exp(s)
            p = p / jnp.sum(p, axis=-1, keepdims=True)
            w_acc = w_acc + p
            heads.append(jnp.dot(p.astype(WDTYPE),
                                 vb[:, lo:lo + Dh].astype(WDTYPE),
                                 preferred_element_type=jnp.float32))
        ctx_rows.append(jnp.concatenate(heads, axis=-1))                # (Lq, E)

        # Lane-dense (padded to 128) store of the head-averaged weights.
        w_avg = w_acc * (1.0 / num_heads)
        if Mpad > M:
            w_avg = jnp.concatenate(
                [w_avg, jnp.zeros((Lq, Mpad - M), jnp.float32)], axis=-1)
        attn_ref[b] = w_avg

    ctx = jnp.concatenate(ctx_rows, axis=0)                             # (B*Lq, E)
    o = jnp.dot(ctx.astype(WDTYPE), wo_ref[...],
                preferred_element_type=jnp.float32) + bo_ref[...]       # out_proj
    o = _ln(o + qn, no_g[...], no_b[...])             # norm_out(out + norm_q(query))
    for b in range(batch):
        out_ref[b] = o[b * Lq:(b + 1) * Lq].astype(out_ref.dtype)


# ------------------------------ kernel wrappers -------------------------------
def _full(shape):
    return pl.BlockSpec(shape, lambda i, _s=shape: (0,) * len(_s))


def pallas_patch_embed(tokens, pe_w, pe_b, pos_emb, cls_token):
    """tokens: (B*Np, Pd) -> (B*SEQ, E) with the cls row prepended per batch."""
    BNp, Pd = tokens.shape
    Np, E = pos_emb.shape
    batch = BNp // Np
    kernel = functools.partial(_embed_kernel, batch=batch, n_patches=Np)
    return pl.pallas_call(
        kernel,
        out_shape=jax.ShapeDtypeStruct((batch * (Np + 1), E), DTYPE),
        grid=(1,),
        in_specs=[_full((BNp, Pd)), _full((Pd, E)), _full((1, E)),
                  _full((Np, E)), _full((1, E))],
        out_specs=_full((batch * (Np + 1), E)),
        compiler_params=_SEQ,
    )(tokens, pe_w, pe_b, pos_emb, cls_token)


def pallas_vit_stack(x, s):
    """All transformer layers in one pallas_call; grid axis = layer index."""
    BL, E = x.shape
    batch = BL // SEQ_LEN
    NL = s['w_qkv'].shape[0]
    kernel = functools.partial(_vit_stack_kernel, num_heads=NUM_HEADS, batch=batch)
    act = pl.BlockSpec((BL, E), lambda l: (0, 0))          # resident across layers

    def per_layer(r, c):                                    # one layer's weight tile
        return pl.BlockSpec((1, r, c), lambda l: (l, 0, 0))

    return pl.pallas_call(
        kernel,
        out_shape=jax.ShapeDtypeStruct((BL, E), x.dtype),
        grid=(NL,),
        in_specs=[act,
                  per_layer(1, E), per_layer(1, E),
                  per_layer(E, 3 * E), per_layer(E, E), per_layer(1, E),
                  per_layer(1, E), per_layer(1, E),
                  per_layer(E, MLP_DIM), per_layer(1, MLP_DIM),
                  per_layer(MLP_DIM, E), per_layer(1, E)],
        out_specs=act,
        # Layer axis carries the activation -> must be "arbitrary".
        compiler_params=pltpu.CompilerParams(dimension_semantics=("arbitrary",)),
    )(x, s['ln1_g'], s['ln1_b'], s['w_qkv'], s['w_out'], s['b_out'],
      s['ln2_g'], s['ln2_b'], s['mlp_w1'], s['mlp_b1'], s['mlp_w2'], s['mlp_b2'])


def pallas_cross_attention(x, kv, lnf_g, lnf_b, c):
    """x: (B*SEQ, E) raw ViT output (cls still present); kv: (B, M, 1)."""
    BL, E = x.shape
    Bx, M, _ = kv.shape
    Lq = BL // Bx - 1
    kernel = functools.partial(_cross_attn_kernel, num_heads=CROSS_HEADS, batch=Bx)
    out, attn = pl.pallas_call(
        kernel,
        out_shape=(jax.ShapeDtypeStruct((Bx, Lq, E), DTYPE),
                   jax.ShapeDtypeStruct((Bx, Lq, ATTN_PAD), jnp.float32)),
        grid=(1,),
        in_specs=[_full((BL, E)),
                  _full((Bx, M, 1)),
                  _full((1, E)), _full((1, E)),          # final ViT LayerNorm (fused)
                  _full((1, E)), _full((1, E)),          # project_kv w / b
                  _full((1, E)), _full((1, E)),          # norm_q
                  _full((1, E)), _full((1, E)),          # norm_kv
                  _full((E, E)), _full((1, E)),          # W_q, b_q
                  _full((E, 2 * E)), _full((1, 2 * E)),  # packed W_k|W_v, b_k|b_v
                  _full((E, E)), _full((1, E)),          # out_proj
                  _full((1, E)), _full((1, E))],         # norm_out
        out_specs=(_full((Bx, Lq, E)), _full((Bx, Lq, ATTN_PAD))),
        compiler_params=_SEQ,
    )(x, kv, lnf_g, lnf_b, c['pkv_w'], c['pkv_b'], c['nq_g'], c['nq_b'],
      c['nkv_g'], c['nkv_b'], c['wq'], c['bq'], c['wkv'], c['bkv'],
      c['wo'], c['bo'], c['no_g'], c['no_b'])
    return out, attn[:, :, :M]          # slice off the lane padding


# ------------------------------ model pieces ---------------------------------
def patchify(x, patch_size):
    # "b c (h p1) (w p2) (d p3) -> b (h w d) (p1 p2 p3 c)"  (MONAI perceptron embed)
    Bx, C, H, W, D = x.shape
    p1, p2, p3 = patch_size
    nh, nw, nd = H // p1, W // p2, D // p3
    x = x.reshape(Bx, C, nh, p1, nw, p2, nd, p3)
    x = x.transpose(0, 2, 4, 6, 3, 5, 7, 1)               # b nh nw nd p1 p2 p3 c
    return x.reshape(Bx, nh * nw * nd, p1 * p2 * p3 * C)


def vit_merlin_forward(params, images, contours):
    del contours  # use_contour=False path of ViT.forward
    Bx = images.shape[0]

    # ---- ViT: patch embedding (+pos emb +cls fused), all blocks in one kernel ----
    tokens = patchify(images, PATCH_SIZE).reshape(Bx * N_PATCHES, PATCH_DIM)
    x = pallas_patch_embed(tokens, params['pe_w'], params['pe_b'],
                           params['pos_emb'], params['cls_token'])      # (B*SEQ, E)
    x = pallas_vit_stack(x, params['stack'])                            # (B*SEQ, E)

    # ---- Merlin ----
    # TODO(synk): Merlin is an external pretrained CT encoder (no source given);
    #             replaced by a deterministic linear stand-in producing (B, M).
    #             Left to XLA (a standalone N=32 Pallas launch is pure overhead).
    flat = images.reshape(Bx, -1)
    merlin_features = jnp.dot(flat, params['merlin_w']) + params['merlin_b']
    kv = merlin_features[:, :, None]                                    # (B, M, 1)

    # ---- CrossAttentionBlock (fused; also applies the final ViT LN, drops cls) ----
    return pallas_cross_attention(x, kv, params['lnf_g'], params['lnf_b'],
                                  params['cross'])


# ------------------------------ parameter init --------------------------------
def init_params(key):
    keys = iter(jax.random.split(key, 40))

    def w(shape, scale=0.02, dtype=WDTYPE):
        return (jax.random.normal(next(keys), shape, jnp.float32) * scale).astype(dtype)

    def zeros(shape):
        return jnp.zeros(shape, DTYPE)

    def ones(shape):
        return jnp.ones(shape, DTYPE)

    NL = NUM_LAYERS
    # Per-layer params stacked on a leading layer dim (selected by the layer grid
    # axis). Matmul weights are stored bf16; biases / LN params stay f32 rows.
    stack = dict(
        ln1_g=ones((NL, 1, HIDDEN)), ln1_b=zeros((NL, 1, HIDDEN)),
        w_qkv=w((NL, HIDDEN, 3 * HIDDEN)),                     # qkv_bias=False
        w_out=w((NL, HIDDEN, HIDDEN)), b_out=zeros((NL, 1, HIDDEN)),
        ln2_g=ones((NL, 1, HIDDEN)), ln2_b=zeros((NL, 1, HIDDEN)),
        mlp_w1=w((NL, HIDDEN, MLP_DIM)), mlp_b1=zeros((NL, 1, MLP_DIM)),
        mlp_w2=w((NL, MLP_DIM, HIDDEN)), mlp_b2=zeros((NL, 1, HIDDEN)),
    )

    cross = dict(
        pkv_w=w((1, HIDDEN), dtype=DTYPE), pkv_b=zeros((1, HIDDEN)),   # nn.Linear(1, E)
        nq_g=ones((1, HIDDEN)), nq_b=zeros((1, HIDDEN)),
        nkv_g=ones((1, HIDDEN)), nkv_b=zeros((1, HIDDEN)),
        wq=w((HIDDEN, HIDDEN)), bq=zeros((1, HIDDEN)),
        wkv=w((HIDDEN, 2 * HIDDEN)), bkv=zeros((1, 2 * HIDDEN)),       # packed K|V in-proj
        wo=w((HIDDEN, HIDDEN)), bo=zeros((1, HIDDEN)),
        no_g=ones((1, HIDDEN)), no_b=zeros((1, HIDDEN)),
    )

    flat_dim = IN_CH * IMG_SIZE[0] * IMG_SIZE[1] * IMG_SIZE[2]
    return dict(
        pe_w=w((PATCH_DIM, HIDDEN)), pe_b=zeros((1, HIDDEN)),
        pos_emb=w((N_PATCHES, HIDDEN), dtype=DTYPE),
        cls_token=zeros((1, HIDDEN)),                          # nn.Parameter(torch.zeros)
        stack=stack,
        lnf_g=ones((1, HIDDEN)), lnf_b=zeros((1, HIDDEN)),
        merlin_w=w((flat_dim, MERLIN_DIM), dtype=DTYPE),
        merlin_b=jnp.zeros((MERLIN_DIM,), DTYPE),
        cross=cross,
    )


# ----------------------------------- main -------------------------------------
if __name__ == "__main__":
    root = jax.random.PRNGKey(0)
    pkey, xkey, ckey = jax.random.split(root, 3)
    params = init_params(pkey)
    images = jax.random.normal(xkey, (B, IN_CH) + IMG_SIZE, DTYPE)
    contours = jax.random.normal(ckey, (B, 1) + IMG_SIZE, DTYPE)  # unused (use_contour=False)

    fwd = jax.jit(vit_merlin_forward)
    out, attn_weights = fwd(params, images, contours)
    jax.block_until_ready((out, attn_weights))

    assert out.shape == (B, N_PATCHES, HIDDEN)
    assert attn_weights.shape == (B, N_PATCHES, MERLIN_DIM)
    assert bool(jnp.all(jnp.isfinite(out))) and bool(jnp.all(jnp.isfinite(attn_weights)))
    print("KERNEL_OK")
</pallas_src>

<mosaic_0001>
module attributes {stable_mosaic.version = 11 : i64} {
  func.func @_embed_kernel(%arg0: i32, %arg1: memref<16x512xf32, #tpu.memory_space<vmem>>, %arg2: memref<512x128xbf16, #tpu.memory_space<vmem>>, %arg3: memref<1x128xf32, #tpu.memory_space<vmem>>, %arg4: memref<8x128xf32, #tpu.memory_space<vmem>>, %arg5: memref<1x128xf32, #tpu.memory_space<vmem>>, %arg6: memref<18x128xf32, #tpu.memory_space<vmem>>) attributes {dimension_semantics = [#tpu.dimension_semantics<arbitrary>], iteration_bounds = array<i64: 1>, scalar_prefetch = 0 : i64, scratch_operands = 0 : i64, tpu.core_type = #tpu.core_type<tc>, window_params = [{pipeline_mode = #tpu.pipeline_mode<synchronous>, transform_indices = @transform_0, window_bounds = array<i64: 16, 512>}, {pipeline_mode = #tpu.pipeline_mode<synchronous>, transform_indices = @transform_1, window_bounds = array<i64: 512, 128>}, {pipeline_mode = #tpu.pipeline_mode<synchronous>, transform_indices = @transform_2, window_bounds = array<i64: 1, 128>}, {pipeline_mode = #tpu.pipeline_mode<synchronous>, transform_indices = @transform_3, window_bounds = array<i64: 8, 128>}, {pipeline_mode = #tpu.pipeline_mode<synchronous>, transform_indices = @transform_4, window_bounds = array<i64: 1, 128>}, {pipeline_mode = #tpu.pipeline_mode<synchronous>, transform_indices = @transform_5, window_bounds = array<i64: 18, 128>}]} {
    %c0 = arith.constant 0 : index
    %c0_0 = arith.constant 0 : index
    %0 = vector.load %arg1[%c0, %c0_0] : memref<16x512xf32, #tpu.memory_space<vmem>>, vector<16x512xf32>
    %1 = arith.truncf %0 : vector<16x512xf32> to vector<16x512xbf16>
    %c0_1 = arith.constant 0 : index
    %c0_2 = arith.constant 0 : index
    %2 = vector.load %arg2[%c0_1, %c0_2] : memref<512x128xbf16, #tpu.memory_space<vmem>>, vector<512x128xbf16>
    %cst = arith.constant dense<0.000000e+00> : vector<16x128xf32>
    %3 = tpu.matmul %1, %2, %cst {dimension_numbers = #tpu.dot_dimension_numbers<[1], [0], [0], [1], [0, 0, 1, 1], [], []>} : vector<16x512xbf16>, vector<512x128xbf16>, vector<16x128xf32> -> vector<16x128xf32>
    %c0_3 = arith.constant 0 : index
    %c0_4 = arith.constant 0 : index
    %4 = vector.load %arg3[%c0_3, %c0_4] : memref<1x128xf32, #tpu.memory_space<vmem>>, vector<1x128xf32>
    %5 = vector.broadcast %4 : vector<1x128xf32> to vector<16x128xf32>
    %6 = arith.addf %3, %5 : vector<16x128xf32>
    %c0_5 = arith.constant 0 : index
    %c0_6 = arith.constant 0 : index
    %7 = vector.load %arg4[%c0_5, %c0_6] : memref<8x128xf32, #tpu.memory_space<vmem>>, vector<8x128xf32>
    %c0_7 = arith.constant 0 : index
    %c0_8 = arith.constant 0 : index
    %8 = vector.load %arg5[%c0_7, %c0_8] : memref<1x128xf32, #tpu.memory_space<vmem>>, vector<1x128xf32>
    %9 = vector.extract_strided_slice %6 {offsets = [0, 0], sizes = [8, 128], strides = [1, 1]} : vector<16x128xf32> to vector<8x128xf32>
    %10 = arith.addf %9, %7 : vector<8x128xf32>
    %11 = vector.extract_strided_slice %6 {offsets = [8, 0], sizes = [8, 128], strides = [1, 1]} : vector<16x128xf32> to vector<8x128xf32>
    %12 = arith.addf %11, %7 : vector<8x128xf32>
    %13 = tpu.concatenate %8, %10, %8, %12 in 0 : vector<1x128xf32>, vector<8x128xf32>, vector<1x128xf32>, vector<8x128xf32> -> vector<18x128xf32>
    %c0_9 = arith.constant 0 : index
    %c0_10 = arith.constant 0 : index
    %14 = vector.load %arg6[%c0_9, %c0_10] : memref<18x128xf32, #tpu.memory_space<vmem>>, vector<18x128xf32>
    tpu.vector_store %arg6[%c0_9, %c0_10], %13 {strides = array<i32>} : memref<18x128xf32, #tpu.memory_space<vmem>>, vector<18x128xf32>,
    return
  }
  func.func @transform_0(%arg0: i32) -> (i32, i32) {
    %c0_i32 = arith.constant 0 : i32
    %c0_i32_0 = arith.constant 0 : i32
    %c0_i32_1 = arith.constant 0 : i32
    return %c0_i32, %c0_i32_0 : i32, i32
  }
  func.func @transform_1(%arg0: i32) -> (i32, i32) {
    %c0_i32 = arith.constant 0 : i32
    %c0_i32_0 = arith.constant 0 : i32
    %c0_i32_1 = arith.constant 0 : i32
    return %c0_i32, %c0_i32_0 : i32, i32
  }
  func.func @transform_2(%arg0: i32) -> (i32, i32) {
    %c0_i32 = arith.constant 0 : i32
    %c0_i32_0 = arith.constant 0 : i32
    %c0_i32_1 = arith.constant 0 : i32
    return %c0_i32, %c0_i32_0 : i32, i32
  }
  func.func @transform_3(%arg0: i32) -> (i32, i32) {
    %c0_i32 = arith.constant 0 : i32
    %c0_i32_0 = arith.constant 0 : i32
    %c0_i32_1 = arith.constant 0 : i32
    return %c0_i32, %c0_i32_0 : i32, i32
  }
  func.func @transform_4(%arg0: i32) -> (i32, i32) {
    %c0_i32 = arith.constant 0 : i32
    %c0_i32_0 = arith.constant 0 : i32
    %c0_i32_1 = arith.constant 0 : i32
    return %c0_i32, %c0_i32_0 : i32, i32
  }
  func.func @transform_5(%arg0: i32) -> (i32, i32) {
    %c0_i32 = arith.constant 0 : i32
    %c0_i32_0 = arith.constant 0 : i32
    %c0_i32_1 = arith.constant 0 : i32
    return %c0_i32, %c0_i32_0 : i32, i32
  }
}

module attributes {stable_mosaic.version = 11 : i64} {
  func.func @_vit_stack_kernel(%arg0: i32, %arg1: memref<18x128xf32, #tpu.memory_space<vmem>>, %arg2: memref<1x1x128xf32, #tpu.memory_space<vmem>>, %arg3: memref<1x1x128xf32, #tpu.memory_space<vmem>>, %arg4: memref<1x128x384xbf16, #tpu.memory_space<vmem>>, %arg5: memref<1x128x128xbf16, #tpu.memory_space<vmem>>, %arg6: memref<1x1x128xf32, #tpu.memory_space<vmem>>, %arg7: memref<1x1x128xf32, #tpu.memory_space<vmem>>, %arg8: memref<1x1x128xf32, #tpu.memory_space<vmem>>, %arg9: memref<1x128x256xbf16, #tpu.memory_space<vmem>>, %arg10: memref<1x1x256xf32, #tpu.memory_space<vmem>>, %arg11: memref<1x256x128xbf16, #tpu.memory_space<vmem>>, %arg12: memref<1x1x128xf32, #tpu.memory_space<vmem>>, %arg13: memref<18x128xf32, #tpu.memory_space<vmem>>) attributes {dimension_semantics = [#tpu.dimension_semantics<arbitrary>], iteration_bounds = array<i64: 2>, scalar_prefetch = 0 : i64, scratch_operands = 0 : i64, tpu.core_type = #tpu.core_type<tc>, window_params = [{pipeline_mode = #tpu.pipeline_mode<synchronous>, transform_indices = @transform_0, window_bounds = array<i64: 18, 128>}, {transform_indices = @transform_1, window_bounds = array<i64: 1, 1, 128>}, {transform_indices = @transform_2, window_bounds = array<i64: 1, 1, 128>}, {transform_indices = @transform_3, window_bounds = array<i64: 1, 128, 384>}, {transform_indices = @transform_4, window_bounds = array<i64: 1, 128, 128>}, {transform_indices = @transform_5, window_bounds = array<i64: 1, 1, 128>}, {transform_indices = @transform_6, window_bounds = array<i64: 1, 1, 128>}, {transform_indices = @transform_7, window_bounds = array<i64: 1, 1, 128>}, {transform_indices = @transform_8, window_bounds = array<i64: 1, 128, 256>}, {transform_indices = @transform_9, window_bounds = array<i64: 1, 1, 256>}, {transform_indices = @transform_10, window_bounds = array<i64: 1, 256, 128>}, {transform_indices = @transform_11, window_bounds = array<i64: 1, 1, 128>}, {pipeline_mode = #tpu.pipeline_mode<synchronous>, transform_indices = @transform_12, window_bounds = array<i64: 18, 128>}]} {
    %c0_i32 = arith.constant 0 : i32
    %0 = arith.cmpi eq, %arg0, %c0_i32 : i32
    %1 = arith.extui %0 : i1 to i32
    %c0_i32_0 = arith.constant 0 : i32
    %2 = arith.cmpi ne, %1, %c0_i32_0 : i32
    scf.if %2 {
      %c0_130 = arith.constant 0 : index
      %c0_131 = arith.constant 0 : index
      %445 = vector.load %arg1[%c0_130, %c0_131] : memref<18x128xf32, #tpu.memory_space<vmem>>, vector<18x128xf32>
      %c0_132 = arith.constant 0 : index
      %c0_133 = arith.constant 0 : index
      %446 = vector.load %arg13[%c0_132, %c0_133] : memref<18x128xf32, #tpu.memory_space<vmem>>, vector<18x128xf32>
      tpu.vector_store %arg13[%c0_132, %c0_133], %445 {strides = array<i32>} : memref<18x128xf32, #tpu.memory_space<vmem>>, vector<18x128xf32>,
    } else {
    }
    %c0 = arith.constant 0 : index
    %c0_1 = arith.constant 0 : index
    %3 = vector.load %arg13[%c0, %c0_1] : memref<18x128xf32, #tpu.memory_space<vmem>>, vector<18x128xf32>
    %c0_2 = arith.constant 0 : index
    %c0_3 = arith.constant 0 : index
    %c0_4 = arith.constant 0 : index
    %4 = vector.load %arg2[%c0_2, %c0_3, %c0_4] : memref<1x1x128xf32, #tpu.memory_space<vmem>>, vector<1x1x128xf32>
    %5 = vector.shape_cast %4 : vector<1x1x128xf32> to vector<1x128xf32>
    %c0_5 = arith.constant 0 : index
    %c0_6 = arith.constant 0 : index
    %c0_7 = arith.constant 0 : index
    %6 = vector.load %arg3[%c0_5, %c0_6, %c0_7] : memref<1x1x128xf32, #tpu.memory_space<vmem>>, vector<1x1x128xf32>
    %7 = vector.shape_cast %6 : vector<1x1x128xf32> to vector<1x128xf32>
    %cst = arith.constant dense<0.000000e+00> : vector<18xf32>
    %8 = vector.multi_reduction <add>, %3, %cst [1] : vector<18x128xf32> to vector<18xf32>
    %9 = vector.shape_cast %8 : vector<18xf32> to vector<18x1xf32>
    %cst_8 = arith.constant 1.280000e+02 : f32
    %10 = vector.broadcast %cst_8 : f32 to vector<18x1xf32>
    %11 = arith.divf %9, %10 : vector<18x1xf32>
    %12 = vector.broadcast %11 : vector<18x1xf32> to vector<18x128xf32>
    %13 = arith.subf %3, %12 : vector<18x128xf32>
    %14 = arith.mulf %13, %13 : vector<18x128xf32>
    %cst_9 = arith.constant dense<0.000000e+00> : vector<18xf32>
    %15 = vector.multi_reduction <add>, %14, %cst_9 [1] : vector<18x128xf32> to vector<18xf32>
    %16 = vector.shape_cast %15 : vector<18xf32> to vector<18x1xf32>
    %cst_10 = arith.constant 1.280000e+02 : f32
    %17 = vector.broadcast %cst_10 : f32 to vector<18x1xf32>
    %18 = arith.divf %16, %17 : vector<18x1xf32>
    %19 = vector.broadcast %11 : vector<18x1xf32> to vector<18x128xf32>
    %20 = arith.subf %3, %19 : vector<18x128xf32>
    %cst_11 = arith.constant 9.99999974E-6 : f32
    %21 = vector.broadcast %cst_11 : f32 to vector<18x1xf32>
    %22 = arith.addf %18, %21 : vector<18x1xf32>
    %23 = math.rsqrt %22 : vector<18x1xf32>
    %24 = vector.broadcast %23 : vector<18x1xf32> to vector<18x128xf32>
    %25 = arith.mulf %20, %24 : vector<18x128xf32>
    %26 = vector.broadcast %5 : vector<1x128xf32> to vector<18x128xf32>
    %27 = arith.mulf %25, %26 : vector<18x128xf32>
    %28 = vector.broadcast %7 : vector<1x128xf32> to vector<18x128xf32>
    %29 = arith.addf %27, %28 : vector<18x128xf32>
    %30 = arith.truncf %29 : vector<18x128xf32> to vector<18x128xbf16>
    %c0_12 = arith.constant 0 : index
    %c0_13 = arith.constant 0 : index
    %c0_14 = arith.constant 0 : index
    %31 = vector.load %arg4[%c0_12, %c0_13, %c0_14] : memref<1x128x384xbf16, #tpu.memory_space<vmem>>, vector<1x128x384xbf16>
    %32 = vector.shape_cast %31 : vector<1x128x384xbf16> to vector<128x384xbf16>
    %cst_15 = arith.constant dense<0.000000e+00> : vector<18x384xf32>
    %33 = tpu.matmul %30, %32, %cst_15 {dimension_numbers = #tpu.dot_dimension_numbers<[1], [0], [0], [1], [0, 0, 1, 1], [], []>} : vector<18x128xbf16>, vector<128x384xbf16>, vector<18x384xf32> -> vector<18x384xf32>
    %34 = vector.extract_strided_slice %33 {offsets = [0, 0], sizes = [18, 128], strides = [1, 1]} : vector<18x384xf32> to vector<18x128xf32>
    %cst_16 = arith.constant 2.500000e-01 : f32
    %35 = vector.broadcast %cst_16 : f32 to vector<18x128xf32>
    %36 = arith.mulf %34, %35 : vector<18x128xf32>
    %37 = vector.extract_strided_slice %33 {offsets = [0, 128], sizes = [18, 128], strides = [1, 1]} : vector<18x384xf32> to vector<18x128xf32>
    %38 = vector.extract_strided_slice %33 {offsets = [0, 256], sizes = [18, 128], strides = [1, 1]} : vector<18x384xf32> to vector<18x128xf32>
    %39 = vector.extract_strided_slice %36 {offsets = [0, 0], sizes = [9, 128], strides = [1, 1]} : vector<18x128xf32> to vector<9x128xf32>
    %40 = vector.extract_strided_slice %37 {offsets = [0, 0], sizes = [9, 128], strides = [1, 1]} : vector<18x128xf32> to vector<9x128xf32>
    %41 = vector.extract_strided_slice %38 {offsets = [0, 0], sizes = [9, 128], strides = [1, 1]} : vector<18x128xf32> to vector<9x128xf32>
    %42 = vector.extract_strided_slice %39 {offsets = [0, 0], sizes = [9, 16], strides = [1, 1]} : vector<9x128xf32> to vector<9x16xf32>
    %43 = arith.truncf %42 : vector<9x16xf32> to vector<9x16xbf16>
    %44 = vector.extract_strided_slice %40 {offsets = [0, 0], sizes = [9, 16], strides = [1, 1]} : vector<9x128xf32> to vector<9x16xf32>
    %45 = arith.truncf %44 : vector<9x16xf32> to vector<9x16xbf16>
    "tpu.trace_start"() <{level = 10 : i32, message = "qd,kd->qk"}> : () -> ()
    %cst_17 = arith.constant dense<0.000000e+00> : vector<9x9xf32>
    %46 = tpu.matmul %43, %45, %cst_17 {dimension_numbers = #tpu.dot_dimension_numbers<[1], [1], [0], [0], [0, 0, 1, 0], [], []>} : vector<9x16xbf16>, vector<9x16xbf16>, vector<9x9xf32> -> vector<9x9xf32>
    "tpu.trace_stop"() : () -> ()
    %cst_18 = arith.constant dense<0xFF800000> : vector<9xf32>
    %47 = vector.multi_reduction <maximumf>, %46, %cst_18 [1] : vector<9x9xf32> to vector<9xf32>
    %48 = vector.shape_cast %47 : vector<9xf32> to vector<9x1xf32>
    %49 = vector.broadcast %48 : vector<9x1xf32> to vector<9x9xf32>
    %50 = arith.subf %46, %49 : vector<9x9xf32>
    %51 = math.exp %50 : vector<9x9xf32>
    %cst_19 = arith.constant dense<0.000000e+00> : vector<9xf32>
    %52 = vector.multi_reduction <add>, %51, %cst_19 [1] : vector<9x9xf32> to vector<9xf32>
    %53 = vector.shape_cast %52 : vector<9xf32> to vector<9x1xf32>
    %54 = tpu.reciprocal %53 {approx = true} : vector<9x1xf32> -> vector<9x1xf32>
    %55 = vector.broadcast %54 : vector<9x1xf32> to vector<9x9xf32>
    %56 = arith.mulf %51, %55 : vector<9x9xf32>
    %57 = arith.truncf %56 : vector<9x9xf32> to vector<9x9xbf16>
    %58 = vector.extract_strided_slice %41 {offsets = [0, 0], sizes = [9, 16], strides = [1, 1]} : vector<9x128xf32> to vector<9x16xf32>
    %59 = arith.truncf %58 : vector<9x16xf32> to vector<9x16xbf16>
    %cst_20 = arith.constant dense<0.000000e+00> : vector<9x16xf32>
    %60 = tpu.matmul %57, %59, %cst_20 {dimension_numbers = #tpu.dot_dimension_numbers<[1], [0], [0], [1], [0, 0, 1, 1], [], []>} : vector<9x9xbf16>, vector<9x16xbf16>, vector<9x16xf32> -> vector<9x16xf32>
    %61 = vector.extract_strided_slice %39 {offsets = [0, 16], sizes = [9, 16], strides = [1, 1]} : vector<9x128xf32> to vector<9x16xf32>
    %62 = arith.truncf %61 : vector<9x16xf32> to vector<9x16xbf16>
    %63 = vector.extract_strided_slice %40 {offsets = [0, 16], sizes = [9, 16], strides = [1, 1]} : vector<9x128xf32> to vector<9x16xf32>
    %64 = arith.truncf %63 : vector<9x16xf32> to vector<9x16xbf16>
    "tpu.trace_start"() <{level = 10 : i32, message = "qd,kd->qk"}> : () -> ()
    %cst_21 = arith.constant dense<0.000000e+00> : vector<9x9xf32>
    %65 = tpu.matmul %62, %64, %cst_21 {dimension_numbers = #tpu.dot_dimension_numbers<[1], [1], [0], [0], [0, 0, 1, 0], [], []>} : vector<9x16xbf16>, vector<9x16xbf16>, vector<9x9xf32> -> vector<9x9xf32>
    "tpu.trace_stop"() : () -> ()
    %cst_22 = arith.constant dense<0xFF800000> : vector<9xf32>
    %66 = vector.multi_reduction <maximumf>, %65, %cst_22 [1] : vector<9x9xf32> to vector<9xf32>
    %67 = vector.shape_cast %66 : vector<9xf32> to vector<9x1xf32>
    %68 = vector.broadcast %67 : vector<9x1xf32> to vector<9x9xf32>
    %69 = arith.subf %65, %68 : vector<9x9xf32>
    %70 = math.exp %69 : vector<9x9xf32>
    %cst_23 = arith.constant dense<0.000000e+00> : vector<9xf32>
    %71 = vector.multi_reduction <add>, %70, %cst_23 [1] : vector<9x9xf32> to vector<9xf32>
    %72 = vector.shape_cast %71 : vector<9xf32> to vector<9x1xf32>
    %73 = tpu.reciprocal %72 {approx = true} : vector<9x1xf32> -> vector<9x1xf32>
    %74 = vector.broadcast %73 : vector<9x1xf32> to vector<9x9xf32>
    %75 = arith.mulf %70, %74 : vector<9x9xf32>
    %76 = arith.truncf %75 : vector<9x9xf32> to vector<9x9xbf16>
    %77 = vector.extract_strided_slice %41 {offsets = [0, 16], sizes = [9, 16], strides = [1, 1]} : vector<9x128xf32> to vector<9x16xf32>
    %78 = arith.truncf %77 : vector<9x16xf32> to vector<9x16xbf16>
    %cst_24 = arith.constant dense<0.000000e+00> : vector<9x16xf32>
    %79 = tpu.matmul %76, %78, %cst_24 {dimension_numbers = #tpu.dot_dimension_numbers<[1], [0], [0], [1], [0, 0, 1, 1], [], []>} : vector<9x9xbf16>, vector<9x16xbf16>, vector<9x16xf32> -> vector<9x16xf32>
    %80 = vector.extract_strided_slice %39 {offsets = [0, 32], sizes = [9, 16], strides = [1, 1]} : vector<9x128xf32> to vector<9x16xf32>
    %81 = arith.truncf %80 : vector<9x16xf32> to vector<9x16xbf16>
    %82 = vector.extract_strided_slice %40 {offsets = [0, 32], sizes = [9, 16], strides = [1, 1]} : vector<9x128xf32> to vector<9x16xf32>
    %83 = arith.truncf %82 : vector<9x16xf32> to vector<9x16xbf16>
    "tpu.trace_start"() <{level = 10 : i32, message = "qd,kd->qk"}> : () -> ()
    %cst_25 = arith.constant dense<0.000000e+00> : vector<9x9xf32>
    %84 = tpu.matmul %81, %83, %cst_25 {dimension_numbers = #tpu.dot_dimension_numbers<[1], [1], [0], [0], [0, 0, 1, 0], [], []>} : vector<9x16xbf16>, vector<9x16xbf16>, vector<9x9xf32> -> vector<9x9xf32>
    "tpu.trace_stop"() : () -> ()
    %cst_26 = arith.constant dense<0xFF800000> : vector<9xf32>
    %85 = vector.multi_reduction <maximumf>, %84, %cst_26 [1] : vector<9x9xf32> to vector<9xf32>
    %86 = vector.shape_cast %85 : vector<9xf32> to vector<9x1xf32>
    %87 = vector.broadcast %86 : vector<9x1xf32> to vector<9x9xf32>
    %88 = arith.subf %84, %87 : vector<9x9xf32>
    %89 = math.exp %88 : vector<9x9xf32>
    %cst_27 = arith.constant dense<0.000000e+00> : vector<9xf32>
    %90 = vector.multi_reduction <add>, %89, %cst_27 [1] : vector<9x9xf32> to vector<9xf32>
    %91 = vector.shape_cast %90 : vector<9xf32> to vector<9x1xf32>
    %92 = tpu.reciprocal %91 {approx = true} : vector<9x1xf32> -> vector<9x1xf32>
    %93 = vector.broadcast %92 : vector<9x1xf32> to vector<9x9xf32>
    %94 = arith.mulf %89, %93 : vector<9x9xf32>
    %95 = arith.truncf %94 : vector<9x9xf32> to vector<9x9xbf16>
    %96 = vector.extract_strided_slice %41 {offsets = [0, 32], sizes = [9, 16], strides = [1, 1]} : vector<9x128xf32> to vector<9x16xf32>
    %97 = arith.truncf %96 : vector<9x16xf32> to vector<9x16xbf16>
    %cst_28 = arith.constant dense<0.000000e+00> : vector<9x16xf32>
    %98 = tpu.matmul %95, %97, %cst_28 {dimension_numbers = #tpu.dot_dimension_numbers<[1], [0], [0], [1], [0, 0, 1, 1], [], []>} : vector<9x9xbf16>, vector<9x16xbf16>, vector<9x16xf32> -> vector<9x16xf32>
    %99 = vector.extract_strided_slice %39 {offsets = [0, 48], sizes = [9, 16], strides = [1, 1]} : vector<9x128xf32> to vector<9x16xf32>
    %100 = arith.truncf %99 : vector<9x16xf32> to vector<9x16xbf16>
    %101 = vector.extract_strided_slice %40 {offsets = [0, 48], sizes = [9, 16], strides = [1, 1]} : vector<9x128xf32> to vector<9x16xf32>
    %102 = arith.truncf %101 : vector<9x16xf32> to vector<9x16xbf16>
    "tpu.trace_start"() <{level = 10 : i32, message = "qd,kd->qk"}> : () -> ()
    %cst_29 = arith.constant dense<0.000000e+00> : vector<9x9xf32>
    %103 = tpu.matmul %100, %102, %cst_29 {dimension_numbers = #tpu.dot_dimension_numbers<[1], [1], [0], [0], [0, 0, 1, 0], [], []>} : vector<9x16xbf16>, vector<9x16xbf16>, vector<9x9xf32> -> vector<9x9xf32>
    "tpu.trace_stop"() : () -> ()
    %cst_30 = arith.constant dense<0xFF800000> : vector<9xf32>
    %104 = vector.multi_reduction <maximumf>, %103, %cst_30 [1] : vector<9x9xf32> to vector<9xf32>
    %105 = vector.shape_cast %104 : vector<9xf32> to vector<9x1xf32>
    %106 = vector.broadcast %105 : vector<9x1xf32> to vector<9x9xf32>
    %107 = arith.subf %103, %106 : vector<9x9xf32>
    %108 = math.exp %107 : vector<9x9xf32>
    %cst_31 = arith.constant dense<0.000000e+00> : vector<9xf32>
    %109 = vector.multi_reduction <add>, %108, %cst_31 [1] : vector<9x9xf32> to vector<9xf32>
    %110 = vector.shape_cast %109 : vector<9xf32> to vector<9x1xf32>
    %111 = tpu.reciprocal %110 {approx = true} : vector<9x1xf32> -> vector<9x1xf32>
    %112 = vector.broadcast %111 : vector<9x1xf32> to vector<9x9xf32>
    %113 = arith.mulf %108, %112 : vector<9x9xf32>
    %114 = arith.truncf %113 : vector<9x9xf32> to vector<9x9xbf16>
    %115 = vector.extract_strided_slice %41 {offsets = [0, 48], sizes = [9, 16], strides = [1, 1]} : vector<9x128xf32> to vector<9x16xf32>
    %116 = arith.truncf %115 : vector<9x16xf32> to vector<9x16xbf16>
    %cst_32 = arith.constant dense<0.000000e+00> : vector<9x16xf32>
    %117 = tpu.matmul %114, %116, %cst_32 {dimension_numbers = #tpu.dot_dimension_numbers<[1], [0], [0], [1], [0, 0, 1, 1], [], []>} : vector<9x9xbf16>, vector<9x16xbf16>, vector<9x16xf32> -> vector<9x16xf32>
    %118 = vector.extract_strided_slice %39 {offsets = [0, 64], sizes = [9, 16], strides = [1, 1]} : vector<9x128xf32> to vector<9x16xf32>
    %119 = arith.truncf %118 : vector<9x16xf32> to vector<9x16xbf16>
    %120 = vector.extract_strided_slice %40 {offsets = [0, 64], sizes = [9, 16], strides = [1, 1]} : vector<9x128xf32> to vector<9x16xf32>
    %121 = arith.truncf %120 : vector<9x16xf32> to vector<9x16xbf16>
    "tpu.trace_start"() <{level = 10 : i32, message = "qd,kd->qk"}> : () -> ()
    %cst_33 = arith.constant dense<0.000000e+00> : vector<9x9xf32>
    %122 = tpu.matmul %119, %121, %cst_33 {dimension_numbers = #tpu.dot_dimension_numbers<[1], [1], [0], [0], [0, 0, 1, 0], [], []>} : vector<9x16xbf16>, vector<9x16xbf16>, vector<9x9xf32> -> vector<9x9xf32>
    "tpu.trace_stop"() : () -> ()
    %cst_34 = arith.constant dense<0xFF800000> : vector<9xf32>
    %123 = vector.multi_reduction <maximumf>, %122, %cst_34 [1] : vector<9x9xf32> to vector<9xf32>
    %124 = vector.shape_cast %123 : vector<9xf32> to vector<9x1xf32>
    %125 = vector.broadcast %124 : vector<9x1xf32> to vector<9x9xf32>
    %126 = arith.subf %122, %125 : vector<9x9xf32>
    %127 = math.exp %126 : vector<9x9xf32>
    %cst_35 = arith.constant dense<0.000000e+00> : vector<9xf32>
    %128 = vector.multi_reduction <add>, %127, %cst_35 [1] : vector<9x9xf32> to vector<9xf32>
    %129 = vector.shape_cast %128 : vector<9xf32> to vector<9x1xf32>
    %130 = tpu.reciprocal %129 {approx = true} : vector<9x1xf32> -> vector<9x1xf32>
    %131 = vector.broadcast %130 : vector<9x1xf32> to vector<9x9xf32>
    %132 = arith.mulf %127, %131 : vector<9x9xf32>
    %133 = arith.truncf %132 : vector<9x9xf32> to vector<9x9xbf16>
    %134 = vector.extract_strided_slice %41 {offsets = [0, 64], sizes = [9, 16], strides = [1, 1]} : vector<9x128xf32> to vector<9x16xf32>
    %135 = arith.truncf %134 : vector<9x16xf32> to vector<9x16xbf16>
    %cst_36 = arith.constant dense<0.000000e+00> : vector<9x16xf32>
    %136 = tpu.matmul %133, %135, %cst_36 {dimension_numbers = #tpu.dot_dimension_numbers<[1], [0], [0], [1], [0, 0, 1, 1], [], []>} : vector<9x9xbf16>, vector<9x16xbf16>, vector<9x16xf32> -> vector<9x16xf32>
    %137 = vector.extract_strided_slice %39 {offsets = [0, 80], sizes = [9, 16], strides = [1, 1]} : vector<9x128xf32> to vector<9x16xf32>
    %138 = arith.truncf %137 : vector<9x16xf32> to vector<9x16xbf16>
    %139 = vector.extract_strided_slice %40 {offsets = [0, 80], sizes = [9, 16], strides = [1, 1]} : vector<9x128xf32> to vector<9x16xf32>
    %140 = arith.truncf %139 : vector<9x16xf32> to vector<9x16xbf16>
    "tpu.trace_start"() <{level = 10 : i32, message = "qd,kd->qk"}> : () -> ()
    %cst_37 = arith.constant dense<0.000000e+00> : vector<9x9xf32>
    %141 = tpu.matmul %138, %140, %cst_37 {dimension_numbers = #tpu.dot_dimension_numbers<[1], [1], [0], [0], [0, 0, 1, 0], [], []>} : vector<9x16xbf16>, vector<9x16xbf16>, vector<9x9xf32> -> vector<9x9xf32>
    "tpu.trace_stop"() : () -> ()
    %cst_38 = arith.constant dense<0xFF800000> : vector<9xf32>
    %142 = vector.multi_reduction <maximumf>, %141, %cst_38 [1] : vector<9x9xf32> to vector<9xf32>
    %143 = vector.shape_cast %142 : vector<9xf32> to vector<9x1xf32>
    %144 = vector.broadcast %143 : vector<9x1xf32> to vector<9x9xf32>
    %145 = arith.subf %141, %144 : vector<9x9xf32>
    %146 = math.exp %145 : vector<9x9xf32>
    %cst_39 = arith.constant dense<0.000000e+00> : vector<9xf32>
    %147 = vector.multi_reduction <add>, %146, %cst_39 [1] : vector<9x9xf32> to vector<9xf32>
    %148 = vector.shape_cast %147 : vector<9xf32> to vector<9x1xf32>
    %149 = tpu.reciprocal %148 {approx = true} : vector<9x1xf32> -> vector<9x1xf32>
    %150 = vector.broadcast %149 : vector<9x1xf32> to vector<9x9xf32>
    %151 = arith.mulf %146, %150 : vector<9x9xf32>
    %152 = arith.truncf %151 : vector<9x9xf32> to vector<9x9xbf16>
    %153 = vector.extract_strided_slice %41 {offsets = [0, 80], sizes = [9, 16], strides = [1, 1]} : vector<9x128xf32> to vector<9x16xf32>
    %154 = arith.truncf %153 : vector<9x16xf32> to vector<9x16xbf16>
    %cst_40 = arith.constant dense<0.000000e+00> : vector<9x16xf32>
    %155 = tpu.matmul %152, %154, %cst_40 {dimension_numbers = #tpu.dot_dimension_numbers<[1], [0], [0], [1], [0, 0, 1, 1], [], []>} : vector<9x9xbf16>, vector<9x16xbf16>, vector<9x16xf32> -> vector<9x16xf32>
    %156 = vector.extract_strided_slice %39 {offsets = [0, 96], sizes = [9, 16], strides = [1, 1]} : vector<9x128xf32> to vector<9x16xf32>
    %157 = arith.truncf %156 : vector<9x16xf32> to vector<9x16xbf16>
    %158 = vector.extract_strided_slice %40 {offsets = [0, 96], sizes = [9, 16], strides = [1, 1]} : vector<9x128xf32> to vector<9x16xf32>
    %159 = arith.truncf %158 : vector<9x16xf32> to vector<9x16xbf16>
    "tpu.trace_start"() <{level = 10 : i32, message = "qd,kd->qk"}> : () -> ()
    %cst_41 = arith.constant dense<0.000000e+00> : vector<9x9xf32>
    %160 = tpu.matmul %157, %159, %cst_41 {dimension_numbers = #tpu.dot_dimension_numbers<[1], [1], [0], [0], [0, 0, 1, 0], [], []>} : vector<9x16xbf16>, vector<9x16xbf16>, vector<9x9xf32> -> vector<9x9xf32>
    "tpu.trace_stop"() : () -> ()
    %cst_42 = arith.constant dense<0xFF800000> : vector<9xf32>
    %161 = vector.multi_reduction <maximumf>, %160, %cst_42 [1] : vector<9x9xf32> to vector<9xf32>
    %162 = vector.shape_cast %161 : vector<9xf32> to vector<9x1xf32>
    %163 = vector.broadcast %162 : vector<9x1xf32> to vector<9x9xf32>
    %164 = arith.subf %160, %163 : vector<9x9xf32>
    %165 = math.exp %164 : vector<9x9xf32>
    %cst_43 = arith.constant dense<0.000000e+00> : vector<9xf32>
    %166 = vector.multi_reduction <add>, %165, %cst_43 [1] : vector<9x9xf32> to vector<9xf32>
    %167 = vector.shape_cast %166 : vector<9xf32> to vector<9x1xf32>
    %168 = tpu.reciprocal %167 {approx = true} : vector<9x1xf32> -> vector<9x1xf32>
    %169 = vector.broadcast %168 : vector<9x1xf32> to vector<9x9xf32>
    %170 = arith.mulf %165, %169 : vector<9x9xf32>
    %171 = arith.truncf %170 : vector<9x9xf32> to vector<9x9xbf16>
    %172 = vector.extract_strided_slice %41 {offsets = [0, 96], sizes = [9, 16], strides = [1, 1]} : vector<9x128xf32> to vector<9x16xf32>
    %173 = arith.truncf %172 : vector<9x16xf32> to vector<9x16xbf16>
    %cst_44 = arith.constant dense<0.000000e+00> : vector<9x16xf32>
    %174 = tpu.matmul %171, %173, %cst_44 {dimension_numbers = #tpu.dot_dimension_numbers<[1], [0], [0], [1], [0, 0, 1, 1], [], []>} : vector<9x9xbf16>, vector<9x16xbf16>, vector<9x16xf32> -> vector<9x16xf32>
    %175 = vector.extract_strided_slice %39 {offsets = [0, 112], sizes = [9, 16], strides = [1, 1]} : vector<9x128xf32> to vector<9x16xf32>
    %176 = arith.truncf %175 : vector<9x16xf32> to vector<9x16xbf16>
    %177 = vector.extract_strided_slice %40 {offsets = [0, 112], sizes = [9, 16], strides = [1, 1]} : vector<9x128xf32> to vector<9x16xf32>
    %178 = arith.truncf %177 : vector<9x16xf32> to vector<9x16xbf16>
    "tpu.trace_start"() <{level = 10 : i32, message = "qd,kd->qk"}> : () -> ()
    %cst_45 = arith.constant dense<0.000000e+00> : vector<9x9xf32>
    %179 = tpu.matmul %176, %178, %cst_45 {dimension_numbers = #tpu.dot_dimension_numbers<[1], [1], [0], [0], [0, 0, 1, 0], [], []>} : vector<9x16xbf16>, vector<9x16xbf16>, vector<9x9xf32> -> vector<9x9xf32>
    "tpu.trace_stop"() : () -> ()
    %cst_46 = arith.constant dense<0xFF800000> : vector<9xf32>
    %180 = vector.multi_reduction <maximumf>, %179, %cst_46 [1] : vector<9x9xf32> to vector<9xf32>
    %181 = vector.shape_cast %180 : vector<9xf32> to vector<9x1xf32>
    %182 = vector.broadcast %181 : vector<9x1xf32> to vector<9x9xf32>
    %183 = arith.subf %179, %182 : vector<9x9xf32>
    %184 = math.exp %183 : vector<9x9xf32>
    %cst_47 = arith.constant dense<0.000000e+00> : vector<9xf32>
    %185 = vector.multi_reduction <add>, %184, %cst_47 [1] : vector<9x9xf32> to vector<9xf32>
    %186 = vector.shape_cast %185 : vector<9xf32> to vector<9x1xf32>
    %187 = tpu.reciprocal %186 {approx = true} : vector<9x1xf32> -> vector<9x1xf32>
    %188 = vector.broadcast %187 : vector<9x1xf32> to vector<9x9xf32>
    %189 = arith.mulf %184, %188 : vector<9x9xf32>
    %190 = arith.truncf %189 : vector<9x9xf32> to vector<9x9xbf16>
    %191 = vector.extract_strided_slice %41 {offsets = [0, 112], sizes = [9, 16], strides = [1, 1]} : vector<9x128xf32> to vector<9x16xf32>
    %192 = arith.truncf %191 : vector<9x16xf32> to vector<9x16xbf16>
    %cst_48 = arith.constant dense<0.000000e+00> : vector<9x16xf32>
    %193 = tpu.matmul %190, %192, %cst_48 {dimension_numbers = #tpu.dot_dimension_numbers<[1], [0], [0], [1], [0, 0, 1, 1], [], []>} : vector<9x9xbf16>, vector<9x16xbf16>, vector<9x16xf32> -> vector<9x16xf32>
    %194 = tpu.concatenate %60, %79, %98, %117, %136, %155, %174, %193 in 1 : vector<9x16xf32>, vector<9x16xf32>, vector<9x16xf32>, vector<9x16xf32>, vector<9x16xf32>, vector<9x16xf32>, vector<9x16xf32>, vector<9x16xf32> -> vector<9x128xf32>
    %195 = vector.extract_strided_slice %36 {offsets = [9, 0], sizes = [9, 128], strides = [1, 1]} : vector<18x128xf32> to vector<9x128xf32>
    %196 = vector.extract_strided_slice %37 {offsets = [9, 0], sizes = [9, 128], strides = [1, 1]} : vector<18x128xf32> to vector<9x128xf32>
    %197 = vector.extract_strided_slice %38 {offsets = [9, 0], sizes = [9, 128], strides = [1, 1]} : vector<18x128xf32> to vector<9x128xf32>
    %198 = vector.extract_strided_slice %195 {offsets = [0, 0], sizes = [9, 16], strides = [1, 1]} : vector<9x128xf32> to vector<9x16xf32>
    %199 = arith.truncf %198 : vector<9x16xf32> to vector<9x16xbf16>
    %200 = vector.extract_strided_slice %196 {offsets = [0, 0], sizes = [9, 16], strides = [1, 1]} : vector<9x128xf32> to vector<9x16xf32>
    %201 = arith.truncf %200 : vector<9x16xf32> to vector<9x16xbf16>
    "tpu.trace_start"() <{level = 10 : i32, message = "qd,kd->qk"}> : () -> ()
    %cst_49 = arith.constant dense<0.000000e+00> : vector<9x9xf32>
    %202 = tpu.matmul %199, %201, %cst_49 {dimension_numbers = #tpu.dot_dimension_numbers<[1], [1], [0], [0], [0, 0, 1, 0], [], []>} : vector<9x16xbf16>, vector<9x16xbf16>, vector<9x9xf32> -> vector<9x9xf32>
    "tpu.trace_stop"() : () -> ()
    %cst_50 = arith.constant dense<0xFF800000> : vector<9xf32>
    %203 = vector.multi_reduction <maximumf>, %202, %cst_50 [1] : vector<9x9xf32> to vector<9xf32>
    %204 = vector.shape_cast %203 : vector<9xf32> to vector<9x1xf32>
    %205 = vector.broadcast %204 : vector<9x1xf32> to vector<9x9xf32>
    %206 = arith.subf %202, %205 : vector<9x9xf32>
    %207 = math.exp %206 : vector<9x9xf32>
    %cst_51 = arith.constant dense<0.000000e+00> : vector<9xf32>
    %208 = vector.multi_reduction <add>, %207, %cst_51 [1] : vector<9x9xf32> to vector<9xf32>
    %209 = vector.shape_cast %208 : vector<9xf32> to vector<9x1xf32>
    %210 = tpu.reciprocal %209 {approx = true} : vector<9x1xf32> -> vector<9x1xf32>
    %211 = vector.broadcast %210 : vector<9x1xf32> to vector<9x9xf32>
    %212 = arith.mulf %207, %211 : vector<9x9xf32>
    %213 = arith.truncf %212 : vector<9x9xf32> to vector<9x9xbf16>
    %214 = vector.extract_strided_slice %197 {offsets = [0, 0], sizes = [9, 16], strides = [1, 1]} : vector<9x128xf32> to vector<9x16xf32>
    %215 = arith.truncf %214 : vector<9x16xf32> to vector<9x16xbf16>
    %cst_52 = arith.constant dense<0.000000e+00> : vector<9x16xf32>
    %216 = tpu.matmul %213, %215, %cst_52 {dimension_numbers = #tpu.dot_dimension_numbers<[1], [0], [0], [1], [0, 0, 1, 1], [], []>} : vector<9x9xbf16>, vector<9x16xbf16>, vector<9x16xf32> -> vector<9x16xf32>
    %217 = vector.extract_strided_slice %195 {offsets = [0, 16], sizes = [9, 16], strides = [1, 1]} : vector<9x128xf32> to vector<9x16xf32>
    %218 = arith.truncf %217 : vector<9x16xf32> to vector<9x16xbf16>
    %219 = vector.extract_strided_slice %196 {offsets = [0, 16], sizes = [9, 16], strides = [1, 1]} : vector<9x128xf32> to vector<9x16xf32>
    %220 = arith.truncf %219 : vector<9x16xf32> to vector<9x16xbf16>
    "tpu.trace_start"() <{level = 10 : i32, message = "qd,kd->qk"}> : () -> ()
    %cst_53 = arith.constant dense<0.000000e+00> : vector<9x9xf32>
    %221 = tpu.matmul %218, %220, %cst_53 {dimension_numbers = #tpu.dot_dimension_numbers<[1], [1], [0], [0], [0, 0, 1, 0], [], []>} : vector<9x16xbf16>, vector<9x16xbf16>, vector<9x9xf32> -> vector<9x9xf32>
    "tpu.trace_stop"() : () -> ()
    %cst_54 = arith.constant dense<0xFF800000> : vector<9xf32>
    %222 = vector.multi_reduction <maximumf>, %221, %cst_54 [1] : vector<9x9xf32> to vector<9xf32>
    %223 = vector.shape_cast %222 : vector<9xf32> to vector<9x1xf32>
    %224 = vector.broadcast %223 : vector<9x1xf32> to vector<9x9xf32>
    %225 = arith.subf %221, %224 : vector<9x9xf32>
    %226 = math.exp %225 : vector<9x9xf32>
    %cst_55 = arith.constant dense<0.000000e+00> : vector<9xf32>
    %227 = vector.multi_reduction <add>, %226, %cst_55 [1] : vector<9x9xf32> to vector<9xf32>
    %228 = vector.shape_cast %227 : vector<9xf32> to vector<9x1xf32>
    %229 = tpu.reciprocal %228 {approx = true} : vector<9x1xf32> -> vector<9x1xf32>
    %230 = vector.broadcast %229 : vector<9x1xf32> to vector<9x9xf32>
    %231 = arith.mulf %226, %230 : vector<9x9xf32>
    %232 = arith.truncf %231 : vector<9x9xf32> to vector<9x9xbf16>
    %233 = vector.extract_strided_slice %197 {offsets = [0, 16], sizes = [9, 16], strides = [1, 1]} : vector<9x128xf32> to vector<9x16xf32>
    %234 = arith.truncf %233 : vector<9x16xf32> to vector<9x16xbf16>
    %cst_56 = arith.constant dense<0.000000e+00> : vector<9x16xf32>
    %235 = tpu.matmul %232, %234, %cst_56 {dimension_numbers = #tpu.dot_dimension_numbers<[1], [0], [0], [1], [0, 0, 1, 1], [], []>} : vector<9x9xbf16>, vector<9x16xbf16>, vector<9x16xf32> -> vector<9x16xf32>
    %236 = vector.extract_strided_slice %195 {offsets = [0, 32], sizes = [9, 16], strides = [1, 1]} : vector<9x128xf32> to vector<9x16xf32>
    %237 = arith.truncf %236 : vector<9x16xf32> to vector<9x16xbf16>
    %238 = vector.extract_strided_slice %196 {offsets = [0, 32], sizes = [9, 16], strides = [1, 1]} : vector<9x128xf32> to vector<9x16xf32>
    %239 = arith.truncf %238 : vector<9x16xf32> to vector<9x16xbf16>
    "tpu.trace_start"() <{level = 10 : i32, message = "qd,kd->qk"}> : () -> ()
    %cst_57 = arith.constant dense<0.000000e+00> : vector<9x9xf32>
    %240 = tpu.matmul %237, %239, %cst_57 {dimension_numbers = #tpu.dot_dimension_numbers<[1], [1], [0], [0], [0, 0, 1, 0], [], []>} : vector<9x16xbf16>, vector<9x16xbf16>, vector<9x9xf32> -> vector<9x9xf32>
    "tpu.trace_stop"() : () -> ()
    %cst_58 = arith.constant dense<0xFF800000> : vector<9xf32>
    %241 = vector.multi_reduction <maximumf>, %240, %cst_58 [1] : vector<9x9xf32> to vector<9xf32>
    %242 = vector.shape_cast %241 : vector<9xf32> to vector<9x1xf32>
    %243 = vector.broadcast %242 : vector<9x1xf32> to vector<9x9xf32>
    %244 = arith.subf %240, %243 : vector<9x9xf32>
    %245 = math.exp %244 : vector<9x9xf32>
    %cst_59 = arith.constant dense<0.000000e+00> : vector<9xf32>
    %246 = vector.multi_reduction <add>, %245, %cst_59 [1] : vector<9x9xf32> to vector<9xf32>
    %247 = vector.shape_cast %246 : vector<9xf32> to vector<9x1xf32>
    %248 = tpu.reciprocal %247 {approx = true} : vector<9x1xf32> -> vector<9x1xf32>
    %249 = vector.broadcast %248 : vector<9x1xf32> to vector<9x9xf32>
    %250 = arith.mulf %245, %249 : vector<9x9xf32>
    %251 = arith.truncf %250 : vector<9x9xf32> to vector<9x9xbf16>
    %252 = vector.extract_strided_slice %197 {offsets = [0, 32], sizes = [9, 16], strides = [1, 1]} : vector<9x128xf32> to vector<9x16xf32>
    %253 = arith.truncf %252 : vector<9x16xf32> to vector<9x16xbf16>
    %cst_60 = arith.constant dense<0.000000e+00> : vector<9x16xf32>
    %254 = tpu.matmul %251, %253, %cst_60 {dimension_numbers = #tpu.dot_dimension_numbers<[1], [0], [0], [1], [0, 0, 1, 1], [], []>} : vector<9x9xbf16>, vector<9x16xbf16>, vector<9x16xf32> -> vector<9x16xf32>
    %255 = vector.extract_strided_slice %195 {offsets = [0, 48], sizes = [9, 16], strides = [1, 1]} : vector<9x128xf32> to vector<9x16xf32>
    %256 = arith.truncf %255 : vector<9x16xf32> to vector<9x16xbf16>
    %257 = vector.extract_strided_slice %196 {offsets = [0, 48], sizes = [9, 16], strides = [1, 1]} : vector<9x128xf32> to vector<9x16xf32>
    %258 = arith.truncf %257 : vector<9x16xf32> to vector<9x16xbf16>
    "tpu.trace_start"() <{level = 10 : i32, message = "qd,kd->qk"}> : () -> ()
    %cst_61 = arith.constant dense<0.000000e+00> : vector<9x9xf32>
    %259 = tpu.matmul %256, %258, %cst_61 {dimension_numbers = #tpu.dot_dimension_numbers<[1], [1], [0], [0], [0, 0, 1, 0], [], []>} : vector<9x16xbf16>, vector<9x16xbf16>, vector<9x9xf32> -> vector<9x9xf32>
    "tpu.trace_stop"() : () -> ()
    %cst_62 = arith.constant dense<0xFF800000> : vector<9xf32>
    %260 = vector.multi_reduction <maximumf>, %259, %cst_62 [1] : vector<9x9xf32> to vector<9xf32>
    %261 = vector.shape_cast %260 : vector<9xf32> to vector<9x1xf32>
    %262 = vector.broadcast %261 : vector<9x1xf32> to vector<9x9xf32>
    %263 = arith.subf %259, %262 : vector<9x9xf32>
    %264 = math.exp %263 : vector<9x9xf32>
    %cst_63 = arith.constant dense<0.000000e+00> : vector<9xf32>
    %265 = vector.multi_reduction <add>, %264, %cst_63 [1] : vector<9x9xf32> to vector<9xf32>
    %266 = vector.shape_cast %265 : vector<9xf32> to vector<9x1xf32>
    %267 = tpu.reciprocal %266 {approx = true} : vector<9x1xf32> -> vector<9x1xf32>
    %268 = vector.broadcast %267 : vector<9x1xf32> to vector<9x9xf32>
    %269 = arith.mulf %264, %268 : vector<9x9xf32>
    %270 = arith.truncf %269 : vector<9x9xf32> to vector<9x9xbf16>
    %271 = vector.extract_strided_slice %197 {offsets = [0, 48], sizes = [9, 16], strides = [1, 1]} : vector<9x128xf32> to vector<9x16xf32>
    %272 = arith.truncf %271 : vector<9x16xf32> to vector<9x16xbf16>
    %cst_64 = arith.constant dense<0.000000e+00> : vector<9x16xf32>
    %273 = tpu.matmul %270, %272, %cst_64 {dimension_numbers = #tpu.dot_dimension_numbers<[1], [0], [0], [1], [0, 0, 1, 1], [], []>} : vector<9x9xbf16>, vector<9x16xbf16>, vector<9x16xf32> -> vector<9x16xf32>
    %274 = vector.extract_strided_slice %195 {offsets = [0, 64], sizes = [9, 16], strides = [1, 1]} : vector<9x128xf32> to vector<9x16xf32>
    %275 = arith.truncf %274 : vector<9x16xf32> to vector<9x16xbf16>
    %276 = vector.extract_strided_slice %196 {offsets = [0, 64], sizes = [9, 16], strides = [1, 1]} : vector<9x128xf32> to vector<9x16xf32>
    %277 = arith.truncf %276 : vector<9x16xf32> to vector<9x16xbf16>
    "tpu.trace_start"() <{level = 10 : i32, message = "qd,kd->qk"}> : () -> ()
    %cst_65 = arith.constant dense<0.000000e+00> : vector<9x9xf32>
    %278 = tpu.matmul %275, %277, %cst_65 {dimension_numbers = #tpu.dot_dimension_numbers<[1], [1], [0], [0], [0, 0, 1, 0], [], []>} : vector<9x16xbf16>, vector<9x16xbf16>, vector<9x9xf32> -> vector<9x9xf32>
    "tpu.trace_stop"() : () -> ()
    %cst_66 = arith.constant dense<0xFF800000> : vector<9xf32>
    %279 = vector.multi_reduction <maximumf>, %278, %cst_66 [1] : vector<9x9xf32> to vector<9xf32>
    %280 = vector.shape_cast %279 : vector<9xf32> to vector<9x1xf32>
    %281 = vector.broadcast %280 : vector<9x1xf32> to vector<9x9xf32>
    %282 = arith.subf %278, %281 : vector<9x9xf32>
    %283 = math.exp %282 : vector<9x9xf32>
    %cst_67 = arith.constant dense<0.000000e+00> : vector<9xf32>
    %284 = vector.multi_reduction <add>, %283, %cst_67 [1] : vector<9x9xf32> to vector<9xf32>
    %285 = vector.shape_cast %284 : vector<9xf32> to vector<9x1xf32>
    %286 = tpu.reciprocal %285 {approx = true} : vector<9x1xf32> -> vector<9x1xf32>
    %287 = vector.broadcast %286 : vector<9x1xf32> to vector<9x9xf32>
    %288 = arith.mulf %283, %287 : vector<9x9xf32>
    %289 = arith.truncf %288 : vector<9x9xf32> to vector<9x9xbf16>
    %290 = vector.extract_strided_slice %197 {offsets = [0, 64], sizes = [9, 16], strides = [1, 1]} : vector<9x128xf32> to vector<9x16xf32>
    %291 = arith.truncf %290 : vector<9x16xf32> to vector<9x16xbf16>
    %cst_68 = arith.constant dense<0.000000e+00> : vector<9x16xf32>
    %292 = tpu.matmul %289, %291, %cst_68 {dimension_numbers = #tpu.dot_dimension_numbers<[1], [0], [0], [1], [0, 0, 1, 1], [], []>} : vector<9x9xbf16>, vector<9x16xbf16>, vector<9x16xf32> -> vector<9x16xf32>
    %293 = vector.extract_strided_slice %195 {offsets = [0, 80], sizes = [9, 16], strides = [1, 1]} : vector<9x128xf32> to vector<9x16xf32>
    %294 = arith.truncf %293 : vector<9x16xf32> to vector<9x16xbf16>
    %295 = vector.extract_strided_slice %196 {offsets = [0, 80], sizes = [9, 16], strides = [1, 1]} : vector<9x128xf32> to vector<9x16xf32>
    %296 = arith.truncf %295 : vector<9x16xf32> to vector<9x16xbf16>
    "tpu.trace_start"() <{level = 10 : i32, message = "qd,kd->qk"}> : () -> ()
    %cst_69 = arith.constant dense<0.000000e+00> : vector<9x9xf32>
    %297 = tpu.matmul %294, %296, %cst_69 {dimension_numbers = #tpu.dot_dimension_numbers<[1], [1], [0], [0], [0, 0, 1, 0], [], []>} : vector<9x16xbf16>, vector<9x16xbf16>, vector<9x9xf32> -> vector<9x9xf32>
    "tpu.trace_stop"() : () -> ()
    %cst_70 = arith.constant dense<0xFF800000> : vector<9xf32>
    %298 = vector.multi_reduction <maximumf>, %297, %cst_70 [1] : vector<9x9xf32> to vector<9xf32>
    %299 = vector.shape_cast %298 : vector<9xf32> to vector<9x1xf32>
    %300 = vector.broadcast %299 : vector<9x1xf32> to vector<9x9xf32>
    %301 = arith.subf %297, %300 : vector<9x9xf32>
    %302 = math.exp %301 : vector<9x9xf32>
    %cst_71 = arith.constant dense<0.000000e+00> : vector<9xf32>
    %303 = vector.multi_reduction <add>, %302, %cst_71 [1] : vector<9x9xf32> to vector<9xf32>
    %304 = vector.shape_cast %303 : vector<9xf32> to vector<9x1xf32>
    %305 = tpu.reciprocal %304 {approx = true} : vector<9x1xf32> -> vector<9x1xf32>
    %306 = vector.broadcast %305 : vector<9x1xf32> to vector<9x9xf32>
    %307 = arith.mulf %302, %306 : vector<9x9xf32>
    %308 = arith.truncf %307 : vector<9x9xf32> to vector<9x9xbf16>
    %309 = vector.extract_strided_slice %197 {offsets = [0, 80], sizes = [9, 16], strides = [1, 1]} : vector<9x128xf32> to vector<9x16xf32>
    %310 = arith.truncf %309 : vector<9x16xf32> to vector<9x16xbf16>
    %cst_72 = arith.constant dense<0.000000e+00> : vector<9x16xf32>
    %311 = tpu.matmul %308, %310, %cst_72 {dimension_numbers = #tpu.dot_dimension_numbers<[1], [0], [0], [1], [0, 0, 1, 1], [], []>} : vector<9x9xbf16>, vector<9x16xbf16>, vector<9x16xf32> -> vector<9x16xf32>
    %312 = vector.extract_strided_slice %195 {offsets = [0, 96], sizes = [9, 16], strides = [1, 1]} : vector<9x128xf32> to vector<9x16xf32>
    %313 = arith.truncf %312 : vector<9x16xf32> to vector<9x16xbf16>
    %314 = vector.extract_strided_slice %196 {offsets = [0, 96], sizes = [9, 16], strides = [1, 1]} : vector<9x128xf32> to vector<9x16xf32>
    %315 = arith.truncf %314 : vector<9x16xf32> to vector<9x16xbf16>
    "tpu.trace_start"() <{level = 10 : i32, message = "qd,kd->qk"}> : () -> ()
    %cst_73 = arith.constant dense<0.000000e+00> : vector<9x9xf32>
    %316 = tpu.matmul %313, %315, %cst_73 {dimension_numbers = #tpu.dot_dimension_numbers<[1], [1], [0], [0], [0, 0, 1, 0], [], []>} : vector<9x16xbf16>, vector<9x16xbf16>, vector<9x9xf32> -> vector<9x9xf32>
    "tpu.trace_stop"() : () -> ()
    %cst_74 = arith.constant dense<0xFF800000> : vector<9xf32>
    %317 = vector.multi_reduction <maximumf>, %316, %cst_74 [1] : vector<9x9xf32> to vector<9xf32>
    %318 = vector.shape_cast %317 : vector<9xf32> to vector<9x1xf32>
    %319 = vector.broadcast %318 : vector<9x1xf32> to vector<9x9xf32>
    %320 = arith.subf %316, %319 : vector<9x9xf32>
    %321 = math.exp %320 : vector<9x9xf32>
    %cst_75 = arith.constant dense<0.000000e+00> : vector<9xf32>
    %322 = vector.multi_reduction <add>, %321, %cst_75 [1] : vector<9x9xf32> to vector<9xf32>
    %323 = vector.shape_cast %322 : vector<9xf32> to vector<9x1xf32>
    %324 = tpu.reciprocal %323 {approx = true} : vector<9x1xf32> -> vector<9x1xf32>
    %325 = vector.broadcast %324 : vector<9x1xf32> to vector<9x9xf32>
    %326 = arith.mulf %321, %325 : vector<9x9xf32>
    %327 = arith.truncf %326 : vector<9x9xf32> to vector<9x9xbf16>
    %328 = vector.extract_strided_slice %197 {offsets = [0, 96], sizes = [9, 16], strides = [1, 1]} : vector<9x128xf32> to vector<9x16xf32>
    %329 = arith.truncf %328 : vector<9x16xf32> to vector<9x16xbf16>
    %cst_76 = arith.constant dense<0.000000e+00> : vector<9x16xf32>
    %330 = tpu.matmul %327, %329, %cst_76 {dimension_numbers = #tpu.dot_dimension_numbers<[1], [0], [0], [1], [0, 0, 1, 1], [], []>} : vector<9x9xbf16>, vector<9x16xbf16>, vector<9x16xf32> -> vector<9x16xf32>
    %331 = vector.extract_strided_slice %195 {offsets = [0, 112], sizes = [9, 16], strides = [1, 1]} : vector<9x128xf32> to vector<9x16xf32>
    %332 = arith.truncf %331 : vector<9x16xf32> to vector<9x16xbf16>
    %333 = vector.extract_strided_slice %196 {offsets = [0, 112], sizes = [9, 16], strides = [1, 1]} : vector<9x128xf32> to vector<9x16xf32>
    %334 = arith.truncf %333 : vector<9x16xf32> to vector<9x16xbf16>
    "tpu.trace_start"() <{level = 10 : i32, message = "qd,kd->qk"}> : () -> ()
    %cst_77 = arith.constant dense<0.000000e+00> : vector<9x9xf32>
    %335 = tpu.matmul %332, %334, %cst_77 {dimension_numbers = #tpu.dot_dimension_numbers<[1], [1], [0], [0], [0, 0, 1, 0], [], []>} : vector<9x16xbf16>, vector<9x16xbf16>, vector<9x9xf32> -> vector<9x9xf32>
    "tpu.trace_stop"() : () -> ()
    %cst_78 = arith.constant dense<0xFF800000> : vector<9xf32>
    %336 = vector.multi_reduction <maximumf>, %335, %cst_78 [1] : vector<9x9xf32> to vector<9xf32>
    %337 = vector.shape_cast %336 : vector<9xf32> to vector<9x1xf32>
    %338 = vector.broadcast %337 : vector<9x1xf32> to vector<9x9xf32>
    %339 = arith.subf %335, %338 : vector<9x9xf32>
    %340 = math.exp %339 : vector<9x9xf32>
    %cst_79 = arith.constant dense<0.000000e+00> : vector<9xf32>
    %341 = vector.multi_reduction <add>, %340, %cst_79 [1] : vector<9x9xf32> to vector<9xf32>
    %342 = vector.shape_cast %341 : vector<9xf32> to vector<9x1xf32>
    %343 = tpu.reciprocal %342 {approx = true} : vector<9x1xf32> -> vector<9x1xf32>
    %344 = vector.broadcast %343 : vector<9x1xf32> to vector<9x9xf32>
    %345 = arith.mulf %340, %344 : vector<9x9xf32>
    %346 = arith.truncf %345 : vector<9x9xf32> to vector<9x9xbf16>
    %347 = vector.extract_strided_slice %197 {offsets = [0, 112], sizes = [9, 16], strides = [1, 1]} : vector<9x128xf32> to vector<9x16xf32>
    %348 = arith.truncf %347 : vector<9x16xf32> to vector<9x16xbf16>
    %cst_80 = arith.constant dense<0.000000e+00> : vector<9x16xf32>
    %349 = tpu.matmul %346, %348, %cst_80 {dimension_numbers = #tpu.dot_dimension_numbers<[1], [0], [0], [1], [0, 0, 1, 1], [], []>} : vector<9x9xbf16>, vector<9x16xbf16>, vector<9x16xf32> -> vector<9x16xf32>
    %350 = tpu.concatenate %216, %235, %254, %273, %292, %311, %330, %349 in 1 : vector<9x16xf32>, vector<9x16xf32>, vector<9x16xf32>, vector<9x16xf32>, vector<9x16xf32>, vector<9x16xf32>, vector<9x16xf32>, vector<9x16xf32> -> vector<9x128xf32>
    %351 = tpu.concatenate %194, %350 in 0 : vector<9x128xf32>, vector<9x128xf32> -> vector<18x128xf32>
    %352 = arith.truncf %351 : vector<18x128xf32> to vector<18x128xbf16>
    %c0_81 = arith.constant 0 : index
    %c0_82 = arith.constant 0 : index
    %c0_83 = arith.constant 0 : index
    %353 = vector.load %arg5[%c0_81, %c0_82, %c0_83] : memref<1x128x128xbf16, #tpu.memory_space<vmem>>, vector<1x128x128xbf16>
    %354 = vector.shape_cast %353 : vector<1x128x128xbf16> to vector<128x128xbf16>
    %cst_84 = arith.constant dense<0.000000e+00> : vector<18x128xf32>
    %355 = tpu.matmul %352, %354, %cst_84 {dimension_numbers = #tpu.dot_dimension_numbers<[1], [0], [0], [1], [0, 0, 1, 1], [], []>} : vector<18x128xbf16>, vector<128x128xbf16>, vector<18x128xf32> -> vector<18x128xf32>
    %c0_85 = arith.constant 0 : index
    %c0_86 = arith.constant 0 : index
    %c0_87 = arith.constant 0 : index
    %356 = vector.load %arg6[%c0_85, %c0_86, %c0_87] : memref<1x1x128xf32, #tpu.memory_space<vmem>>, vector<1x1x128xf32>
    %357 = vector.shape_cast %356 : vector<1x1x128xf32> to vector<1x128xf32>
    %358 = vector.broadcast %357 : vector<1x128xf32> to vector<18x128xf32>
    %359 = arith.addf %355, %358 : vector<18x128xf32>
    %360 = arith.addf %3, %359 : vector<18x128xf32>
    %c0_88 = arith.constant 0 : index
    %c0_89 = arith.constant 0 : index
    %c0_90 = arith.constant 0 : index
    %361 = vector.load %arg7[%c0_88, %c0_89, %c0_90] : memref<1x1x128xf32, #tpu.memory_space<vmem>>, vector<1x1x128xf32>
    %362 = vector.shape_cast %361 : vector<1x1x128xf32> to vector<1x128xf32>
    %c0_91 = arith.constant 0 : index
    %c0_92 = arith.constant 0 : index
    %c0_93 = arith.constant 0 : index
    %363 = vector.load %arg8[%c0_91, %c0_92, %c0_93] : memref<1x1x128xf32, #tpu.memory_space<vmem>>, vector<1x1x128xf32>
    %364 = vector.shape_cast %363 : vector<1x1x128xf32> to vector<1x128xf32>
    %cst_94 = arith.constant dense<0.000000e+00> : vector<18xf32>
    %365 = vector.multi_reduction <add>, %360, %cst_94 [1] : vector<18x128xf32> to vector<18xf32>
    %366 = vector.shape_cast %365 : vector<18xf32> to vector<18x1xf32>
    %cst_95 = arith.constant 1.280000e+02 : f32
    %367 = vector.broadcast %cst_95 : f32 to vector<18x1xf32>
    %368 = arith.divf %366, %367 : vector<18x1xf32>
    %369 = vector.broadcast %368 : vector<18x1xf32> to vector<18x128xf32>
    %370 = arith.subf %360, %369 : vector<18x128xf32>
    %371 = arith.mulf %370, %370 : vector<18x128xf32>
    %cst_96 = arith.constant dense<0.000000e+00> : vector<18xf32>
    %372 = vector.multi_reduction <add>, %371, %cst_96 [1] : vector<18x128xf32> to vector<18xf32>
    %373 = vector.shape_cast %372 : vector<18xf32> to vector<18x1xf32>
    %cst_97 = arith.constant 1.280000e+02 : f32
    %374 = vector.broadcast %cst_97 : f32 to vector<18x1xf32>
    %375 = arith.divf %373, %374 : vector<18x1xf32>
    %376 = vector.broadcast %368 : vector<18x1xf32> to vector<18x128xf32>
    %377 = arith.subf %360, %376 : vector<18x128xf32>
    %cst_98 = arith.constant 9.99999974E-6 : f32
    %378 = vector.broadcast %cst_98 : f32 to vector<18x1xf32>
    %379 = arith.addf %375, %378 : vector<18x1xf32>
    %380 = math.rsqrt %379 : vector<18x1xf32>
    %381 = vector.broadcast %380 : vector<18x1xf32> to vector<18x128xf32>
    %382 = arith.mulf %377, %381 : vector<18x128xf32>
    %383 = vector.broadcast %362 : vector<1x128xf32> to vector<18x128xf32>
    %384 = arith.mulf %382, %383 : vector<18x128xf32>
    %385 = vector.broadcast %364 : vector<1x128xf32> to vector<18x128xf32>
    %386 = arith.addf %384, %385 : vector<18x128xf32>
    %387 = arith.truncf %386 : vector<18x128xf32> to vector<18x128xbf16>
    %c0_99 = arith.constant 0 : index
    %c0_100 = arith.constant 0 : index
    %c0_101 = arith.constant 0 : index
    %388 = vector.load %arg9[%c0_99, %c0_100, %c0_101] : memref<1x128x256xbf16, #tpu.memory_space<vmem>>, vector<1x128x256xbf16>
    %389 = vector.shape_cast %388 : vector<1x128x256xbf16> to vector<128x256xbf16>
    %cst_102 = arith.constant dense<0.000000e+00> : vector<18x256xf32>
    %390 = tpu.matmul %387, %389, %cst_102 {dimension_numbers = #tpu.dot_dimension_numbers<[1], [0], [0], [1], [0, 0, 1, 1], [], []>} : vector<18x128xbf16>, vector<128x256xbf16>, vector<18x256xf32> -> vector<18x256xf32>
    %c0_103 = arith.constant 0 : index
    %c0_104 = arith.constant 0 : index
    %c0_105 = arith.constant 0 : index
    %391 = vector.load %arg10[%c0_103, %c0_104, %c0_105] : memref<1x1x256xf32, #tpu.memory_space<vmem>>, vector<1x1x256xf32>
    %392 = vector.shape_cast %391 : vector<1x1x256xf32> to vector<1x256xf32>
    %393 = vector.broadcast %392 : vector<1x256xf32> to vector<18x256xf32>
    %394 = arith.addf %390, %393 : vector<18x256xf32>
    %cst_106 = arith.constant 0.707106769 : f32
    %395 = vector.broadcast %cst_106 : f32 to vector<18x256xf32>
    %396 = arith.mulf %394, %395 : vector<18x256xf32>
    %397 = math.absf %396 : vector<18x256xf32>
    %cst_107 = arith.constant 0.327591091 : f32
    %398 = vector.broadcast %cst_107 : f32 to vector<18x256xf32>
    %399 = arith.mulf %398, %397 : vector<18x256xf32>
    %cst_108 = arith.constant 1.000000e+00 : f32
    %400 = vector.broadcast %cst_108 : f32 to vector<18x256xf32>
    %401 = arith.addf %400, %399 : vector<18x256xf32>
    %cst_109 = arith.constant 1.000000e+00 : f32
    %402 = vector.broadcast %cst_109 : f32 to vector<18x256xf32>
    %403 = arith.divf %402, %401 : vector<18x256xf32>
    %cst_110 = arith.constant 1.06140542 : f32
    %404 = vector.broadcast %cst_110 : f32 to vector<18x256xf32>
    %405 = arith.mulf %403, %404 : vector<18x256xf32>
    %cst_111 = arith.constant -1.45315206 : f32
    %406 = vector.broadcast %cst_111 : f32 to vector<18x256xf32>
    %407 = arith.addf %406, %405 : vector<18x256xf32>
    %408 = arith.mulf %403, %407 : vector<18x256xf32>
    %cst_112 = arith.constant 1.42141378 : f32
    %409 = vector.broadcast %cst_112 : f32 to vector<18x256xf32>
    %410 = arith.addf %409, %408 : vector<18x256xf32>
    %411 = arith.mulf %403, %410 : vector<18x256xf32>
    %cst_113 = arith.constant -0.284496725 : f32
    %412 = vector.broadcast %cst_113 : f32 to vector<18x256xf32>
    %413 = arith.addf %412, %411 : vector<18x256xf32>
    %414 = arith.mulf %403, %413 : vector<18x256xf32>
    %cst_114 = arith.constant 0.254829586 : f32
    %415 = vector.broadcast %cst_114 : f32 to vector<18x256xf32>
    %416 = arith.addf %415, %414 : vector<18x256xf32>
    %417 = arith.mulf %403, %416 : vector<18x256xf32>
    %cst_115 = arith.constant 0.000000e+00 : f32
    %418 = vector.broadcast %cst_115 : f32 to vector<18x256xf32>
    %419 = arith.subf %418, %397 : vector<18x256xf32>
    %420 = arith.mulf %419, %397 : vector<18x256xf32>
    %421 = math.exp %420 : vector<18x256xf32>
    %422 = arith.mulf %417, %421 : vector<18x256xf32>
    %cst_116 = arith.constant 1.000000e+00 : f32
    %423 = vector.broadcast %cst_116 : f32 to vector<18x256xf32>
    %424 = arith.subf %423, %422 : vector<18x256xf32>
    %cst_117 = arith.constant 0.000000e+00 : f32
    %425 = vector.broadcast %cst_117 : f32 to vector<18x256xf32>
    %426 = arith.cmpf oge, %396, %425 : vector<18x256xf32>
    %cst_118 = arith.constant 0.000000e+00 : f32
    %427 = vector.broadcast %cst_118 : f32 to vector<18x256xf32>
    %428 = arith.subf %427, %424 : vector<18x256xf32>
    %429 = arith.select %426, %424, %428 : vector<18x256xi1>, vector<18x256xf32>
    %cst_119 = arith.constant 5.000000e-01 : f32
    %430 = vector.broadcast %cst_119 : f32 to vector<18x256xf32>
    %431 = arith.mulf %430, %394 : vector<18x256xf32>
    %cst_120 = arith.constant 1.000000e+00 : f32
    %432 = vector.broadcast %cst_120 : f32 to vector<18x256xf32>
    %433 = arith.addf %432, %429 : vector<18x256xf32>
    %434 = arith.mulf %431, %433 : vector<18x256xf32>
    %435 = arith.truncf %434 : vector<18x256xf32> to vector<18x256xbf16>
    %c0_121 = arith.constant 0 : index
    %c0_122 = arith.constant 0 : index
    %c0_123 = arith.constant 0 : index
    %436 = vector.load %arg11[%c0_121, %c0_122, %c0_123] : memref<1x256x128xbf16, #tpu.memory_space<vmem>>, vector<1x256x128xbf16>
    %437 = vector.shape_cast %436 : vector<1x256x128xbf16> to vector<256x128xbf16>
    %cst_124 = arith.constant dense<0.000000e+00> : vector<18x128xf32>
    %438 = tpu.matmul %435, %437, %cst_124 {dimension_numbers = #tpu.dot_dimension_numbers<[1], [0], [0], [1], [0, 0, 1, 1], [], []>} : vector<18x256xbf16>, vector<256x128xbf16>, vector<18x128xf32> -> vector<18x128xf32>
    %c0_125 = arith.constant 0 : index
    %c0_126 = arith.constant 0 : index
    %c0_127 = arith.constant 0 : index
    %439 = vector.load %arg12[%c0_125, %c0_126, %c0_127] : memref<1x1x128xf32, #tpu.memory_space<vmem>>, vector<1x1x128xf32>
    %440 = vector.shape_cast %439 : vector<1x1x128xf32> to vector<1x128xf32>
    %441 = vector.broadcast %440 : vector<1x128xf32> to vector<18x128xf32>
    %442 = arith.addf %438, %441 : vector<18x128xf32>
    %443 = arith.addf %360, %442 : vector<18x128xf32>
    %c0_128 = arith.constant 0 : index
    %c0_129 = arith.constant 0 : index
    %444 = vector.load %arg13[%c0_128, %c0_129] : memref<18x128xf32, #tpu.memory_space<vmem>>, vector<18x128xf32>
    tpu.vector_store %arg13[%c0_128, %c0_129], %443 {strides = array<i32>} : memref<18x128xf32, #tpu.memory_space<vmem>>, vector<18x128xf32>,
    return
  }
  func.func @transform_0(%arg0: i32) -> (i32, i32) {
    %c0_i32 = arith.constant 0 : i32
    %c0_i32_0 = arith.constant 0 : i32
    %c0_i32_1 = arith.constant 0 : i32
    return %c0_i32, %c0_i32_0 : i32, i32
  }
  func.func @transform_1(%arg0: i32) -> (i32, i32, i32) {
    %c0_i32 = arith.constant 0 : i32
    %c0_i32_0 = arith.constant 0 : i32
    %c0_i32_1 = arith.constant 0 : i32
    return %arg0, %c0_i32, %c0_i32_0 : i32, i32, i32
  }
  func.func @transform_2(%arg0: i32) -> (i32, i32, i32) {
    %c0_i32 = arith.constant 0 : i32
    %c0_i32_0 = arith.constant 0 : i32
    %c0_i32_1 = arith.constant 0 : i32
    return %arg0, %c0_i32, %c0_i32_0 : i32, i32, i32
  }
  func.func @transform_3(%arg0: i32) -> (i32, i32, i32) {
    %c0_i32 = arith.constant 0 : i32
    %c0_i32_0 = arith.constant 0 : i32
    %c0_i32_1 = arith.constant 0 : i32
    return %arg0, %c0_i32, %c0_i32_0 : i32, i32, i32
  }
  func.func @transform_4(%arg0: i32) -> (i32, i32, i32) {
    %c0_i32 = arith.constant 0 : i32
    %c0_i32_0 = arith.constant 0 : i32
    %c0_i32_1 = arith.constant 0 : i32
    return %arg0, %c0_i32, %c0_i32_0 : i32, i32, i32
  }
  func.func @transform_5(%arg0: i32) -> (i32, i32, i32) {
    %c0_i32 = arith.constant 0 : i32
    %c0_i32_0 = arith.constant 0 : i32
    %c0_i32_1 = arith.constant 0 : i32
    return %arg0, %c0_i32, %c0_i32_0 : i32, i32, i32
  }
  func.func @transform_6(%arg0: i32) -> (i32, i32, i32) {
    %c0_i32 = arith.constant 0 : i32
    %c0_i32_0 = arith.constant 0 : i32
    %c0_i32_1 = arith.constant 0 : i32
    return %arg0, %c0_i32, %c0_i32_0 : i32, i32, i32
  }
  func.func @transform_7(%arg0: i32) -> (i32, i32, i32) {
    %c0_i32 = arith.constant 0 : i32
    %c0_i32_0 = arith.constant 0 : i32
    %c0_i32_1 = arith.constant 0 : i32
    return %arg0, %c0_i32, %c0_i32_0 : i32, i32, i32
  }
  func.func @transform_8(%arg0: i32) -> (i32, i32, i32) {
    %c0_i32 = arith.constant 0 : i32
    %c0_i32_0 = arith.constant 0 : i32
    %c0_i32_1 = arith.constant 0 : i32
    return %arg0, %c0_i32, %c0_i32_0 : i32, i32, i32
  }
  func.func @transform_9(%arg0: i32) -> (i32, i32, i32) {
    %c0_i32 = arith.constant 0 : i32
    %c0_i32_0 = arith.constant 0 : i32
    %c0_i32_1 = arith.constant 0 : i32
    return %arg0, %c0_i32, %c0_i32_0 : i32, i32, i32
  }
  func.func @transform_10(%arg0: i32) -> (i32, i32, i32) {
    %c0_i32 = arith.constant 0 : i32
    %c0_i32_0 = arith.constant 0 : i32
    %c0_i32_1 = arith.constant 0 : i32
    return %arg0, %c0_i32, %c0_i32_0 : i32, i32, i32
  }
  func.func @transform_11(%arg0: i32) -> (i32, i32, i32) {
    %c0_i32 = arith.constant 0 : i32
    %c0_i32_0 = arith.constant 0 : i32
    %c0_i32_1 = arith.constant 0 : i32
    return %arg0, %c0_i32, %c0_i32_0 : i32, i32, i32
  }
  func.func @transform_12(%arg0: i32) -> (i32, i32) {
    %c0_i32 = arith.constant 0 : i32
    %c0_i32_0 = arith.constant 0 : i32
    %c0_i32_1 = arith.constant 0 : i32
    return %c0_i32, %c0_i32_0 : i32, i32
  }
}

module attributes {stable_mosaic.version = 11 : i64} {
  func.func @_cross_attn_kernel(%arg0: i32, %arg1: memref<18x128xf32, #tpu.memory_space<vmem>>, %arg2: memref<2x32x1xf32, #tpu.memory_space<vmem>>, %arg3: memref<1x128xf32, #tpu.memory_space<vmem>>, %arg4: memref<1x128xf32, #tpu.memory_space<vmem>>, %arg5: memref<1x128xf32, #tpu.memory_space<vmem>>, %arg6: memref<1x128xf32, #tpu.memory_space<vmem>>, %arg7: memref<1x128xf32, #tpu.memory_space<vmem>>, %arg8: memref<1x128xf32, #tpu.memory_space<vmem>>, %arg9: memref<1x128xf32, #tpu.memory_space<vmem>>, %arg10: memref<1x128xf32, #tpu.memory_space<vmem>>, %arg11: memref<128x128xbf16, #tpu.memory_space<vmem>>, %arg12: memref<1x128xf32, #tpu.memory_space<vmem>>, %arg13: memref<128x256xbf16, #tpu.memory_space<vmem>>, %arg14: memref<1x256xf32, #tpu.memory_space<vmem>>, %arg15: memref<128x128xbf16, #tpu.memory_space<vmem>>, %arg16: memref<1x128xf32, #tpu.memory_space<vmem>>, %arg17: memref<1x128xf32, #tpu.memory_space<vmem>>, %arg18: memref<1x128xf32, #tpu.memory_space<vmem>>, %arg19: memref<2x8x128xf32, #tpu.memory_space<vmem>>, %arg20: memref<2x8x128xf32, #tpu.memory_space<vmem>>) attributes {dimension_semantics = [#tpu.dimension_semantics<arbitrary>], iteration_bounds = array<i64: 1>, scalar_prefetch = 0 : i64, scratch_operands = 0 : i64, tpu.core_type = #tpu.core_type<tc>, window_params = [{pipeline_mode = #tpu.pipeline_mode<synchronous>, transform_indices = @transform_0, window_bounds = array<i64: 18, 128>}, {pipeline_mode = #tpu.pipeline_mode<synchronous>, transform_indices = @transform_1, window_bounds = array<i64: 2, 32, 1>}, {pipeline_mode = #tpu.pipeline_mode<synchronous>, transform_indices = @transform_2, window_bounds = array<i64: 1, 128>}, {pipeline_mode = #tpu.pipeline_mode<synchronous>, transform_indices = @transform_3, window_bounds = array<i64: 1, 128>}, {pipeline_mode = #tpu.pipeline_mode<synchronous>, transform_indices = @transform_4, window_bounds = array<i64: 1, 128>}, {pipeline_mode = #tpu.pipeline_mode<synchronous>, transform_indices = @transform_5, window_bounds = array<i64: 1, 128>}, {pipeline_mode = #tpu.pipeline_mode<synchronous>, transform_indices = @transform_6, window_bounds = array<i64: 1, 128>}, {pipeline_mode = #tpu.pipeline_mode<synchronous>, transform_indices = @transform_7, window_bounds = array<i64: 1, 128>}, {pipeline_mode = #tpu.pipeline_mode<synchronous>, transform_indices = @transform_8, window_bounds = array<i64: 1, 128>}, {pipeline_mode = #tpu.pipeline_mode<synchronous>, transform_indices = @transform_9, window_bounds = array<i64: 1, 128>}, {pipeline_mode = #tpu.pipeline_mode<synchronous>, transform_indices = @transform_10, window_bounds = array<i64: 128, 128>}, {pipeline_mode = #tpu.pipeline_mode<synchronous>, transform_indices = @transform_11, window_bounds = array<i64: 1, 128>}, {pipeline_mode = #tpu.pipeline_mode<synchronous>, transform_indices = @transform_12, window_bounds = array<i64: 128, 256>}, {pipeline_mode = #tpu.pipeline_mode<synchronous>, transform_indices = @transform_13, window_bounds = array<i64: 1, 256>}, {pipeline_mode = #tpu.pipeline_mode<synchronous>, transform_indices = @transform_14, window_bounds = array<i64: 128, 128>}, {pipeline_mode = #tpu.pipeline_mode<synchronous>, transform_indices = @transform_15, window_bounds = array<i64: 1, 128>}, {pipeline_mode = #tpu.pipeline_mode<synchronous>, transform_indices = @transform_16, window_bounds = array<i64: 1, 128>}, {pipeline_mode = #tpu.pipeline_mode<synchronous>, transform_indices = @transform_17, window_bounds = array<i64: 1, 128>}, {pipeline_mode = #tpu.pipeline_mode<synchronous>, transform_indices = @transform_18, window_bounds = array<i64: 2, 8, 128>}, {pipeline_mode = #tpu.pipeline_mode<synchronous>, transform_indices = @transform_19, window_bounds = array<i64: 2, 8, 128>}]} {
    %c0 = arith.constant 0 : index
    %c0_0 = arith.constant 0 : index
    %0 = vector.load %arg1[%c0, %c0_0] : memref<18x128xf32, #tpu.memory_space<vmem>>, vector<18x128xf32>
    %1 = vector.extract_strided_slice %0 {offsets = [1, 0], sizes = [8, 128], strides = [1, 1]} : vector<18x128xf32> to vector<8x128xf32>
    %2 = vector.extract_strided_slice %0 {offsets = [10, 0], sizes = [8, 128], strides = [1, 1]} : vector<18x128xf32> to vector<8x128xf32>
    %3 = tpu.concatenate %1, %2 in 0 : vector<8x128xf32>, vector<8x128xf32> -> vector<16x128xf32>
    %c0_1 = arith.constant 0 : index
    %c0_2 = arith.constant 0 : index
    %4 = vector.load %arg3[%c0_1, %c0_2] : memref<1x128xf32, #tpu.memory_space<vmem>>, vector<1x128xf32>
    %c0_3 = arith.constant 0 : index
    %c0_4 = arith.constant 0 : index
    %5 = vector.load %arg4[%c0_3, %c0_4] : memref<1x128xf32, #tpu.memory_space<vmem>>, vector<1x128xf32>
    %cst = arith.constant dense<0.000000e+00> : vector<16xf32>
    %6 = vector.multi_reduction <add>, %3, %cst [1] : vector<16x128xf32> to vector<16xf32>
    %7 = vector.shape_cast %6 : vector<16xf32> to vector<16x1xf32>
    %cst_5 = arith.constant 1.280000e+02 : f32
    %8 = vector.broadcast %cst_5 : f32 to vector<16x1xf32>
    %9 = arith.divf %7, %8 : vector<16x1xf32>
    %10 = vector.broadcast %9 : vector<16x1xf32> to vector<16x128xf32>
    %11 = arith.subf %3, %10 : vector<16x128xf32>
    %12 = arith.mulf %11, %11 : vector<16x128xf32>
    %cst_6 = arith.constant dense<0.000000e+00> : vector<16xf32>
    %13 = vector.multi_reduction <add>, %12, %cst_6 [1] : vector<16x128xf32> to vector<16xf32>
    %14 = vector.shape_cast %13 : vector<16xf32> to vector<16x1xf32>
    %cst_7 = arith.constant 1.280000e+02 : f32
    %15 = vector.broadcast %cst_7 : f32 to vector<16x1xf32>
    %16 = arith.divf %14, %15 : vector<16x1xf32>
    %17 = vector.broadcast %9 : vector<16x1xf32> to vector<16x128xf32>
    %18 = arith.subf %3, %17 : vector<16x128xf32>
    %cst_8 = arith.constant 9.99999974E-6 : f32
    %19 = vector.broadcast %cst_8 : f32 to vector<16x1xf32>
    %20 = arith.addf %16, %19 : vector<16x1xf32>
    %21 = math.rsqrt %20 : vector<16x1xf32>
    %22 = vector.broadcast %21 : vector<16x1xf32> to vector<16x128xf32>
    %23 = arith.mulf %18, %22 : vector<16x128xf32>
    %24 = vector.broadcast %4 : vector<1x128xf32> to vector<16x128xf32>
    %25 = arith.mulf %23, %24 : vector<16x128xf32>
    %26 = vector.broadcast %5 : vector<1x128xf32> to vector<16x128xf32>
    %27 = arith.addf %25, %26 : vector<16x128xf32>
    %c0_9 = arith.constant 0 : index
    %c0_10 = arith.constant 0 : index
    %28 = vector.load %arg7[%c0_9, %c0_10] : memref<1x128xf32, #tpu.memory_space<vmem>>, vector<1x128xf32>
    %c0_11 = arith.constant 0 : index
    %c0_12 = arith.constant 0 : index
    %29 = vector.load %arg8[%c0_11, %c0_12] : memref<1x128xf32, #tpu.memory_space<vmem>>, vector<1x128xf32>
    %cst_13 = arith.constant dense<0.000000e+00> : vector<16xf32>
    %30 = vector.multi_reduction <add>, %27, %cst_13 [1] : vector<16x128xf32> to vector<16xf32>
    %31 = vector.shape_cast %30 : vector<16xf32> to vector<16x1xf32>
    %cst_14 = arith.constant 1.280000e+02 : f32
    %32 = vector.broadcast %cst_14 : f32 to vector<16x1xf32>
    %33 = arith.divf %31, %32 : vector<16x1xf32>
    %34 = vector.broadcast %33 : vector<16x1xf32> to vector<16x128xf32>
    %35 = arith.subf %27, %34 : vector<16x128xf32>
    %36 = arith.mulf %35, %35 : vector<16x128xf32>
    %cst_15 = arith.constant dense<0.000000e+00> : vector<16xf32>
    %37 = vector.multi_reduction <add>, %36, %cst_15 [1] : vector<16x128xf32> to vector<16xf32>
    %38 = vector.shape_cast %37 : vector<16xf32> to vector<16x1xf32>
    %cst_16 = arith.constant 1.280000e+02 : f32
    %39 = vector.broadcast %cst_16 : f32 to vector<16x1xf32>
    %40 = arith.divf %38, %39 : vector<16x1xf32>
    %41 = vector.broadcast %33 : vector<16x1xf32> to vector<16x128xf32>
    %42 = arith.subf %27, %41 : vector<16x128xf32>
    %cst_17 = arith.constant 9.99999974E-6 : f32
    %43 = vector.broadcast %cst_17 : f32 to vector<16x1xf32>
    %44 = arith.addf %40, %43 : vector<16x1xf32>
    %45 = math.rsqrt %44 : vector<16x1xf32>
    %46 = vector.broadcast %45 : vector<16x1xf32> to vector<16x128xf32>
    %47 = arith.mulf %42, %46 : vector<16x128xf32>
    %48 = vector.broadcast %28 : vector<1x128xf32> to vector<16x128xf32>
    %49 = arith.mulf %47, %48 : vector<16x128xf32>
    %50 = vector.broadcast %29 : vector<1x128xf32> to vector<16x128xf32>
    %51 = arith.addf %49, %50 : vector<16x128xf32>
    %52 = arith.truncf %51 : vector<16x128xf32> to vector<16x128xbf16>
    %c0_18 = arith.constant 0 : index
    %c0_19 = arith.constant 0 : index
    %53 = vector.load %arg11[%c0_18, %c0_19] : memref<128x128xbf16, #tpu.memory_space<vmem>>, vector<128x128xbf16>
    %cst_20 = arith.constant dense<0.000000e+00> : vector<16x128xf32>
    %54 = tpu.matmul %52, %53, %cst_20 {dimension_numbers = #tpu.dot_dimension_numbers<[1], [0], [0], [1], [0, 0, 1, 1], [], []>} : vector<16x128xbf16>, vector<128x128xbf16>, vector<16x128xf32> -> vector<16x128xf32>
    %c0_21 = arith.constant 0 : index
    %c0_22 = arith.constant 0 : index
    %55 = vector.load %arg12[%c0_21, %c0_22] : memref<1x128xf32, #tpu.memory_space<vmem>>, vector<1x128xf32>
    %56 = vector.broadcast %55 : vector<1x128xf32> to vector<16x128xf32>
    %57 = arith.addf %54, %56 : vector<16x128xf32>
    %cst_23 = arith.constant 2.500000e-01 : f32
    %58 = vector.broadcast %cst_23 : f32 to vector<16x128xf32>
    %59 = arith.mulf %57, %58 : vector<16x128xf32>
    %c0_24 = arith.constant 0 : index
    %c0_25 = arith.constant 0 : index
    %c0_26 = arith.constant 0 : index
    %60 = vector.load %arg2[%c0_24, %c0_25, %c0_26] : memref<2x32x1xf32, #tpu.memory_space<vmem>>, vector<1x32x1xf32>
    %61 = vector.shape_cast %60 : vector<1x32x1xf32> to vector<32x1xf32>
    %c0_27 = arith.constant 0 : index
    %c0_28 = arith.constant 0 : index
    %62 = vector.load %arg5[%c0_27, %c0_28] : memref<1x128xf32, #tpu.memory_space<vmem>>, vector<1x128xf32>
    %63 = vector.broadcast %61 : vector<32x1xf32> to vector<32x128xf32>
    %64 = vector.broadcast %62 : vector<1x128xf32> to vector<32x128xf32>
    %65 = arith.mulf %63, %64 : vector<32x128xf32>
    %c0_29 = arith.constant 0 : index
    %c0_30 = arith.constant 0 : index
    %66 = vector.load %arg6[%c0_29, %c0_30] : memref<1x128xf32, #tpu.memory_space<vmem>>, vector<1x128xf32>
    %67 = vector.broadcast %66 : vector<1x128xf32> to vector<32x128xf32>
    %68 = arith.addf %65, %67 : vector<32x128xf32>
    %c0_31 = arith.constant 0 : index
    %c0_32 = arith.constant 0 : index
    %69 = vector.load %arg9[%c0_31, %c0_32] : memref<1x128xf32, #tpu.memory_space<vmem>>, vector<1x128xf32>
    %c0_33 = arith.constant 0 : index
    %c0_34 = arith.constant 0 : index
    %70 = vector.load %arg10[%c0_33, %c0_34] : memref<1x128xf32, #tpu.memory_space<vmem>>, vector<1x128xf32>
    %cst_35 = arith.constant dense<0.000000e+00> : vector<32xf32>
    %71 = vector.multi_reduction <add>, %68, %cst_35 [1] : vector<32x128xf32> to vector<32xf32>
    %72 = vector.shape_cast %71 : vector<32xf32> to vector<32x1xf32>
    %cst_36 = arith.constant 1.280000e+02 : f32
    %73 = vector.broadcast %cst_36 : f32 to vector<32x1xf32>
    %74 = arith.divf %72, %73 : vector<32x1xf32>
    %75 = vector.broadcast %74 : vector<32x1xf32> to vector<32x128xf32>
    %76 = arith.subf %68, %75 : vector<32x128xf32>
    %77 = arith.mulf %76, %76 : vector<32x128xf32>
    %cst_37 = arith.constant dense<0.000000e+00> : vector<32xf32>
    %78 = vector.multi_reduction <add>, %77, %cst_37 [1] : vector<32x128xf32> to vector<32xf32>
    %79 = vector.shape_cast %78 : vector<32xf32> to vector<32x1xf32>
    %cst_38 = arith.constant 1.280000e+02 : f32
    %80 = vector.broadcast %cst_38 : f32 to vector<32x1xf32>
    %81 = arith.divf %79, %80 : vector<32x1xf32>
    %82 = vector.broadcast %74 : vector<32x1xf32> to vector<32x128xf32>
    %83 = arith.subf %68, %82 : vector<32x128xf32>
    %cst_39 = arith.constant 9.99999974E-6 : f32
    %84 = vector.broadcast %cst_39 : f32 to vector<32x1xf32>
    %85 = arith.addf %81, %84 : vector<32x1xf32>
    %86 = math.rsqrt %85 : vector<32x1xf32>
    %87 = vector.broadcast %86 : vector<32x1xf32> to vector<32x128xf32>
    %88 = arith.mulf %83, %87 : vector<32x128xf32>
    %89 = vector.broadcast %69 : vector<1x128xf32> to vector<32x128xf32>
    %90 = arith.mulf %88, %89 : vector<32x128xf32>
    %91 = vector.broadcast %70 : vector<1x128xf32> to vector<32x128xf32>
    %92 = arith.addf %90, %91 : vector<32x128xf32>
    %93 = arith.truncf %92 : vector<32x128xf32> to vector<32x128xbf16>
    %c0_40 = arith.constant 0 : index
    %c0_41 = arith.constant 0 : index
    %94 = vector.load %arg13[%c0_40, %c0_41] : memref<128x256xbf16, #tpu.memory_space<vmem>>, vector<128x256xbf16>
    %cst_42 = arith.constant dense<0.000000e+00> : vector<32x256xf32>
    %95 = tpu.matmul %93, %94, %cst_42 {dimension_numbers = #tpu.dot_dimension_numbers<[1], [0], [0], [1], [0, 0, 1, 1], [], []>} : vector<32x128xbf16>, vector<128x256xbf16>, vector<32x256xf32> -> vector<32x256xf32>
    %c0_43 = arith.constant 0 : index
    %c0_44 = arith.constant 0 : index
    %96 = vector.load %arg14[%c0_43, %c0_44] : memref<1x256xf32, #tpu.memory_space<vmem>>, vector<1x256xf32>
    %97 = vector.broadcast %96 : vector<1x256xf32> to vector<32x256xf32>
    %98 = arith.addf %95, %97 : vector<32x256xf32>
    %99 = vector.extract_strided_slice %98 {offsets = [0, 0], sizes = [32, 128], strides = [1, 1]} : vector<32x256xf32> to vector<32x128xf32>
    %100 = vector.extract_strided_slice %98 {offsets = [0, 128], sizes = [32, 128], strides = [1, 1]} : vector<32x256xf32> to vector<32x128xf32>
    %101 = vector.extract_strided_slice %59 {offsets = [0, 0], sizes = [8, 128], strides = [1, 1]} : vector<16x128xf32> to vector<8x128xf32>
    %cst_45 = arith.constant 0.000000e+00 : f32
    %102 = vector.broadcast %cst_45 : f32 to vector<8x32xf32>
    %103 = vector.extract_strided_slice %101 {offsets = [0, 0], sizes = [8, 16], strides = [1, 1]} : vector<8x128xf32> to vector<8x16xf32>
    %104 = arith.truncf %103 : vector<8x16xf32> to vector<8x16xbf16>
    %105 = vector.extract_strided_slice %99 {offsets = [0, 0], sizes = [32, 16], strides = [1, 1]} : vector<32x128xf32> to vector<32x16xf32>
    %106 = arith.truncf %105 : vector<32x16xf32> to vector<32x16xbf16>
    "tpu.trace_start"() <{level = 10 : i32, message = "qd,kd->qk"}> : () -> ()
    %cst_46 = arith.constant dense<0.000000e+00> : vector<8x32xf32>
    %107 = tpu.matmul %104, %106, %cst_46 {dimension_numbers = #tpu.dot_dimension_numbers<[1], [1], [0], [0], [0, 0, 1, 0], [], []>} : vector<8x16xbf16>, vector<32x16xbf16>, vector<8x32xf32> -> vector<8x32xf32>
    "tpu.trace_stop"() : () -> ()
    %cst_47 = arith.constant dense<0xFF800000> : vector<8xf32>
    %108 = vector.multi_reduction <maximumf>, %107, %cst_47 [1] : vector<8x32xf32> to vector<8xf32>
    %109 = vector.shape_cast %108 : vector<8xf32> to vector<8x1xf32>
    %110 = vector.broadcast %109 : vector<8x1xf32> to vector<8x32xf32>
    %111 = arith.subf %107, %110 : vector<8x32xf32>
    %112 = math.exp %111 : vector<8x32xf32>
    %cst_48 = arith.constant dense<0.000000e+00> : vector<8xf32>
    %113 = vector.multi_reduction <add>, %112, %cst_48 [1] : vector<8x32xf32> to vector<8xf32>
    %114 = vector.shape_cast %113 : vector<8xf32> to vector<8x1xf32>
    %115 = vector.broadcast %114 : vector<8x1xf32> to vector<8x32xf32>
    %116 = arith.divf %112, %115 : vector<8x32xf32>
    %117 = arith.addf %102, %116 : vector<8x32xf32>
    %118 = arith.truncf %116 : vector<8x32xf32> to vector<8x32xbf16>
    %119 = vector.extract_strided_slice %100 {offsets = [0, 0], sizes = [32, 16], strides = [1, 1]} : vector<32x128xf32> to vector<32x16xf32>
    %120 = arith.truncf %119 : vector<32x16xf32> to vector<32x16xbf16>
    %cst_49 = arith.constant dense<0.000000e+00> : vector<8x16xf32>
    %121 = tpu.matmul %118, %120, %cst_49 {dimension_numbers = #tpu.dot_dimension_numbers<[1], [0], [0], [1], [0, 0, 1, 1], [], []>} : vector<8x32xbf16>, vector<32x16xbf16>, vector<8x16xf32> -> vector<8x16xf32>
    %122 = vector.extract_strided_slice %101 {offsets = [0, 16], sizes = [8, 16], strides = [1, 1]} : vector<8x128xf32> to vector<8x16xf32>
    %123 = arith.truncf %122 : vector<8x16xf32> to vector<8x16xbf16>
    %124 = vector.extract_strided_slice %99 {offsets = [0, 16], sizes = [32, 16], strides = [1, 1]} : vector<32x128xf32> to vector<32x16xf32>
    %125 = arith.truncf %124 : vector<32x16xf32> to vector<32x16xbf16>
    "tpu.trace_start"() <{level = 10 : i32, message = "qd,kd->qk"}> : () -> ()
    %cst_50 = arith.constant dense<0.000000e+00> : vector<8x32xf32>
    %126 = tpu.matmul %123, %125, %cst_50 {dimension_numbers = #tpu.dot_dimension_numbers<[1], [1], [0], [0], [0, 0, 1, 0], [], []>} : vector<8x16xbf16>, vector<32x16xbf16>, vector<8x32xf32> -> vector<8x32xf32>
    "tpu.trace_stop"() : () -> ()
    %cst_51 = arith.constant dense<0xFF800000> : vector<8xf32>
    %127 = vector.multi_reduction <maximumf>, %126, %cst_51 [1] : vector<8x32xf32> to vector<8xf32>
    %128 = vector.shape_cast %127 : vector<8xf32> to vector<8x1xf32>
    %129 = vector.broadcast %128 : vector<8x1xf32> to vector<8x32xf32>
    %130 = arith.subf %126, %129 : vector<8x32xf32>
    %131 = math.exp %130 : vector<8x32xf32>
    %cst_52 = arith.constant dense<0.000000e+00> : vector<8xf32>
    %132 = vector.multi_reduction <add>, %131, %cst_52 [1] : vector<8x32xf32> to vector<8xf32>
    %133 = vector.shape_cast %132 : vector<8xf32> to vector<8x1xf32>
    %134 = vector.broadcast %133 : vector<8x1xf32> to vector<8x32xf32>
    %135 = arith.divf %131, %134 : vector<8x32xf32>
    %136 = arith.addf %117, %135 : vector<8x32xf32>
    %137 = arith.truncf %135 : vector<8x32xf32> to vector<8x32xbf16>
    %138 = vector.extract_strided_slice %100 {offsets = [0, 16], sizes = [32, 16], strides = [1, 1]} : vector<32x128xf32> to vector<32x16xf32>
    %139 = arith.truncf %138 : vector<32x16xf32> to vector<32x16xbf16>
    %cst_53 = arith.constant dense<0.000000e+00> : vector<8x16xf32>
    %140 = tpu.matmul %137, %139, %cst_53 {dimension_numbers = #tpu.dot_dimension_numbers<[1], [0], [0], [1], [0, 0, 1, 1], [], []>} : vector<8x32xbf16>, vector<32x16xbf16>, vector<8x16xf32> -> vector<8x16xf32>
    %141 = vector.extract_strided_slice %101 {offsets = [0, 32], sizes = [8, 16], strides = [1, 1]} : vector<8x128xf32> to vector<8x16xf32>
    %142 = arith.truncf %141 : vector<8x16xf32> to vector<8x16xbf16>
    %143 = vector.extract_strided_slice %99 {offsets = [0, 32], sizes = [32, 16], strides = [1, 1]} : vector<32x128xf32> to vector<32x16xf32>
    %144 = arith.truncf %143 : vector<32x16xf32> to vector<32x16xbf16>
    "tpu.trace_start"() <{level = 10 : i32, message = "qd,kd->qk"}> : () -> ()
    %cst_54 = arith.constant dense<0.000000e+00> : vector<8x32xf32>
    %145 = tpu.matmul %142, %144, %cst_54 {dimension_numbers = #tpu.dot_dimension_numbers<[1], [1], [0], [0], [0, 0, 1, 0], [], []>} : vector<8x16xbf16>, vector<32x16xbf16>, vector<8x32xf32> -> vector<8x32xf32>
    "tpu.trace_stop"() : () -> ()
    %cst_55 = arith.constant dense<0xFF800000> : vector<8xf32>
    %146 = vector.multi_reduction <maximumf>, %145, %cst_55 [1] : vector<8x32xf32> to vector<8xf32>
    %147 = vector.shape_cast %146 : vector<8xf32> to vector<8x1xf32>
    %148 = vector.broadcast %147 : vector<8x1xf32> to vector<8x32xf32>
    %149 = arith.subf %145, %148 : vector<8x32xf32>
    %150 = math.exp %149 : vector<8x32xf32>
    %cst_56 = arith.constant dense<0.000000e+00> : vector<8xf32>
    %151 = vector.multi_reduction <add>, %150, %cst_56 [1] : vector<8x32xf32> to vector<8xf32>
    %152 = vector.shape_cast %151 : vector<8xf32> to vector<8x1xf32>
    %153 = vector.broadcast %152 : vector<8x1xf32> to vector<8x32xf32>
    %154 = arith.divf %150, %153 : vector<8x32xf32>
    %155 = arith.addf %136, %154 : vector<8x32xf32>
    %156 = arith.truncf %154 : vector<8x32xf32> to vector<8x32xbf16>
    %157 = vector.extract_strided_slice %100 {offsets = [0, 32], sizes = [32, 16], strides = [1, 1]} : vector<32x128xf32> to vector<32x16xf32>
    %158 = arith.truncf %157 : vector<32x16xf32> to vector<32x16xbf16>
    %cst_57 = arith.constant dense<0.000000e+00> : vector<8x16xf32>
    %159 = tpu.matmul %156, %158, %cst_57 {dimension_numbers = #tpu.dot_dimension_numbers<[1], [0], [0], [1], [0, 0, 1, 1], [], []>} : vector<8x32xbf16>, vector<32x16xbf16>, vector<8x16xf32> -> vector<8x16xf32>
    %160 = vector.extract_strided_slice %101 {offsets = [0, 48], sizes = [8, 16], strides = [1, 1]} : vector<8x128xf32> to vector<8x16xf32>
    %161 = arith.truncf %160 : vector<8x16xf32> to vector<8x16xbf16>
    %162 = vector.extract_strided_slice %99 {offsets = [0, 48], sizes = [32, 16], strides = [1, 1]} : vector<32x128xf32> to vector<32x16xf32>
    %163 = arith.truncf %162 : vector<32x16xf32> to vector<32x16xbf16>
    "tpu.trace_start"() <{level = 10 : i32, message = "qd,kd->qk"}> : () -> ()
    %cst_58 = arith.constant dense<0.000000e+00> : vector<8x32xf32>
    %164 = tpu.matmul %161, %163, %cst_58 {dimension_numbers = #tpu.dot_dimension_numbers<[1], [1], [0], [0], [0, 0, 1, 0], [], []>} : vector<8x16xbf16>, vector<32x16xbf16>, vector<8x32xf32> -> vector<8x32xf32>
    "tpu.trace_stop"() : () -> ()
    %cst_59 = arith.constant dense<0xFF800000> : vector<8xf32>
    %165 = vector.multi_reduction <maximumf>, %164, %cst_59 [1] : vector<8x32xf32> to vector<8xf32>
    %166 = vector.shape_cast %165 : vector<8xf32> to vector<8x1xf32>
    %167 = vector.broadcast %166 : vector<8x1xf32> to vector<8x32xf32>
    %168 = arith.subf %164, %167 : vector<8x32xf32>
    %169 = math.exp %168 : vector<8x32xf32>
    %cst_60 = arith.constant dense<0.000000e+00> : vector<8xf32>
    %170 = vector.multi_reduction <add>, %169, %cst_60 [1] : vector<8x32xf32> to vector<8xf32>
    %171 = vector.shape_cast %170 : vector<8xf32> to vector<8x1xf32>
    %172 = vector.broadcast %171 : vector<8x1xf32> to vector<8x32xf32>
    %173 = arith.divf %169, %172 : vector<8x32xf32>
    %174 = arith.addf %155, %173 : vector<8x32xf32>
    %175 = arith.truncf %173 : vector<8x32xf32> to vector<8x32xbf16>
    %176 = vector.extract_strided_slice %100 {offsets = [0, 48], sizes = [32, 16], strides = [1, 1]} : vector<32x128xf32> to vector<32x16xf32>
    %177 = arith.truncf %176 : vector<32x16xf32> to vector<32x16xbf16>
    %cst_61 = arith.constant dense<0.000000e+00> : vector<8x16xf32>
    %178 = tpu.matmul %175, %177, %cst_61 {dimension_numbers = #tpu.dot_dimension_numbers<[1], [0], [0], [1], [0, 0, 1, 1], [], []>} : vector<8x32xbf16>, vector<32x16xbf16>, vector<8x16xf32> -> vector<8x16xf32>
    %179 = vector.extract_strided_slice %101 {offsets = [0, 64], sizes = [8, 16], strides = [1, 1]} : vector<8x128xf32> to vector<8x16xf32>
    %180 = arith.truncf %179 : vector<8x16xf32> to vector<8x16xbf16>
    %181 = vector.extract_strided_slice %99 {offsets = [0, 64], sizes = [32, 16], strides = [1, 1]} : vector<32x128xf32> to vector<32x16xf32>
    %182 = arith.truncf %181 : vector<32x16xf32> to vector<32x16xbf16>
    "tpu.trace_start"() <{level = 10 : i32, message = "qd,kd->qk"}> : () -> ()
    %cst_62 = arith.constant dense<0.000000e+00> : vector<8x32xf32>
    %183 = tpu.matmul %180, %182, %cst_62 {dimension_numbers = #tpu.dot_dimension_numbers<[1], [1], [0], [0], [0, 0, 1, 0], [], []>} : vector<8x16xbf16>, vector<32x16xbf16>, vector<8x32xf32> -> vector<8x32xf32>
    "tpu.trace_stop"() : () -> ()
    %cst_63 = arith.constant dense<0xFF800000> : vector<8xf32>
    %184 = vector.multi_reduction <maximumf>, %183, %cst_63 [1] : vector<8x32xf32> to vector<8xf32>
    %185 = vector.shape_cast %184 : vector<8xf32> to vector<8x1xf32>
    %186 = vector.broadcast %185 : vector<8x1xf32> to vector<8x32xf32>
    %187 = arith.subf %183, %186 : vector<8x32xf32>
    %188 = math.exp %187 : vector<8x32xf32>
    %cst_64 = arith.constant dense<0.000000e+00> : vector<8xf32>
    %189 = vector.multi_reduction <add>, %188, %cst_64 [1] : vector<8x32xf32> to vector<8xf32>
    %190 = vector.shape_cast %189 : vector<8xf32> to vector<8x1xf32>
    %191 = vector.broadcast %190 : vector<8x1xf32> to vector<8x32xf32>
    %192 = arith.divf %188, %191 : vector<8x32xf32>
    %193 = arith.addf %174, %192 : vector<8x32xf32>
    %194 = arith.truncf %192 : vector<8x32xf32> to vector<8x32xbf16>
    %195 = vector.extract_strided_slice %100 {offsets = [0, 64], sizes = [32, 16], strides = [1, 1]} : vector<32x128xf32> to vector<32x16xf32>
    %196 = arith.truncf %195 : vector<32x16xf32> to vector<32x16xbf16>
    %cst_65 = arith.constant dense<0.000000e+00> : vector<8x16xf32>
    %197 = tpu.matmul %194, %196, %cst_65 {dimension_numbers = #tpu.dot_dimension_numbers<[1], [0], [0], [1], [0, 0, 1, 1], [], []>} : vector<8x32xbf16>, vector<32x16xbf16>, vector<8x16xf32> -> vector<8x16xf32>
    %198 = vector.extract_strided_slice %101 {offsets = [0, 80], sizes = [8, 16], strides = [1, 1]} : vector<8x128xf32> to vector<8x16xf32>
    %199 = arith.truncf %198 : vector<8x16xf32> to vector<8x16xbf16>
    %200 = vector.extract_strided_slice %99 {offsets = [0, 80], sizes = [32, 16], strides = [1, 1]} : vector<32x128xf32> to vector<32x16xf32>
    %201 = arith.truncf %200 : vector<32x16xf32> to vector<32x16xbf16>
    "tpu.trace_start"() <{level = 10 : i32, message = "qd,kd->qk"}> : () -> ()
    %cst_66 = arith.constant dense<0.000000e+00> : vector<8x32xf32>
    %202 = tpu.matmul %199, %201, %cst_66 {dimension_numbers = #tpu.dot_dimension_numbers<[1], [1], [0], [0], [0, 0, 1, 0], [], []>} : vector<8x16xbf16>, vector<32x16xbf16>, vector<8x32xf32> -> vector<8x32xf32>
    "tpu.trace_stop"() : () -> ()
    %cst_67 = arith.constant dense<0xFF800000> : vector<8xf32>
    %203 = vector.multi_reduction <maximumf>, %202, %cst_67 [1] : vector<8x32xf32> to vector<8xf32>
    %204 = vector.shape_cast %203 : vector<8xf32> to vector<8x1xf32>
    %205 = vector.broadcast %204 : vector<8x1xf32> to vector<8x32xf32>
    %206 = arith.subf %202, %205 : vector<8x32xf32>
    %207 = math.exp %206 : vector<8x32xf32>
    %cst_68 = arith.constant dense<0.000000e+00> : vector<8xf32>
    %208 = vector.multi_reduction <add>, %207, %cst_68 [1] : vector<8x32xf32> to vector<8xf32>
    %209 = vector.shape_cast %208 : vector<8xf32> to vector<8x1xf32>
    %210 = vector.broadcast %209 : vector<8x1xf32> to vector<8x32xf32>
    %211 = arith.divf %207, %210 : vector<8x32xf32>
    %212 = arith.addf %193, %211 : vector<8x32xf32>
    %213 = arith.truncf %211 : vector<8x32xf32> to vector<8x32xbf16>
    %214 = vector.extract_strided_slice %100 {offsets = [0, 80], sizes = [32, 16], strides = [1, 1]} : vector<32x128xf32> to vector<32x16xf32>
    %215 = arith.truncf %214 : vector<32x16xf32> to vector<32x16xbf16>
    %cst_69 = arith.constant dense<0.000000e+00> : vector<8x16xf32>
    %216 = tpu.matmul %213, %215, %cst_69 {dimension_numbers = #tpu.dot_dimension_numbers<[1], [0], [0], [1], [0, 0, 1, 1], [], []>} : vector<8x32xbf16>, vector<32x16xbf16>, vector<8x16xf32> -> vector<8x16xf32>
    %217 = vector.extract_strided_slice %101 {offsets = [0, 96], sizes = [8, 16], strides = [1, 1]} : vector<8x128xf32> to vector<8x16xf32>
    %218 = arith.truncf %217 : vector<8x16xf32> to vector<8x16xbf16>
    %219 = vector.extract_strided_slice %99 {offsets = [0, 96], sizes = [32, 16], strides = [1, 1]} : vector<32x128xf32> to vector<32x16xf32>
    %220 = arith.truncf %219 : vector<32x16xf32> to vector<32x16xbf16>
    "tpu.trace_start"() <{level = 10 : i32, message = "qd,kd->qk"}> : () -> ()
    %cst_70 = arith.constant dense<0.000000e+00> : vector<8x32xf32>
    %221 = tpu.matmul %218, %220, %cst_70 {dimension_numbers = #tpu.dot_dimension_numbers<[1], [1], [0], [0], [0, 0, 1, 0], [], []>} : vector<8x16xbf16>, vector<32x16xbf16>, vector<8x32xf32> -> vector<8x32xf32>
    "tpu.trace_stop"() : () -> ()
    %cst_71 = arith.constant dense<0xFF800000> : vector<8xf32>
    %222 = vector.multi_reduction <maximumf>, %221, %cst_71 [1] : vector<8x32xf32> to vector<8xf32>
    %223 = vector.shape_cast %222 : vector<8xf32> to vector<8x1xf32>
    %224 = vector.broadcast %223 : vector<8x1xf32> to vector<8x32xf32>
    %225 = arith.subf %221, %224 : vector<8x32xf32>
    %226 = math.exp %225 : vector<8x32xf32>
    %cst_72 = arith.constant dense<0.000000e+00> : vector<8xf32>
    %227 = vector.multi_reduction <add>, %226, %cst_72 [1] : vector<8x32xf32> to vector<8xf32>
    %228 = vector.shape_cast %227 : vector<8xf32> to vector<8x1xf32>
    %229 = vector.broadcast %228 : vector<8x1xf32> to vector<8x32xf32>
    %230 = arith.divf %226, %229 : vector<8x32xf32>
    %231 = arith.addf %212, %230 : vector<8x32xf32>
    %232 = arith.truncf %230 : vector<8x32xf32> to vector<8x32xbf16>
    %233 = vector.extract_strided_slice %100 {offsets = [0, 96], sizes = [32, 16], strides = [1, 1]} : vector<32x128xf32> to vector<32x16xf32>
    %234 = arith.truncf %233 : vector<32x16xf32> to vector<32x16xbf16>
    %cst_73 = arith.constant dense<0.000000e+00> : vector<8x16xf32>
    %235 = tpu.matmul %232, %234, %cst_73 {dimension_numbers = #tpu.dot_dimension_numbers<[1], [0], [0], [1], [0, 0, 1, 1], [], []>} : vector<8x32xbf16>, vector<32x16xbf16>, vector<8x16xf32> -> vector<8x16xf32>
    %236 = vector.extract_strided_slice %101 {offsets = [0, 112], sizes = [8, 16], strides = [1, 1]} : vector<8x128xf32> to vector<8x16xf32>
    %237 = arith.truncf %236 : vector<8x16xf32> to vector<8x16xbf16>
    %238 = vector.extract_strided_slice %99 {offsets = [0, 112], sizes = [32, 16], strides = [1, 1]} : vector<32x128xf32> to vector<32x16xf32>
    %239 = arith.truncf %238 : vector<32x16xf32> to vector<32x16xbf16>
    "tpu.trace_start"() <{level = 10 : i32, message = "qd,kd->qk"}> : () -> ()
    %cst_74 = arith.constant dense<0.000000e+00> : vector<8x32xf32>
    %240 = tpu.matmul %237, %239, %cst_74 {dimension_numbers = #tpu.dot_dimension_numbers<[1], [1], [0], [0], [0, 0, 1, 0], [], []>} : vector<8x16xbf16>, vector<32x16xbf16>, vector<8x32xf32> -> vector<8x32xf32>
    "tpu.trace_stop"() : () -> ()
    %cst_75 = arith.constant dense<0xFF800000> : vector<8xf32>
    %241 = vector.multi_reduction <maximumf>, %240, %cst_75 [1] : vector<8x32xf32> to vector<8xf32>
    %242 = vector.shape_cast %241 : vector<8xf32> to vector<8x1xf32>
    %243 = vector.broadcast %242 : vector<8x1xf32> to vector<8x32xf32>
    %244 = arith.subf %240, %243 : vector<8x32xf32>
    %245 = math.exp %244 : vector<8x32xf32>
    %cst_76 = arith.constant dense<0.000000e+00> : vector<8xf32>
    %246 = vector.multi_reduction <add>, %245, %cst_76 [1] : vector<8x32xf32> to vector<8xf32>
    %247 = vector.shape_cast %246 : vector<8xf32> to vector<8x1xf32>
    %248 = vector.broadcast %247 : vector<8x1xf32> to vector<8x32xf32>
    %249 = arith.divf %245, %248 : vector<8x32xf32>
    %250 = arith.addf %231, %249 : vector<8x32xf32>
    %251 = arith.truncf %249 : vector<8x32xf32> to vector<8x32xbf16>
    %252 = vector.extract_strided_slice %100 {offsets = [0, 112], sizes = [32, 16], strides = [1, 1]} : vector<32x128xf32> to vector<32x16xf32>
    %253 = arith.truncf %252 : vector<32x16xf32> to vector<32x16xbf16>
    %cst_77 = arith.constant dense<0.000000e+00> : vector<8x16xf32>
    %254 = tpu.matmul %251, %253, %cst_77 {dimension_numbers = #tpu.dot_dimension_numbers<[1], [0], [0], [1], [0, 0, 1, 1], [], []>} : vector<8x32xbf16>, vector<32x16xbf16>, vector<8x16xf32> -> vector<8x16xf32>
    %255 = tpu.concatenate %121, %140, %159, %178, %197, %216, %235, %254 in 1 : vector<8x16xf32>, vector<8x16xf32>, vector<8x16xf32>, vector<8x16xf32>, vector<8x16xf32>, vector<8x16xf32>, vector<8x16xf32>, vector<8x16xf32> -> vector<8x128xf32>
    %cst_78 = arith.constant 1.250000e-01 : f32
    %256 = vector.broadcast %cst_78 : f32 to vector<8x32xf32>
    %257 = arith.mulf %250, %256 : vector<8x32xf32>
    %cst_79 = arith.constant 0.000000e+00 : f32
    %258 = vector.broadcast %cst_79 : f32 to vector<8x96xf32>
    %259 = tpu.concatenate %257, %258 in 1 : vector<8x32xf32>, vector<8x96xf32> -> vector<8x128xf32>
    %c0_80 = arith.constant 0 : index
    %c0_81 = arith.constant 0 : index
    %c0_82 = arith.constant 0 : index
    %260 = vector.load %arg20[%c0_80, %c0_81, %c0_82] : memref<2x8x128xf32, #tpu.memory_space<vmem>>, vector<1x8x128xf32>
    %261 = vector.shape_cast %260 : vector<1x8x128xf32> to vector<8x128xf32>
    %262 = vector.shape_cast %259 : vector<8x128xf32> to vector<1x8x128xf32>
    tpu.vector_store %arg20[%c0_80, %c0_81, %c0_82], %262 {strides = array<i32>} : memref<2x8x128xf32, #tpu.memory_space<vmem>>, vector<1x8x128xf32>,
    %c1 = arith.constant 1 : index
    %c0_83 = arith.constant 0 : index
    %c0_84 = arith.constant 0 : index
    %263 = vector.load %arg2[%c1, %c0_83, %c0_84] : memref<2x32x1xf32, #tpu.memory_space<vmem>>, vector<1x32x1xf32>
    %264 = vector.shape_cast %263 : vector<1x32x1xf32> to vector<32x1xf32>
    %c0_85 = arith.constant 0 : index
    %c0_86 = arith.constant 0 : index
    %265 = vector.load %arg5[%c0_85, %c0_86] : memref<1x128xf32, #tpu.memory_space<vmem>>, vector<1x128xf32>
    %266 = vector.broadcast %264 : vector<32x1xf32> to vector<32x128xf32>
    %267 = vector.broadcast %265 : vector<1x128xf32> to vector<32x128xf32>
    %268 = arith.mulf %266, %267 : vector<32x128xf32>
    %c0_87 = arith.constant 0 : index
    %c0_88 = arith.constant 0 : index
    %269 = vector.load %arg6[%c0_87, %c0_88] : memref<1x128xf32, #tpu.memory_space<vmem>>, vector<1x128xf32>
    %270 = vector.broadcast %269 : vector<1x128xf32> to vector<32x128xf32>
    %271 = arith.addf %268, %270 : vector<32x128xf32>
    %c0_89 = arith.constant 0 : index
    %c0_90 = arith.constant 0 : index
    %272 = vector.load %arg9[%c0_89, %c0_90] : memref<1x128xf32, #tpu.memory_space<vmem>>, vector<1x128xf32>
    %c0_91 = arith.constant 0 : index
    %c0_92 = arith.constant 0 : index
    %273 = vector.load %arg10[%c0_91, %c0_92] : memref<1x128xf32, #tpu.memory_space<vmem>>, vector<1x128xf32>
    %cst_93 = arith.constant dense<0.000000e+00> : vector<32xf32>
    %274 = vector.multi_reduction <add>, %271, %cst_93 [1] : vector<32x128xf32> to vector<32xf32>
    %275 = vector.shape_cast %274 : vector<32xf32> to vector<32x1xf32>
    %cst_94 = arith.constant 1.280000e+02 : f32
    %276 = vector.broadcast %cst_94 : f32 to vector<32x1xf32>
    %277 = arith.divf %275, %276 : vector<32x1xf32>
    %278 = vector.broadcast %277 : vector<32x1xf32> to vector<32x128xf32>
    %279 = arith.subf %271, %278 : vector<32x128xf32>
    %280 = arith.mulf %279, %279 : vector<32x128xf32>
    %cst_95 = arith.constant dense<0.000000e+00> : vector<32xf32>
    %281 = vector.multi_reduction <add>, %280, %cst_95 [1] : vector<32x128xf32> to vector<32xf32>
    %282 = vector.shape_cast %281 : vector<32xf32> to vector<32x1xf32>
    %cst_96 = arith.constant 1.280000e+02 : f32
    %283 = vector.broadcast %cst_96 : f32 to vector<32x1xf32>
    %284 = arith.divf %282, %283 : vector<32x1xf32>
    %285 = vector.broadcast %277 : vector<32x1xf32> to vector<32x128xf32>
    %286 = arith.subf %271, %285 : vector<32x128xf32>
    %cst_97 = arith.constant 9.99999974E-6 : f32
    %287 = vector.broadcast %cst_97 : f32 to vector<32x1xf32>
    %288 = arith.addf %284, %287 : vector<32x1xf32>
    %289 = math.rsqrt %288 : vector<32x1xf32>
    %290 = vector.broadcast %289 : vector<32x1xf32> to vector<32x128xf32>
    %291 = arith.mulf %286, %290 : vector<32x128xf32>
    %292 = vector.broadcast %272 : vector<1x128xf32> to vector<32x128xf32>
    %293 = arith.mulf %291, %292 : vector<32x128xf32>
    %294 = vector.broadcast %273 : vector<1x128xf32> to vector<32x128xf32>
    %295 = arith.addf %293, %294 : vector<32x128xf32>
    %296 = arith.truncf %295 : vector<32x128xf32> to vector<32x128xbf16>
    %c0_98 = arith.constant 0 : index
    %c0_99 = arith.constant 0 : index
    %297 = vector.load %arg13[%c0_98, %c0_99] : memref<128x256xbf16, #tpu.memory_space<vmem>>, vector<128x256xbf16>
    %cst_100 = arith.constant dense<0.000000e+00> : vector<32x256xf32>
    %298 = tpu.matmul %296, %297, %cst_100 {dimension_numbers = #tpu.dot_dimension_numbers<[1], [0], [0], [1], [0, 0, 1, 1], [], []>} : vector<32x128xbf16>, vector<128x256xbf16>, vector<32x256xf32> -> vector<32x256xf32>
    %c0_101 = arith.constant 0 : index
    %c0_102 = arith.constant 0 : index
    %299 = vector.load %arg14[%c0_101, %c0_102] : memref<1x256xf32, #tpu.memory_space<vmem>>, vector<1x256xf32>
    %300 = vector.broadcast %299 : vector<1x256xf32> to vector<32x256xf32>
    %301 = arith.addf %298, %300 : vector<32x256xf32>
    %302 = vector.extract_strided_slice %301 {offsets = [0, 0], sizes = [32, 128], strides = [1, 1]} : vector<32x256xf32> to vector<32x128xf32>
    %303 = vector.extract_strided_slice %301 {offsets = [0, 128], sizes = [32, 128], strides = [1, 1]} : vector<32x256xf32> to vector<32x128xf32>
    %304 = vector.extract_strided_slice %59 {offsets = [8, 0], sizes = [8, 128], strides = [1, 1]} : vector<16x128xf32> to vector<8x128xf32>
    %cst_103 = arith.constant 0.000000e+00 : f32
    %305 = vector.broadcast %cst_103 : f32 to vector<8x32xf32>
    %306 = vector.extract_strided_slice %304 {offsets = [0, 0], sizes = [8, 16], strides = [1, 1]} : vector<8x128xf32> to vector<8x16xf32>
    %307 = arith.truncf %306 : vector<8x16xf32> to vector<8x16xbf16>
    %308 = vector.extract_strided_slice %302 {offsets = [0, 0], sizes = [32, 16], strides = [1, 1]} : vector<32x128xf32> to vector<32x16xf32>
    %309 = arith.truncf %308 : vector<32x16xf32> to vector<32x16xbf16>
    "tpu.trace_start"() <{level = 10 : i32, message = "qd,kd->qk"}> : () -> ()
    %cst_104 = arith.constant dense<0.000000e+00> : vector<8x32xf32>
    %310 = tpu.matmul %307, %309, %cst_104 {dimension_numbers = #tpu.dot_dimension_numbers<[1], [1], [0], [0], [0, 0, 1, 0], [], []>} : vector<8x16xbf16>, vector<32x16xbf16>, vector<8x32xf32> -> vector<8x32xf32>
    "tpu.trace_stop"() : () -> ()
    %cst_105 = arith.constant dense<0xFF800000> : vector<8xf32>
    %311 = vector.multi_reduction <maximumf>, %310, %cst_105 [1] : vector<8x32xf32> to vector<8xf32>
    %312 = vector.shape_cast %311 : vector<8xf32> to vector<8x1xf32>
    %313 = vector.broadcast %312 : vector<8x1xf32> to vector<8x32xf32>
    %314 = arith.subf %310, %313 : vector<8x32xf32>
    %315 = math.exp %314 : vector<8x32xf32>
    %cst_106 = arith.constant dense<0.000000e+00> : vector<8xf32>
    %316 = vector.multi_reduction <add>, %315, %cst_106 [1] : vector<8x32xf32> to vector<8xf32>
    %317 = vector.shape_cast %316 : vector<8xf32> to vector<8x1xf32>
    %318 = vector.broadcast %317 : vector<8x1xf32> to vector<8x32xf32>
    %319 = arith.divf %315, %318 : vector<8x32xf32>
    %320 = arith.addf %305, %319 : vector<8x32xf32>
    %321 = arith.truncf %319 : vector<8x32xf32> to vector<8x32xbf16>
    %322 = vector.extract_strided_slice %303 {offsets = [0, 0], sizes = [32, 16], strides = [1, 1]} : vector<32x128xf32> to vector<32x16xf32>
    %323 = arith.truncf %322 : vector<32x16xf32> to vector<32x16xbf16>
    %cst_107 = arith.constant dense<0.000000e+00> : vector<8x16xf32>
    %324 = tpu.matmul %321, %323, %cst_107 {dimension_numbers = #tpu.dot_dimension_numbers<[1], [0], [0], [1], [0, 0, 1, 1], [], []>} : vector<8x32xbf16>, vector<32x16xbf16>, vector<8x16xf32> -> vector<8x16xf32>
    %325 = vector.extract_strided_slice %304 {offsets = [0, 16], sizes = [8, 16], strides = [1, 1]} : vector<8x128xf32> to vector<8x16xf32>
    %326 = arith.truncf %325 : vector<8x16xf32> to vector<8x16xbf16>
    %327 = vector.extract_strided_slice %302 {offsets = [0, 16], sizes = [32, 16], strides = [1, 1]} : vector<32x128xf32> to vector<32x16xf32>
    %328 = arith.truncf %327 : vector<32x16xf32> to vector<32x16xbf16>
    "tpu.trace_start"() <{level = 10 : i32, message = "qd,kd->qk"}> : () -> ()
    %cst_108 = arith.constant dense<0.000000e+00> : vector<8x32xf32>
    %329 = tpu.matmul %326, %328, %cst_108 {dimension_numbers = #tpu.dot_dimension_numbers<[1], [1], [0], [0], [0, 0, 1, 0], [], []>} : vector<8x16xbf16>, vector<32x16xbf16>, vector<8x32xf32> -> vector<8x32xf32>
    "tpu.trace_stop"() : () -> ()
    %cst_109 = arith.constant dense<0xFF800000> : vector<8xf32>
    %330 = vector.multi_reduction <maximumf>, %329, %cst_109 [1] : vector<8x32xf32> to vector<8xf32>
    %331 = vector.shape_cast %330 : vector<8xf32> to vector<8x1xf32>
    %332 = vector.broadcast %331 : vector<8x1xf32> to vector<8x32xf32>
    %333 = arith.subf %329, %332 : vector<8x32xf32>
    %334 = math.exp %333 : vector<8x32xf32>
    %cst_110 = arith.constant dense<0.000000e+00> : vector<8xf32>
    %335 = vector.multi_reduction <add>, %334, %cst_110 [1] : vector<8x32xf32> to vector<8xf32>
    %336 = vector.shape_cast %335 : vector<8xf32> to vector<8x1xf32>
    %337 = vector.broadcast %336 : vector<8x1xf32> to vector<8x32xf32>
    %338 = arith.divf %334, %337 : vector<8x32xf32>
    %339 = arith.addf %320, %338 : vector<8x32xf32>
    %340 = arith.truncf %338 : vector<8x32xf32> to vector<8x32xbf16>
    %341 = vector.extract_strided_slice %303 {offsets = [0, 16], sizes = [32, 16], strides = [1, 1]} : vector<32x128xf32> to vector<32x16xf32>
    %342 = arith.truncf %341 : vector<32x16xf32> to vector<32x16xbf16>
    %cst_111 = arith.constant dense<0.000000e+00> : vector<8x16xf32>
    %343 = tpu.matmul %340, %342, %cst_111 {dimension_numbers = #tpu.dot_dimension_numbers<[1], [0], [0], [1], [0, 0, 1, 1], [], []>} : vector<8x32xbf16>, vector<32x16xbf16>, vector<8x16xf32> -> vector<8x16xf32>
    %344 = vector.extract_strided_slice %304 {offsets = [0, 32], sizes = [8, 16], strides = [1, 1]} : vector<8x128xf32> to vector<8x16xf32>
    %345 = arith.truncf %344 : vector<8x16xf32> to vector<8x16xbf16>
    %346 = vector.extract_strided_slice %302 {offsets = [0, 32], sizes = [32, 16], strides = [1, 1]} : vector<32x128xf32> to vector<32x16xf32>
    %347 = arith.truncf %346 : vector<32x16xf32> to vector<32x16xbf16>
    "tpu.trace_start"() <{level = 10 : i32, message = "qd,kd->qk"}> : () -> ()
    %cst_112 = arith.constant dense<0.000000e+00> : vector<8x32xf32>
    %348 = tpu.matmul %345, %347, %cst_112 {dimension_numbers = #tpu.dot_dimension_numbers<[1], [1], [0], [0], [0, 0, 1, 0], [], []>} : vector<8x16xbf16>, vector<32x16xbf16>, vector<8x32xf32> -> vector<8x32xf32>
    "tpu.trace_stop"() : () -> ()
    %cst_113 = arith.constant dense<0xFF800000> : vector<8xf32>
    %349 = vector.multi_reduction <maximumf>, %348, %cst_113 [1] : vector<8x32xf32> to vector<8xf32>
    %350 = vector.shape_cast %349 : vector<8xf32> to vector<8x1xf32>
    %351 = vector.broadcast %350 : vector<8x1xf32> to vector<8x32xf32>
    %352 = arith.subf %348, %351 : vector<8x32xf32>
    %353 = math.exp %352 : vector<8x32xf32>
    %cst_114 = arith.constant dense<0.000000e+00> : vector<8xf32>
    %354 = vector.multi_reduction <add>, %353, %cst_114 [1] : vector<8x32xf32> to vector<8xf32>
    %355 = vector.shape_cast %354 : vector<8xf32> to vector<8x1xf32>
    %356 = vector.broadcast %355 : vector<8x1xf32> to vector<8x32xf32>
    %357 = arith.divf %353, %356 : vector<8x32xf32>
    %358 = arith.addf %339, %357 : vector<8x32xf32>
    %359 = arith.truncf %357 : vector<8x32xf32> to vector<8x32xbf16>
    %360 = vector.extract_strided_slice %303 {offsets = [0, 32], sizes = [32, 16], strides = [1, 1]} : vector<32x128xf32> to vector<32x16xf32>
    %361 = arith.truncf %360 : vector<32x16xf32> to vector<32x16xbf16>
    %cst_115 = arith.constant dense<0.000000e+00> : vector<8x16xf32>
    %362 = tpu.matmul %359, %361, %cst_115 {dimension_numbers = #tpu.dot_dimension_numbers<[1], [0], [0], [1], [0, 0, 1, 1], [], []>} : vector<8x32xbf16>, vector<32x16xbf16>, vector<8x16xf32> -> vector<8x16xf32>
    %363 = vector.extract_strided_slice %304 {offsets = [0, 48], sizes = [8, 16], strides = [1, 1]} : vector<8x128xf32> to vector<8x16xf32>
    %364 = arith.truncf %363 : vector<8x16xf32> to vector<8x16xbf16>
    %365 = vector.extract_strided_slice %302 {offsets = [0, 48], sizes = [32, 16], strides = [1, 1]} : vector<32x128xf32> to vector<32x16xf32>
    %366 = arith.truncf %365 : vector<32x16xf32> to vector<32x16xbf16>
    "tpu.trace_start"() <{level = 10 : i32, message = "qd,kd->qk"}> : () -> ()
    %cst_116 = arith.constant dense<0.000000e+00> : vector<8x32xf32>
    %367 = tpu.matmul %364, %366, %cst_116 {dimension_numbers = #tpu.dot_dimension_numbers<[1], [1], [0], [0], [0, 0, 1, 0], [], []>} : vector<8x16xbf16>, vector<32x16xbf16>, vector<8x32xf32> -> vector<8x32xf32>
    "tpu.trace_stop"() : () -> ()
    %cst_117 = arith.constant dense<0xFF800000> : vector<8xf32>
    %368 = vector.multi_reduction <maximumf>, %367, %cst_117 [1] : vector<8x32xf32> to vector<8xf32>
    %369 = vector.shape_cast %368 : vector<8xf32> to vector<8x1xf32>
    %370 = vector.broadcast %369 : vector<8x1xf32> to vector<8x32xf32>
    %371 = arith.subf %367, %370 : vector<8x32xf32>
    %372 = math.exp %371 : vector<8x32xf32>
    %cst_118 = arith.constant dense<0.000000e+00> : vector<8xf32>
    %373 = vector.multi_reduction <add>, %372, %cst_118 [1] : vector<8x32xf32> to vector<8xf32>
    %374 = vector.shape_cast %373 : vector<8xf32> to vector<8x1xf32>
    %375 = vector.broadcast %374 : vector<8x1xf32> to vector<8x32xf32>
    %376 = arith.divf %372, %375 : vector<8x32xf32>
    %377 = arith.addf %358, %376 : vector<8x32xf32>
    %378 = arith.truncf %376 : vector<8x32xf32> to vector<8x32xbf16>
    %379 = vector.extract_strided_slice %303 {offsets = [0, 48], sizes = [32, 16], strides = [1, 1]} : vector<32x128xf32> to vector<32x16xf32>
    %380 = arith.truncf %379 : vector<32x16xf32> to vector<32x16xbf16>
    %cst_119 = arith.constant dense<0.000000e+00> : vector<8x16xf32>
    %381 = tpu.matmul %378, %380, %cst_119 {dimension_numbers = #tpu.dot_dimension_numbers<[1], [0], [0], [1], [0, 0, 1, 1], [], []>} : vector<8x32xbf16>, vector<32x16xbf16>, vector<8x16xf32> -> vector<8x16xf32>
    %382 = vector.extract_strided_slice %304 {offsets = [0, 64], sizes = [8, 16], strides = [1, 1]} : vector<8x128xf32> to vector<8x16xf32>
    %383 = arith.truncf %382 : vector<8x16xf32> to vector<8x16xbf16>
    %384 = vector.extract_strided_slice %302 {offsets = [0, 64], sizes = [32, 16], strides = [1, 1]} : vector<32x128xf32> to vector<32x16xf32>
    %385 = arith.truncf %384 : vector<32x16xf32> to vector<32x16xbf16>
    "tpu.trace_start"() <{level = 10 : i32, message = "qd,kd->qk"}> : () -> ()
    %cst_120 = arith.constant dense<0.000000e+00> : vector<8x32xf32>
    %386 = tpu.matmul %383, %385, %cst_120 {dimension_numbers = #tpu.dot_dimension_numbers<[1], [1], [0], [0], [0, 0, 1, 0], [], []>} : vector<8x16xbf16>, vector<32x16xbf16>, vector<8x32xf32> -> vector<8x32xf32>
    "tpu.trace_stop"() : () -> ()
    %cst_121 = arith.constant dense<0xFF800000> : vector<8xf32>
    %387 = vector.multi_reduction <maximumf>, %386, %cst_121 [1] : vector<8x32xf32> to vector<8xf32>
    %388 = vector.shape_cast %387 : vector<8xf32> to vector<8x1xf32>
    %389 = vector.broadcast %388 : vector<8x1xf32> to vector<8x32xf32>
    %390 = arith.subf %386, %389 : vector<8x32xf32>
    %391 = math.exp %390 : vector<8x32xf32>
    %cst_122 = arith.constant dense<0.000000e+00> : vector<8xf32>
    %392 = vector.multi_reduction <add>, %391, %cst_122 [1] : vector<8x32xf32> to vector<8xf32>
    %393 = vector.shape_cast %392 : vector<8xf32> to vector<8x1xf32>
    %394 = vector.broadcast %393 : vector<8x1xf32> to vector<8x32xf32>
    %395 = arith.divf %391, %394 : vector<8x32xf32>
    %396 = arith.addf %377, %395 : vector<8x32xf32>
    %397 = arith.truncf %395 : vector<8x32xf32> to vector<8x32xbf16>
    %398 = vector.extract_strided_slice %303 {offsets = [0, 64], sizes = [32, 16], strides = [1, 1]} : vector<32x128xf32> to vector<32x16xf32>
    %399 = arith.truncf %398 : vector<32x16xf32> to vector<32x16xbf16>
    %cst_123 = arith.constant dense<0.000000e+00> : vector<8x16xf32>
    %400 = tpu.matmul %397, %399, %cst_123 {dimension_numbers = #tpu.dot_dimension_numbers<[1], [0], [0], [1], [0, 0, 1, 1], [], []>} : vector<8x32xbf16>, vector<32x16xbf16>, vector<8x16xf32> -> vector<8x16xf32>
    %401 = vector.extract_strided_slice %304 {offsets = [0, 80], sizes = [8, 16], strides = [1, 1]} : vector<8x128xf32> to vector<8x16xf32>
    %402 = arith.truncf %401 : vector<8x16xf32> to vector<8x16xbf16>
    %403 = vector.extract_strided_slice %302 {offsets = [0, 80], sizes = [32, 16], strides = [1, 1]} : vector<32x128xf32> to vector<32x16xf32>
    %404 = arith.truncf %403 : vector<32x16xf32> to vector<32x16xbf16>
    "tpu.trace_start"() <{level = 10 : i32, message = "qd,kd->qk"}> : () -> ()
    %cst_124 = arith.constant dense<0.000000e+00> : vector<8x32xf32>
    %405 = tpu.matmul %402, %404, %cst_124 {dimension_numbers = #tpu.dot_dimension_numbers<[1], [1], [0], [0], [0, 0, 1, 0], [], []>} : vector<8x16xbf16>, vector<32x16xbf16>, vector<8x32xf32> -> vector<8x32xf32>
    "tpu.trace_stop"() : () -> ()
    %cst_125 = arith.constant dense<0xFF800000> : vector<8xf32>
    %406 = vector.multi_reduction <maximumf>, %405, %cst_125 [1] : vector<8x32xf32> to vector<8xf32>
    %407 = vector.shape_cast %406 : vector<8xf32> to vector<8x1xf32>
    %408 = vector.broadcast %407 : vector<8x1xf32> to vector<8x32xf32>
    %409 = arith.subf %405, %408 : vector<8x32xf32>
    %410 = math.exp %409 : vector<8x32xf32>
    %cst_126 = arith.constant dense<0.000000e+00> : vector<8xf32>
    %411 = vector.multi_reduction <add>, %410, %cst_126 [1] : vector<8x32xf32> to vector<8xf32>
    %412 = vector.shape_cast %411 : vector<8xf32> to vector<8x1xf32>
    %413 = vector.broadcast %412 : vector<8x1xf32> to vector<8x32xf32>
    %414 = arith.divf %410, %413 : vector<8x32xf32>
    %415 = arith.addf %396, %414 : vector<8x32xf32>
    %416 = arith.truncf %414 : vector<8x32xf32> to vector<8x32xbf16>
    %417 = vector.extract_strided_slice %303 {offsets = [0, 80], sizes = [32, 16], strides = [1, 1]} : vector<32x128xf32> to vector<32x16xf32>
    %418 = arith.truncf %417 : vector<32x16xf32> to vector<32x16xbf16>
    %cst_127 = arith.constant dense<0.000000e+00> : vector<8x16xf32>
    %419 = tpu.matmul %416, %418, %cst_127 {dimension_numbers = #tpu.dot_dimension_numbers<[1], [0], [0], [1], [0, 0, 1, 1], [], []>} : vector<8x32xbf16>, vector<32x16xbf16>, vector<8x16xf32> -> vector<8x16xf32>
    %420 = vector.extract_strided_slice %304 {offsets = [0, 96], sizes = [8, 16], strides = [1, 1]} : vector<8x128xf32> to vector<8x16xf32>
    %421 = arith.truncf %420 : vector<8x16xf32> to vector<8x16xbf16>
    %422 = vector.extract_strided_slice %302 {offsets = [0, 96], sizes = [32, 16], strides = [1, 1]} : vector<32x128xf32> to vector<32x16xf32>
    %423 = arith.truncf %422 : vector<32x16xf32> to vector<32x16xbf16>
    "tpu.trace_start"() <{level = 10 : i32, message = "qd,kd->qk"}> : () -> ()
    %cst_128 = arith.constant dense<0.000000e+00> : vector<8x32xf32>
    %424 = tpu.matmul %421, %423, %cst_128 {dimension_numbers = #tpu.dot_dimension_numbers<[1], [1], [0], [0], [0, 0, 1, 0], [], []>} : vector<8x16xbf16>, vector<32x16xbf16>, vector<8x32xf32> -> vector<8x32xf32>
    "tpu.trace_stop"() : () -> ()
    %cst_129 = arith.constant dense<0xFF800000> : vector<8xf32>
    %425 = vector.multi_reduction <maximumf>, %424, %cst_129 [1] : vector<8x32xf32> to vector<8xf32>
    %426 = vector.shape_cast %425 : vector<8xf32> to vector<8x1xf32>
    %427 = vector.broadcast %426 : vector<8x1xf32> to vector<8x32xf32>
    %428 = arith.subf %424, %427 : vector<8x32xf32>
    %429 = math.exp %428 : vector<8x32xf32>
    %cst_130 = arith.constant dense<0.000000e+00> : vector<8xf32>
    %430 = vector.multi_reduction <add>, %429, %cst_130 [1] : vector<8x32xf32> to vector<8xf32>
    %431 = vector.shape_cast %430 : vector<8xf32> to vector<8x1xf32>
    %432 = vector.broadcast %431 : vector<8x1xf32> to vector<8x32xf32>
    %433 = arith.divf %429, %432 : vector<8x32xf32>
    %434 = arith.addf %415, %433 : vector<8x32xf32>
    %435 = arith.truncf %433 : vector<8x32xf32> to vector<8x32xbf16>
    %436 = vector.extract_strided_slice %303 {offsets = [0, 96], sizes = [32, 16], strides = [1, 1]} : vector<32x128xf32> to vector<32x16xf32>
    %437 = arith.truncf %436 : vector<32x16xf32> to vector<32x16xbf16>
    %cst_131 = arith.constant dense<0.000000e+00> : vector<8x16xf32>
    %438 = tpu.matmul %435, %437, %cst_131 {dimension_numbers = #tpu.dot_dimension_numbers<[1], [0], [0], [1], [0, 0, 1, 1], [], []>} : vector<8x32xbf16>, vector<32x16xbf16>, vector<8x16xf32> -> vector<8x16xf32>
    %439 = vector.extract_strided_slice %304 {offsets = [0, 112], sizes = [8, 16], strides = [1, 1]} : vector<8x128xf32> to vector<8x16xf32>
    %440 = arith.truncf %439 : vector<8x16xf32> to vector<8x16xbf16>
    %441 = vector.extract_strided_slice %302 {offsets = [0, 112], sizes = [32, 16], strides = [1, 1]} : vector<32x128xf32> to vector<32x16xf32>
    %442 = arith.truncf %441 : vector<32x16xf32> to vector<32x16xbf16>
    "tpu.trace_start"() <{level = 10 : i32, message = "qd,kd->qk"}> : () -> ()
    %cst_132 = arith.constant dense<0.000000e+00> : vector<8x32xf32>
    %443 = tpu.matmul %440, %442, %cst_132 {dimension_numbers = #tpu.dot_dimension_numbers<[1], [1], [0], [0], [0, 0, 1, 0], [], []>} : vector<8x16xbf16>, vector<32x16xbf16>, vector<8x32xf32> -> vector<8x32xf32>
    "tpu.trace_stop"() : () -> ()
    %cst_133 = arith.constant dense<0xFF800000> : vector<8xf32>
    %444 = vector.multi_reduction <maximumf>, %443, %cst_133 [1] : vector<8x32xf32> to vector<8xf32>
    %445 = vector.shape_cast %444 : vector<8xf32> to vector<8x1xf32>
    %446 = vector.broadcast %445 : vector<8x1xf32> to vector<8x32xf32>
    %447 = arith.subf %443, %446 : vector<8x32xf32>
    %448 = math.exp %447 : vector<8x32xf32>
    %cst_134 = arith.constant dense<0.000000e+00> : vector<8xf32>
    %449 = vector.multi_reduction <add>, %448, %cst_134 [1] : vector<8x32xf32> to vector<8xf32>
    %450 = vector.shape_cast %449 : vector<8xf32> to vector<8x1xf32>
    %451 = vector.broadcast %450 : vector<8x1xf32> to vector<8x32xf32>
    %452 = arith.divf %448, %451 : vector<8x32xf32>
    %453 = arith.addf %434, %452 : vector<8x32xf32>
    %454 = arith.truncf %452 : vector<8x32xf32> to vector<8x32xbf16>
    %455 = vector.extract_strided_slice %303 {offsets = [0, 112], sizes = [32, 16], strides = [1, 1]} : vector<32x128xf32> to vector<32x16xf32>
    %456 = arith.truncf %455 : vector<32x16xf32> to vector<32x16xbf16>
    %cst_135 = arith.constant dense<0.000000e+00> : vector<8x16xf32>
    %457 = tpu.matmul %454, %456, %cst_135 {dimension_numbers = #tpu.dot_dimension_numbers<[1], [0], [0], [1], [0, 0, 1, 1], [], []>} : vector<8x32xbf16>, vector<32x16xbf16>, vector<8x16xf32> -> vector<8x16xf32>
    %458 = tpu.concatenate %324, %343, %362, %381, %400, %419, %438, %457 in 1 : vector<8x16xf32>, vector<8x16xf32>, vector<8x16xf32>, vector<8x16xf32>, vector<8x16xf32>, vector<8x16xf32>, vector<8x16xf32>, vector<8x16xf32> -> vector<8x128xf32>
    %cst_136 = arith.constant 1.250000e-01 : f32
    %459 = vector.broadcast %cst_136 : f32 to vector<8x32xf32>
    %460 = arith.mulf %453, %459 : vector<8x32xf32>
    %cst_137 = arith.constant 0.000000e+00 : f32
    %461 = vector.broadcast %cst_137 : f32 to vector<8x96xf32>
    %462 = tpu.concatenate %460, %461 in 1 : vector<8x32xf32>, vector<8x96xf32> -> vector<8x128xf32>
    %c1_138 = arith.constant 1 : index
    %c0_139 = arith.constant 0 : index
    %c0_140 = arith.constant 0 : index
    %463 = vector.load %arg20[%c1_138, %c0_139, %c0_140] : memref<2x8x128xf32, #tpu.memory_space<vmem>>, vector<1x8x128xf32>
    %464 = vector.shape_cast %463 : vector<1x8x128xf32> to vector<8x128xf32>
    %465 = vector.shape_cast %462 : vector<8x128xf32> to vector<1x8x128xf32>
    tpu.vector_store %arg20[%c1_138, %c0_139, %c0_140], %465 {strides = array<i32>} : memref<2x8x128xf32, #tpu.memory_space<vmem>>, vector<1x8x128xf32>,
    %466 = tpu.concatenate %255, %458 in 0 : vector<8x128xf32>, vector<8x128xf32> -> vector<16x128xf32>
    %467 = arith.truncf %466 : vector<16x128xf32> to vector<16x128xbf16>
    %c0_141 = arith.constant 0 : index
    %c0_142 = arith.constant 0 : index
    %468 = vector.load %arg15[%c0_141, %c0_142] : memref<128x128xbf16, #tpu.memory_space<vmem>>, vector<128x128xbf16>
    %cst_143 = arith.constant dense<0.000000e+00> : vector<16x128xf32>
    %469 = tpu.matmul %467, %468, %cst_143 {dimension_numbers = #tpu.dot_dimension_numbers<[1], [0], [0], [1], [0, 0, 1, 1], [], []>} : vector<16x128xbf16>, vector<128x128xbf16>, vector<16x128xf32> -> vector<16x128xf32>
    %c0_144 = arith.constant 0 : index
    %c0_145 = arith.constant 0 : index
    %470 = vector.load %arg16[%c0_144, %c0_145] : memref<1x128xf32, #tpu.memory_space<vmem>>, vector<1x128xf32>
    %471 = vector.broadcast %470 : vector<1x128xf32> to vector<16x128xf32>
    %472 = arith.addf %469, %471 : vector<16x128xf32>
    %473 = arith.addf %472, %51 : vector<16x128xf32>
    %c0_146 = arith.constant 0 : index
    %c0_147 = arith.constant 0 : index
    %474 = vector.load %arg17[%c0_146, %c0_147] : memref<1x128xf32, #tpu.memory_space<vmem>>, vector<1x128xf32>
    %c0_148 = arith.constant 0 : index
    %c0_149 = arith.constant 0 : index
    %475 = vector.load %arg18[%c0_148, %c0_149] : memref<1x128xf32, #tpu.memory_space<vmem>>, vector<1x128xf32>
    %cst_150 = arith.constant dense<0.000000e+00> : vector<16xf32>
    %476 = vector.multi_reduction <add>, %473, %cst_150 [1] : vector<16x128xf32> to vector<16xf32>
    %477 = vector.shape_cast %476 : vector<16xf32> to vector<16x1xf32>
    %cst_151 = arith.constant 1.280000e+02 : f32
    %478 = vector.broadcast %cst_151 : f32 to vector<16x1xf32>
    %479 = arith.divf %477, %478 : vector<16x1xf32>
    %480 = vector.broadcast %479 : vector<16x1xf32> to vector<16x128xf32>
    %481 = arith.subf %473, %480 : vector<16x128xf32>
    %482 = arith.mulf %481, %481 : vector<16x128xf32>
    %cst_152 = arith.constant dense<0.000000e+00> : vector<16xf32>
    %483 = vector.multi_reduction <add>, %482, %cst_152 [1] : vector<16x128xf32> to vector<16xf32>
    %484 = vector.shape_cast %483 : vector<16xf32> to vector<16x1xf32>
    %cst_153 = arith.constant 1.280000e+02 : f32
    %485 = vector.broadcast %cst_153 : f32 to vector<16x1xf32>
    %486 = arith.divf %484, %485 : vector<16x1xf32>
    %487 = vector.broadcast %479 : vector<16x1xf32> to vector<16x128xf32>
    %488 = arith.subf %473, %487 : vector<16x128xf32>
    %cst_154 = arith.constant 9.99999974E-6 : f32
    %489 = vector.broadcast %cst_154 : f32 to vector<16x1xf32>
    %490 = arith.addf %486, %489 : vector<16x1xf32>
    %491 = math.rsqrt %490 : vector<16x1xf32>
    %492 = vector.broadcast %491 : vector<16x1xf32> to vector<16x128xf32>
    %493 = arith.mulf %488, %492 : vector<16x128xf32>
    %494 = vector.broadcast %474 : vector<1x128xf32> to vector<16x128xf32>
    %495 = arith.mulf %493, %494 : vector<16x128xf32>
    %496 = vector.broadcast %475 : vector<1x128xf32> to vector<16x128xf32>
    %497 = arith.addf %495, %496 : vector<16x128xf32>
    %498 = vector.extract_strided_slice %497 {offsets = [0, 0], sizes = [8, 128], strides = [1, 1]} : vector<16x128xf32> to vector<8x128xf32>
    %c0_155 = arith.constant 0 : index
    %c0_156 = arith.constant 0 : index
    %c0_157 = arith.constant 0 : index
    %499 = vector.load %arg19[%c0_155, %c0_156, %c0_157] : memref<2x8x128xf32, #tpu.memory_space<vmem>>, vector<1x8x128xf32>
    %500 = vector.shape_cast %499 : vector<1x8x128xf32> to vector<8x128xf32>
    %501 = vector.shape_cast %498 : vector<8x128xf32> to vector<1x8x128xf32>
    tpu.vector_store %arg19[%c0_155, %c0_156, %c0_157], %501 {strides = array<i32>} : memref<2x8x128xf32, #tpu.memory_space<vmem>>, vector<1x8x128xf32>,
    %502 = vector.extract_strided_slice %497 {offsets = [8, 0], sizes = [8, 128], strides = [1, 1]} : vector<16x128xf32> to vector<8x128xf32>
    %c1_158 = arith.constant 1 : index
    %c0_159 = arith.constant 0 : index
    %c0_160 = arith.constant 0 : index
    %503 = vector.load %arg19[%c1_158, %c0_159, %c0_160] : memref<2x8x128xf32, #tpu.memory_space<vmem>>, vector<1x8x128xf32>
    %504 = vector.shape_cast %503 : vector<1x8x128xf32> to vector<8x128xf32>
    %505 = vector.shape_cast %502 : vector<8x128xf32> to vector<1x8x128xf32>
    tpu.vector_store %arg19[%c1_158, %c0_159, %c0_160], %505 {strides = array<i32>} : memref<2x8x128xf32, #tpu.memory_space<vmem>>, vector<1x8x128xf32>,
    return
  }
  func.func @transform_0(%arg0: i32) -> (i32, i32) {
    %c0_i32 = arith.constant 0 : i32
    %c0_i32_0 = arith.constant 0 : i32
    %c0_i32_1 = arith.constant 0 : i32
    return %c0_i32, %c0_i32_0 : i32, i32
  }
  func.func @transform_1(%arg0: i32) -> (i32, i32, i32) {
    %c0_i32 = arith.constant 0 : i32
    %c0_i32_0 = arith.constant 0 : i32
    %c0_i32_1 = arith.constant 0 : i32
    %c0_i32_2 = arith.constant 0 : i32
    return %c0_i32, %c0_i32_0, %c0_i32_1 : i32, i32, i32
  }
  func.func @transform_2(%arg0: i32) -> (i32, i32) {
    %c0_i32 = arith.constant 0 : i32
    %c0_i32_0 = arith.constant 0 : i32
    %c0_i32_1 = arith.constant 0 : i32
    return %c0_i32, %c0_i32_0 : i32, i32
  }
  func.func @transform_3(%arg0: i32) -> (i32, i32) {
    %c0_i32 = arith.constant 0 : i32
    %c0_i32_0 = arith.constant 0 : i32
    %c0_i32_1 = arith.constant 0 : i32
    return %c0_i32, %c0_i32_0 : i32, i32
  }
  func.func @transform_4(%arg0: i32) -> (i32, i32) {
    %c0_i32 = arith.constant 0 : i32
    %c0_i32_0 = arith.constant 0 : i32
    %c0_i32_1 = arith.constant 0 : i32
    return %c0_i32, %c0_i32_0 : i32, i32
  }
  func.func @transform_5(%arg0: i32) -> (i32, i32) {
    %c0_i32 = arith.constant 0 : i32
    %c0_i32_0 = arith.constant 0 : i32
    %c0_i32_1 = arith.constant 0 : i32
    return %c0_i32, %c0_i32_0 : i32, i32
  }
  func.func @transform_6(%arg0: i32) -> (i32, i32) {
    %c0_i32 = arith.constant 0 : i32
    %c0_i32_0 = arith.constant 0 : i32
    %c0_i32_1 = arith.constant 0 : i32
    return %c0_i32, %c0_i32_0 : i32, i32
  }
  func.func @transform_7(%arg0: i32) -> (i32, i32) {
    %c0_i32 = arith.constant 0 : i32
    %c0_i32_0 = arith.constant 0 : i32
    %c0_i32_1 = arith.constant 0 : i32
    return %c0_i32, %c0_i32_0 : i32, i32
  }
  func.func @transform_8(%arg0: i32) -> (i32, i32) {
    %c0_i32 = arith.constant 0 : i32
    %c0_i32_0 = arith.constant 0 : i32
    %c0_i32_1 = arith.constant 0 : i32
    return %c0_i32, %c0_i32_0 : i32, i32
  }
  func.func @transform_9(%arg0: i32) -> (i32, i32) {
    %c0_i32 = arith.constant 0 : i32
    %c0_i32_0 = arith.constant 0 : i32
    %c0_i32_1 = arith.constant 0 : i32
    return %c0_i32, %c0_i32_0 : i32, i32
  }
  func.func @transform_10(%arg0: i32) -> (i32, i32) {
    %c0_i32 = arith.constant 0 : i32
    %c0_i32_0 = arith.constant 0 : i32
    %c0_i32_1 = arith.constant 0 : i32
    return %c0_i32, %c0_i32_0 : i32, i32
  }
  func.func @transform_11(%arg0: i32) -> (i32, i32) {
    %c0_i32 = arith.constant 0 : i32
    %c0_i32_0 = arith.constant 0 : i32
    %c0_i32_1 = arith.constant 0 : i32
    return %c0_i32, %c0_i32_0 : i32, i32
  }
  func.func @transform_12(%arg0: i32) -> (i32, i32) {
    %c0_i32 = arith.constant 0 : i32
    %c0_i32_0 = arith.constant 0 : i32
    %c0_i32_1 = arith.constant 0 : i32
    return %c0_i32, %c0_i32_0 : i32, i32
  }
  func.func @transform_13(%arg0: i32) -> (i32, i32) {
    %c0_i32 = arith.constant 0 : i32
    %c0_i32_0 = arith.constant 0 : i32
    %c0_i32_1 = arith.constant 0 : i32
    return %c0_i32, %c0_i32_0 : i32, i32
  }
  func.func @transform_14(%arg0: i32) -> (i32, i32) {
    %c0_i32 = arith.constant 0 : i32
    %c0_i32_0 = arith.constant 0 : i32
    %c0_i32_1 = arith.constant 0 : i32
    return %c0_i32, %c0_i32_0 : i32, i32
  }
  func.func @transform_15(%arg0: i32) -> (i32, i32) {
    %c0_i32 = arith.constant 0 : i32
    %c0_i32_0 = arith.constant 0 : i32
    %c0_i32_1 = arith.constant 0 : i32
    return %c0_i32, %c0_i32_0 : i32, i32
  }
  func.func @transform_16(%arg0: i32) -> (i32, i32) {
    %c0_i32 = arith.constant 0 : i32
    %c0_i32_0 = arith.constant 0 : i32
    %c0_i32_1 = arith.constant 0 : i32
    return %c0_i32, %c0_i32_0 : i32, i32
  }
  func.func @transform_17(%arg0: i32) -> (i32, i32) {
    %c0_i32 = arith.constant 0 : i32
    %c0_i32_0 = arith.constant 0 : i32
    %c0_i32_1 = arith.constant 0 : i32
    return %c0_i32, %c0_i32_0 : i32, i32
  }
  func.func @transform_18(%arg0: i32) -> (i32, i32, i32) {
    %c0_i32 = arith.constant 0 : i32
    %c0_i32_0 = arith.constant 0 : i32
    %c0_i32_1 = arith.constant 0 : i32
    %c0_i32_2 = arith.constant 0 : i32
    return %c0_i32, %c0_i32_0, %c0_i32_1 : i32, i32, i32
  }
  func.func @transform_19(%arg0: i32) -> (i32, i32, i32) {
    %c0_i32 = arith.constant 0 : i32
    %c0_i32_0 = arith.constant 0 : i32
    %c0_i32_1 = arith.constant 0 : i32
    %c0_i32_2 = arith.constant 0 : i32
    return %c0_i32, %c0_i32_0, %c0_i32_1 : i32, i32, i32
  }
}

</mosaic_0001>

<bundles_post_ra>
// kernel: vit_merlin_forward.3
= control target key start
LH: loop header
LB: loop body
LE: loop exit
PB: predicated region body
PF: predicated region fallthrough
CT: control target
= control target key end

     0   :  { %vm361_vm0 = vcmask 1040384   ;;  %vm364_vm1 = vcmask 1041408   ;;  %s706_s1 = inlined_call_operand.vmem [shape: bf16[512,128], index: 1, kind: input, shape index: {}]   ;;  %s707_s2 = inlined_call_operand.vmem [shape: f32[1,128], index: 2, kind: input, shape index: {}]   ;;  %s708_s0 = inlined_call_operand.vmem [shape: f32[16,512], index: 0, kind: input, shape index: {}]   ;;  %s709_s3 = inlined_call_operand.vmem [shape: f32[8,128], index: 3, kind: input, shape index: {}]   ;;  %s710_s4 = inlined_call_operand.vmem [shape: f32[1,128], index: 4, kind: input, shape index: {}]   ;;  %s711_s5 = inlined_call_operand.vmem [shape: f32[18,128], index: 5, kind: output, shape index: {}]  }
   0x1   :  { %v508_v0 = vld [vmem:[%s706_s1 + $0x38] sm:$0xff]  ;;  %v507_v4 = vld [vmem:[%s706_s1 + $0x30] sm:$0xff]  ;;  %v506_v8 = vld [vmem:[%s706_s1 + $0x28] sm:$0xff] }
   0x2   :  { %v516_v1 = vld [vmem:[%s706_s1 + $0x78] sm:$0xff]  ;;  %292 = vmatpush.bf16.msra.mxu0 %v508_v0  ;;  %v515_v5 = vld [vmem:[%s706_s1 + $0x70] sm:$0xff]  ;;  %v514_v9 = vld [vmem:[%s706_s1 + $0x68] sm:$0xff] }
   0x3   :  { %v524_v2 = vld [vmem:[%s706_s1 + $0xb8] sm:$0xff]  ;;  %306 = vmatpush.bf16.msra.mxu1 %v516_v1  ;;  %v523_v6 = vld [vmem:[%s706_s1 + $0xb0] sm:$0xff]  ;;  %v522_v10 = vld [vmem:[%s706_s1 + $0xa8] sm:$0xff] }
   0x4   :  { %v532_v3 = vld [vmem:[%s706_s1 + $0xf8] sm:$0xff]  ;;  %320 = vmatpush.bf16.msra.mxu2 %v524_v2  ;;  %v531_v7 = vld [vmem:[%s706_s1 + $0xf0] sm:$0xff]  ;;  %v530_v11 = vld [vmem:[%s706_s1 + $0xe8] sm:$0xff] }
   0x5   :  { %334 = vmatpush.bf16.msra.mxu3 %v532_v3  ;;  %v505_v12 = vld [vmem:[%s706_s1 + $0x20] sm:$0xff]  ;;  %v504_v16 = vld [vmem:[%s706_s1 + $0x18] sm:$0xff]  ;;  %v503_v20 = vld [vmem:[%s706_s1 + $0x10] sm:$0xff] }
   0x6   :  { %293 = vmatpush.bf16.msra.mxu0 %v507_v4  ;;  %v513_v13 = vld [vmem:[%s706_s1 + $0x60] sm:$0xff]  ;;  %v512_v17 = vld [vmem:[%s706_s1 + $0x58] sm:$0xff]  ;;  %v511_v21 = vld [vmem:[%s706_s1 + $0x50] sm:$0xff] }
   0x7   :  { %307 = vmatpush.bf16.msra.mxu1 %v515_v5  ;;  %v521_v14 = vld [vmem:[%s706_s1 + $0xa0] sm:$0xff]  ;;  %v520_v18 = vld [vmem:[%s706_s1 + $0x98] sm:$0xff]  ;;  %v519_v22 = vld [vmem:[%s706_s1 + $0x90] sm:$0xff] }
   0x8   :  { %321 = vmatpush.bf16.msra.mxu2 %v523_v6  ;;  %v529_v15 = vld [vmem:[%s706_s1 + $0xe0] sm:$0xff]  ;;  %v528_v19 = vld [vmem:[%s706_s1 + $0xd8] sm:$0xff]  ;;  %v527_v23 = vld [vmem:[%s706_s1 + $0xd0] sm:$0xff] }
   0x9   :  { %335 = vmatpush.bf16.msra.mxu3 %v531_v7  ;;  %v502_v24 = vld [vmem:[%s706_s1 + $0x8] sm:$0xff]  ;;  %v501_v28 = vld [vmem:[%s706_s1] sm:$0xff]  ;;  %v22_v36 = vld [vmem:[%s708_s0 + $0x10] sm:$0xff] }
   0xa   :  { %294 = vmatpush.bf16.msra.mxu0 %v506_v8  ;;  %v510_v25 = vld [vmem:[%s706_s1 + $0x48] sm:$0xff]  ;;  %v509_v29 = vld [vmem:[%s706_s1 + $0x40] sm:$0xff]  ;;  %v26_v37 = vld [vmem:[%s708_s0 + $0x30] sm:$0xff] }
   0xb   :  { %308 = vmatpush.bf16.msra.mxu1 %v514_v9  ;;  %v518_v26 = vld [vmem:[%s706_s1 + $0x88] sm:$0xff]  ;;  %v517_v30 = vld [vmem:[%s706_s1 + $0x80] sm:$0xff]  ;;  %v23_v38 = vld [vmem:[%s708_s0 + $0x18] sm:$0xff]  ;;  %v30_v42 = vpack.c.bf16 %v26_v37, %v22_v36 }
   0xc   :  { %322 = vmatpush.bf16.msra.mxu2 %v522_v10  ;;  %v526_v27 = vld [vmem:[%s706_s1 + $0xc8] sm:$0xff]  ;;  %v525_v31 = vld [vmem:[%s706_s1 + $0xc0] sm:$0xff]  ;;  %v27_v39 = vld [vmem:[%s708_s0 + $0x38] sm:$0xff] }
   0xd   :  { %336 = vmatpush.bf16.msra.mxu3 %v530_v11  ;;  %v20_v32 = vld [vmem:[%s708_s0] sm:$0xff]  ;;  %v21_v34 = vld [vmem:[%s708_s0 + $0x8] sm:$0xff]  ;;  %v31_v43 = vpack.c.bf16 %v27_v39, %v23_v38 }
   0xe   :  { %295 = vmatpush.bf16.msra.mxu0 %v505_v12  ;;  %v24_v33 = vld [vmem:[%s708_s0 + $0x20] sm:$0xff]  ;;  %v25_v35 = vld [vmem:[%s708_s0 + $0x28] sm:$0xff] }
   0xf   :  { %309 = vmatpush.bf16.msra.mxu1 %v513_v13  ;;  %v28_v40 = vpack.c.bf16 %v24_v33, %v20_v32  ;;  %v29_v41 = vpack.c.bf16 %v25_v35, %v21_v34  ;;  %v533_v44 = vld [vmem:[%s707_s2] ss:$0 sm:$0xff] }
  0x10   :  { %323 = vmatpush.bf16.msra.mxu2 %v521_v14  ;;  %v348_v53 = vld [vmem:[%s709_s3] sm:$0xff] }
  0x11   :  { %337 = vmatpush.bf16.msra.mxu3 %v529_v15  ;;  %v349_v57 = vld [vmem:[%s710_s4] sm:$0x1] }
  0x12   :  { %296 = vmatpush.bf16.msra.mxu0 %v504_v16  ;;  %v534_v2 = vld [vmem:[%s710_s4] ss:$0 sm:$0xff] }
  0x13   :  { %310 = vmatpush.bf16.msra.mxu1 %v512_v17 }
  0x14   :  { %324 = vmatpush.bf16.msra.mxu2 %v520_v18 }
  0x15   :  { %338 = vmatpush.bf16.msra.mxu3 %v528_v19 }
  0x16   :  { %297 = vmatpush.bf16.msra.mxu0 %v503_v20 }
  0x17   :  { %311 = vmatpush.bf16.msra.mxu1 %v511_v21 }
  0x18   :  { %325 = vmatpush.bf16.msra.mxu2 %v519_v22 }
  0x19   :  { %339 = vmatpush.bf16.msra.mxu3 %v527_v23 }
  0x1a   :  { %298 = vmatpush.bf16.msra.mxu0 %v502_v24 }
  0x1b   :  { %312 = vmatpush.bf16.msra.mxu1 %v510_v25 }
  0x1c   :  { %326 = vmatpush.bf16.msra.mxu2 %v518_v26 }
  0x1d   :  { %340 = vmatpush.bf16.msra.mxu3 %v526_v27 }
  0x1e   :  { %299 = vmatpush.bf16.msra.mxu0 %v501_v28 }
  0x1f   :  { %313 = vmatpush.bf16.msra.mxu1 %v509_v29 }
  0x20   :  { %327 = vmatpush.bf16.msra.mxu2 %v517_v30 }
  0x21   :  { %341 = vmatpush.bf16.msra.mxu3 %v525_v31  ;;  %300 = vmatmul.bf16.vlgmr.msra.gmra.mxu0 %v28_v40 }
  0x22   :  { %314 = vmatmul.bf16.vlgmr.msra.gmra.mxu1 %v29_v41 }
  0x23   :  { %328 = vmatmul.bf16.vlgmr.msra.gmra.mxu2 %v30_v42 }
  0x24   :  { %342 = vmatmul.bf16.vlgmr.msra.gmra.mxu3 %v31_v43 }
  0x9e   :  { %v301_v45 = vpop.f32.mrf.mxu0 }
  0x9f   :  { %v302_v46 = vadd.f32 %v533_v44, %v301_v45  ;;  %v315_v47 = vpop.f32.mrf.mxu1 }
  0xa1   :  { %v316_v48 = vadd.f32 %v315_v47, %v302_v46 }
  0xa6   :  { %v329_v49 = vpop.f32.mrf.mxu2  ;;  %v303_v52 = vpop.f32.mrf.mxu0 }
  0xa7   :  { %v343_v50 = vpop.f32.mrf.mxu3  ;;  %v330_v51 = vadd.f32 %v329_v49, %v316_v48  ;;  %v304_v55 = vadd.f32 %v533_v44, %v303_v52  ;;  %v317_v58 = vpop.f32.mrf.mxu1 }
  0xa9   :  { %v344_v54 = vadd.f32 %v343_v50, %v330_v51  ;;  %v318_v60 = vadd.f32 %v317_v58, %v304_v55 }
  0xab   :  { %v350_v56 = vadd.f32 %v348_v53, %v344_v54 }
  0xad   :  { %v353_v59 = vrot.slane %v350_v56, 7 }
  0xae   :  { %v331_v61 = vpop.f32.mrf.mxu2 }
  0xaf   :  { %v362_v62 = vsel %vm361_vm0, %v349_v57, %v353_v59  ;;  %v332_v63 = vadd.f32 %v331_v61, %v318_v60  ;;  %v345_v0 = vpop.f32.mrf.mxu3  ;;  %v363_v5 = vsel %vm361_vm0, %v353_v59, %v534_v2 }
  0xb0   :  { %366 = vst [vmem:[%s711_s5] sm:$0xff] %v362_v62 }
  0xb1   :  { %v346_v1 = vadd.f32 %v345_v0, %v332_v63 }
  0xb3   :  { %v351_v3 = vadd.f32 %v348_v53, %v346_v1 }
  0xb5   :  { %v359_v4 = vrot.slane %v351_v3, 6 }
  0xb7   :  { %v365_v6 = vsel %vm364_vm1, %v363_v5, %v359_v4  ;;  %368 = vst [vmem:[%s711_s5 + $0x10] sm:$0x3] %v359_v4 }
  0xb8   :  { %367 = vst [vmem:[%s711_s5 + $0x8] sm:$0xff] %v365_v6 }

// kernel: vit_merlin_forward.4
= control target key start
LH: loop header
LB: loop body
LE: loop exit
PB: predicated region body
PF: predicated region fallthrough
CT: control target
= control target key end

     0   :  { %s3696_s21 = smov 0   ;;  %s4778_s0 = inlined_call_operand.vmem [shape: f32[18,128], index: 0, kind: input, shape index: {}]   ;;  %s4779_s1 = inlined_call_operand.vmem [shape: f32[2,1,128], index: 1, kind: input, shape index: {}]   ;;  %s4780_s2 = inlined_call_operand.vmem [shape: f32[2,1,128], index: 2, kind: input, shape index: {}]   ;;  %s4781_s3 = inlined_call_operand.vmem [shape: bf16[2,128,384], index: 3, kind: input, shape index: {}]   ;;  %s4782_s4 = inlined_call_operand.vmem [shape: bf16[2,128,128], index: 4, kind: input, shape index: {}]   ;;  %s4783_s5 = inlined_call_operand.vmem [shape: f32[2,1,128], index: 5, kind: input, shape index: {}]   ;;  %s4784_s6 = inlined_call_operand.vmem [shape: f32[2,1,128], index: 6, kind: input, shape index: {}]   ;;  %s4785_s7 = inlined_call_operand.vmem [shape: f32[2,1,128], index: 7, kind: input, shape index: {}]   ;;  %s4786_s8 = inlined_call_operand.vmem [shape: bf16[2,128,256], index: 8, kind: input, shape index: {}]   ;;  %s4787_s9 = inlined_call_operand.vmem [shape: f32[2,1,256], index: 9, kind: input, shape index: {}]   ;;  %s4788_s10 = inlined_call_operand.vmem [shape: bf16[2,256,128], index: 10, kind: input, shape index: {}]   ;;  %s4789_s11 = inlined_call_operand.vmem [shape: f32[2,1,128], index: 11, kind: input, shape index: {}]   ;;  %s4790_s12 = inlined_call_operand.vmem [shape: f32[18,128], index: 12, kind: output, shape index: {}]  }
   0x1   :  { %4792 = sst [smem:[#allocation3_spill]] %s4780_s2 }
   0x2   :  { %4793 = sst [smem:[#allocation4_spill]] %s4782_s4 }
   0x3 LB: > { %4794 = sst [smem:[#allocation2_spill]] %s3620_s21  ;;  %s3016_s22 = sadd.s32 4294967295, %s3620_s21   ;;  %s3620_s21 = sphi %s3696_s21, %s22_s21  }
   0x4   : > { %p3019_p0 = scmp.ge.s32.totalorder %s3620_s21, 1  ;;  %p444_p1 = scmp.lt.s32.totalorder %s3620_s21, 3 }
   0x6   : > { %p445_p2 = pnand %p3019_p0, %p444_p1 }
   0x7   : > { %p518_p3 = scmp.lt.s32.totalorder (!%p445_p2), %s3016_s22, 1  ;;  %s4796_s4 = sld [smem:[#allocation4_spill]] (!%p445_p2) }
   0x8   : > { %448 = sbr.rel (%p445_p2) target bundleno = 2494 (0x9be), region = 68  ;;  %p3028_p4 = scmp.ne.s32.totalorder (!%p445_p2), %s3016_s22, 0 }
   0xd   : > { %s3704_s23 = scalar_select %p518_p3, %s3016_s22, 1 }
   0xf   : > { %s3386_s30 = smul.u32 192, %s3704_s23  ;;  %s3319_s13 = sshll.u32 %s3704_s23, 6 }
  0x10   : > { %s3719_s16 = scalar_lea.vmem %s4796_s4, %s3319_s13  ;;  %s3320_s14 = sshll.u32 %s3704_s23, 7 }
  0x11   : > { %s3728_s25 = scalar_lea.vmem %s4781_s3, %s3386_s30  ;;  %s3742_s4 = scalar_lea.vmem %s4786_s8, %s3320_s14 }
  0x12   : > { %s3025_s17 = sshll.u32 %s3704_s23, 1  ;;  %s3753_s21 = scalar_lea.vmem %s4788_s10, %s3320_s14 }
  0x13   : > { %s3748_s30 = scalar_lea.vmem %s4787_s9, %s3025_s17  ;;  %s559_s28 = scalar_lea.vmem %s4789_s11, %s3704_s23 }
  0x14   : > { %564 = sbr.rel (%p3028_p4) target bundleno = 29 (0x1d), region = 72 }
  0x19   : > { %v565_v0 = vld [vmem:[%s4778_s0] sm:$0xff]  ;;  %v566_v1 = vld [vmem:[%s4778_s0 + $0x8] sm:$0xff]  ;;  %v567_v2 = vld [vmem:[%s4778_s0 + $0x10] sm:$0x3] }
  0x1a   : > { %568 = vst [vmem:[%s4790_s12] sm:$0xff] %v565_v0 }
  0x1b   : > { %569 = vst [vmem:[%s4790_s12 + $0x8] sm:$0xff] %v566_v1 }
  0x1c   : > { %570 = vst [vmem:[%s4790_s12 + $0x10] sm:$0x3] %v567_v2 }
  0x1d PF: > { %vm580_vm0 = vcmask 1041408   ;;  %v3622_v7 = vmov 128.0   ;;  %v3115_v27 = vld [vmem:[%s3728_s25 + $0xa8] sm:$0xf]  ;;  %v3344_v28 = vld [vmem:[%s3728_s25 + $0xb0] sm:$0xf0]  ;;  %s4797_s14 = scalar_lea.vmem %s4779_s1, %s3704_s23  ;;  %s4800_s17 = scalar_lea.vmem %s4783_s5, %s3704_s23 }
  0x1e   : > { %3445 = vrcp.f32 %v3622_v7  ;;  %v3343_v29 = vld [vmem:[%s3728_s25 + $0xac] sm:$0xf]  ;;  %v3116_v30 = vor.u32 %v3344_v28, %v3115_v27  ;;  %v3117_v31 = vld [vmem:[%s3728_s25 + $0xb4] sm:$0xf0]  ;;  %v3123_v32 = vld [vmem:[%s3728_s25 + $0xb0] sm:$0xf] }
  0x1f   : > { %v3345_v33 = vld [vmem:[%s3728_s25 + $0xb8] sm:$0xf0]  ;;  %v3120_v34 = vor.u32 %v3343_v29, %v3117_v31  ;;  %v3103_v36 = vld [vmem:[%s3728_s25 + $0x90] sm:$0xf]  ;;  %v3340_v38 = vld [vmem:[%s3728_s25 + $0x94] sm:$0xf] }
  0x20   : > { %v3124_v35 = vor.u32 %v3345_v33, %v3123_v32  ;;  %820 = vmatpush.bf16.msra.mxu0 %v3116_v30  ;;  %v3341_v37 = vld [vmem:[%s3728_s25 + $0x98] sm:$0xf0]  ;;  %v3105_v40 = vld [vmem:[%s3728_s25 + $0x9c] sm:$0xf0]  ;;  %v3111_v41 = vld [vmem:[%s3728_s25 + $0x98] sm:$0xf] }
  0x21   : > { %v571_v3 = vld [vmem:[%s4790_s12] sm:$0xff]  ;;  %838 = vmatpush.bf16.msra.mxu1 %v3120_v34  ;;  %v3104_v39 = vor.u32 %v3341_v37, %v3103_v36  ;;  %v3108_v43 = vor.u32 %v3340_v38, %v3105_v40  ;;  %v3091_v45 = vld [vmem:[%s3728_s25 + $0x78] sm:$0xf]  ;;  %v3337_v47 = vld [vmem:[%s3728_s25 + $0x7c] sm:$0xf]  ;;  %s4798_s24 = sld [smem:[#allocation3_spill]] }
  0x22   : > { %576 = vadd.xlane.f32.xlu0 %v571_v3  ;;  %v572_v6 = vld [vmem:[%s4790_s12 + $0x8] sm:$0xff]  ;;  %856 = vmatpush.bf16.msra.mxu2 %v3124_v35  ;;  %v3342_v42 = vld [vmem:[%s3728_s25 + $0xa0] sm:$0xf0]  ;;  %v3099_v50 = vld [vmem:[%s3728_s25 + $0x80] sm:$0xf]  ;;  %vm879_vm11 = vcmask 130048  }
  0x23   : > { %v573_v4 = vld [vmem:[%s4790_s12 + $0x10] sm:$0x3]  ;;  %v3112_v44 = vor.u32 %v3342_v42, %v3111_v41  ;;  %v3338_v46 = vld [vmem:[%s3728_s25 + $0x80] sm:$0xf0]  ;;  %v3093_v49 = vld [vmem:[%s3728_s25 + $0x84] sm:$0xf0] }
  0x24   : > { %v581_v5 = vsel %vm580_vm0, %v573_v4, 0.0  ;;  %v3446_v8 = vpop.eup %3445  ;;  %821 = vmatpush.bf16.msra.mxu0 %v3104_v39  ;;  %v3092_v48 = vor.u32 %v3338_v46, %v3091_v45  ;;  %v3339_v51 = vld [vmem:[%s3728_s25 + $0x88] sm:$0xf0]  ;;  %v3096_v52 = vor.u32 %v3337_v47, %v3093_v49  ;;  %v3079_v54 = vld [vmem:[%s3728_s25 + $0x60] sm:$0xf]  ;;  %vm929_vm12 = vcmask 1043456  }
  0x25   : > { %582 = vadd.xlane.f32.xlu2 %v581_v5  ;;  %v585_v9 = vmul.f32 128.0, %v3446_v8  ;;  %vm589_vm1 = vweird.f32 %v3446_v8  ;;  %839 = vmatpush.bf16.msra.mxu1 %v3108_v43  ;;  %v3100_v53 = vor.u32 %v3339_v51, %v3099_v50  ;;  %v3335_v55 = vld [vmem:[%s3728_s25 + $0x68] sm:$0xf0]  ;;  %v3334_v56 = vld [vmem:[%s3728_s25 + $0x64] sm:$0xf]  ;;  %s3623_s26 = smov 16  }
  0x26   : > { %857 = vmatpush.bf16.msra.mxu2 %v3112_v44  ;;  %v3080_v57 = vor.u32 %v3335_v55, %v3079_v54  ;;  %v3081_v58 = vld [vmem:[%s3728_s25 + $0x6c] sm:$0xf0]  ;;  %v3087_v59 = vld [vmem:[%s3728_s25 + $0x68] sm:$0xf]  ;;  %v3336_v60 = vld [vmem:[%s3728_s25 + $0x70] sm:$0xf0] }
  0x27   : > { %v586_v10 = vsub.f32 1.0, %v585_v9  ;;  %v3084_v61 = vor.u32 %v3334_v56, %v3081_v58  ;;  %v3088_v62 = vor.u32 %v3336_v60, %v3087_v59  ;;  %v3067_v63 = vld [vmem:[%s3728_s25 + $0x48] sm:$0xf]  ;;  %v3332_v0 = vld [vmem:[%s3728_s25 + $0x50] sm:$0xf0]  ;;  %s4799_s22 = scalar_lea.vmem %s4798_s24, %s3704_s23  ;;  %s3624_s29 = smov 80  }
  0x28   : > { %822 = vmatpush.bf16.msra.mxu0 %v3092_v48  ;;  %v3331_v1 = vld [vmem:[%s3728_s25 + $0x4c] sm:$0xf]  ;;  %v3068_v2 = vor.u32 %v3332_v0, %v3067_v63  ;;  %v3333_v5 = vld [vmem:[%s3728_s25 + $0x58] sm:$0xf0]  ;;  %v3031_v30 = vld [vmem:[%s3728_s25] sm:$0xf] }
  0x29   : > { %v587_v11 = vmul.f32 %v3446_v8, %v586_v10  ;;  %840 = vmatpush.bf16.msra.mxu1 %v3096_v52  ;;  %v3329_v9 = vld [vmem:[%s3728_s25 + $0x38] sm:$0xf0]  ;;  %v3328_v10 = vld [vmem:[%s3728_s25 + $0x34] sm:$0xf]  ;;  %v3327_v27 = vld [vmem:[%s3728_s25 + $0x28] sm:$0xf0] }
  0x2a   : > { %578 = vadd.xlane.f32.xlu0 %v572_v6  ;;  %858 = vmatpush.bf16.msra.mxu2 %v3100_v53  ;;  %v3323_v31 = vld [vmem:[%s3728_s25 + $0x8] sm:$0xf0]  ;;  %v3322_v32 = vld [vmem:[%s3728_s25 + $0x4] sm:$0xf]  ;;  %v3033_v35 = vld [vmem:[%s3728_s25 + $0xc] sm:$0xf0] }
  0x2b   : > { %v588_v12 = vadd.f32 %v3446_v8, %v587_v11  ;;  %v3032_v34 = vor.u32 %v3323_v31, %v3031_v30  ;;  %v3039_v36 = vld [vmem:[%s3728_s25 + $0x8] sm:$0xf]  ;;  %v3324_v37 = vld [vmem:[%s3728_s25 + $0x10] sm:$0xf0]  ;;  %v3036_v39 = vor.u32 %v3322_v32, %v3033_v35  ;;  %s3625_s2 = smov 112   ;;  %vm930_vm13 = vcmask 1044480  }
  0x2c   : > { %823 = vmatpush.bf16.msra.mxu0 %v3080_v57  ;;  %v3040_v40 = vor.u32 %v3324_v37, %v3039_v36  ;;  %s3627_s27 = smov 32   ;;  %s3628_s13 = smov 48   ;;  %vm900_vm14 = vcmask 72704   ;;  %vm904_vm15 = vcmask 65536  }
  0x2d   : > { %v3787_v13 = vsel %vm589_vm1, %v3446_v8, %v588_v12  ;;  %841 = vmatpush.bf16.msra.mxu1 %v3084_v61  ;;  %v3055_v8 = vld [vmem:[%s3728_s25 + $0x30] sm:$0xf]  ;;  %v3057_v12 = vld [vmem:[%s3728_s25 + $0x3c] sm:$0xf0]  ;;  %s3629_s15 = smov 96   ;;  %s3630_s19 = smov 64  }
  0x2e   : > { %859 = vmatpush.bf16.msra.mxu2 %v3088_v62  ;;  %v3056_v11 = vor.u32 %v3329_v9, %v3055_v8  ;;  %vm1494_vm1 = vcmask 261120  }
  0x30   : > { %824 = vmatpush.bf16.msra.mxu0 %v3068_v2 }
  0x34   : > { %825 = vmatpush.bf16.msra.mxu0 %v3056_v11 }
  0x95   : > { %v577_v14 = vpop.xlane.xlu0 %576 }
  0x96   : > { %v591_v15 = vmul.f32 %v3787_v13, %v577_v14  ;;  %v3063_v14 = vld [vmem:[%s3728_s25 + $0x38] sm:$0xf] }
  0x98   : > { %v583_v16 = vpop.xlane.xlu2 %582  ;;  %v3791_v18 = vsub.f32 %v571_v3, %v591_v15  ;;  %v3069_v3 = vld [vmem:[%s3728_s25 + $0x54] sm:$0xf0]  ;;  %v3330_v15 = vld [vmem:[%s3728_s25 + $0x40] sm:$0xf0] }
  0x99   : > { %v593_v17 = vmul.f32 %v3787_v13, %v583_v16  ;;  %v3060_v16 = vor.u32 %v3328_v10, %v3057_v12 }
  0x9a   : > { %v597_v20 = vmul.f32 %v3791_v18, %v3791_v18 }
  0x9b   : > { %v3793_v19 = vsub.f32 %v573_v4, %v593_v17  ;;  %v3075_v4 = vld [vmem:[%s3728_s25 + $0x50] sm:$0xf]  ;;  %v3064_v17 = vor.u32 %v3330_v15, %v3063_v14 }
  0x9c   : > { %600 = vadd.xlane.f32.xlu1 %v597_v20  ;;  %v3076_v7 = vor.u32 %v3333_v5, %v3075_v4  ;;  %v3043_v20 = vld [vmem:[%s3728_s25 + $0x18] sm:$0xf] }
  0x9d   : > { %v599_v21 = vmul.f32 %v3793_v19, %v3793_v19  ;;  %v579_v22 = vpop.xlane.xlu0 %578 }
  0x9e   : > { %v592_v24 = vmul.f32 %v3787_v13, %v579_v22  ;;  %860 = vmatpush.bf16.msra.mxu2 %v3076_v7  ;;  %v3325_v22 = vld [vmem:[%s3728_s25 + $0x1c] sm:$0xf]  ;;  %v3440_v7 = vld [vmem:[%s4799_s22] ss:$0 sm:$0xff] }
  0x9f   : > { %v604_v23 = vsel %vm580_vm0, %v599_v21, 0.0  ;;  %v3326_v21 = vld [vmem:[%s3728_s25 + $0x20] sm:$0xf0] }
  0xa0   : > { %605 = vadd.xlane.f32.xlu2 %v604_v23  ;;  %v3801_v25 = vsub.f32 %v572_v6, %v592_v24  ;;  %v3072_v6 = vor.u32 %v3331_v1, %v3069_v3  ;;  %v3044_v23 = vor.u32 %v3326_v21, %v3043_v20  ;;  %v3045_v24 = vld [vmem:[%s3728_s25 + $0x24] sm:$0xf0]  ;;  %v3439_v1 = vld [vmem:[%s4797_s14] ss:$0 sm:$0xff] }
  0xa1   : > { %v3048_v28 = vor.u32 %v3325_v22, %v3045_v24 }
  0xa2   : > { %v598_v26 = vmul.f32 %v3801_v25, %v3801_v25  ;;  %842 = vmatpush.bf16.msra.mxu1 %v3072_v6  ;;  %861 = vmatpush.bf16.msra.mxu2 %v3064_v17 }
  0xa3   : > { %826 = vmatpush.bf16.msra.mxu0 %v3044_v23 }
  0xa4   : > { %602 = vadd.xlane.f32.xlu1 %v598_v26  ;;  %v3051_v26 = vld [vmem:[%s3728_s25 + $0x20] sm:$0xf] }
  0xa5   : > { %v3052_v29 = vor.u32 %v3327_v27, %v3051_v26  ;;  %v3626_v26 = vmov 65535  }
  0xa6   : > { %843 = vmatpush.bf16.msra.mxu1 %v3060_v16  ;;  %v931_v27 = vsel %vm929_vm12, 4294967295, %v3626_v26 }
  0xa7   : > { %862 = vmatpush.bf16.msra.mxu2 %v3052_v29  ;;  %827 = vmatpush.bf16.msra.mxu0 %v3032_v34  ;;  %v3873_v30 = vsel %vm930_vm13, %v931_v27, 0 }
  0xaa   : > { %844 = vmatpush.bf16.msra.mxu1 %v3048_v28 }
  0xab   : > { %863 = vmatpush.bf16.msra.mxu2 %v3040_v40 }
  0xae   : > { %845 = vmatpush.bf16.msra.mxu1 %v3036_v39 }
 0x10f   : > { %v601_v33 = vpop.xlane.xlu1 %600 }
 0x110   : > { %v607_v38 = vmul.f32 %v601_v33, %v3787_v13 }
 0x112   : > { %v610_v42 = vadd.f32 1e-05, %v607_v38 }
 0x113   : > { %v606_v41 = vpop.xlane.xlu2 %605 }
 0x114   : > { %v609_v43 = vmul.f32 %v606_v41, %v3787_v13  ;;  %3447 = vrsqrt.f32 %v610_v42  ;;  %vm619_vm3 = vweird.f32 %v610_v42 }
 0x116   : > { %v612_v44 = vadd.f32 1e-05, %v609_v43 }
 0x117   : > { %v603_v45 = vpop.xlane.xlu1 %602 }
 0x118   : > { %3449 = vrsqrt.f32 %v612_v44  ;;  %v608_v46 = vmul.f32 %v603_v45, %v3787_v13  ;;  %vm639_vm8 = vweird.f32 %v612_v44 }
 0x11a   : > { %v3448_v47 = vpop.eup %3447  ;;  %v611_v48 = vadd.f32 1e-05, %v608_v46 }
 0x11b   : > { %v614_v49 = vmul.f32 %v3448_v47, %v610_v42  ;;  %vm620_vm2 = vweird.f32 %v3448_v47 }
 0x11c   : > { %3451 = vrsqrt.f32 %v611_v48  ;;  %vm621_vm4 = vmor %vm619_vm3, %vm620_vm2  ;;  %vm629_vm6 = vweird.f32 %v611_v48  ;;  %vm1497_vm2 = vcmask 392192   ;;  %vm1500_vm3 = vcmask 523264  }
 0x11d   : > { %v615_v50 = vmul.f32 %v3448_v47, %v614_v49 }
 0x11e   : > { %v3450_v51 = vpop.eup %3449 }
 0x11f   : > { %v616_v52 = vmul.f32 0.5, %v615_v50  ;;  %v634_v54 = vmul.f32 %v3450_v51, %v612_v44  ;;  %vm640_vm9 = vweird.f32 %v3450_v51 }
 0x120   : > { %vm641_vm10 = vmor %vm639_vm8, %vm640_vm9 }
 0x121   : > { %v617_v53 = vsub.f32 1.5, %v616_v52  ;;  %v635_v58 = vmul.f32 %v3450_v51, %v634_v54 }
 0x122   : > { %v3452_v55 = vpop.eup %3451 }
 0x123   : > { %v618_v56 = vmul.f32 %v3448_v47, %v617_v53  ;;  %v624_v57 = vmul.f32 %v3452_v55, %v611_v48  ;;  %v636_v62 = vmul.f32 0.5, %v635_v58  ;;  %vm630_vm5 = vweird.f32 %v3452_v55 }
 0x124   : > { %vm631_vm7 = vmor %vm629_vm6, %vm630_vm5  ;;  %vm1506_vm5 = vcmask 785408   ;;  %vm1509_vm6 = vcmask 916480  }
 0x125   : > { %v625_v59 = vmul.f32 %v3452_v55, %v624_v57  ;;  %v622_v60 = vsel %vm621_vm4, %v3448_v47, %v618_v56  ;;  %v637_v3 = vsub.f32 1.5, %v636_v62  ;;  %vm1503_vm4 = vcmask 654336  }
 0x126   : > { %v643_v0 = vmul.f32 %v622_v60, %v3791_v18 }
 0x127   : > { %v626_v61 = vmul.f32 0.5, %v625_v59  ;;  %v638_v8 = vmul.f32 %v3450_v51, %v637_v3 }
 0x128   : > { %v649_v6 = vmul.f32 %v3439_v1, %v643_v0 }
 0x129   : > { %v627_v63 = vsub.f32 1.5, %v626_v61  ;;  %v642_v12 = vsel %vm641_vm10, %v3450_v51, %v638_v8 }
 0x12a   : > { %v655_v9 = vadd.f32 %v3440_v7, %v649_v6 }
 0x12b   : > { %v628_v2 = vmul.f32 %v3452_v55, %v627_v63 }
 0x12d   : > { %v632_v4 = vsel %vm631_vm7, %v3452_v55, %v628_v2  ;;  %vm2154_vm7 = vcmask 1040384  }
 0x12e   : > { %v644_v5 = vmul.f32 %v632_v4, %v3801_v25  ;;  %v645_v25 = vmul.f32 %v642_v12, %v3793_v19 }
 0x130   : > { %v650_v18 = vmul.f32 %v3439_v1, %v644_v5  ;;  %v651_v14 = vmul.f32 %v3439_v1, %v645_v25 }
 0x132   : > { %v656_v10 = vadd.f32 %v3440_v7, %v650_v18  ;;  %v657_v15 = vadd.f32 %v3440_v7, %v651_v14 }
 0x134   : > { %v658_v11 = vpack.c.bf16 %v656_v10, %v655_v9  ;;  %v659_v16 = vpack.c.bf16 %v657_v15, %v657_v15 }
 0x136   : > { %828 = vmatmul.bf16.vlgmr.msra.gmra.mxu0 %v658_v11  ;;  %846 = vmatmul.bf16.vlgmr.msra.gmra.mxu1 %v658_v11 }
 0x137   : > { %864 = vmatmul.bf16.vlgmr.msra.gmra.mxu2 %v658_v11 }
 0x146   : > { %833 = vmatmul.bf16.gmra.mxu0 %v659_v16  ;;  %851 = vmatmul.bf16.gmra.mxu1 %v659_v16 }
 0x147   : > { %869 = vmatmul.bf16.gmra.mxu2 %v659_v16 }
 0x1b3   : > { %v829_v17 = vpop.f32.mrf.mxu0  ;;  %v847_v20 = vpop.f32.mrf.mxu1 }
 0x1b4   : > { %v874_v31 = vmul.f32 0.25, %v829_v17 }
 0x1ba   : > { %v865_v21 = vpop.f32.mrf.mxu2 }
 0x1bb   : > { %v831_v22 = vpop.f32.mrf.mxu0  ;;  %v849_v23 = vpop.f32.mrf.mxu1 }
 0x1bc   : > { %v878_v24 = vpack.c.bf16 %v849_v23, %v847_v20  ;;  %v875_v28 = vmul.f32 0.25, %v831_v22 }
 0x1be   : > { %1369 = vrot.lane.b32.xlu2 %v878_v24, %s3623_s26  ;;  %1093 = vrot.lane.b32.xlu0 %v878_v24, %s3624_s29  ;;  %v884_v19 = vsel %vm879_vm11, %v878_v24, 0  ;;  %v877_v35 = vpack.c.bf16 %v875_v28, %v874_v31 }
 0x1bf   : > { %954 = vrot.lane.b32.xlu1 %v878_v24, %s3625_s2  ;;  %893 = vmatpush.bf16.xpose.msra.mxu3 %v884_v19 }
 0x1c2   : > { %v867_v29 = vpop.f32.mrf.mxu2 }
 0x1c3   : > { %v3875_v32 = vpack.c.bf16 %v867_v29, %v865_v21  ;;  %v834_v33 = vpop.f32.mrf.mxu0  ;;  %v852_v34 = vpop.f32.mrf.mxu1 }
 0x1c4   : > { %v1513_v41 = vpack.c.bf16 %v852_v34, %v849_v23  ;;  %v876_v43 = vmul.f32 0.25, %v834_v33 }
 0x1c5   : > { %v934_v36 = vand.u32 %v3873_v30, %v3875_v32 }
 0x1c6   : > { %1300 = vrot.lane.b32.xlu2 %v878_v24, %s3627_s27  ;;  %1231 = vrot.lane.b32.xlu0 %v878_v24, %s3628_s13  ;;  %v1524_v44 = vshll.u32 %v1513_v41, 16  ;;  %v1512_v45 = vpack.c.bf16 %v876_v43, %v875_v28  ;;  %v1522_v47 = vshrl.u32 %v1513_v41, 16 }
 0x1c7   : > { %1024 = vrot.lane.b32.xlu1 %v878_v24, %s3629_s15  ;;  %3125 = vmatmul.msk.bf16.vlgmr.msra.gmra.mxu3 %vm879_vm11, %v877_v35 }
 0x1c8   : > { %943 = vmatpush.bf16.msrb.mxu3 %v934_v36  ;;  %v1526_v46 = vrot.slane %v1524_v44, 1  ;;  %v1517_v48 = vshll.u32 %v1512_v45, 16  ;;  %v1515_v51 = vshrl.u32 %v1512_v45, 16 }
 0x1ca   : > { %v870_v37 = vpop.f32.mrf.mxu2  ;;  %v3891_v49 = vor.u32 %v1526_v46, %v1522_v47  ;;  %v1519_v50 = vrot.slane %v1517_v48, 1 }
 0x1cb   : > { %v3883_v38 = vpack.c.bf16 %v870_v37, %v867_v29  ;;  %v836_v39 = vpop.f32.mrf.mxu0  ;;  %v854_v40 = vpop.f32.mrf.mxu1 }
 0x1cc   : > { %v3897_v52 = vor.u32 %v1519_v50, %v1515_v51  ;;  %v1532_v8 = vsel %vm879_vm11, %v3891_v49, 0 }
 0x1ce   : > { %1162 = vrot.lane.b32.xlu0 %v878_v24, %s3630_s19  ;;  %951 = vrot.lane.b32.xlu2 %v877_v35, %s3625_s2 }
 0x1cf   : > { %1229 = vrot.lane.b32.xlu1 %v877_v35, %s3628_s13 }
 0x1d2   : > { %v872_v42 = vpop.f32.mrf.mxu2 }
 0x1d6   : > { %1367 = vrot.lane.b32.xlu0 %v877_v35, %s3623_s26  ;;  %1091 = vrot.lane.b32.xlu2 %v877_v35, %s3624_s29 }
 0x1d7   : > { %1160 = vrot.lane.b32.xlu1 %v877_v35, %s3630_s19 }
 0x1de   : > { %1298 = vrot.lane.b32.xlu0 %v877_v35, %s3627_s27  ;;  %1022 = vrot.lane.b32.xlu2 %v877_v35, %s3629_s15 }
 0x1df   : > { %1601 = vrot.lane.b32.xlu1 %v3891_v49, %s3625_s2 }
 0x1e6   : > { %1670 = vrot.lane.b32.xlu2 %v3891_v49, %s3629_s15  ;;  %1737 = vrot.lane.b32.xlu0 %v3897_v52, %s3624_s29 }
 0x1e7   : > { %1739 = vrot.lane.b32.xlu1 %v3891_v49, %s3624_s29 }
 0x1ee   : > { %1668 = vrot.lane.b32.xlu0 %v3897_v52, %s3629_s15  ;;  %1599 = vrot.lane.b32.xlu2 %v3897_v52, %s3625_s2 }
 0x1ef   : > { %1877 = vrot.lane.b32.xlu1 %v3891_v49, %s3628_s13 }
 0x1f6   : > { %1875 = vrot.lane.b32.xlu2 %v3897_v52, %s3628_s13 }
 0x1f7   : > { %1808 = vrot.lane.b32.xlu1 %v3891_v49, %s3630_s19 }
 0x1fe   : > { %1806 = vrot.lane.b32.xlu2 %v3897_v52, %s3630_s19 }
 0x218   : > { %v1370_v53 = vpop.permute.xlu2 %1369 }
 0x219   : > { %v1375_v0 = vsel %vm879_vm11, %v1370_v53, 0 }
 0x220   : > { %v1301_v54 = vpop.permute.xlu2 %1300 }
 0x221   : > { %v1306_v6 = vsel %vm879_vm11, %v1301_v54, 0 }
 0x228   : > { %v3917_v55 = vpop.permute.xlu2 %951 }
 0x230   : > { %v1094_v56 = vpop.permute.xlu0 %1093  ;;  %v1092_v60 = vpop.permute.xlu2 %1091 }
 0x231   : > { %v955_v57 = vpop.permute.xlu1 %954  ;;  %v1099_v58 = vsel %vm879_vm11, %v1094_v56, 0 }
 0x232   : > { %v960_v59 = vsel %vm879_vm11, %v955_v57, 0  ;;  %1108 = vmatpush.bf16.xpose.msrb.mxu2 %v1099_v58 }
 0x233   : > { %969 = vmatpush.bf16.xpose.msra.mxu3 %v960_v59 }
 0x238   : > { %v1232_v61 = vpop.permute.xlu0 %1231  ;;  %v1023_v3 = vpop.permute.xlu2 %1022 }
 0x239   : > { %v1237_v62 = vsel %vm879_vm11, %v1232_v61, 0  ;;  %v1025_v63 = vpop.permute.xlu1 %1024  ;;  %3131 = vmatmul.msk.bf16.vlgmr.msrb.gmra.mxu2 %vm879_vm11, %v1092_v60 }
 0x23a   : > { %v1030_v1 = vsel %vm879_vm11, %v1025_v63, 0  ;;  %1246 = vmatpush.bf16.xpose.msra.mxu2 %v1237_v62 }
 0x23b   : > { %1039 = vmatpush.bf16.xpose.msrb.mxu1 %v1030_v1 }
 0x240   : > { %v1163_v2 = vpop.permute.xlu0 %1162  ;;  %v1671_v15 = vpop.permute.xlu2 %1670 }
 0x241   : > { %v1230_v4 = vpop.permute.xlu1 %1229  ;;  %v1168_v5 = vsel %vm879_vm11, %v1163_v2, 0  ;;  %v1676_v20 = vsel %vm879_vm11, %v1671_v15, 0 }
 0x242   : > { %1384 = vmatpush.bf16.xpose.msrb.mxu2 %v1375_v0  ;;  %3129 = vmatmul.msk.bf16.vlgmr.msrb.gmra.mxu1 %vm879_vm11, %v1023_v3 }
 0x243   : > { %1177 = vmatpush.bf16.xpose.msrb.mxu0 %v1168_v5 }
 0x248   : > { %v1368_v10 = vpop.permute.xlu0 %1367  ;;  %v1600_v23 = vpop.permute.xlu2 %1599 }
 0x249   : > { %v1161_v7 = vpop.permute.xlu1 %1160  ;;  %3135 = vmatmul.msk.bf16.vlgmr.msra.gmra.mxu2 %vm879_vm11, %v1230_v4 }
 0x24a   : > { %v895_v18 = vpop.f32.mrf.mxu3  ;;  %3133 = vmatmul.msk.bf16.vlgmr.msrb.gmra.mxu0 %vm879_vm11, %v1161_v7 }
 0x24b   : > { %1315 = vmatpush.bf16.xpose.msra.mxu0 %v1306_v6  ;;  %v901_v9 = vsel %vm900_vm14, %v895_v18, -inf }
 0x24c   : > { %902 = vmax.xlane.f32.xlu0 %v901_v9 }
 0x250   : > { %v1299_v16 = vpop.permute.xlu0 %1298  ;;  %v1876_v29 = vpop.permute.xlu2 %1875 }
 0x251   : > { %v1602_v11 = vpop.permute.xlu1 %1601 }
 0x252   : > { %v1607_v12 = vsel %vm879_vm11, %v1602_v11, 0  ;;  %v897_v25 = vpop.f32.mrf.mxu3 }
 0x253   : > { %1541 = vmatpush.bf16.xpose.msrb.mxu0 %v1532_v8  ;;  %1616 = vmatpush.bf16.xpose.msra.mxu2 %v1607_v12  ;;  %v905_v14 = vsel %vm904_vm15, %v897_v25, -inf }
 0x254   : > { %906 = vmax.xlane.f32.xlu1 %v905_v14 }
 0x258   : > { %v1738_v27 = vpop.permute.xlu0 %1737  ;;  %v1807_v31 = vpop.permute.xlu2 %1806 }
 0x259   : > { %v1740_v17 = vpop.permute.xlu1 %1739  ;;  %3139 = vmatmul.msk.bf16.vlgmr.msrb.gmra.mxu2 %vm879_vm11, %v1368_v10 }
 0x25a   : > { %v1745_v21 = vsel %vm879_vm11, %v1740_v17, 0  ;;  %3137 = vmatmul.msk.bf16.vlgmr.msra.gmra.mxu0 %vm879_vm11, %v1299_v16 }
 0x25b   : > { %1685 = vmatpush.bf16.xpose.msra.mxu0 %v1676_v20  ;;  %1754 = vmatpush.bf16.xpose.msrb.mxu2 %v1745_v21 }
 0x260   : > { %2015 = vrot.lane.b32.xlu0 %v3891_v49, %s3623_s26  ;;  %v1669_v28 = vpop.permute.xlu0 %1668 }
 0x261   : > { %v1878_v22 = vpop.permute.xlu1 %1877 }
 0x262   : > { %v1883_v24 = vsel %vm879_vm11, %v1878_v22, 0 }
 0x269   : > { %v1809_v19 = vpop.permute.xlu1 %1808  ;;  %3143 = vmatmul.msk.bf16.vlgmr.msra.gmra.mxu2 %vm879_vm11, %v1600_v23 }
 0x26a   : > { %v1814_v26 = vsel %vm879_vm11, %v1809_v19, 0  ;;  %3141 = vmatmul.msk.bf16.vlgmr.msrb.gmra.mxu0 %vm879_vm11, %v3897_v52  ;;  %1892 = vmatpush.bf16.xpose.msra.mxu2 %v1883_v24 }
 0x26b   : > { %1823 = vmatpush.bf16.xpose.msrb.mxu0 %v1814_v26 }
 0x26d   : > { %2013 = vrot.lane.b32.xlu1 %v3897_v52, %s3623_s26 }
 0x279   : > { %3147 = vmatmul.msk.bf16.vlgmr.msrb.gmra.mxu2 %vm879_vm11, %v1738_v27 }
 0x27a   : > { %3145 = vmatmul.msk.bf16.vlgmr.msra.gmra.mxu0 %vm879_vm11, %v1669_v28 }
 0x289   : > { %3151 = vmatmul.msk.bf16.vlgmr.msra.gmra.mxu2 %vm879_vm11, %v1876_v29 }
 0x28a   : > { %3149 = vmatmul.msk.bf16.vlgmr.msrb.gmra.mxu0 %vm879_vm11, %v1807_v31 }
 0x2bc   : > { %v3952_v33 = vpop.f32.mrf.mxu2 }
 0x2bf   : > { %v903_v34 = vpop.xlane.xlu0 %902  ;;  %v3998_v1 = vpop.f32.mrf.mxu1 }
 0x2c0   : > { %v908_v35 = vsub.f32 %v895_v18, %v903_v34  ;;  %v1046_v4 = vsel %vm900_vm14, %v3998_v1, -inf }
 0x2c2   : > { %v910_v36 = vmul.f32 1.442695, %v908_v35 }
 0x2c4   : > { %3453 = vpow2.f32 %v910_v36  ;;  %v3954_v37 = vpop.f32.mrf.mxu2 }
 0x2c5   : > { %v1118_v39 = vsel %vm904_vm15, %v3954_v37, -inf }
 0x2c6   : > { %1119 = vmax.xlane.f32.xlu1 %v1118_v39 }
 0x2c7   : > { %v907_v40 = vpop.xlane.xlu1 %906  ;;  %v3958_v42 = vpop.f32.mrf.mxu0 }
 0x2c8   : > { %v909_v41 = vsub.f32 %v897_v25, %v907_v40  ;;  %v4006_v3 = vpop.f32.mrf.mxu1  ;;  %v1184_v18 = vsel %vm900_vm14, %v3958_v42, -inf }
 0x2c9   : > { %v1049_v6 = vsel %vm904_vm15, %v4006_v3, -inf }
 0x2ca   : > { %v3960_v43 = vpop.eup %3453  ;;  %v912_v44 = vmul.f32 1.442695, %v909_v41 }
 0x2cb   : > { %v914_v45 = vsel %vm900_vm14, %v3960_v43, 0.0 }
 0x2cc   : > { %3455 = vpow2.f32 %v912_v44  ;;  %915 = vadd.xlane.f32.xlu2 %v914_v45  ;;  %v3964_v46 = vpop.f32.mrf.mxu2 }
 0x2cd   : > { %v1253_v47 = vsel %vm900_vm14, %v3964_v46, -inf }
 0x2ce   : > { %1254 = vmax.xlane.f32.xlu1 %v1253_v47 }
 0x2cf   : > { %v3968_v48 = vpop.f32.mrf.mxu0 }
 0x2d0   : > { %v1187_v56 = vsel %vm904_vm15, %v3968_v48, -inf }
 0x2d2   : > { %v3970_v50 = vpop.eup %3455  ;;  %v2016_v51 = vpop.permute.xlu0 %2015 }
 0x2d3   : > { %v2021_v53 = vsel %vm879_vm11, %v2016_v51, 0  ;;  %v917_v54 = vsel %vm904_vm15, %v3970_v50, 0.0 }
 0x2d4   : > { %918 = vadd.xlane.f32.xlu0 %v917_v54  ;;  %2030 = vmatpush.bf16.xpose.msrb.mxu2 %v2021_v53  ;;  %v3988_v61 = vpop.f32.mrf.mxu2 }
 0x2d5   : > { %v1256_v31 = vsel %vm904_vm15, %v3988_v61, -inf }
 0x2d6   : > { %1188 = vmax.xlane.f32.xlu1 %v1187_v56 }
 0x2d7   : > { %v3977_v57 = vpop.f32.mrf.mxu0 }
 0x2d8   : > { %v1322_v11 = vsel %vm900_vm14, %v3977_v57, -inf }
 0x2dc   : > { %v3990_v62 = vpop.f32.mrf.mxu2 }
 0x2dd   : > { %v1391_v36 = vsel %vm900_vm14, %v3990_v62, -inf }
 0x2df   : > { %v2014_v58 = vpop.permute.xlu1 %2013  ;;  %v3979_v59 = vpop.f32.mrf.mxu0 }
 0x2e0   : > { %3155 = vmatmul.msk.bf16.vlgmr.msrb.gmra.mxu2 %vm879_vm11, %v2014_v58  ;;  %v1325_v60 = vsel %vm904_vm15, %v3979_v59, -inf }
 0x2e1   : > { %1326 = vmax.xlane.f32.xlu1 %v1325_v60 }
 0x2e4   : > { %1944 = vrot.lane.b32.xlu2 %v3897_v52, %s3627_s27  ;;  %v3996_v0 = vpop.f32.mrf.mxu2  ;;  %v1115_v52 = vsel %vm900_vm14, %v3952_v33, -inf }
 0x2e5   : > { %v1394_v45 = vsel %vm904_vm15, %v3996_v0, -inf }
 0x2e7   : > { %v3994_v63 = vpop.f32.mrf.mxu0 }
 0x2e8   : > { %1946 = vrot.lane.b32.xlu0 %v3891_v49, %s3627_s27  ;;  %v1548_v41 = vsel %vm900_vm14, %v3994_v63, -inf }
 0x2ec   : > { %v4004_v49 = vpop.f32.mrf.mxu2 }
 0x2ef   : > { %v4000_v2 = vpop.f32.mrf.mxu0 }
 0x2f0   : > { %v1551_v40 = vsel %vm904_vm15, %v4000_v2, -inf }
 0x2f4   : > { %v4014_v7 = vpop.f32.mrf.mxu2 }
 0x2f5   : > { %v1626_v10 = vsel %vm904_vm15, %v4014_v7, -inf }
 0x2f7   : > { %v4010_v5 = vpop.f32.mrf.mxu0 }
 0x2fa   : > { %1138 = vrot.lane.b32.xlu1 %v3875_v32, %s3624_s29 }
 0x2fc   : > { %v4020_v9 = vpop.f32.mrf.mxu2 }
 0x2fd   : > { %v1761_v25 = vsel %vm900_vm14, %v4020_v9, -inf }
 0x2ff   : > { %v4018_v8 = vpop.f32.mrf.mxu0 }
 0x304   : > { %v4032_v14 = vpop.f32.mrf.mxu2 }
 0x307   : > { %v4028_v12 = vpop.f32.mrf.mxu0 }
 0x308   : > { %v1830_v58 = vsel %vm900_vm14, %v4028_v12, -inf }
 0x30c   : > { %v4040_v17 = vpop.f32.mrf.mxu2 }
 0x30d   : > { %1116 = vmax.xlane.f32.xlu2 %v1115_v52  ;;  %v1899_v20 = vsel %vm900_vm14, %v4040_v17, -inf }
 0x30f   : > { %v4036_v15 = vpop.f32.mrf.mxu0 }
 0x310   : > { %v1833_v16 = vsel %vm904_vm15, %v4036_v15, -inf }
 0x312   : > { %1047 = vmax.xlane.f32.xlu0 %v1046_v4 }
 0x314   : > { %v4046_v21 = vpop.f32.mrf.mxu2 }
 0x315   : > { %1050 = vmax.xlane.f32.xlu2 %v1049_v6  ;;  %v1902_v23 = vsel %vm904_vm15, %v4046_v21, -inf }
 0x31d   : > { %1185 = vmax.xlane.f32.xlu2 %v1184_v18 }
 0x324   : > { %1627 = vmax.xlane.f32.xlu1 %v1626_v10 }
 0x325   : > { %1323 = vmax.xlane.f32.xlu2 %v1322_v11 }
 0x326   : > { %1000 = vrot.lane.b32.xlu0 %v3875_v32, %s3625_s2 }
 0x32c   : > { %1762 = vmax.xlane.f32.xlu1 %v1761_v25 }
 0x32e   : > { %1207 = vrot.lane.b32.xlu0 %v3875_v32, %s3630_s19 }
 0x334   : > { %1834 = vmax.xlane.f32.xlu1 %v1833_v16 }
 0x339   : > { %v1120_v44 = vpop.xlane.xlu1 %1119 }
 0x33c   : > { %1900 = vmax.xlane.f32.xlu1 %v1899_v20 }
 0x33d   : > { %1069 = vrot.lane.b32.xlu2 %v3875_v32, %s3629_s15 }
 0x33f   : > { %v916_v22 = vpop.xlane.xlu2 %915 }
 0x340   : > { %3457 = vrcp.f32 %v916_v22 }
 0x341   : > { %v1255_v47 = vpop.xlane.xlu1 %1254 }
 0x344   : > { %1903 = vmax.xlane.f32.xlu1 %v1902_v23 }
 0x345   : > { %1276 = vrot.lane.b32.xlu2 %v3875_v32, %s3628_s13 }
 0x346   : > { %v3458_v19 = vpop.eup %3457 }
 0x347   : > { %v919_v24 = vpop.xlane.xlu0 %918  ;;  %v922_v27 = vmul.f32 %v3458_v19, %v3960_v43  ;;  %v1945_v39 = vpop.permute.xlu2 %1944  ;;  %v1692_v43 = vsel %vm900_vm14, %v4010_v5, -inf }
 0x348   : > { %3459 = vrcp.f32 %v919_v24 }
 0x349   : > { %v1189_v54 = vpop.xlane.xlu1 %1188 }
 0x34a   : > { %v1191_v52 = vsub.f32 %v3968_v48, %v1189_v54 }
 0x34c   : > { %v1194_v10 = vmul.f32 1.442695, %v1191_v52 }
 0x34e   : > { %v3460_v26 = vpop.eup %3459 }
 0x34f   : > { %v923_v28 = vmul.f32 %v3460_v26, %v3970_v50  ;;  %v1623_v50 = vsel %vm900_vm14, %v4004_v49, -inf }
 0x351   : > { %v924_v29 = vpack.c.bf16 %v923_v28, %v922_v27 }
 0x353   : > { %3126 = vmatmul.msk.bf16.vlgmr.msrb.gmra.mxu3 %vm900_vm14, %v924_v29 }
 0x354   : > { %v1327_v25 = vpop.xlane.xlu1 %1326 }
 0x358   : > { %1257 = vmax.xlane.f32.xlu0 %v1256_v31 }
 0x35a   : > { %v1947_v34 = vpop.permute.xlu0 %1946 }
 0x35b   : > { %v1952_v35 = vsel %vm879_vm11, %v1947_v34, 0 }
 0x35c   : > { %1961 = vmatpush.bf16.xpose.msra.mxu0 %v1952_v35 }
 0x360   : > { %1392 = vmax.xlane.f32.xlu0 %v1391_v36 }
 0x363   : > { %3127 = vmatmul.msk.bf16.vlgmr.msra.gmra.mxu3 %vm879_vm11, %v3917_v55  ;;  %3153 = vmatmul.msk.bf16.vlgmr.msra.gmra.mxu0 %vm879_vm11, %v1945_v39  ;;  %v1695_v55 = vsel %vm904_vm15, %v4018_v8, -inf }
 0x368   : > { %1552 = vmax.xlane.f32.xlu0 %v1551_v40 }
 0x36e   : > { %1549 = vmax.xlane.f32.xlu2 %v1548_v41 }
 0x370   : > { %1693 = vmax.xlane.f32.xlu0 %v1692_v43 }
 0x376   : > { %1395 = vmax.xlane.f32.xlu2 %v1394_v45 }
 0x378   : > { %1696 = vmax.xlane.f32.xlu0 %v1695_v55  ;;  %v1329_v55 = vsub.f32 %v3979_v59, %v1327_v25 }
 0x37e   : > { %1624 = vmax.xlane.f32.xlu2 %v1623_v50 }
 0x380   : > { %v1117_v51 = vpop.xlane.xlu2 %1116 }
 0x381   : > { %v1121_v53 = vsub.f32 %v3952_v33, %v1117_v51  ;;  %v1764_v33 = vsel %vm904_vm15, %v4032_v14, -inf }
 0x383   : > { %v1123_v4 = vmul.f32 1.442695, %v1121_v53 }
 0x385   : > { %v1048_v56 = vpop.xlane.xlu0 %1047 }
 0x386   : > { %v1052_v60 = vsub.f32 %v3998_v1, %v1048_v56  ;;  %1831 = vmax.xlane.f32.xlu2 %v1830_v58  ;;  %v1122_v1 = vsub.f32 %v3954_v37, %v1120_v44 }
 0x388   : > { %v1054_v6 = vmul.f32 1.442695, %v1052_v60  ;;  %v1051_v18 = vpop.xlane.xlu2 %1050  ;;  %v1125_v26 = vmul.f32 1.442695, %v1122_v1  ;;  %v1332_v60 = vmul.f32 1.442695, %v1329_v55 }
 0x389   : > { %v1053_v11 = vsub.f32 %v4006_v3, %v1051_v18  ;;  %v1259_v3 = vsub.f32 %v3964_v46, %v1255_v47 }
 0x38a   : > { %3461 = vpow2.f32 %v1054_v6 }
 0x38b   : > { %3463 = vpow2.f32 %v1123_v4  ;;  %v1056_v20 = vmul.f32 1.442695, %v1053_v11  ;;  %v1261_v28 = vmul.f32 1.442695, %v1259_v3 }
 0x38c   : > { %3465 = vpow2.f32 %v1194_v10 }
 0x38d   : > { %3467 = vpow2.f32 %v1056_v20 }
 0x38e   : > { %1765 = vmax.xlane.f32.xlu2 %v1764_v33 }
 0x390   : > { %v4083_v16 = vpop.eup %3461  ;;  %v1186_v48 = vpop.xlane.xlu2 %1185 }
 0x391   : > { %v1190_v22 = vsub.f32 %v3958_v42, %v1186_v48  ;;  %v1058_v23 = vsel %vm900_vm14, %v4083_v16, 0.0  ;;  %v4089_v24 = vpop.eup %3463  ;;  %v1139_v42 = vpop.permute.xlu1 %1138 }
 0x392   : > { %1059 = vadd.xlane.f32.xlu1 %v1058_v23  ;;  %v1127_v37 = vsel %vm900_vm14, %v4089_v24, 0.0  ;;  %v4094_v27 = vpop.eup %3465  ;;  %v1144_v36 = vand.u32 %v1139_v42, %v3873_v30 }
 0x393   : > { %v1192_v19 = vmul.f32 1.442695, %v1190_v22  ;;  %v1199_v46 = vsel %vm904_vm15, %v4094_v27, 0.0  ;;  %v4099_v35 = vpop.eup %3467 }
 0x394   : > { %v1061_v44 = vsel %vm904_vm15, %v4099_v35, 0.0 }
 0x395   : > { %3469 = vpow2.f32 %v1192_v19 }
 0x396   : > { %1128 = vadd.xlane.f32.xlu2 %v1127_v37  ;;  %3471 = vpow2.f32 %v1125_v26 }
 0x397   : > { %3473 = vpow2.f32 %v1261_v28 }
 0x398   : > { %v1001_v29 = vpop.permute.xlu0 %1000  ;;  %v1324_v34 = vpop.xlane.xlu2 %1323 }
 0x399   : > { %v1006_v31 = vand.u32 %v1001_v29, %v3873_v30  ;;  %v1328_v39 = vsub.f32 %v3977_v57, %v1324_v34  ;;  %v4112_v57 = vpop.f32.mrf.mxu2  ;;  %v1628_v51 = vpop.xlane.xlu1 %1627 }
 0x39a   : > { %1200 = vadd.xlane.f32.xlu1 %v1199_v46  ;;  %v1630_v52 = vsub.f32 %v4014_v7, %v1628_v51  ;;  %v2037_v4 = vsel %vm900_vm14, %v4112_v57, -inf }
 0x39b   : > { %v4103_v40 = vpop.eup %3469  ;;  %1015 = vmatpush.bf16.msrb.mxu3 %v1006_v31  ;;  %v1330_v41 = vmul.f32 1.442695, %v1328_v39 }
 0x39c   : > { %v1196_v43 = vsel %vm900_vm14, %v4103_v40, 0.0  ;;  %v4109_v45 = vpop.eup %3471  ;;  %v1633_v18 = vmul.f32 1.442695, %v1630_v52 }
 0x39d   : > { %1197 = vadd.xlane.f32.xlu0 %v1196_v43  ;;  %3475 = vpow2.f32 %v1330_v41  ;;  %v4114_v50 = vpop.eup %3473  ;;  %v1130_v56 = vsel %vm904_vm15, %v4109_v45, 0.0 }
 0x39e   : > { %1062 = vadd.xlane.f32.xlu2 %v1061_v44  ;;  %v1265_v59 = vsel %vm900_vm14, %v4114_v50, 0.0  ;;  %3477 = vpow2.f32 %v1332_v60 }
 0x39f   : > { %1153 = vmatpush.bf16.msra.mxu3 %v1144_v36  ;;  %3479 = vpow2.f32 %v1633_v18 }
 0x3a0   : > { %v1208_v47 = vpop.permute.xlu0 %1207  ;;  %v1070_v54 = vpop.permute.xlu2 %1069 }
 0x3a1   : > { %v1213_v53 = vand.u32 %v1208_v47, %v3873_v30  ;;  %v1075_v58 = vand.u32 %v1070_v54, %v3873_v30  ;;  %v4129_v11 = vpop.f32.mrf.mxu2  ;;  %v4155_v34 = vpop.xlane.xlu1 %1762 }
 0x3a2   : > { %1131 = vadd.xlane.f32.xlu1 %v1130_v56  ;;  %v2040_v7 = vsel %vm904_vm15, %v4129_v11, -inf }
 0x3a3   : > { %1084 = vmatpush.bf16.msra.mxu1 %v1075_v58  ;;  %v4125_v6 = vpop.eup %3475 }
 0x3a4   : > { %v1334_v10 = vsel %vm900_vm14, %v4125_v6, 0.0  ;;  %v4133_v33 = vpop.eup %3477 }
 0x3a5   : > { %1266 = vadd.xlane.f32.xlu0 %v1265_v59  ;;  %v1337_v25 = vsel %vm904_vm15, %v4133_v33, 0.0  ;;  %v4137_v1 = vpop.eup %3479 }
 0x3a6   : > { %2038 = vmax.xlane.f32.xlu2 %v2037_v4  ;;  %v1638_v20 = vsel %vm904_vm15, %v4137_v1, 0.0 }
 0x3a7   : > { %1222 = vmatpush.bf16.msrb.mxu1 %v1213_v53 }
 0x3a8   : > { %v4149_v29 = vpop.permute.xlu2 %1276 }
 0x3a9   : > { %v4169_v53 = vpop.xlane.xlu1 %1834 }
 0x3aa   : > { %1335 = vadd.xlane.f32.xlu1 %v1334_v10 }
 0x3ae   : > { %2041 = vmax.xlane.f32.xlu2 %v2040_v7 }
 0x3b1   : > { %v4180_v4 = vpop.xlane.xlu1 %1900 }
 0x3b2   : > { %1338 = vadd.xlane.f32.xlu1 %v1337_v25 }
 0x3b6   : > { %1639 = vadd.xlane.f32.xlu2 %v1638_v20 }
 0x3cb   : > { %v1258_v48 = vpop.xlane.xlu0 %1257 }
 0x3cc   : > { %v1260_v22 = vsub.f32 %v3988_v61, %v1258_v48  ;;  %v1904_v48 = vpop.xlane.xlu1 %1903 }
 0x3ce   : > { %v1263_v23 = vmul.f32 1.442695, %v1260_v22 }
 0x3d0   : > { %3481 = vpow2.f32 %v1263_v23 }
 0x3d3   : > { %v1393_v3 = vpop.xlane.xlu0 %1392 }
 0x3d4   : > { %v1397_v19 = vsub.f32 %v3990_v62, %v1393_v3 }
 0x3d6   : > { %v4143_v26 = vpop.eup %3481  ;;  %v1399_v37 = vmul.f32 1.442695, %v1397_v19  ;;  %v4145_v28 = vpop.f32.mrf.mxu3  ;;  %v1575_v19 = vshll.u32 %v3883_v38, 16 }
 0x3d7   : > { %v1268_v42 = vsel %vm904_vm15, %v4143_v26, 0.0 }
 0x3d8   : > { %3483 = vpow2.f32 %v1399_v37  ;;  %1269 = vadd.xlane.f32.xlu0 %v1268_v42 }
 0x3db   : > { %v1553_v43 = vpop.xlane.xlu0 %1552 }
 0x3dc   : > { %v1555_v47 = vsub.f32 %v4000_v2, %v1553_v43 }
 0x3de   : > { %v4151_v31 = vpop.eup %3483  ;;  %v4153_v61 = vpop.f32.mrf.mxu3  ;;  %v1558_v58 = vmul.f32 1.442695, %v1555_v47 }
 0x3df   : > { %v1403_v62 = vsel %vm900_vm14, %v4151_v31, 0.0 }
 0x3e0   : > { %v4159_v46 = vpop.f32.mrf.mxu0  ;;  %1404 = vadd.xlane.f32.xlu1 %v1403_v62  ;;  %v1577_v62 = vrot.slane %v1575_v19, 1 }
 0x3e1   : > { %v1550_v36 = vpop.xlane.xlu2 %1549 }
 0x3e2   : > { %v1554_v39 = vsub.f32 %v3994_v63, %v1550_v36 }
 0x3e3   : > { %v4201_v37 = vpop.xlane.xlu0 %1693 }
 0x3e4   : > { %v1556_v41 = vmul.f32 1.442695, %v1554_v39  ;;  %v1573_v39 = vshrl.u32 %v3883_v38, 16 }
 0x3e6   : > { %v4162_v44 = vpop.f32.mrf.mxu3  ;;  %3485 = vpow2.f32 %v1556_v41  ;;  %v4204_v41 = vor.u32 %v1577_v62, %v1573_v39 }
 0x3e7   : > { %v976_v55 = vsel %vm900_vm14, %v4162_v44, -inf }
 0x3e8   : > { %v4167_v51 = vpop.f32.mrf.mxu0  ;;  %977 = vmax.xlane.f32.xlu1 %v976_v55 }
 0x3e9   : > { %v1396_v54 = vpop.xlane.xlu2 %1395  ;;  %v1971_v56 = vsel %vm904_vm15, %v4167_v51, -inf }
 0x3ea   : > { %v1398_v63 = vsub.f32 %v3996_v0, %v1396_v54  ;;  %1972 = vmax.xlane.f32.xlu2 %v1971_v56 }
 0x3eb   : > { %v4208_v55 = vpop.xlane.xlu0 %1696 }
 0x3ec   : > { %v1401_v60 = vmul.f32 1.442695, %v1398_v63  ;;  %v4174_v52 = vpop.eup %3485 }
 0x3ed   : > { %v1560_v59 = vsel %vm900_vm14, %v4174_v52, 0.0 }
 0x3ee   : > { %3487 = vpow2.f32 %v1401_v60  ;;  %v4192_v20 = vpop.f32.mrf.mxu3 }
 0x3ef   : > { %3489 = vpow2.f32 %v1558_v58  ;;  %v979_v22 = vsel %vm904_vm15, %v4192_v20, -inf }
 0x3f1   : > { %v4176_v2 = vpop.xlane.xlu2 %1624 }
 0x3f2   : > { %1561 = vadd.xlane.f32.xlu2 %v1560_v59 }
 0x3f4   : > { %v4182_v18 = vpop.eup %3487 }
 0x3f5   : > { %v1406_v0 = vsel %vm904_vm15, %v4182_v18, 0.0  ;;  %v4186_v10 = vpop.eup %3489 }
 0x3f6   : > { %1407 = vadd.xlane.f32.xlu0 %v1406_v0  ;;  %v1563_v25 = vsel %vm904_vm15, %v4186_v10, 0.0 }
 0x3f9   : > { %v4188_v7 = vpop.xlane.xlu2 %1831 }
 0x3fa   : > { %1564 = vadd.xlane.f32.xlu2 %v1563_v25 }
 0x3fe   : > { %980 = vmax.xlane.f32.xlu0 %v979_v22 }
 0x401   : > { %v4196_v23 = vpop.xlane.xlu2 %1765  ;;  %1414 = vrot.lane.b32.xlu1 %v3875_v32, %s3623_s26 }
 0x405   : > { %v1060_v3 = vpop.xlane.xlu1 %1059 }
 0x406   : > { %3491 = vrcp.f32 %v1060_v3 }
 0x409   : > { %v1129_v42 = vpop.xlane.xlu2 %1128 }
 0x40c   : > { %v3492_v54 = vpop.eup %3491 }
 0x40d   : > { %v1201_v36 = vpop.xlane.xlu1 %1200  ;;  %v1066_v63 = vmul.f32 %v3492_v54, %v4083_v16 }
 0x410   : > { %v1198_v60 = vpop.xlane.xlu0 %1197 }
 0x411   : > { %v1063_v43 = vpop.xlane.xlu2 %1062 }
 0x412   : > { %3493 = vrcp.f32 %v1063_v43  ;;  %1646 = vrot.lane.b32.xlu2 %v4204_v41, %s3625_s2 }
 0x413   : > { %3495 = vrcp.f32 %v1129_v42 }
 0x415   : > { %v1132_v47 = vpop.xlane.xlu1 %1131 }
 0x416   : > { %3497 = vrcp.f32 %v1132_v47 }
 0x417   : > { %3499 = vrcp.f32 %v1198_v60 }
 0x418   : > { %v3494_v56 = vpop.eup %3493  ;;  %3501 = vrcp.f32 %v1201_v36 }
 0x419   : > { %v1067_v58 = vmul.f32 %v3494_v56, %v4099_v35  ;;  %v3496_v38 = vpop.eup %3495  ;;  %v1906_v56 = vsub.f32 %v4046_v21, %v1904_v48 }
 0x41a   : > { %1715 = vrot.lane.b32.xlu2 %v4204_v41, %s3629_s15  ;;  %v4215_v25 = vmul.f32 %v3496_v38, %v4089_v24 }
 0x41b   : > { %v1068_v59 = vpack.c.bf16 %v1067_v58, %v1066_v63  ;;  %v1267_v58 = vpop.xlane.xlu0 %1266 }
 0x41c   : > { %v3498_v0 = vpop.eup %3497 }
 0x41d   : > { %v4218_v22 = vmul.f32 %v3498_v0, %v4109_v45  ;;  %3130 = vmatmul.msk.bf16.vlgmr.msra.gmra.mxu1 %vm900_vm14, %v1068_v59  ;;  %v1336_v3 = vpop.xlane.xlu1 %1335  ;;  %v3500_v35 = vpop.eup %3499 }
 0x41e   : > { %3503 = vrcp.f32 %v1336_v3  ;;  %v3502_v42 = vpop.eup %3501  ;;  %v1204_v62 = vmul.f32 %v3500_v35, %v4103_v40  ;;  %v1909_v40 = vmul.f32 1.442695, %v1906_v56  ;;  %v1629_v35 = vsub.f32 %v4004_v49, %v4176_v2 }
 0x41f   : > { %v1137_v16 = vpack.c.bf16 %v4218_v22, %v4215_v25  ;;  %v1205_v24 = vmul.f32 %v3502_v42, %v4094_v27  ;;  %v1698_v49 = vsub.f32 %v4010_v5, %v4201_v37 }
 0x420   : > { %v1631_v42 = vmul.f32 1.442695, %v1629_v35  ;;  %v1699_v35 = vsub.f32 %v4018_v8, %v4208_v55 }
 0x421   : > { %v1206_v45 = vpack.c.bf16 %v1205_v24, %v1204_v62 }
 0x424   : > { %v3504_v39 = vpop.eup %3503 }
 0x425   : > { %v1339_v19 = vpop.xlane.xlu1 %1338  ;;  %v4227_v47 = vmul.f32 %v3504_v39, %v4125_v6 }
 0x426   : > { %3505 = vrcp.f32 %v1339_v19 }
 0x427   : > { %3507 = vpow2.f32 %v1909_v40 }
 0x428   : > { %3509 = vrcp.f32 %v1267_v58 }
 0x42c   : > { %v3506_v43 = vpop.eup %3505 }
 0x42d   : > { %3134 = vmatmul.msk.bf16.vlgmr.msrb.gmra.mxu1 %vm900_vm14, %v1206_v45  ;;  %v4230_v54 = vmul.f32 %v3506_v43, %v4133_v33  ;;  %v4235_v63 = vpop.eup %3507 }
 0x42e   : > { %v1914_v27 = vsel %vm904_vm15, %v4235_v63, 0.0  ;;  %v3510_v38 = vpop.eup %3509 }
 0x42f   : > { %v1344_v36 = vpack.c.bf16 %v4230_v54, %v4227_v47  ;;  %v4240_v60 = vmul.f32 %v3510_v38, %v4114_v50  ;;  %v1767_v50 = vsub.f32 %v4020_v9, %v4155_v34  ;;  %v1700_v34 = vmul.f32 1.442695, %v1698_v49 }
 0x431   : > { %v1769_v39 = vmul.f32 1.442695, %v1767_v50 }
 0x443   : > { %1915 = vadd.xlane.f32.xlu2 %v1914_v27 }
 0x44b   : > { %v1270_v6 = vpop.xlane.xlu0 %1269 }
 0x44c   : > { %3511 = vrcp.f32 %v1270_v6 }
 0x452   : > { %v3512_v33 = vpop.eup %3511 }
 0x453   : > { %v4243_v59 = vmul.f32 %v3512_v33, %v4143_v26  ;;  %v1405_v21 = vpop.xlane.xlu1 %1404  ;;  %v1768_v33 = vsub.f32 %v4032_v14, %v4196_v23  ;;  %v1905_v14 = vsub.f32 %v4040_v17, %v4180_v4 }
 0x455   : > { %v1275_v48 = vpack.c.bf16 %v4243_v59, %v4240_v60  ;;  %v1907_v23 = vmul.f32 1.442695, %v1905_v14 }
 0x45b   : > { %v978_v0 = vpop.xlane.xlu1 %977 }
 0x45c   : > { %v982_v3 = vsub.f32 %v4162_v44, %v978_v0  ;;  %v2039_v0 = vpop.xlane.xlu2 %2038 }
 0x45e   : > { %v984_v19 = vmul.f32 1.442695, %v982_v3  ;;  %v2043_v3 = vsub.f32 %v4112_v57, %v2039_v0 }
 0x460   : > { %3513 = vpow2.f32 %v984_v19  ;;  %v2045_v19 = vmul.f32 1.442695, %v2043_v3 }
 0x461   : > { %3515 = vpow2.f32 %v1631_v42  ;;  %v1702_v42 = vmul.f32 1.442695, %v1699_v35 }
 0x462   : > { %3517 = vrcp.f32 %v1405_v21  ;;  %v1771_v21 = vmul.f32 1.442695, %v1768_v33 }
 0x464   : > { %v2042_v4 = vpop.xlane.xlu2 %2041 }
 0x466   : > { %v4250_v62 = vpop.eup %3513 }
 0x467   : > { %v988_v26 = vsel %vm900_vm14, %v4250_v62, 0.0  ;;  %v4256_v44 = vpop.eup %3515 }
 0x468   : > { %989 = vadd.xlane.f32.xlu1 %v988_v26  ;;  %v3518_v2 = vpop.eup %3517  ;;  %v1635_v45 = vsel %vm900_vm14, %v4256_v44, 0.0  ;;  %v1836_v26 = vsub.f32 %v4028_v12, %v4188_v7 }
 0x469   : > { %v1408_v24 = vpop.xlane.xlu0 %1407  ;;  %v4263_v43 = vmul.f32 %v3518_v2, %v4151_v31  ;;  %v1837_v2 = vsub.f32 %v4036_v15, %v4169_v53 }
 0x46a   : > { %3519 = vrcp.f32 %v1408_v24 }
 0x46b   : > { %3521 = vpow2.f32 %v1769_v39  ;;  %v1838_v39 = vmul.f32 1.442695, %v1836_v26  ;;  %v1840_v12 = vmul.f32 1.442695, %v1837_v2  ;;  %v1583_v26 = vand.u32 %v4204_v41, %v3873_v30 }
 0x46c   : > { %3523 = vpow2.f32 %v1700_v34  ;;  %v4318_v7 = vpop.xlane.xlu2 %1639 }
 0x470   : > { %v3520_v9 = vpop.eup %3519  ;;  %1636 = vadd.xlane.f32.xlu1 %v1635_v45 }
 0x471   : > { %v4266_v56 = vmul.f32 %v3520_v9, %v4182_v18  ;;  %v981_v40 = vpop.xlane.xlu0 %980  ;;  %v4271_v37 = vpop.eup %3521 }
 0x472   : > { %v983_v27 = vsub.f32 %v4192_v20, %v981_v40  ;;  %v1773_v6 = vsel %vm900_vm14, %v4271_v37, 0.0  ;;  %v4275_v31 = vpop.eup %3523 }
 0x473   : > { %v1413_v5 = vpack.c.bf16 %v4266_v56, %v4263_v43  ;;  %v1704_v20 = vsel %vm900_vm14, %v4275_v31, 0.0  ;;  %v1415_v53 = vpop.permute.xlu1 %1414 }
 0x474   : > { %v986_v58 = vmul.f32 1.442695, %v983_v27  ;;  %v4324_v40 = vpop.xlane.xlu2 %1972 }
 0x476   : > { %3525 = vpow2.f32 %v986_v58 }
 0x477   : > { %3527 = vpow2.f32 %v1771_v21 }
 0x478   : > { %1774 = vadd.xlane.f32.xlu1 %v1773_v6  ;;  %3529 = vpow2.f32 %v2045_v19  ;;  %v1282_v19 = vand.u32 %v4149_v29, %v3873_v30  ;;  %v1420_v29 = vand.u32 %v1415_v53, %v3873_v30 }
 0x479   : > { %3531 = vpow2.f32 %v1702_v42 }
 0x47a   : > { %3533 = vpow2.f32 %v1907_v23 }
 0x47b   : > { %3535 = vpow2.f32 %v1838_v39 }
 0x47c   : > { %v4277_v38 = vpop.eup %3525  ;;  %3537 = vpow2.f32 %v1840_v12  ;;  %v1562_v58 = vpop.xlane.xlu2 %1561 }
 0x47d   : > { %v991_v18 = vsel %vm904_vm15, %v4277_v38, 0.0  ;;  %v4296_v50 = vpop.eup %3527 }
 0x47e   : > { %992 = vadd.xlane.f32.xlu0 %v991_v18  ;;  %v1776_v57 = vsel %vm904_vm15, %v4296_v50, 0.0  ;;  %v4302_v8 = vpop.eup %3529 }
 0x47f   : > { %v4304_v55 = vpop.eup %3531  ;;  %v2049_v24 = vsel %vm900_vm14, %v4302_v8, 0.0 }
 0x480   : > { %1705 = vadd.xlane.f32.xlu1 %v1704_v20  ;;  %v1707_v17 = vsel %vm904_vm15, %v4304_v55, 0.0  ;;  %v4312_v49 = vpop.eup %3533 }
 0x481   : > { %v1911_v45 = vsel %vm900_vm14, %v4312_v49, 0.0  ;;  %v4320_v9 = vpop.eup %3535 }
 0x482   : > { %v1842_v34 = vsel %vm900_vm14, %v4320_v9, 0.0  ;;  %v4326_v27 = vpop.eup %3537 }
 0x483   : > { %v1845_v15 = vsel %vm904_vm15, %v4326_v27, 0.0 }
 0x484   : > { %v1565_v33 = vpop.xlane.xlu2 %1564 }
 0x48c   : > { %v1647_v42 = vpop.permute.xlu2 %1646 }
 0x48d   : > { %v1652_v12 = vand.u32 %v1647_v42, %v3873_v30 }
 0x492   : > { %1345 = vrot.lane.b32.xlu0 %v3875_v32, %s3627_s27  ;;  %v1968_v32 = vsel %vm900_vm14, %v4159_v46, -inf }
 0x494   : > { %v1716_v23 = vpop.permute.xlu2 %1715 }
 0x499   : > { %1784 = vrot.lane.b32.xlu1 %v4204_v41, %s3624_s29 }
 0x49a   : > { %v1086_v6 = vpop.f32.mrf.mxu1 }
 0x4a1   : > { %1922 = vrot.lane.b32.xlu1 %v4204_v41, %s3628_s13 }
 0x4a2   : > { %v4366_v22 = vpop.f32.mrf.mxu1 }
 0x4bc   : > { %1969 = vmax.xlane.f32.xlu0 %v1968_v32 }
 0x4c4   : > { %1777 = vadd.xlane.f32.xlu0 %v1776_v57 }
 0x4cb   : > { %2050 = vadd.xlane.f32.xlu1 %v2049_v24  ;;  %v2044_v24 = vsub.f32 %v4129_v11, %v2042_v4 }
 0x4cc   : > { %1708 = vadd.xlane.f32.xlu0 %v1707_v17 }
 0x4cd   : > { %v2047_v2 = vmul.f32 1.442695, %v2044_v24 }
 0x4d4   : > { %1912 = vadd.xlane.f32.xlu0 %v1911_v45 }
 0x4db   : > { %v990_v18 = vpop.xlane.xlu1 %989 }
 0x4dc   : > { %1843 = vadd.xlane.f32.xlu0 %v1842_v34  ;;  %3539 = vrcp.f32 %v990_v18 }
 0x4e2   : > { %v3540_v21 = vpop.eup %3539 }
 0x4e3   : > { %v996_v3 = vmul.f32 %v3540_v21, %v4250_v62  ;;  %v1721_v62 = vand.u32 %v1716_v23, %v3873_v30  ;;  %v1916_v23 = vpop.xlane.xlu2 %1915 }
 0x4e4   : > { %1846 = vadd.xlane.f32.xlu0 %v1845_v15  ;;  %1991 = vrot.lane.b32.xlu1 %v4204_v41, %s3627_s27  ;;  %v1224_v15 = vpop.f32.mrf.mxu1 }
 0x4ec   : > { %1446 = vrot.lane.b32.xlu1 %v1086_v6, %s3627_s27 }
 0x4f1   : > { %v993_v20 = vpop.xlane.xlu0 %992 }
 0x4f2   : > { %3541 = vrcp.f32 %v993_v20 }
 0x4f3   : > { %3543 = vrcp.f32 %v1565_v33 }
 0x4f4   : > { %3545 = vrcp.f32 %v1562_v58 }
 0x4f5   : > { %3547 = vpow2.f32 %v2047_v2 }
 0x4f8   : > { %v3542_v0 = vpop.eup %3541  ;;  %1853 = vrot.lane.b32.xlu0 %v4204_v41, %s3630_s19 }
 0x4f9   : > { %v997_v35 = vmul.f32 %v3542_v0, %v4277_v38  ;;  %v1637_v38 = vpop.xlane.xlu1 %1636  ;;  %v3544_v17 = vpop.eup %3543 }
 0x4fa   : > { %v3546_v39 = vpop.eup %3545  ;;  %v1569_v47 = vmul.f32 %v3544_v17, %v4186_v10  ;;  %3549 = vrcp.f32 %v1637_v38 }
 0x4fb   : > { %v998_v32 = vpack.c.bf16 %v997_v35, %v996_v3  ;;  %v1568_v54 = vmul.f32 %v3546_v39, %v4174_v52  ;;  %v4362_v11 = vpop.eup %3547  ;;  %3551 = vrcp.f32 %v4318_v7 }
 0x4fc   : > { %v2052_v10 = vsel %vm904_vm15, %v4362_v11, 0.0 }
 0x4fd   : > { %3128 = vmatmul.msk.bf16.vlgmr.msrb.gmra.mxu3 %vm900_vm14, %v998_v32  ;;  %v1570_v45 = vpack.c.bf16 %v1569_v47, %v1568_v54 }
 0x4fe   : > { %1291 = vmatpush.bf16.msrb.mxu3 %v1282_v19 }
 0x500   : > { %v3550_v34 = vpop.eup %3549 }
 0x501   : > { %v3552_v53 = vpop.eup %3551  ;;  %v1643_v43 = vmul.f32 %v3550_v34, %v4256_v44 }
 0x504   : > { %v1346_v14 = vpop.permute.xlu0 %1345 }
 0x505   : > { %v1351_v57 = vand.u32 %v1346_v14, %v3873_v30 }
 0x507   : > { %1360 = vmatpush.bf16.msra.mxu1 %v1351_v57 }
 0x50a   : > { %3138 = vmatmul.msk.bf16.vlgmr.msra.gmra.mxu1 %vm900_vm14, %v1344_v36  ;;  %v1775_v36 = vpop.xlane.xlu1 %1774 }
 0x50b   : > { %1592 = vmatpush.bf16.msrb.mxu1 %v1583_v26 }
 0x50d   : > { %3132 = vmatmul.msk.bf16.vlgmr.msra.gmra.mxu3 %vm900_vm14, %v1137_v16 }
 0x50e   : > { %1429 = vmatpush.bf16.msra.mxu3 %v1420_v29 }
 0x50f   : > { %1730 = vmatpush.bf16.msra.mxu1 %v1721_v62 }
 0x512   : > { %v1706_v25 = vpop.xlane.xlu1 %1705 }
 0x51a   : > { %3142 = vmatmul.msk.bf16.vlgmr.msrb.gmra.mxu1 %vm900_vm14, %v1570_v45  ;;  %v1785_v52 = vpop.permute.xlu1 %1784 }
 0x51b   : > { %v1790_v16 = vand.u32 %v1785_v52, %v3873_v30 }
 0x51d   : > { %3136 = vmatmul.msk.bf16.vlgmr.msrb.gmra.mxu3 %vm900_vm14, %v1275_v48  ;;  %v1975_v48 = vsub.f32 %v4167_v51, %v4324_v40 }
 0x51e   : > { %1661 = vmatpush.bf16.msrb.mxu3 %v1652_v12 }
 0x51f   : > { %v1978_v58 = vmul.f32 1.442695, %v1975_v48 }
 0x522   : > { %2053 = vadd.xlane.f32.xlu0 %v2052_v10  ;;  %v1923_v6 = vpop.permute.xlu1 %1922  ;;  %v1226_v10 = vpop.f32.mrf.mxu1 }
 0x523   : > { %v1928_v40 = vand.u32 %v1923_v6, %v3873_v30 }
 0x52d   : > { %3140 = vmatmul.msk.bf16.vlgmr.msra.gmra.mxu3 %vm900_vm14, %v1413_v5  ;;  %v1644_v5 = vmul.f32 %v3552_v53, %v4137_v1 }
 0x52e   : > { %1799 = vmatpush.bf16.msra.mxu3 %v1790_v16 }
 0x52f   : > { %v1970_v60 = vpop.xlane.xlu0 %1969 }
 0x530   : > { %v1974_v59 = vsub.f32 %v4159_v46, %v1970_v60  ;;  %v1645_v46 = vpack.c.bf16 %v1644_v5, %v1643_v43 }
 0x532   : > { %v1976_v4 = vmul.f32 1.442695, %v1974_v59 }
 0x534   : > { %3553 = vpow2.f32 %v1976_v4 }
 0x535   : > { %3555 = vpow2.f32 %v1978_v58 }
 0x536   : > { %1462 = vrot.lane.b32.xlu0 %v1224_v15, %s3630_s19  ;;  %3557 = vrcp.f32 %v1706_v25 }
 0x537   : > { %v1778_v56 = vpop.xlane.xlu0 %1777 }
 0x538   : > { %3559 = vrcp.f32 %v1778_v56 }
 0x539   : > { %3561 = vrcp.f32 %v1775_v36 }
 0x53a   : > { %v4380_v7 = vpop.eup %3553 }
 0x53b   : > { %v1980_v51 = vsel %vm900_vm14, %v4380_v7, 0.0  ;;  %v4386_v18 = vpop.eup %3555 }
 0x53c   : > { %1981 = vadd.xlane.f32.xlu2 %v1980_v51  ;;  %v3558_v1 = vpop.eup %3557  ;;  %v1983_v20 = vsel %vm904_vm15, %v4386_v18, 0.0 }
 0x53d   : > { %3144 = vmatmul.msk.bf16.vlgmr.msrb.gmra.mxu3 %vm900_vm14, %v1645_v46  ;;  %v1712_v3 = vmul.f32 %v3558_v1, %v4275_v31 }
 0x53e   : > { %1937 = vmatpush.bf16.msrb.mxu3 %v1928_v40  ;;  %v3560_v33 = vpop.eup %3559  ;;  %v2051_v38 = vpop.xlane.xlu1 %2050 }
 0x53f   : > { %v1709_v44 = vpop.xlane.xlu0 %1708  ;;  %v3562_v21 = vpop.eup %3561  ;;  %v1782_v35 = vmul.f32 %v3560_v33, %v4296_v50 }
 0x540   : > { %3563 = vrcp.f32 %v1709_v44  ;;  %v1781_v19 = vmul.f32 %v3562_v21, %v4271_v37 }
 0x542   : > { %v1783_v57 = vpack.c.bf16 %v1782_v35, %v1781_v19 }
 0x544   : > { %1984 = vadd.xlane.f32.xlu2 %v1983_v20 }
 0x546   : > { %v3564_v0 = vpop.eup %3563 }
 0x547   : > { %v1713_v32 = vmul.f32 %v3564_v0, %v4304_v55  ;;  %v1913_v14 = vpop.xlane.xlu0 %1912 }
 0x548   : > { %3565 = vrcp.f32 %v1913_v14 }
 0x549   : > { %v1714_v42 = vpack.c.bf16 %v1713_v32, %v1712_v3  ;;  %3567 = vrcp.f32 %v1916_v23 }
 0x54b   : > { %3146 = vmatmul.msk.bf16.vlgmr.msra.gmra.mxu1 %vm900_vm14, %v1714_v42 }
 0x54d   : > { %3148 = vmatmul.msk.bf16.vlgmr.msra.gmra.mxu3 %vm900_vm14, %v1783_v57 }
 0x54e   : > { %v3566_v26 = vpop.eup %3565 }
 0x54f   : > { %v1844_v62 = vpop.xlane.xlu0 %1843  ;;  %v3568_v29 = vpop.eup %3567  ;;  %v1919_v31 = vmul.f32 %v3566_v26, %v4312_v49 }
 0x550   : > { %v1920_v50 = vmul.f32 %v3568_v29, %v4235_v63 }
 0x552   : > { %v1921_v55 = vpack.c.bf16 %v1920_v50, %v1919_v31 }
 0x556   : > { %v1992_v39 = vpop.permute.xlu1 %1991 }
 0x557   : > { %v1847_v37 = vpop.xlane.xlu0 %1846  ;;  %v1997_v54 = vand.u32 %v1992_v39, %v3873_v30  ;;  %v3349_v39 = vld [vmem:[%s3719_s16 + $0x18] sm:$0xff] }
 0x558   : > { %3569 = vrcp.f32 %v1847_v37  ;;  %v3352_v37 = vld [vmem:[%s3719_s16 + $0x30] sm:$0xff] }
 0x559   : > { %3571 = vrcp.f32 %v1844_v62 }
 0x55c   : > { %2060 = vrot.lane.b32.xlu2 %v4204_v41, %s3623_s26 }
 0x55d   : > { %3152 = vmatmul.msk.bf16.vlgmr.msrb.gmra.mxu3 %vm900_vm14, %v1921_v55  ;;  %v3353_v55 = vld [vmem:[%s3719_s16 + $0x38] sm:$0xff] }
 0x55e   : > { %v3570_v24 = vpop.eup %3569  ;;  %2231 = vmatpush.bf16.msrb.mxu0 %v3353_v55 }
 0x55f   : > { %v3572_v17 = vpop.eup %3571  ;;  %v1851_v2 = vmul.f32 %v3570_v24, %v4326_v27 }
 0x560   : > { %v1850_v63 = vmul.f32 %v3572_v17, %v4320_v9  ;;  %v3350_v17 = vld [vmem:[%s3719_s16 + $0x20] sm:$0xff] }
 0x562   : > { %v1852_v41 = vpack.c.bf16 %v1851_v2, %v1850_v63  ;;  %2232 = vmatpush.bf16.msrb.mxu0 %v3352_v37 }
 0x56a   : > { %v1854_v47 = vpop.permute.xlu0 %1853 }
 0x56b   : > { %v1859_v49 = vand.u32 %v1854_v47, %v3873_v30  ;;  %v3348_v47 = vld [vmem:[%s3719_s16 + $0x10] sm:$0xff] }
 0x56d   : > { %1868 = vmatpush.bf16.msrb.mxu1 %v1859_v49  ;;  %v3347_v49 = vld [vmem:[%s3719_s16 + $0x8] sm:$0xff] }
 0x570   : > { %3150 = vmatmul.msk.bf16.vlgmr.msrb.gmra.mxu1 %vm900_vm14, %v1852_v41 }
 0x571   : > { %2006 = vmatpush.bf16.msra.mxu1 %v1997_v54  ;;  %v3346_v54 = vld [vmem:[%s3719_s16] sm:$0xff] }
 0x580   : > { %v4406_v36 = vpop.f32.mrf.mxu3 }
 0x587   : > { %v1362_v27 = vpop.f32.mrf.mxu1 }
 0x588   : > { %v1019_v45 = vpop.f32.mrf.mxu3 }
 0x58f   : > { %v1364_v60 = vpop.f32.mrf.mxu1 }
 0x590   : > { %v1155_v12 = vpop.f32.mrf.mxu3 }
 0x595   : > { %v2054_v9 = vpop.xlane.xlu0 %2053 }
 0x596   : > { %3573 = vrcp.f32 %v2054_v9 }
 0x597   : > { %v4408_v4 = vpop.f32.mrf.mxu1 }
 0x598   : > { %v1157_v25 = vpop.f32.mrf.mxu3 }
 0x59c   : > { %v3574_v53 = vpop.eup %3573 }
 0x59d   : > { %v2058_v5 = vmul.f32 %v3574_v53, %v4362_v11 }
 0x59f   : > { %v4413_v40 = vpop.f32.mrf.mxu1 }
 0x5a0   : > { %v1293_v52 = vpop.f32.mrf.mxu3 }
 0x5a8   : > { %v1295_v16 = vpop.f32.mrf.mxu3  ;;  %v1463_v41 = vpop.permute.xlu0 %1462 }
 0x5af   : > { %v1982_v59 = vpop.xlane.xlu2 %1981 }
 0x5b0   : > { %v1431_v48 = vpop.f32.mrf.mxu3  ;;  %3575 = vrcp.f32 %v1982_v59 }
 0x5b1   : > { %3577 = vrcp.f32 %v2051_v38  ;;  %v3351_v38 = vld [vmem:[%s3719_s16 + $0x28] sm:$0xff] }
 0x5b2   : > { %2233 = vmatpush.bf16.msrb.mxu0 %v3351_v38 }
 0x5b6   : > { %v3576_v58 = vpop.eup %3575  ;;  %2234 = vmatpush.bf16.msrb.mxu0 %v3350_v17 }
 0x5b7   : > { %v1985_v34 = vpop.xlane.xlu2 %1984  ;;  %v3578_v43 = vpop.eup %3577  ;;  %v1988_v6 = vmul.f32 %v3576_v58, %v4380_v7 }
 0x5b8   : > { %3579 = vrcp.f32 %v1985_v34  ;;  %v1433_v15 = vpop.f32.mrf.mxu3  ;;  %v2057_v20 = vmul.f32 %v3578_v43, %v4302_v8 }
 0x5ba   : > { %v2059_v21 = vpack.c.bf16 %v2058_v5, %v2057_v20  ;;  %2235 = vmatpush.bf16.msrb.mxu0 %v3349_v39 }
 0x5be   : > { %v3580_v56 = vpop.eup %3579  ;;  %2236 = vmatpush.bf16.msrb.mxu0 %v3348_v47 }
 0x5bf   : > { %v1989_v46 = vmul.f32 %v3580_v56, %v4386_v18  ;;  %v2061_v51 = vpop.permute.xlu2 %2060 }
 0x5c0   : > { %v2066_v44 = vand.u32 %v2061_v51, %v3873_v30  ;;  %v1663_v1 = vpop.f32.mrf.mxu3 }
 0x5c1   : > { %v1990_v33 = vpack.c.bf16 %v1989_v46, %v1988_v6  ;;  %v3419_v42 = vpack.i.bf16 %v1019_v45, %v1663_v1 }
 0x5c2   : > { %2075 = vmatpush.bf16.msra.mxu3 %v2066_v44  ;;  %2237 = vmatpush.bf16.msrb.mxu0 %v3347_v49 }
 0x5c3   : > { %3154 = vmatmul.msk.bf16.vlgmr.msra.gmra.mxu1 %vm900_vm14, %v1990_v33 }
 0x5c5   : > { %3156 = vmatmul.msk.bf16.vlgmr.msra.gmra.mxu3 %vm900_vm14, %v2059_v21 }
 0x5c6   : > { %2238 = vmatpush.bf16.msrb.mxu0 %v3346_v54 }
 0x5c8   : > { %v1665_v11 = vpop.f32.mrf.mxu3  ;;  %v1732_v0 = vpop.f32.mrf.mxu1 }
 0x5c9   : > { %v3404_v7 = vpack.i.bf16 %v4366_v22, %v1732_v0 }
 0x5cb   : > { %3405 = vrot.lane.b32.xlu0 %v3404_v7, %s3627_s27 }
 0x5d0   : > { %v1801_v18 = vpop.f32.mrf.mxu3  ;;  %v1734_v8 = vpop.f32.mrf.mxu1 }
 0x5d1   : > { %v3424_v14 = vpack.i.bf16 %v1157_v25, %v1801_v18 }
 0x5d8   : > { %v1803_v3 = vpop.f32.mrf.mxu3 }
 0x5e0   : > { %v1939_v35 = vpop.f32.mrf.mxu3 }
 0x5e1   : > { %v3429_v30 = vpack.i.bf16 %v1295_v16, %v1939_v35 }
 0x5e3   : > { %3430 = vrot.lane.b32.xlu0 %v3429_v30, %s3624_s29 }
 0x5e8   : > { %v1941_v22 = vpop.f32.mrf.mxu3 }
 0x5eb   : > { %1478 = vrot.lane.b32.xlu0 %v1362_v27, %s3629_s15 }
 0x5ed   : > { %v1870_v32 = vpop.f32.mrf.mxu1 }
 0x5ee   : > { %v3409_v19 = vpack.i.bf16 %v1226_v10, %v1870_v32 }
 0x5f0   : > { %3410 = vrot.lane.b32.xlu2 %v3409_v19, %s3630_s19 }
 0x5f3   : > { %2094 = vrot.lane.b32.xlu0 %v1734_v8, %s3627_s27 }
 0x5f5   : > { %v1872_v57 = vpop.f32.mrf.mxu1 }
 0x5f8   : > { %1454 = vrot.lane.b32.xlu2 %v1155_v12, %s3628_s13 }
 0x5fb   : > { %2118 = vrot.lane.b32.xlu0 %v1941_v22, %s3624_s29 }
 0x600   : > { %3420 = vrot.lane.b32.xlu2 %v3419_v42, %s3623_s26 }
 0x608   : > { %3425 = vrot.lane.b32.xlu2 %v3424_v14, %s3628_s13 }
 0x63d   : > { %v3406_v12 = vpop.permute.xlu0 %3405 }
 0x63e   : > { %v3407_v27 = vunpack.i.l.bf16 %v3406_v12  ;;  %v3408_v58 = vunpack.i.h.bf16 %v3406_v12  ;;  %v3441_v12 = vld [vmem:[%s4800_s17] ss:$0 sm:$0xff] }
 0x640   : > { %v2008_v23 = vpop.f32.mrf.mxu1 }
 0x641   : > { %v3414_v26 = vpack.i.bf16 %v1364_v60, %v2008_v23 }
 0x643   : > { %3415 = vrot.lane.b32.xlu1 %v3414_v26, %s3629_s15 }
 0x648   : > { %v2077_v62 = vpop.f32.mrf.mxu3  ;;  %v2010_v31 = vpop.f32.mrf.mxu1 }
 0x649   : > { %v3434_v29 = vpack.i.bf16 %v1433_v15, %v2077_v62 }
 0x64a   : > { %v3411_v24 = vpop.permute.xlu2 %3410 }
 0x64b   : > { %3435 = vrot.lane.b32.xlu2 %v3434_v29, %s3625_s2  ;;  %1438 = vrot.lane.b32.xlu1 %v4406_v36, %s3623_s26  ;;  %v1447_v36 = vpop.permute.xlu1 %1446  ;;  %v3412_v9 = vunpack.i.l.bf16 %v3411_v24  ;;  %v3413_v1 = vunpack.i.h.bf16 %v3411_v24 }
 0x650   : > { %v2079_v50 = vpop.f32.mrf.mxu3 }
 0x652   : > { %v1455_v2 = vpop.permute.xlu2 %1454 }
 0x653   : > { %1486 = vrot.lane.b32.xlu2 %v1431_v48, %s3625_s2  ;;  %1470 = vrot.lane.b32.xlu1 %v1293_v52, %s3624_s29 }
 0x655   : > { %v3431_v34 = vpop.permute.xlu0 %3430 }
 0x656   : > { %v3432_v56 = vunpack.i.l.bf16 %v3431_v34  ;;  %v3433_v7 = vunpack.i.h.bf16 %v3431_v34 }
 0x65a   : > { %v3421_v63 = vpop.permute.xlu2 %3420 }
 0x65b   : > { %2102 = vrot.lane.b32.xlu2 %v1803_v3, %s3628_s13  ;;  %2086 = vrot.lane.b32.xlu1 %v1665_v11, %s3623_s26  ;;  %v3422_v45 = vunpack.i.l.bf16 %v3421_v63  ;;  %v3423_v16 = vunpack.i.h.bf16 %v3421_v63 }
 0x65d   : > { %v2138_v10 = vsel %vm879_vm11, %v4408_v4, %v3422_v45  ;;  %v1493_v15 = vsel %vm879_vm11, %v4153_v61, %v3423_v16 }
 0x65e   : > { %v2140_v59 = vsel %vm1494_vm1, %v2138_v10, %v3407_v27  ;;  %v1496_v5 = vsel %vm1494_vm1, %v1493_v15, %v3408_v58  ;;  %v3613_v15 = vld [vmem:[%s4790_s12 + $0x10] sm:$0x3] }
 0x662   : > { %v3426_v25 = vpop.permute.xlu2 %3425 }
 0x663   : > { %2110 = vrot.lane.b32.xlu1 %v1872_v57, %s3630_s19  ;;  %2126 = vrot.lane.b32.xlu2 %v2010_v31, %s3629_s15  ;;  %v3427_v52 = vunpack.i.l.bf16 %v3426_v25  ;;  %v3428_v53 = vunpack.i.h.bf16 %v3426_v25  ;;  %s4802_s15 = scalar_lea.vmem %s4785_s7, %s3704_s23 }
 0x665   : > { %v2142_v48 = vsel %vm1497_vm2, %v2140_v59, %v3427_v52  ;;  %v1499_v46 = vsel %vm1497_vm2, %v1496_v5, %v3428_v53  ;;  %v3611_v52 = vld [vmem:[%s4790_s12] sm:$0xff]  ;;  %v3612_v59 = vld [vmem:[%s4790_s12 + $0x8] sm:$0xff] }
 0x666   : > { %v2144_v4 = vsel %vm1500_vm3, %v2142_v48, %v3412_v9  ;;  %v1502_v0 = vsel %vm1500_vm3, %v1499_v46, %v3413_v1 }
 0x667   : > { %v2146_v44 = vsel %vm1503_vm4, %v2144_v4, %v3432_v56  ;;  %v1505_v35 = vsel %vm1503_vm4, %v1502_v0, %v3433_v7  ;;  %v3247_v0 = vld [vmem:[%s3742_s4 + $0x70] sm:$0xf]  ;;  %v3369_v7 = vld [vmem:[%s3742_s4 + $0x74] sm:$0xf0] }
 0x66b   : > { %2134 = vrot.lane.b32.xlu1 %v2079_v50, %s3625_s2  ;;  %s4801_s2 = scalar_lea.vmem %s4784_s6, %s3704_s23 }
 0x6a5   : > { %v3436_v6 = vpop.permute.xlu2 %3435 }
 0x6a6   : > { %v3437_v33 = vunpack.i.l.bf16 %v3436_v6  ;;  %v3438_v32 = vunpack.i.h.bf16 %v3436_v6 }
 0x6ad   : > { %v1487_v14 = vpop.permute.xlu2 %1486 }
 0x6b5   : > { %v3416_v60 = vpop.permute.xlu1 %3415  ;;  %v2103_v37 = vpop.permute.xlu2 %2102 }
 0x6b6   : > { %v3417_v43 = vunpack.i.l.bf16 %v3416_v60  ;;  %v3418_v11 = vunpack.i.h.bf16 %v3416_v60 }
 0x6b8   : > { %v2148_v20 = vsel %vm1506_vm5, %v2146_v44, %v3417_v43  ;;  %v1508_v30 = vsel %vm1506_vm5, %v1505_v35, %v3418_v11  ;;  %v3249_v35 = vld [vmem:[%s3742_s4 + $0x78] sm:$0xf0] }
 0x6b9   : > { %v2150_v18 = vsel %vm1509_vm6, %v2148_v20, %v3437_v33  ;;  %v1511_v23 = vsel %vm1509_vm6, %v1508_v30, %v3438_v32  ;;  %v3366_v32 = vld [vmem:[%s3742_s4 + $0x64] sm:$0xf] }
 0x6ba   : > { %v2155_v8 = vrot.slane %v2150_v18, 7  ;;  %v3368_v18 = vld [vmem:[%s3742_s4 + $0x74] sm:$0xf] }
 0x6bb   : > { %v3252_v30 = vor.u32 %v3368_v18, %v3249_v35 }
 0x6bc   : > { %v2160_v62 = vsel %vm2154_vm7, %v1511_v23, %v2155_v8  ;;  %v3364_v23 = vld [vmem:[%s3742_s4 + $0x54] sm:$0xf] }
 0x6bd   : > { %v1439_v51 = vpop.permute.xlu1 %1438  ;;  %v2127_v49 = vpop.permute.xlu2 %2126  ;;  %2450 = vmatpush.bf16.msra.mxu2 %v3252_v30 }
 0x6be   : > { %v1492_v61 = vsel %vm879_vm11, %v4145_v28, %v1439_v51  ;;  %v1479_v28 = vpop.permute.xlu0 %1478 }
 0x6bf   : > { %v1495_v21 = vsel %vm1494_vm1, %v1492_v61, %v1447_v36 }
 0x6c0   : > { %v1498_v3 = vsel %vm1497_vm2, %v1495_v21, %v1455_v2 }
 0x6c1   : > { %v1501_v19 = vsel %vm1500_vm3, %v1498_v3, %v1463_v41  ;;  %v3248_v3 = vor.u32 %v3369_v7, %v3247_v0 }
 0x6c3   : > { %2432 = vmatpush.bf16.msrb.mxu1 %v3248_v3 }
 0x6c5   : > { %v1471_v22 = vpop.permute.xlu1 %1470 }
 0x6c6   : > { %v1504_v42 = vsel %vm1503_vm4, %v1501_v19, %v1471_v22  ;;  %v2095_v50 = vpop.permute.xlu0 %2094  ;;  %v3241_v22 = vld [vmem:[%s3742_s4 + $0x68] sm:$0xf0] }
 0x6c7   : > { %v1507_v57 = vsel %vm1506_vm5, %v1504_v42, %v1479_v28  ;;  %v3367_v28 = vld [vmem:[%s3742_s4 + $0x64] sm:$0xf0]  ;;  %v3244_v42 = vor.u32 %v3366_v32, %v3241_v22 }
 0x6c8   : > { %v1510_v26 = vsel %vm1509_vm6, %v1507_v57, %v1487_v14  ;;  %v3231_v14 = vld [vmem:[%s3742_s4 + $0x50] sm:$0xf]  ;;  %v3365_v57 = vld [vmem:[%s3742_s4 + $0x54] sm:$0xf0] }
 0x6c9   : > { %v2161_v29 = vpack.c.bf16 %v2160_v62, %v1510_v26  ;;  %2451 = vmatpush.bf16.msra.mxu2 %v3244_v42  ;;  %v3232_v26 = vor.u32 %v3365_v57, %v3231_v14  ;;  %v3233_v62 = vld [vmem:[%s3742_s4 + $0x58] sm:$0xf0]  ;;  %v3442_v42 = vld [vmem:[%s4801_s2] ss:$0 sm:$0xff] }
 0x6cb   : > { %2239 = vmatmul.bf16.vlgmr.msrb.gmra.mxu0 %v2161_v29  ;;  %v3236_v29 = vor.u32 %v3364_v23, %v3233_v62 }
 0x6cd   : > { %v2087_v31 = vpop.permute.xlu1 %2086  ;;  %2452 = vmatpush.bf16.msra.mxu2 %v3236_v29 }
 0x6ce   : > { %v2139_v55 = vsel %vm879_vm11, %v4413_v40, %v2087_v31  ;;  %v2119_v2 = vpop.permute.xlu0 %2118  ;;  %v3223_v31 = vld [vmem:[%s3742_s4 + $0x40] sm:$0xf] }
 0x6cf   : > { %v2141_v38 = vsel %vm1494_vm1, %v2139_v55, %v2095_v50  ;;  %v3363_v50 = vld [vmem:[%s3742_s4 + $0x44] sm:$0xf0]  ;;  %v3362_v55 = vld [vmem:[%s3742_s4 + $0x44] sm:$0xf] }
 0x6d0   : > { %v2143_v17 = vsel %vm1497_vm2, %v2141_v38, %v2103_v37  ;;  %v3224_v37 = vor.u32 %v3363_v50, %v3223_v31  ;;  %v3225_v38 = vld [vmem:[%s3742_s4 + $0x48] sm:$0xf0] }
 0x6d5   : > { %v2111_v24 = vpop.permute.xlu1 %2110 }
 0x6d6   : > { %v2145_v39 = vsel %vm1500_vm3, %v2143_v17, %v2111_v24  ;;  %v3228_v24 = vor.u32 %v3362_v55, %v3225_v38  ;;  %v3215_v17 = vld [vmem:[%s3742_s4 + $0x30] sm:$0xf] }
 0x6d7   : > { %v2147_v47 = vsel %vm1503_vm4, %v2145_v39, %v2119_v2  ;;  %v3361_v39 = vld [vmem:[%s3742_s4 + $0x34] sm:$0xf0]  ;;  %v3360_v2 = vld [vmem:[%s3742_s4 + $0x34] sm:$0xf] }
 0x6d8   : > { %v2149_v63 = vsel %vm1506_vm5, %v2147_v47, %v2127_v49  ;;  %2453 = vmatpush.bf16.msra.mxu2 %v3228_v24  ;;  %v3216_v47 = vor.u32 %v3361_v39, %v3215_v17  ;;  %v3217_v49 = vld [vmem:[%s3742_s4 + $0x38] sm:$0xf0] }
 0x6dd   : > { %v2135_v54 = vpop.permute.xlu1 %2134 }
 0x6de   : > { %v2151_v41 = vsel %vm1509_vm6, %v2149_v63, %v2135_v54  ;;  %v3220_v63 = vor.u32 %v3360_v2, %v3217_v49  ;;  %v3207_v54 = vld [vmem:[%s3742_s4 + $0x20] sm:$0xf] }
 0x6df   : > { %v2156_v36 = vrot.slane %v2151_v41, 7  ;;  %v3359_v41 = vld [vmem:[%s3742_s4 + $0x24] sm:$0xf0] }
 0x6e0   : > { %2454 = vmatpush.bf16.msra.mxu2 %v3220_v63 }
 0x6e1   : > { %v2157_v40 = vsel %vm2154_vm7, %v2155_v8, %v2156_v36  ;;  %v3239_v8 = vld [vmem:[%s3742_s4 + $0x60] sm:$0xf]  ;;  %v3358_v36 = vld [vmem:[%s3742_s4 + $0x24] sm:$0xf] }
 0x6e2   : > { %v2162_v45 = vpack.c.bf16 %v2157_v40, %v2157_v40  ;;  %v3240_v19 = vor.u32 %v3367_v28, %v3239_v8  ;;  %v3208_v40 = vor.u32 %v3359_v41, %v3207_v54  ;;  %v2346_v41 = vld [vmem:[%s3748_s30] sm:$0x3] }
 0x6e4   : > { %2244 = vmatmul.bf16.gmra.mxu0 %v2162_v45  ;;  %2433 = vmatpush.bf16.msrb.mxu1 %v3240_v19  ;;  %v3209_v45 = vld [vmem:[%s3742_s4 + $0x28] sm:$0xf0] }
 0x6e8   : > { %2434 = vmatpush.bf16.msrb.mxu1 %v3232_v26 }
 0x6ec   : > { %2435 = vmatpush.bf16.msrb.mxu1 %v3224_v37 }
 0x6f0   : > { %2436 = vmatpush.bf16.msrb.mxu1 %v3216_v47 }
 0x6f4   : > { %2437 = vmatpush.bf16.msrb.mxu1 %v3208_v40 }
 0x748   : > { %v2240_v25 = vpop.f32.mrf.mxu0 }
 0x749   : > { %v2241_v10 = vadd.f32 %v3441_v12, %v2240_v25  ;;  %v3199_v25 = vld [vmem:[%s3742_s4 + $0x10] sm:$0xf] }
 0x74b   : > { %v4490_v27 = vadd.f32 %v3611_v52, %v2241_v10  ;;  %v3357_v10 = vld [vmem:[%s3742_s4 + $0x14] sm:$0xf0]  ;;  %v3356_v52 = vld [vmem:[%s3742_s4 + $0x14] sm:$0xf] }
 0x74d   : > { %2254 = vadd.xlane.f32.xlu0 %v4490_v27 }
 0x750   : > { %v2242_v16 = vpop.f32.mrf.mxu0 }
 0x751   : > { %v2243_v60 = vadd.f32 %v3441_v12, %v2242_v16  ;;  %v3200_v16 = vor.u32 %v3357_v10, %v3199_v25  ;;  %v4579_v25 = vperm.slane %v2346_v41, 1 }
 0x753   : > { %v4496_v48 = vadd.f32 %v3612_v59, %v2243_v60  ;;  %v3201_v60 = vld [vmem:[%s3742_s4 + $0x18] sm:$0xf0]  ;;  %2438 = vmatpush.bf16.msrb.mxu1 %v3200_v16 }
 0x755   : > { %2256 = vadd.xlane.f32.xlu2 %v4496_v48 }
 0x761   : > { %v2245_v9 = vpop.f32.mrf.mxu0 }
 0x762   : > { %v2246_v34 = vadd.f32 %v3441_v12, %v2245_v9  ;;  %v3212_v12 = vor.u32 %v3358_v36, %v3209_v45  ;;  %v3204_v9 = vor.u32 %v3356_v52, %v3201_v60  ;;  %v2348_v36 = vperm.slane %v2346_v41, 0 }
 0x764   : > { %v4502_v53 = vadd.f32 %v3613_v15, %v2246_v34  ;;  %2455 = vmatpush.bf16.msra.mxu2 %v3212_v12  ;;  %v3191_v15 = vld [vmem:[%s3742_s4] sm:$0xf] }
 0x766   : > { %v2258_v58 = vsel %vm580_vm0, %v4502_v53, 0.0 }
 0x767   : > { %2259 = vadd.xlane.f32.xlu1 %v2258_v58  ;;  %v3355_v58 = vld [vmem:[%s3742_s4 + $0x4] sm:$0xf0] }
 0x768   : > { %2456 = vmatpush.bf16.msra.mxu2 %v3204_v9 }
 0x769   : > { %v2247_v43 = vpop.f32.mrf.mxu0 }
 0x76a   : > { %v3354_v43 = vld [vmem:[%s3742_s4 + $0x4] sm:$0xf] }
 0x7c0   : > { %v2255_v4 = vpop.xlane.xlu0 %2254 }
 0x7c1   : > { %v2261_v56 = vmul.f32 %v2255_v4, %v3787_v13 }
 0x7c3   : > { %v4508_v5 = vsub.f32 %v4490_v27, %v2261_v56  ;;  %v3192_v56 = vor.u32 %v3355_v58, %v3191_v15 }
 0x7c5   : > { %v2267_v6 = vmul.f32 %v4508_v5, %v4508_v5  ;;  %2439 = vmatpush.bf16.msrb.mxu1 %v3192_v56 }
 0x7c7   : > { %2270 = vadd.xlane.f32.xlu0 %v2267_v6  ;;  %v3193_v6 = vld [vmem:[%s3742_s4 + $0x8] sm:$0xf0] }
 0x7c8   : > { %v2257_v46 = vpop.xlane.xlu2 %2256 }
 0x7c9   : > { %v2262_v51 = vmul.f32 %v2257_v46, %v3787_v13  ;;  %v3196_v46 = vor.u32 %v3354_v43, %v3193_v6  ;;  %v3377_v43 = vld [vmem:[%s3753_s21 + $0x38] sm:$0xff] }
 0x7ca   : > { %2844 = vmatpush.bf16.msrb.mxu3 %v3377_v43 }
 0x7cb   : > { %v4514_v44 = vsub.f32 %v4496_v48, %v2262_v51  ;;  %2457 = vmatpush.bf16.msra.mxu2 %v3196_v46 }
 0x7cd   : > { %v2268_v1 = vmul.f32 %v4514_v44, %v4514_v44 }
 0x7cf   : > { %2272 = vadd.xlane.f32.xlu2 %v2268_v1 }
 0x7da   : > { %v2260_v61 = vpop.xlane.xlu1 %2259 }
 0x7db   : > { %v2263_v20 = vmul.f32 %v2260_v61, %v3787_v13 }
 0x7dd   : > { %v4520_v33 = vsub.f32 %v4502_v53, %v2263_v20 }
 0x7df   : > { %v2269_v21 = vmul.f32 %v4520_v33, %v4520_v33 }
 0x7e1   : > { %v2274_v11 = vsel %vm580_vm0, %v2269_v21, 0.0 }
 0x7e2   : > { %2275 = vadd.xlane.f32.xlu1 %v2274_v11 }
 0x83a   : > { %v2271_v59 = vpop.xlane.xlu0 %2270 }
 0x83b   : > { %v2277_v34 = vmul.f32 %v2271_v59, %v3787_v13 }
 0x83d   : > { %v2280_v4 = vadd.f32 1e-05, %v2277_v34 }
 0x83f   : > { %3581 = vrsqrt.f32 %v2280_v4  ;;  %vm2289_vm8 = vweird.f32 %v2280_v4 }
 0x842   : > { %v2273_v51 = vpop.xlane.xlu2 %2272 }
 0x843   : > { %v2278_v1 = vmul.f32 %v2273_v51, %v3787_v13 }
 0x845   : > { %v3582_v61 = vpop.eup %3581  ;;  %v2281_v20 = vadd.f32 1e-05, %v2278_v1 }
 0x846   : > { %v2284_v21 = vmul.f32 %v3582_v61, %v2280_v4  ;;  %vm2290_vm0 = vweird.f32 %v3582_v61 }
 0x847   : > { %3583 = vrsqrt.f32 %v2281_v20  ;;  %vm2291_vm9 = vmor %vm2289_vm8, %vm2290_vm0  ;;  %vm2299_vm11 = vweird.f32 %v2281_v20 }
 0x848   : > { %v2285_v11 = vmul.f32 %v3582_v61, %v2284_v21 }
 0x84a   : > { %v2286_v0 = vmul.f32 0.5, %v2285_v11 }
 0x84c   : > { %v2287_v7 = vsub.f32 1.5, %v2286_v0 }
 0x84d   : > { %v3584_v18 = vpop.eup %3583 }
 0x84e   : > { %v2288_v3 = vmul.f32 %v3582_v61, %v2287_v7  ;;  %v2294_v35 = vmul.f32 %v3584_v18, %v2281_v20  ;;  %vm2300_vm10 = vweird.f32 %v3584_v18  ;;  %v3376_v7 = vld [vmem:[%s3753_s21 + $0x30] sm:$0xff] }
 0x84f   : > { %vm2301_vm12 = vmor %vm2299_vm11, %vm2300_vm10  ;;  %2845 = vmatpush.bf16.msrb.mxu3 %v3376_v7 }
 0x850   : > { %v2295_v30 = vmul.f32 %v3584_v18, %v2294_v35  ;;  %v2292_v8 = vsel %vm2291_vm9, %v3582_v61, %v2288_v3 }
 0x851   : > { %v2313_v19 = vmul.f32 %v2292_v8, %v4508_v5  ;;  %v3443_v5 = vld [vmem:[%s4802_s15] ss:$0 sm:$0xff]  ;;  %v3385_v8 = vld [vmem:[%s3753_s21 + $0x78] sm:$0xff] }
 0x852   : > { %v2296_v28 = vmul.f32 0.5, %v2295_v30  ;;  %2862 = vmatpush.bf16.msra.mxu0 %v3385_v8  ;;  %v3372_v8 = vld [vmem:[%s3753_s21 + $0x10] sm:$0xff] }
 0x853   : > { %v2319_v29 = vmul.f32 %v3442_v42, %v2313_v19  ;;  %v3375_v19 = vld [vmem:[%s3753_s21 + $0x28] sm:$0xff] }
 0x854   : > { %v2297_v32 = vsub.f32 1.5, %v2296_v28  ;;  %2846 = vmatpush.bf16.msrb.mxu3 %v3375_v19 }
 0x855   : > { %v2276_v22 = vpop.xlane.xlu1 %2275  ;;  %v2325_v50 = vadd.f32 %v3443_v5, %v2319_v29 }
 0x856   : > { %v2298_v14 = vmul.f32 %v3584_v18, %v2297_v32  ;;  %v2279_v57 = vmul.f32 %v2276_v22, %v3787_v13 }
 0x858   : > { %v2302_v23 = vsel %vm2301_vm12, %v3584_v18, %v2298_v14  ;;  %v2282_v26 = vadd.f32 1e-05, %v2279_v57 }
 0x859   : > { %v2314_v62 = vmul.f32 %v2302_v23, %v4514_v44  ;;  %v3384_v23 = vld [vmem:[%s3753_s21 + $0x70] sm:$0xff] }
 0x85a   : > { %3585 = vrsqrt.f32 %v2282_v26  ;;  %vm2309_vm14 = vweird.f32 %v2282_v26  ;;  %2863 = vmatpush.bf16.msra.mxu0 %v3384_v23 }
 0x85b   : > { %v2320_v31 = vmul.f32 %v3442_v42, %v2314_v62 }
 0x85d   : > { %v2326_v55 = vadd.f32 %v3443_v5, %v2320_v31 }
 0x85f   : > { %v2328_v37 = vpack.c.bf16 %v2326_v55, %v2325_v50 }
 0x860   : > { %v3586_v38 = vpop.eup %3585 }
 0x861   : > { %v2304_v24 = vmul.f32 %v3586_v38, %v2282_v26  ;;  %2440 = vmatmul.bf16.vlgmr.msrb.gmra.mxu1 %v2328_v37  ;;  %2458 = vmatmul.bf16.vlgmr.msra.gmra.mxu2 %v2328_v37  ;;  %vm2310_vm13 = vweird.f32 %v3586_v38 }
 0x862   : > { %vm2311_vm15 = vmor %vm2309_vm14, %vm2310_vm13 }
 0x863   : > { %v2305_v13 = vmul.f32 %v3586_v38, %v2304_v24 }
 0x865   : > { %v2306_v17 = vmul.f32 0.5, %v2305_v13 }
 0x867   : > { %v2307_v39 = vsub.f32 1.5, %v2306_v17 }
 0x869   : > { %v2308_v44 = vmul.f32 %v3586_v38, %v2307_v39 }
 0x86b   : > { %v2312_v2 = vsel %vm2311_vm15, %v3586_v38, %v2308_v44  ;;  %v3374_v38 = vld [vmem:[%s3753_s21 + $0x20] sm:$0xff] }
 0x86c   : > { %v2315_v47 = vmul.f32 %v2312_v2, %v4520_v33  ;;  %v3383_v2 = vld [vmem:[%s3753_s21 + $0x68] sm:$0xff]  ;;  %2847 = vmatpush.bf16.msrb.mxu3 %v3374_v38 }
 0x86d   : > { %2864 = vmatpush.bf16.msra.mxu0 %v3383_v2 }
 0x86e   : > { %v2321_v49 = vmul.f32 %v3442_v42, %v2315_v47 }
 0x870   : > { %v2327_v63 = vadd.f32 %v3443_v5, %v2321_v49 }
 0x872   : > { %v2329_v54 = vpack.c.bf16 %v2327_v63, %v2327_v63 }
 0x874   : > { %2445 = vmatmul.bf16.gmra.mxu1 %v2329_v54  ;;  %2463 = vmatmul.bf16.gmra.mxu2 %v2329_v54 }
 0x8de   : > { %v2441_v40 = vpop.f32.mrf.mxu1 }
 0x8df   : > { %v4574_v45 = vadd.f32 %v2441_v40, %v2348_v36  ;;  %v3380_v40 = vld [vmem:[%s3753_s21 + $0x50] sm:$0xff] }
 0x8e1   : > { %v4577_v12 = vmul.f32 0.70710677, %v4574_v45 }
 0x8e3   : > { %v2474_v10 = vand.u32 2147483647, %v4577_v12 }
 0x8e4   : > { %v2459_v52 = vpop.f32.mrf.mxu2 }
 0x8e5   : > { %v2480_v33 = vmul.f32 0.3275911, %v2474_v10  ;;  %v4583_v16 = vadd.f32 %v2459_v52, %v4579_v25  ;;  %v2636_v4 = vsub.f32 0.0, %v2474_v10  ;;  %v3373_v52 = vld [vmem:[%s3753_s21 + $0x18] sm:$0xff] }
 0x8e6   : > { %v2443_v60 = vpop.f32.mrf.mxu1  ;;  %2848 = vmatpush.bf16.msrb.mxu3 %v3373_v52 }
 0x8e7   : > { %v2486_v59 = vadd.f32 1.0, %v2480_v33  ;;  %v4586_v9 = vmul.f32 0.70710677, %v4583_v16  ;;  %v4588_v34 = vadd.f32 %v2443_v60, %v2348_v36  ;;  %v2642_v0 = vmul.f32 %v2636_v4, %v2474_v10 }
 0x8e9   : > { %3587 = vrcp.f32 %v2486_v59  ;;  %v2475_v15 = vand.u32 2147483647, %v4586_v9  ;;  %v4592_v58 = vmul.f32 0.70710677, %v4588_v34  ;;  %v2501_v28 = vand.u32 2147483647, %v2486_v59 }
 0x8ea   : > { %v2503_v32 = vand.u32 2147483648, %v2486_v59  ;;  %v2648_v42 = vmul.f32 1.442695, %v2642_v0  ;;  %vm2497_vm2 = vweird.f32 %v2486_v59  ;;  %2849 = vmatpush.bf16.msrb.mxu3 %v3372_v8 }
 0x8eb   : > { %v2481_v56 = vmul.f32 0.3275911, %v2475_v15  ;;  %v4596_v46 = vand.u32 2147483647, %v4592_v58  ;;  %v2637_v29 = vsub.f32 0.0, %v2475_v15  ;;  %vm2502_vm4 = vcmp.eq.f32.partialorder %v2501_v28, 8.507059e+37 }
 0x8ec   : > { %v2461_v6 = vpop.f32.mrf.mxu2  ;;  %v2504_v5 = vor.u32 1.1754944e-38, %v2503_v32 }
 0x8ed   : > { %v4599_v51 = vadd.f32 %v2461_v6, %v4579_v25  ;;  %v4601_v1 = vadd.f32 1.0, %v2481_v56  ;;  %v2482_v20 = vmul.f32 0.3275911, %v4596_v46  ;;  %v2643_v54 = vmul.f32 %v2637_v29, %v2475_v15  ;;  %v3382_v6 = vld [vmem:[%s3753_s21 + $0x60] sm:$0xff] }
 0x8ee   : > { %v2638_v41 = vsub.f32 0.0, %v4596_v46  ;;  %2865 = vmatpush.bf16.msra.mxu0 %v3382_v6 }
 0x8ef   : > { %v3588_v61 = vpop.eup %3587  ;;  %v4605_v21 = vmul.f32 0.70710677, %v4599_v51  ;;  %3589 = vrcp.f32 %v4601_v1  ;;  %v4609_v18 = vadd.f32 1.0, %v2482_v20  ;;  %v2516_v50 = vand.u32 2147483647, %v4601_v1 }
 0x8f0   : > { %v2493_v11 = vmul.f32 %v3588_v61, %v2486_v59  ;;  %vm2498_vm1 = vweird.f32 %v3588_v61  ;;  %v2518_v63 = vand.u32 2147483648, %v4601_v1  ;;  %vm2512_vm7 = vweird.f32 %v4601_v1 }
 0x8f1   : > { %v2446_v3 = vpop.f32.mrf.mxu1  ;;  %v4612_v30 = vand.u32 2147483647, %v4605_v21  ;;  %3591 = vrcp.f32 %v4609_v18  ;;  %vm2499_vm3 = vmor %vm2497_vm2, %vm2498_vm1  ;;  %vm4636_vm6 = vcmp.eq.f32.partialorder %v2516_v50, 8.507059e+37  ;;  %v2531_v60 = vand.u32 2147483647, %v4609_v18 }
 0x8f2   : > { %v2494_v35 = vsub.f32 1.0, %v2493_v11  ;;  %v4618_v57 = vadd.f32 %v2446_v3, %v2348_v36  ;;  %3593 = vpow2.f32 %v2648_v42  ;;  %v2533_v4 = vand.u32 2147483648, %v4609_v18 }
 0x8f3   : > { %v2483_v14 = vmul.f32 0.3275911, %v4612_v30  ;;  %vm2527_vm8 = vweird.f32 %v4609_v18  ;;  %vm4666_vm10 = vcmp.eq.f32.partialorder %v2531_v60, 8.507059e+37 }
 0x8f4   : > { %v2495_v22 = vmul.f32 %v3588_v61, %v2494_v35  ;;  %v4627_v13 = vmul.f32 0.70710677, %v4618_v57  ;;  %v2534_v23 = vor.u32 1.1754944e-38, %v2533_v4  ;;  %v3370_v4 = vld [vmem:[%s3753_s21] sm:$0xff] }
 0x8f5   : > { %v3590_v26 = vpop.eup %3589  ;;  %v4623_v55 = vadd.f32 1.0, %v2483_v14 }
 0x8f6   : > { %v2496_v62 = vadd.f32 %v3588_v61, %v2495_v22  ;;  %v2508_v31 = vmul.f32 %v3590_v26, %v4601_v1  ;;  %vm2513_vm5 = vweird.f32 %v3590_v26  ;;  %v4645_v59 = vand.u32 2147483647, %v4627_v13 }
 0x8f7   : > { %v2464_v37 = vpop.f32.mrf.mxu2  ;;  %3595 = vrcp.f32 %v4623_v55  ;;  %v3592_v47 = vpop.eup %3591  ;;  %vm2514_vm0 = vmor %vm2512_vm7, %vm2513_vm5  ;;  %v2519_v1 = vor.u32 1.1754944e-38, %v2518_v63  ;;  %v2650_v63 = vmul.f32 1.442695, %v2643_v54  ;;  %vm2542_vm13 = vweird.f32 %v4623_v55 }
 0x8f8   : > { %v2500_v24 = vsel %vm2499_vm3, %v3588_v61, %v2496_v62  ;;  %v2509_v39 = vsub.f32 1.0, %v2508_v31  ;;  %v2523_v10 = vmul.f32 %v3592_v47, %v4609_v18  ;;  %v4649_v56 = vadd.f32 %v2464_v37, %v4579_v25  ;;  %v4652_v61 = vpop.eup %3593  ;;  %v3381_v62 = vld [vmem:[%s3753_s21 + $0x58] sm:$0xff] }
 0x8f9   : > { %v4629_v17 = vsel %vm2502_vm4, %v2504_v5, %v2500_v24  ;;  %v2448_v44 = vpop.f32.mrf.mxu1  ;;  %v2484_v11 = vmul.f32 0.3275911, %v4645_v59  ;;  %vm2528_vm9 = vweird.f32 %v3592_v47  ;;  %v2546_v31 = vand.u32 2147483647, %v4623_v55  ;;  %2866 = vmatpush.bf16.msra.mxu0 %v3381_v62  ;;  %v3378_v62 = vld [vmem:[%s3753_s21 + $0x40] sm:$0xff] }
 0x8fa   : > { %v2582_v49 = vmul.f32 1.0614054, %v4629_v17  ;;  %v2510_v36 = vmul.f32 %v3590_v26, %v2509_v39  ;;  %v2524_v43 = vsub.f32 1.0, %v2523_v10  ;;  %v4659_v25 = vmul.f32 0.70710677, %v4649_v56  ;;  %vm2529_vm11 = vmor %vm2527_vm8, %vm2528_vm9  ;;  %v3371_v39 = vld [vmem:[%s3753_s21 + $0x8] sm:$0xff] }
 0x8fb   : > { %v2548_v24 = vand.u32 2147483648, %v4623_v55  ;;  %2850 = vmatpush.bf16.msrb.mxu3 %v3371_v39  ;;  %v2644_v54 = vmul.f32 %v2638_v41, %v4596_v46  ;;  %vm2547_vm15 = vcmp.eq.f32.partialorder %v2546_v31, 8.507059e+37  ;;  %v2640_v39 = vsub.f32 0.0, %v4645_v59 }
 0x8fc   : > { %v2588_v33 = vadd.f32 -1.4531521, %v2582_v49  ;;  %v2511_v15 = vadd.f32 %v3590_v26, %v2510_v36  ;;  %v2525_v3 = vmul.f32 %v3592_v47, %v2524_v43  ;;  %v4681_v50 = vand.u32 2147483647, %v4659_v25 }
 0x8fd   : > { %v3596_v0 = vpop.eup %3595  ;;  %v2549_v43 = vor.u32 1.1754944e-38, %v2548_v24  ;;  %2867 = vmatpush.bf16.msra.mxu0 %v3380_v40  ;;  %vm2673_vm7 = vcmp.ge.f32.partialorder %v4586_v9, 0.0 }
 0x8fe   : > { %v2594_v20 = vmul.f32 %v2588_v33, %v4629_v17  ;;  %v2515_v7 = vsel %vm2514_vm0, %v3590_v26, %v2511_v15  ;;  %v2538_v22 = vmul.f32 %v3596_v0, %v4623_v55  ;;  %v2526_v14 = vadd.f32 %v3592_v47, %v2525_v3  ;;  %v3379_v55 = vld [vmem:[%s3753_s21 + $0x48] sm:$0xff] }
 0x8ff   : > { %v2466_v35 = vpop.f32.mrf.mxu2  ;;  %v4664_v32 = vsel %vm4636_vm6, %v2519_v1, %v2515_v7  ;;  %v4672_v26 = vadd.f32 1.0, %v2484_v11  ;;  %vm2543_vm12 = vweird.f32 %v3596_v0  ;;  %v2485_v33 = vmul.f32 0.3275911, %v4681_v50  ;;  %2851 = vmatpush.bf16.msrb.mxu3 %v3370_v4 }
 0x900   : > { %v2600_v28 = vadd.f32 1.4214138, %v2594_v20  ;;  %v2583_v42 = vmul.f32 1.0614054, %v4664_v32  ;;  %v2539_v5 = vsub.f32 1.0, %v2538_v22  ;;  %v2530_v38 = vsel %vm2529_vm11, %v3592_v47, %v2526_v14  ;;  %vm2544_vm14 = vmor %vm2542_vm13, %vm2543_vm12 }
 0x901   : > { %3597 = vrcp.f32 %v4672_v26  ;;  %v4688_v18 = vsel %vm4666_vm10, %v2534_v23, %v2530_v38  ;;  %v2639_v47 = vsub.f32 0.0, %v4612_v30  ;;  %v4702_v1 = vadd.f32 1.0, %v2485_v33  ;;  %2868 = vmatpush.bf16.msra.mxu0 %v3379_v55 }
 0x902   : > { %v2606_v29 = vmul.f32 %v2600_v28, %v4629_v17  ;;  %v2589_v37 = vadd.f32 -1.4531521, %v2583_v42  ;;  %v2540_v2 = vmul.f32 %v3596_v0, %v2539_v5  ;;  %v2584_v36 = vmul.f32 1.0614054, %v4688_v18 }
 0x903   : > { %v2645_v46 = vmul.f32 %v2639_v47, %v4612_v30  ;;  %v2652_v22 = vmul.f32 1.442695, %v2644_v54  ;;  %3599 = vrcp.f32 %v4702_v1  ;;  %v2563_v5 = vand.u32 2147483648, %v4672_v26 }
 0x904   : > { %v2612_v44 = vadd.f32 -0.28449672, %v2606_v29  ;;  %v2595_v49 = vmul.f32 %v2589_v37, %v4664_v32  ;;  %v2541_v52 = vadd.f32 %v3596_v0, %v2540_v2  ;;  %v2590_v15 = vadd.f32 -1.4531521, %v2584_v36 }
 0x905   : > { %3601 = vpow2.f32 %v2650_v63  ;;  %v2654_v29 = vmul.f32 1.442695, %v2645_v46  ;;  %v2561_v38 = vand.u32 2147483647, %v4672_v26  ;;  %vm2557_vm2 = vweird.f32 %v4672_v26  ;;  %2869 = vmatpush.bf16.msra.mxu0 %v3378_v62 }
 0x906   : > { %v2618_v10 = vmul.f32 %v2612_v44, %v4629_v17  ;;  %v2601_v60 = vadd.f32 1.4214138, %v2595_v49  ;;  %v2545_v20 = vsel %vm2544_vm14, %v3596_v0, %v2541_v52  ;;  %v2596_v3 = vmul.f32 %v2590_v15, %v4688_v18 }
 0x907   : > { %v3598_v11 = vpop.eup %3597  ;;  %v4707_v35 = vsel %vm2547_vm15, %v2549_v43, %v2545_v20  ;;  %3603 = vpow2.f32 %v2652_v22  ;;  %v2564_v40 = vor.u32 1.1754944e-38, %v2563_v5  ;;  %vm2562_vm4 = vcmp.eq.f32.partialorder %v2561_v38, 8.507059e+37 }
 0x908   : > { %v2624_v6 = vadd.f32 0.2548296, %v2618_v10  ;;  %v2607_v7 = vmul.f32 %v2601_v60, %v4664_v32  ;;  %v2585_v8 = vmul.f32 1.0614054, %v4707_v35  ;;  %v2553_v0 = vmul.f32 %v3598_v11, %v4672_v26 }
 0x909   : > { %v2602_v19 = vadd.f32 1.4214138, %v2596_v3  ;;  %vm2558_vm1 = vweird.f32 %v3598_v11  ;;  %v3600_v63 = vpop.eup %3599  ;;  %3605 = vpow2.f32 %v2654_v29  ;;  %v2646_v26 = vmul.f32 %v2640_v39, %v4645_v59 }
 0x90a   : > { %v2630_v41 = vmul.f32 %v2624_v6, %v4629_v17  ;;  %v2613_v28 = vadd.f32 -0.28449672, %v2607_v7  ;;  %v2591_v14 = vadd.f32 -1.4531521, %v2585_v8  ;;  %v2554_v23 = vsub.f32 1.0, %v2553_v0  ;;  %vm2559_vm3 = vmor %vm2557_vm2, %vm2558_vm1 }
 0x90b   : > { %v2608_v17 = vmul.f32 %v2602_v19, %v4688_v18  ;;  %v3602_v10 = vpop.eup %3601  ;;  %v2568_v33 = vmul.f32 %v3600_v63, %v4702_v1  ;;  %v2578_v46 = vand.u32 2147483648, %v4702_v1  ;;  %vm2573_vm5 = vweird.f32 %v3600_v63 }
 0x90c   : > { %v2660_v42 = vmul.f32 %v4652_v61, %v2630_v41  ;;  %v2619_v30 = vmul.f32 %v2613_v28, %v4664_v32  ;;  %v2597_v31 = vmul.f32 %v2591_v14, %v4707_v35  ;;  %v2555_v37 = vmul.f32 %v3598_v11, %v2554_v23 }
 0x90d   : > { %v2614_v61 = vadd.f32 -0.28449672, %v2608_v17  ;;  %v2569_v6 = vsub.f32 1.0, %v2568_v33  ;;  %v3604_v55 = vpop.eup %3603  ;;  %vm2672_vm6 = vcmp.ge.f32.partialorder %v4577_v12, 0.0  ;;  %vm2572_vm0 = vweird.f32 %v4702_v1 }
 0x90e   : > { %v2625_v24 = vadd.f32 0.2548296, %v2619_v30  ;;  %v2666_v44 = vsub.f32 1.0, %v2660_v42  ;;  %v2603_v2 = vadd.f32 1.4214138, %v2597_v31  ;;  %v2556_v49 = vadd.f32 %v3598_v11, %v2555_v37  ;;  %vm2574_vm8 = vmor %vm2572_vm0, %vm2573_vm5 }
 0x90f   : > { %v2620_v47 = vmul.f32 %v2614_v61, %v4688_v18  ;;  %v2570_v8 = vmul.f32 %v3600_v63, %v2569_v6  ;;  %v3606_v59 = vpop.eup %3605  ;;  %v2656_v62 = vmul.f32 1.442695, %v2646_v26  ;;  %v2579_v30 = vor.u32 1.1754944e-38, %v2578_v46 }
 0x910   : > { %v2631_v36 = vmul.f32 %v2625_v24, %v4664_v32  ;;  %v2609_v52 = vmul.f32 %v2603_v2, %v4707_v35  ;;  %v2560_v60 = vsel %vm2559_vm3, %v3598_v11, %v2556_v49  ;;  %v2678_v32 = vsub.f32 0.0, %v2666_v44 }
 0x911   : > { %v2626_v54 = vadd.f32 0.2548296, %v2620_v47  ;;  %v4729_v43 = vsel %vm2562_vm4, %v2564_v40, %v2560_v60  ;;  %v2576_v11 = vand.u32 2147483647, %v4702_v1  ;;  %v2571_v42 = vadd.f32 %v3600_v63, %v2570_v8 }
 0x912   : > { %v2661_v15 = vmul.f32 %v3602_v10, %v2631_v36  ;;  %v2615_v4 = vadd.f32 -0.28449672, %v2609_v52  ;;  %v2586_v20 = vmul.f32 1.0614054, %v4729_v43  ;;  %v2684_v19 = vsel %vm2672_vm6, %v2666_v44, %v2678_v32 }
 0x913   : > { %v2632_v3 = vmul.f32 %v2626_v54, %v4688_v18  ;;  %v2575_v5 = vsel %vm2574_vm8, %v3600_v63, %v2571_v42  ;;  %vm2577_vm9 = vcmp.eq.f32.partialorder %v2576_v11, 8.507059e+37  ;;  %v2696_v12 = vadd.f32 1.0, %v2684_v19 }
 0x914   : > { %v2667_v7 = vsub.f32 1.0, %v2661_v15  ;;  %v2621_v41 = vmul.f32 %v2615_v4, %v4707_v35  ;;  %v2592_v0 = vadd.f32 -1.4531521, %v2586_v20  ;;  %v2641_v37 = vsub.f32 0.0, %v4681_v50 }
 0x915   : > { %v2662_v28 = vmul.f32 %v3604_v55, %v2632_v3  ;;  %v2580_v1 = vsel %vm2577_vm9, %v2579_v30, %v2575_v5  ;;  %vm2674_vm10 = vcmp.ge.f32.partialorder %v4592_v58, 0.0  ;;  %v2690_v39 = vmul.f32 0.5, %v4574_v45 }
 0x916   : > { %v2627_v22 = vadd.f32 0.2548296, %v2621_v41  ;;  %v2598_v18 = vmul.f32 %v2592_v0, %v4729_v43  ;;  %v2679_v14 = vsub.f32 0.0, %v2667_v7  ;;  %v2587_v61 = vmul.f32 1.0614054, %v2580_v1 }
 0x917   : > { %v2668_v23 = vsub.f32 1.0, %v2662_v28  ;;  %v2692_v2 = vmul.f32 0.5, %v4588_v34  ;;  %v2702_v40 = vmul.f32 %v2696_v12, %v2690_v39  ;;  %3607 = vpow2.f32 %v2656_v62 }
 0x918   : > { %v2633_v17 = vmul.f32 %v2627_v22, %v4707_v35  ;;  %v2604_v29 = vadd.f32 1.4214138, %v2598_v18  ;;  %v2685_v44 = vsel %vm2673_vm7, %v2667_v7, %v2679_v14  ;;  %v2593_v47 = vadd.f32 -1.4531521, %v2587_v61 }
 0x919   : > { %v2680_v31 = vsub.f32 0.0, %v2668_v23  ;;  %v2647_v58 = vmul.f32 %v2641_v37, %v4681_v50  ;;  %v2697_v45 = vadd.f32 1.0, %v2685_v44  ;;  %vm2675_vm11 = vcmp.ge.f32.partialorder %v4605_v21, 0.0 }
 0x91a   : > { %v2663_v38 = vmul.f32 %v3606_v59, %v2633_v17  ;;  %v2610_v24 = vmul.f32 %v2604_v29, %v4729_v43  ;;  %v2599_v60 = vmul.f32 %v2593_v47, %v2580_v1  ;;  %v2691_v26 = vmul.f32 0.5, %v4583_v16 }
 0x91b   : > { %v2686_v35 = vsel %vm2674_vm10, %v2668_v23, %v2680_v31  ;;  %v2693_v32 = vmul.f32 0.5, %v4599_v51  ;;  %v2658_v6 = vmul.f32 1.442695, %v2647_v58  ;;  %vm2676_vm12 = vcmp.ge.f32.partialorder %v4627_v13, 0.0 }
 0x91c   : > { %v2698_v49 = vadd.f32 1.0, %v2686_v35  ;;  %v2669_v63 = vsub.f32 1.0, %v2663_v38  ;;  %v2616_v36 = vadd.f32 -0.28449672, %v2610_v24  ;;  %v2605_v34 = vadd.f32 1.4214138, %v2599_v60 }
 0x91d   : > { %v3608_v55 = vpop.eup %3607  ;;  %v2703_v7 = vmul.f32 %v2697_v45, %v2691_v26  ;;  %3609 = vpow2.f32 %v2658_v6  ;;  %vm2677_vm13 = vcmp.ge.f32.partialorder %v4659_v25, 0.0  ;;  %v2695_v30 = vmul.f32 0.5, %v4649_v56 }
 0x91e   : > { %v2704_v10 = vmul.f32 %v2698_v49, %v2692_v2  ;;  %v2681_v52 = vsub.f32 0.0, %v2669_v63  ;;  %v2622_v33 = vmul.f32 %v2616_v36, %v4729_v43  ;;  %v2611_v20 = vmul.f32 %v2605_v34, %v2580_v1 }
 0x920   : > { %v2708_v9 = vpack.c.bf16 %v2704_v10, %v2702_v40  ;;  %v2687_v15 = vsel %vm2675_vm11, %v2669_v63, %v2681_v52  ;;  %v2628_v54 = vadd.f32 0.2548296, %v2622_v33  ;;  %v2617_v11 = vadd.f32 -0.28449672, %v2611_v20 }
 0x921   : > { %v2699_v4 = vadd.f32 1.0, %v2687_v15 }
 0x922   : > { %2852 = vmatmul.bf16.vlgmr.msrb.gmra.mxu3 %v2708_v9  ;;  %v2634_v50 = vmul.f32 %v2628_v54, %v4729_v43  ;;  %v2623_v8 = vmul.f32 %v2617_v11, %v2580_v1  ;;  %v2694_v43 = vmul.f32 0.5, %v4618_v57  ;;  %v3444_v57 = vld [vmem:[%s559_s28] ss:$0 sm:$0xff] }
 0x923   : > { %v2705_v3 = vmul.f32 %v2699_v4, %v2693_v32  ;;  %v3610_v28 = vpop.eup %3609 }
 0x924   : > { %v2664_v46 = vmul.f32 %v3608_v55, %v2634_v50  ;;  %v2629_v16 = vadd.f32 0.2548296, %v2623_v8 }
 0x925   : > { %v2709_v21 = vpack.c.bf16 %v2705_v3, %v2703_v7 }
 0x926   : > { %v2670_v41 = vsub.f32 1.0, %v2664_v46  ;;  %v2635_v59 = vmul.f32 %v2629_v16, %v2580_v1 }
 0x927   : > { %2870 = vmatmul.bf16.vlgmr.msra.gmra.mxu0 %v2709_v21 }
 0x928   : > { %v2682_v0 = vsub.f32 0.0, %v2670_v41  ;;  %v2665_v22 = vmul.f32 %v3610_v28, %v2635_v59 }
 0x92a   : > { %v2688_v51 = vsel %vm2676_vm12, %v2670_v41, %v2682_v0  ;;  %v2671_v42 = vsub.f32 1.0, %v2665_v22 }
 0x92b   : > { %v2700_v19 = vadd.f32 1.0, %v2688_v51 }
 0x92c   : > { %v2683_v23 = vsub.f32 0.0, %v2671_v42 }
 0x92d   : > { %v2706_v18 = vmul.f32 %v2700_v19, %v2694_v43 }
 0x92e   : > { %v2689_v62 = vsel %vm2677_vm13, %v2671_v42, %v2683_v23 }
 0x92f   : > { %v2710_v14 = vpack.c.bf16 %v2706_v18, %v2706_v18  ;;  %v2701_v17 = vadd.f32 1.0, %v2689_v62 }
 0x931   : > { %v2707_v13 = vmul.f32 %v2701_v17, %v2695_v30 }
 0x932   : > { %2857 = vmatmul.bf16.gmra.mxu3 %v2710_v14 }
 0x933   : > { %v2711_v29 = vpack.c.bf16 %v2707_v13, %v2707_v13 }
 0x937   : > { %2875 = vmatmul.bf16.gmra.mxu0 %v2711_v29 }
 0x9a4   : > { %v2871_v5 = vpop.f32.mrf.mxu0 }
 0x9a5   : > { %v2853_v12 = vpop.f32.mrf.mxu3 }
 0x9a6   : > { %v2854_v31 = vadd.f32 %v3444_v57, %v2853_v12 }
 0x9a8   : > { %v2872_v37 = vadd.f32 %v2871_v5, %v2854_v31 }
 0x9aa   : > { %v2880_v1 = vadd.f32 %v2872_v37, %v4490_v27 }
 0x9ac   : > { %2883 = vst [vmem:[%s4790_s12] sm:$0xff] %v2880_v1  ;;  %v2873_v56 = vpop.f32.mrf.mxu0 }
 0x9ad   : > { %v2855_v25 = vpop.f32.mrf.mxu3 }
 0x9ae   : > { %v2856_v38 = vadd.f32 %v3444_v57, %v2855_v25 }
 0x9b0   : > { %v2874_v24 = vadd.f32 %v2873_v56, %v2856_v38 }
 0x9b2   : > { %v2881_v61 = vadd.f32 %v2874_v24, %v4496_v48 }
 0x9b4   : > { %2884 = vst [vmem:[%s4790_s12 + $0x8] sm:$0xff] %v2881_v61  ;;  %v2876_v35 = vpop.f32.mrf.mxu0 }
 0x9b5   : > { %v2858_v39 = vpop.f32.mrf.mxu3 }
 0x9b6   : > { %v2859_v44 = vadd.f32 %v3444_v57, %v2858_v39 }
 0x9b8   : > { %v2877_v2 = vadd.f32 %v2876_v35, %v2859_v44 }
 0x9ba   : > { %v2882_v27 = vadd.f32 %v2877_v2, %v4502_v53 }
 0x9bc   : > { %2885 = vst [vmem:[%s4790_s12 + $0x10] sm:$0x3] %v2882_v27  ;;  %v2878_v63 = vpop.f32.mrf.mxu0 }
 0x9bd   : > { %v2860_v49 = vpop.f32.mrf.mxu3 }
 0x9be PF: > { %s4807_s14 = sld [smem:[#allocation2_spill]] }
 0x9c4   : > { %s22_s21 = sadd.s32 1, %s4807_s14  }
 0x9c5   : > { %p19_p5 = scmp.ge.s32.totalorder %s22_s21, 4  }
 0x9c7   :  { %21 = sbr.rel (!%p19_p5) target bundleno = 3 (0x3), region = 128 }

// kernel: vit_merlin_forward.5
= control target key start
LH: loop header
LB: loop body
LE: loop exit
PB: predicated region body
PF: predicated region fallthrough
CT: control target
= control target key end

     0   :  { %s3905_s0 = inlined_call_operand.vmem [shape: f32[18,128], index: 0, kind: input, shape index: {}]   ;;  %s3906_s1 = inlined_call_operand.vmem [shape: f32[2,32,1], index: 1, kind: input, shape index: {}]   ;;  %s3907_s2 = inlined_call_operand.vmem [shape: f32[1,128], index: 2, kind: input, shape index: {}]   ;;  %s3908_s3 = inlined_call_operand.vmem [shape: f32[1,128], index: 3, kind: input, shape index: {}]   ;;  %s3909_s4 = inlined_call_operand.vmem [shape: f32[1,128], index: 4, kind: input, shape index: {}]   ;;  %s3910_s5 = inlined_call_operand.vmem [shape: f32[1,128], index: 5, kind: input, shape index: {}]   ;;  %s3911_s6 = inlined_call_operand.vmem [shape: f32[1,128], index: 6, kind: input, shape index: {}]   ;;  %s3912_s7 = inlined_call_operand.vmem [shape: f32[1,128], index: 7, kind: input, shape index: {}]   ;;  %s3913_s8 = inlined_call_operand.vmem [shape: f32[1,128], index: 8, kind: input, shape index: {}]   ;;  %s3914_s9 = inlined_call_operand.vmem [shape: f32[1,128], index: 9, kind: input, shape index: {}]   ;;  %s3915_s10 = inlined_call_operand.vmem [shape: bf16[128,128], index: 10, kind: input, shape index: {}]   ;;  %s3916_s11 = inlined_call_operand.vmem [shape: f32[1,128], index: 11, kind: input, shape index: {}]   ;;  %s3917_s12 = inlined_call_operand.vmem [shape: bf16[128,256], index: 12, kind: input, shape index: {}]   ;;  %s3918_s13 = inlined_call_operand.vmem [shape: f32[1,256], index: 13, kind: input, shape index: {}]   ;;  %s3919_s14 = inlined_call_operand.vmem [shape: bf16[128,128], index: 14, kind: input, shape index: {}]   ;;  %s3920_s15 = inlined_call_operand.vmem [shape: f32[1,128], index: 15, kind: input, shape index: {}]   ;;  %s3921_s16 = inlined_call_operand.vmem [shape: f32[1,128], index: 16, kind: input, shape index: {}]   ;;  %s3922_s17 = inlined_call_operand.vmem [shape: f32[1,128], index: 17, kind: input, shape index: {}]   ;;  %s3923_s18 = inlined_call_operand.hbm [shape: f32[2,8,128], index: 18, kind: output, shape index: {0}]   ;;  %s3924_s19 = inlined_call_operand.hbm [shape: f32[2,8,128], index: 19, kind: output, shape index: {1}]  }
   0x1   :  { %3927 = sst [smem:[#allocation8_spill]] %s3905_s0 }
   0x2   :  { %3928 = sst [smem:[#allocation9_spill]] %s3906_s1 }
   0x3   :  { %3929 = sst [smem:[#allocation10_spill]] %s3907_s2 }
   0x4   :  { %3930 = sst [smem:[#allocation11_spill]] %s3908_s3 }
   0x5   :  { %25 = vsyncpa [#allocation3], 0  ;;  %s3931_s20 = sld [smem:[#allocation9_spill]]  ;;  %vm69_vm0 = vcmask 1046528   ;;  %v2794_v3 = vmov 0   ;;  %vm75_vm1 = vcmask 1045504  }
   0x6   :  { %s3932_s22 = sld [smem:[#allocation8_spill]]  ;;  %2594 = vset.pattern.permute.xlu1 %v2794_v3  ;;  %2595 = vset.pattern.permute.xlu0 %v2794_v3 }
   0x7   :  { %2596 = vset.pattern.permute.xlu2 %v2794_v3 }
   0xb   :  { %v276_v0 = vld [vmem:[%s3931_s20] sm:$0xff]  ;;  %v277_v10 = vld [vmem:[%s3931_s20 + $0x8] sm:$0xff] }
   0xc   :  { %v64_v1 = vld [vmem:[%s3932_s22] sm:$0xff]  ;;  %v65_v2 = vld [vmem:[%s3932_s22 + $0x8] sm:$0xff]  ;;  %v66_v6 = vld [vmem:[%s3932_s22 + $0x10] sm:$0x3]  ;;  %283 = vperm.xlu1 %2594, %v276_v0  }
   0xd   :  { %v70_v4 = vrot.slane %v64_v1, 1  ;;  %v71_v5 = vrot.slane %v65_v2, 1  ;;  %v76_v8 = vrot.slane %v65_v2, 2  ;;  %v77_v9 = vrot.slane %v66_v6, 2 }
   0xf   :  { %v72_v7 = vsel %vm69_vm0, %v70_v4, %v71_v5 }
  0x10   :  { %82 = vadd.xlane.f32.xlu0 %v72_v7 }
  0x11   :  { %26 = vsyncpa [#allocation5], 0  ;;  %v78_v11 = vsel %vm75_vm1, %v76_v8, %v77_v9  ;;  %v279_v12 = vld [vmem:[%s3931_s20 + $0x18] sm:$0xff]  ;;  %v278_v13 = vld [vmem:[%s3931_s20 + $0x10] sm:$0xff]  ;;  %v2795_v14 = vmov 128.0   ;;  %s3933_s24 = sld [smem:[#allocation10_spill]] }
  0x12   :  { %2648 = vrcp.f32 %v2795_v14  ;;  %v2632_v24 = vld [vmem:[%s3909_s4] ss:$0 sm:$0xff]  ;;  %s3934_s26 = sld [smem:[#allocation11_spill]]  ;;  %s2796_s25 = smov 112  }
  0x13   :  { %v2633_v26 = vld [vmem:[%s3910_s5] ss:$0 sm:$0xff]  ;;  %s2797_s3 = smov 96   ;;  %s2799_s27 = smov 32  }
  0x14   :  { %288 = vperm.xlu1 %2594, %v277_v10   ;;  %s2801_s0 = smov 48   ;;  %s2802_s30 = smov 16  }
  0x15   :  { %s2288_s22 = sshll.u32 %s3924_s19, 4  ;;  %s2804_s2 = smov 128   ;;  %s2289_s22 = int_to_ptr.hbm [resolvable:$true] %s2288_s22 }
  0x16   :  { %s2805_s23 = smov 8  }
  0x17   :  { %v2634_v61 = vld [vmem:[%s3933_s24] ss:$0 sm:$0xff] }
  0x18   :  { %84 = vadd.xlane.f32.xlu0 %v78_v11  ;;  %v2649_v15 = vpop.eup %2648  ;;  %v2635_v1 = vld [vmem:[%s3934_s26] ss:$0 sm:$0xff]  ;;  %s2798_s26 = smov 64  }
  0x19   :  { %v87_v16 = vmul.f32 128.0, %v2649_v15  ;;  %vm91_vm2 = vweird.f32 %v2649_v15 }
  0x1b   :  { %v88_v17 = vsub.f32 1.0, %v87_v16 }
  0x1c   :  { %298 = vperm.xlu1 %2594, %v279_v12  }
  0x1d   :  { %v89_v18 = vmul.f32 %v2649_v15, %v88_v17 }
  0x1f   :  { %v90_v19 = vadd.f32 %v2649_v15, %v89_v18 }
  0x21   :  { %v2928_v21 = vsel %vm91_vm2, %v2649_v15, %v90_v19  ;;  %v2418_v19 = vld [vmem:[%s3931_s20 + $0x28] sm:$0xff] }
  0x2c   :  { %293 = vperm.xlu0 %2595, %v278_v13  }
  0x7e   :  { %v284_v20 = vpop.permute.xlu1 %283 }
  0x7f   :  { %v304_v35 = vmul.f32 %v2632_v24, %v284_v20 }
  0x81   :  { %v312_v36 = vadd.f32 %v2633_v26, %v304_v35  ;;  %v2389_v35 = vld [vmem:[%s3917_s12 + $0x68] sm:$0xf0] }
  0x83   :  { %v83_v22 = vpop.xlane.xlu0 %82 }
  0x84   :  { %v93_v23 = vmul.f32 %v2928_v21, %v83_v22 }
  0x86   :  { %v95_v25 = vsub.f32 %v72_v7, %v93_v23  ;;  %v289_v27 = vpop.permute.xlu1 %288 }
  0x87   :  { %v305_v29 = vmul.f32 %v2632_v24, %v289_v27  ;;  %v2555_v27 = vld [vmem:[%s3917_s12 + $0x74] sm:$0xf] }
  0x88   :  { %v97_v28 = vmul.f32 %v95_v25, %v95_v25 }
  0x89   :  { %v2937_v31 = vadd.f32 %v2633_v26, %v305_v29  ;;  %v2397_v29 = vld [vmem:[%s3917_s12 + $0x78] sm:$0xf0] }
  0x8a   :  { %99 = vadd.xlane.f32.xlu2 %v97_v28 }
  0x8b   :  { %v85_v30 = vpop.xlane.xlu0 %84  ;;  %320 = vadd.xlane.f32.xlu1 %v2937_v31 }
  0x8c   :  { %v94_v32 = vmul.f32 %v2928_v21, %v85_v30  ;;  %v2400_v30 = vor.u32 %v2555_v27, %v2397_v29 }
  0x8e   :  { %v96_v33 = vsub.f32 %v78_v11, %v94_v32  ;;  %v299_v40 = vpop.permute.xlu1 %298  ;;  %535 = vmatpush.bf16.msra.mxu2 %v2400_v30  ;;  %v2554_v32 = vld [vmem:[%s3917_s12 + $0x64] sm:$0xf0] }
  0x8f   :  { %v307_v41 = vmul.f32 %v2632_v24, %v299_v40 }
  0x90   :  { %v98_v34 = vmul.f32 %v96_v33, %v96_v33 }
  0x91   :  { %v315_v42 = vadd.f32 %v2633_v26, %v307_v41  ;;  %v2381_v41 = vld [vmem:[%s3917_s12 + $0x58] sm:$0xf0] }
  0x92   :  { %101 = vadd.xlane.f32.xlu2 %v98_v34 }
  0x9a   :  { %318 = vadd.xlane.f32.xlu2 %v312_v36 }
  0x9e   :  { %v294_v37 = vpop.permute.xlu0 %293 }
  0x9f   :  { %v306_v38 = vmul.f32 %v2632_v24, %v294_v37  ;;  %v2379_v37 = vld [vmem:[%s3917_s12 + $0x50] sm:$0xf] }
  0xa1   :  { %v2941_v39 = vadd.f32 %v2633_v26, %v306_v38  ;;  %v2556_v26 = vld [vmem:[%s3917_s12 + $0x74] sm:$0xf0] }
  0xa2   :  { %v2552_v38 = vld [vmem:[%s3917_s12 + $0x54] sm:$0xf0] }
  0xa3   :  { %322 = vadd.xlane.f32.xlu2 %v2941_v39  ;;  %v2380_v40 = vor.u32 %v2552_v38, %v2379_v37 }
  0xab   :  { %324 = vadd.xlane.f32.xlu2 %v315_v42 }
  0xfd   :  { %v100_v43 = vpop.xlane.xlu2 %99 }
  0xfe   :  { %v103_v44 = vmul.f32 %v100_v43, %v2928_v21  ;;  %v321_v10 = vpop.xlane.xlu1 %320  ;;  %v2371_v43 = vld [vmem:[%s3917_s12 + $0x40] sm:$0xf] }
  0xff   :  { %v327_v14 = vmul.f32 %v321_v10, %v2928_v21 }
 0x100   :  { %v105_v45 = vadd.f32 1e-05, %v103_v44  ;;  %v2550_v44 = vld [vmem:[%s3917_s12 + $0x44] sm:$0xf0] }
 0x101   :  { %v2970_v18 = vsub.f32 %v2937_v31, %v327_v14  ;;  %v2387_v31 = vld [vmem:[%s3917_s12 + $0x60] sm:$0xf] }
 0x102   :  { %2650 = vrsqrt.f32 %v105_v45  ;;  %vm113_vm4 = vweird.f32 %v105_v45  ;;  %v2388_v34 = vor.u32 %v2554_v32, %v2387_v31  ;;  %v2339_v14 = vld [vmem:[%s3917_s12] sm:$0xf] }
 0x103   :  { %v335_v22 = vmul.f32 %v2970_v18, %v2970_v18 }
 0x105   :  { %v102_v46 = vpop.xlane.xlu2 %101 }
 0x106   :  { %v104_v47 = vmul.f32 %v102_v46, %v2928_v21 }
 0x108   :  { %v2651_v48 = vpop.eup %2650  ;;  %v106_v49 = vadd.f32 1e-05, %v104_v47  ;;  %v2372_v47 = vor.u32 %v2550_v44, %v2371_v43  ;;  %v2419_v44 = vld [vmem:[%s3931_s20 + $0x30] sm:$0xff] }
 0x109   :  { %v108_v50 = vmul.f32 %v2651_v48, %v105_v45  ;;  %vm114_vm3 = vweird.f32 %v2651_v48  ;;  %v2549_v45 = vld [vmem:[%s3917_s12 + $0x44] sm:$0xf] }
 0x10a   :  { %2652 = vrsqrt.f32 %v106_v49  ;;  %vm115_vm5 = vmor %vm113_vm4, %vm114_vm3  ;;  %vm123_vm7 = vweird.f32 %v106_v49 }
 0x10b   :  { %v109_v51 = vmul.f32 %v2651_v48, %v108_v50 }
 0x10d   :  { %v110_v52 = vmul.f32 0.5, %v109_v51  ;;  %v319_v53 = vpop.xlane.xlu2 %318  ;;  %v2363_v51 = vld [vmem:[%s3917_s12 + $0x30] sm:$0xf] }
 0x10e   :  { %v326_v54 = vmul.f32 %v319_v53, %v2928_v21 }
 0x10f   :  { %v111_v55 = vsub.f32 1.5, %v110_v52  ;;  %v2548_v52 = vld [vmem:[%s3917_s12 + $0x34] sm:$0xf0] }
 0x110   :  { %v2653_v56 = vpop.eup %2652  ;;  %v2947_v57 = vsub.f32 %v312_v36, %v326_v54  ;;  %v2364_v53 = vor.u32 %v2548_v52, %v2363_v51  ;;  %v2547_v54 = vld [vmem:[%s3917_s12 + $0x34] sm:$0xf]  ;;  %v2637_v52 = vld [vmem:[%s3913_s8] ss:$0 sm:$0xff] }
 0x111   :  { %v118_v58 = vmul.f32 %v2653_v56, %v106_v49  ;;  %v112_v59 = vmul.f32 %v2651_v48, %v111_v55  ;;  %vm124_vm6 = vweird.f32 %v2653_v56  ;;  %v2365_v55 = vld [vmem:[%s3917_s12 + $0x38] sm:$0xf0] }
 0x112   :  { %v334_v60 = vmul.f32 %v2947_v57, %v2947_v57  ;;  %vm125_vm8 = vmor %vm123_vm7, %vm124_vm6 }
 0x113   :  { %v119_v62 = vmul.f32 %v2653_v56, %v118_v58  ;;  %v116_v63 = vsel %vm115_vm5, %v2651_v48, %v112_v59  ;;  %v2373_v48 = vld [vmem:[%s3917_s12 + $0x48] sm:$0xf0]  ;;  %v2368_v58 = vor.u32 %v2547_v54, %v2365_v55 }
 0x114   :  { %338 = vadd.xlane.f32.xlu0 %v334_v60  ;;  %v127_v0 = vmul.f32 %v116_v63, %v95_v25  ;;  %v2395_v25 = vld [vmem:[%s3917_s12 + $0x70] sm:$0xf]  ;;  %v2376_v50 = vor.u32 %v2549_v45, %v2373_v48  ;;  %v2545_v63 = vld [vmem:[%s3917_s12 + $0x24] sm:$0xf] }
 0x115   :  { %v120_v2 = vmul.f32 0.5, %v119_v62  ;;  %v2396_v28 = vor.u32 %v2556_v26, %v2395_v25  ;;  %v2546_v62 = vld [vmem:[%s3917_s12 + $0x24] sm:$0xf0] }
 0x116   :  { %v323_v3 = vpop.xlane.xlu2 %322  ;;  %v132_v4 = vmul.f32 %v2634_v61, %v127_v0 }
 0x117   :  { %v121_v5 = vsub.f32 1.5, %v120_v2  ;;  %v328_v20 = vmul.f32 %v323_v3, %v2928_v21  ;;  %516 = vmatpush.bf16.msra.mxu1 %v2396_v28 }
 0x118   :  { %v2957_v6 = vadd.f32 %v2635_v1, %v132_v4 }
 0x119   :  { %v122_v7 = vmul.f32 %v2653_v56, %v121_v5  ;;  %v2979_v23 = vsub.f32 %v2941_v39, %v328_v20  ;;  %v2551_v39 = vld [vmem:[%s3917_s12 + $0x54] sm:$0xf]  ;;  %v2347_v5 = vld [vmem:[%s3917_s12 + $0x10] sm:$0xf] }
 0x11a   :  { %141 = vadd.xlane.f32.xlu2 %v2957_v6 }
 0x11b   :  { %v126_v8 = vsel %vm125_vm8, %v2653_v56, %v122_v7  ;;  %v336_v24 = vmul.f32 %v2979_v23, %v2979_v23  ;;  %517 = vmatpush.bf16.msra.mxu1 %v2388_v34  ;;  %v2544_v7 = vld [vmem:[%s3917_s12 + $0x14] sm:$0xf0] }
 0x11c   :  { %v128_v9 = vmul.f32 %v126_v8, %v96_v33  ;;  %v2553_v33 = vld [vmem:[%s3917_s12 + $0x64] sm:$0xf]  ;;  %v2543_v8 = vld [vmem:[%s3917_s12 + $0x14] sm:$0xf] }
 0x11d   :  { %v2392_v36 = vor.u32 %v2553_v33, %v2389_v35 }
 0x11e   :  { %v325_v11 = vpop.xlane.xlu2 %324  ;;  %v133_v12 = vmul.f32 %v2634_v61, %v128_v9  ;;  %v2355_v61 = vld [vmem:[%s3917_s12 + $0x20] sm:$0xf]  ;;  %v2349_v9 = vld [vmem:[%s3917_s12 + $0x18] sm:$0xf0] }
 0x11f   :  { %v329_v13 = vmul.f32 %v325_v11, %v2928_v21  ;;  %536 = vmatpush.bf16.msra.mxu2 %v2392_v36  ;;  %518 = vmatpush.bf16.msra.mxu1 %v2380_v40  ;;  %v2356_v0 = vor.u32 %v2546_v62, %v2355_v61  ;;  %v2352_v10 = vor.u32 %v2543_v8, %v2349_v9 }
 0x120   :  { %v2962_v15 = vadd.f32 %v2635_v1, %v133_v12  ;;  %v2357_v1 = vld [vmem:[%s3917_s12 + $0x28] sm:$0xf0] }
 0x121   :  { %v2964_v16 = vsub.f32 %v315_v42, %v329_v13  ;;  %v2384_v42 = vor.u32 %v2551_v39, %v2381_v41  ;;  %v2360_v3 = vor.u32 %v2545_v63, %v2357_v1 }
 0x122   :  { %143 = vadd.xlane.f32.xlu2 %v2962_v15 }
 0x123   :  { %v337_v17 = vmul.f32 %v2964_v16, %v2964_v16  ;;  %537 = vmatpush.bf16.msra.mxu2 %v2384_v42  ;;  %519 = vmatpush.bf16.msra.mxu1 %v2372_v47 }
 0x125   :  { %344 = vadd.xlane.f32.xlu1 %v337_v17  ;;  %v2542_v17 = vld [vmem:[%s3917_s12 + $0x4] sm:$0xf0] }
 0x126   :  { %v2340_v20 = vor.u32 %v2542_v17, %v2339_v14 }
 0x127   :  { %538 = vmatpush.bf16.msra.mxu2 %v2376_v50  ;;  %520 = vmatpush.bf16.msra.mxu1 %v2364_v53 }
 0x128   :  { %1218 = vperm.xlu0 %2595, %v2418_v19   ;;  %v2541_v19 = vld [vmem:[%s3917_s12 + $0x4] sm:$0xf] }
 0x12a   :  { %340 = vadd.xlane.f32.xlu2 %v335_v22  ;;  %v2341_v22 = vld [vmem:[%s3917_s12 + $0x8] sm:$0xf0] }
 0x12b   :  { %539 = vmatpush.bf16.msra.mxu2 %v2368_v58  ;;  %521 = vmatpush.bf16.msra.mxu1 %v2356_v0  ;;  %v2344_v26 = vor.u32 %v2541_v19, %v2341_v22  ;;  %v2539_v22 = vld [vmem:[%s3915_s10 + $0x30] sm:$0xff] }
 0x12f   :  { %540 = vmatpush.bf16.msra.mxu2 %v2360_v3 }
 0x132   :  { %342 = vadd.xlane.f32.xlu2 %v336_v24 }
 0x133   :  { %541 = vmatpush.bf16.msra.mxu2 %v2352_v10 }
 0x137   :  { %542 = vmatpush.bf16.msra.mxu2 %v2344_v26  ;;  %v2535_v26 = vld [vmem:[%s3915_s10 + $0x10] sm:$0xff] }
 0x187   :  { %v339_v46 = vpop.xlane.xlu0 %338 }
 0x188   :  { %v346_v49 = vmul.f32 %v339_v46, %v2928_v21 }
 0x18a   :  { %v3044_v56 = vadd.f32 1e-05, %v346_v49 }
 0x18c   :  { %2654 = vrsqrt.f32 %v3044_v56  ;;  %vm360_vm10 = vweird.f32 %v3044_v56 }
 0x18d   :  { %v142_v59 = vpop.xlane.xlu2 %141 }
 0x18e   :  { %v145_v60 = vmul.f32 %v142_v59, %v2928_v21 }
 0x190   :  { %v3061_v2 = vsub.f32 %v2957_v6, %v145_v60  ;;  %v2348_v6 = vor.u32 %v2544_v7, %v2347_v5 }
 0x192   :  { %v149_v4 = vmul.f32 %v3061_v2, %v3061_v2  ;;  %522 = vmatpush.bf16.msra.mxu1 %v2348_v6  ;;  %v2655_v12 = vpop.eup %2654 }
 0x193   :  { %v355_v27 = vmul.f32 %v2655_v12, %v3044_v56  ;;  %vm361_vm9 = vweird.f32 %v2655_v12  ;;  %v2417_v56 = vld [vmem:[%s3931_s20 + $0x20] sm:$0xff] }
 0x194   :  { %151 = vadd.xlane.f32.xlu2 %v149_v4  ;;  %vm362_vm11 = vmor %vm360_vm10, %vm361_vm9 }
 0x195   :  { %v144_v11 = vpop.xlane.xlu2 %143  ;;  %v356_v31 = vmul.f32 %v2655_v12, %v355_v27  ;;  %v2534_v27 = vld [vmem:[%s3915_s10 + $0x8] sm:$0xff] }
 0x196   :  { %v146_v13 = vmul.f32 %v144_v11, %v2928_v21  ;;  %523 = vmatpush.bf16.msra.mxu1 %v2340_v20  ;;  %v2540_v20 = vld [vmem:[%s3915_s10 + $0x38] sm:$0xff] }
 0x197   :  { %260 = vmatpush.bf16.msra.mxu0 %v2540_v20 }
 0x198   :  { %v345_v24 = vpop.xlane.xlu1 %344  ;;  %v3091_v25 = vsub.f32 %v2962_v15, %v146_v13  ;;  %v357_v15 = vmul.f32 0.5, %v356_v31 }
 0x199   :  { %v349_v28 = vmul.f32 %v345_v24, %v2928_v21  ;;  %v2536_v24 = vld [vmem:[%s3915_s10 + $0x18] sm:$0xff] }
 0x19a   :  { %v150_v29 = vmul.f32 %v3091_v25, %v3091_v25  ;;  %v358_v35 = vsub.f32 1.5, %v357_v15 }
 0x19b   :  { %v353_v30 = vadd.f32 1e-05, %v349_v28  ;;  %261 = vmatpush.bf16.msra.mxu0 %v2539_v22 }
 0x19c   :  { %153 = vadd.xlane.f32.xlu1 %v150_v29  ;;  %v359_v41 = vmul.f32 %v2655_v12, %v358_v35 }
 0x19d   :  { %v341_v32 = vpop.xlane.xlu2 %340  ;;  %2656 = vrsqrt.f32 %v353_v30  ;;  %vm390_vm3 = vweird.f32 %v353_v30 }
 0x19e   :  { %v347_v33 = vmul.f32 %v341_v32, %v2928_v21  ;;  %v363_v48 = vsel %vm362_vm11, %v2655_v12, %v359_v41  ;;  %v3147_v32 = vld [vmem:[%s3909_s4] ss:$0 sm:$0xff]  ;;  %vm557_vm11 = vcmask 130048  }
 0x19f   :  { %v394_v51 = vmul.f32 %v363_v48, %v2947_v57  ;;  %v2638_v57 = vld [vmem:[%s3914_s9] ss:$0 sm:$0xff] }
 0x1a0   :  { %v351_v34 = vadd.f32 1e-05, %v347_v33 }
 0x1a1   :  { %v401_v61 = vmul.f32 %v2637_v52, %v394_v51 }
 0x1a2   :  { %2658 = vrsqrt.f32 %v351_v34  ;;  %vm370_vm13 = vweird.f32 %v351_v34 }
 0x1a3   :  { %v2657_v37 = vpop.eup %2656  ;;  %v408_v3 = vadd.f32 %v2638_v57, %v401_v61 }
 0x1a4   :  { %v385_v42 = vmul.f32 %v2657_v37, %v353_v30  ;;  %vm391_vm0 = vweird.f32 %v2657_v37  ;;  %v2533_v30 = vld [vmem:[%s3915_s10] sm:$0xff] }
 0x1a5   :  { %v343_v36 = vpop.xlane.xlu2 %342  ;;  %vm392_vm4 = vmor %vm390_vm3, %vm391_vm0 }
 0x1a6   :  { %v348_v38 = vmul.f32 %v343_v36, %v2928_v21  ;;  %v386_v46 = vmul.f32 %v2657_v37, %v385_v42  ;;  %v3154_v36 = vld [vmem:[%s3910_s5] ss:$0 sm:$0xff] }
 0x1a8   :  { %v2659_v39 = vpop.eup %2658  ;;  %v352_v40 = vadd.f32 1e-05, %v348_v38  ;;  %v387_v53 = vmul.f32 0.5, %v386_v46 }
 0x1a9   :  { %v365_v43 = vmul.f32 %v2659_v39, %v351_v34  ;;  %vm371_vm12 = vweird.f32 %v2659_v39 }
 0x1aa   :  { %2660 = vrsqrt.f32 %v352_v40  ;;  %vm372_vm14 = vmor %vm370_vm13, %vm371_vm12  ;;  %v388_v62 = vsub.f32 1.5, %v387_v53  ;;  %vm380_vm1 = vweird.f32 %v352_v40  ;;  %vm580_vm12 = vcmask 261120  }
 0x1ab   :  { %v366_v45 = vmul.f32 %v2659_v39, %v365_v43 }
 0x1ac   :  { %1223 = vperm.xlu2 %2596, %v2419_v44   ;;  %v389_v5 = vmul.f32 %v2657_v37, %v388_v62 }
 0x1ad   :  { %v367_v47 = vmul.f32 0.5, %v366_v45 }
 0x1ae   :  { %v393_v9 = vsel %vm392_vm4, %v2657_v37, %v389_v5 }
 0x1af   :  { %v368_v49 = vsub.f32 1.5, %v367_v47  ;;  %v397_v11 = vmul.f32 %v393_v9, %v2964_v16  ;;  %v2538_v16 = vld [vmem:[%s3915_s10 + $0x28] sm:$0xff] }
 0x1b0   :  { %v2661_v50 = vpop.eup %2660  ;;  %262 = vmatpush.bf16.msra.mxu0 %v2538_v16 }
 0x1b1   :  { %v369_v54 = vmul.f32 %v2659_v39, %v368_v49  ;;  %v375_v55 = vmul.f32 %v2661_v50, %v352_v40  ;;  %vm381_vm15 = vweird.f32 %v2661_v50  ;;  %v404_v13 = vmul.f32 %v2637_v52, %v397_v11 }
 0x1b2   :  { %vm382_vm2 = vmor %vm380_vm1, %vm381_vm15 }
 0x1b3   :  { %v376_v58 = vmul.f32 %v2661_v50, %v375_v55  ;;  %v373_v59 = vsel %vm372_vm14, %v2659_v39, %v369_v54  ;;  %v411_v17 = vadd.f32 %v2638_v57, %v404_v13 }
 0x1b4   :  { %v395_v60 = vmul.f32 %v373_v59, %v2970_v18  ;;  %v2420_v18 = vld [vmem:[%s3931_s20 + $0x38] sm:$0xff] }
 0x1b5   :  { %v377_v63 = vmul.f32 0.5, %v376_v58  ;;  %1213 = vperm.xlu1 %2594, %v2417_v56   ;;  %v2641_v58 = vld [vmem:[%s3912_s7] ss:$0 sm:$0xff] }
 0x1b6   :  { %v402_v0 = vmul.f32 %v2637_v52, %v395_v60 }
 0x1b7   :  { %v378_v1 = vsub.f32 1.5, %v377_v63 }
 0x1b8   :  { %v409_v4 = vadd.f32 %v2638_v57, %v402_v0 }
 0x1b9   :  { %v379_v7 = vmul.f32 %v2661_v50, %v378_v1 }
 0x1ba   :  { %v412_v8 = vpack.c.bf16 %v409_v4, %v408_v3  ;;  %v430_v4 = vld [vmem:[%s3918_s13] sm:$0x3] }
 0x1bb   :  { %v383_v6 = vsel %vm382_vm2, %v2661_v50, %v379_v7  ;;  %v432_v5 = vperm.slane %v430_v4, 0  ;;  %v433_v16 = vperm.slane %v430_v4, 1 }
 0x1bc   :  { %524 = vmatmul.bf16.vlgmr.msra.gmra.mxu1 %v412_v8  ;;  %543 = vmatmul.bf16.vlgmr.msra.gmra.mxu2 %v412_v8  ;;  %v396_v10 = vmul.f32 %v383_v6, %v2979_v23  ;;  %v2537_v23 = vld [vmem:[%s3915_s10 + $0x20] sm:$0xff] }
 0x1bd   :  { %1228 = vperm.xlu1 %2594, %v2420_v18   ;;  %263 = vmatpush.bf16.msra.mxu0 %v2537_v23 }
 0x1be   :  { %v403_v12 = vmul.f32 %v2637_v52, %v396_v10  ;;  %v2640_v52 = vld [vmem:[%s3911_s6] ss:$0 sm:$0xff] }
 0x1c0   :  { %v410_v14 = vadd.f32 %v2638_v57, %v403_v12 }
 0x1c1   :  { %264 = vmatpush.bf16.msra.mxu0 %v2536_v24 }
 0x1c2   :  { %v413_v19 = vpack.c.bf16 %v411_v17, %v410_v14 }
 0x1c5   :  { %265 = vmatpush.bf16.msra.mxu0 %v2535_v26 }
 0x1c9   :  { %266 = vmatpush.bf16.msra.mxu0 %v2534_v27 }
 0x1cc   :  { %529 = vmatmul.bf16.gmra.mxu1 %v413_v19  ;;  %548 = vmatmul.bf16.gmra.mxu2 %v413_v19 }
 0x1cd   :  { %267 = vmatpush.bf16.msra.mxu0 %v2533_v30 }
 0x207   :  { %v152_v28 = vpop.xlane.xlu2 %151 }
 0x208   :  { %v155_v29 = vmul.f32 %v152_v28, %v2928_v21 }
 0x20a   :  { %v157_v31 = vadd.f32 1e-05, %v155_v29 }
 0x20c   :  { %2662 = vrsqrt.f32 %v157_v31  ;;  %vm165_vm6 = vweird.f32 %v157_v31 }
 0x20f   :  { %v154_v33 = vpop.xlane.xlu1 %153  ;;  %v1224_v34 = vpop.permute.xlu2 %1223 }
 0x210   :  { %v156_v15 = vmul.f32 %v154_v33, %v2928_v21  ;;  %v1236_v35 = vmul.f32 %v3147_v32, %v1224_v34 }
 0x212   :  { %v2663_v37 = vpop.eup %2662  ;;  %v158_v38 = vadd.f32 1e-05, %v156_v15  ;;  %v3157_v39 = vadd.f32 %v3154_v36, %v1236_v35 }
 0x213   :  { %v160_v40 = vmul.f32 %v2663_v37, %v157_v31  ;;  %vm166_vm5 = vweird.f32 %v2663_v37  ;;  %v1219_v31 = vpop.permute.xlu0 %1218 }
 0x214   :  { %2664 = vrsqrt.f32 %v158_v38  ;;  %1252 = vadd.xlane.f32.xlu1 %v3157_v39  ;;  %vm167_vm7 = vmor %vm165_vm6, %vm166_vm5  ;;  %vm175_vm9 = vweird.f32 %v158_v38  ;;  %v1235_v33 = vmul.f32 %v3147_v32, %v1219_v31 }
 0x215   :  { %v161_v41 = vmul.f32 %v2663_v37, %v160_v40 }
 0x216   :  { %v1243_v34 = vadd.f32 %v3154_v36, %v1235_v33 }
 0x217   :  { %v162_v42 = vmul.f32 0.5, %v161_v41 }
 0x219   :  { %v163_v43 = vsub.f32 1.5, %v162_v42 }
 0x21a   :  { %v2665_v44 = vpop.eup %2664 }
 0x21b   :  { %v164_v45 = vmul.f32 %v2663_v37, %v163_v43  ;;  %v170_v46 = vmul.f32 %v2665_v44, %v158_v38  ;;  %vm176_vm8 = vweird.f32 %v2665_v44 }
 0x21c   :  { %vm177_vm10 = vmor %vm175_vm9, %vm176_vm8 }
 0x21d   :  { %v171_v47 = vmul.f32 %v2665_v44, %v170_v46  ;;  %v168_v49 = vsel %vm167_vm7, %v2663_v37, %v164_v45 }
 0x21e   :  { %v179_v51 = vmul.f32 %v168_v49, %v3061_v2 }
 0x21f   :  { %v172_v48 = vmul.f32 0.5, %v171_v47 }
 0x220   :  { %v184_v56 = vmul.f32 %v2640_v52, %v179_v51 }
 0x221   :  { %v173_v50 = vsub.f32 1.5, %v172_v48 }
 0x222   :  { %v3170_v57 = vadd.f32 %v2641_v58, %v184_v56 }
 0x223   :  { %v174_v53 = vmul.f32 %v2665_v44, %v173_v50 }
 0x225   :  { %v178_v54 = vsel %vm177_vm10, %v2665_v44, %v174_v53 }
 0x226   :  { %v180_v55 = vmul.f32 %v178_v54, %v3091_v25 }
 0x227   :  { %v1214_v59 = vpop.permute.xlu1 %1213 }
 0x228   :  { %v1234_v60 = vmul.f32 %v3147_v32, %v1214_v59  ;;  %v185_v61 = vmul.f32 %v2640_v52, %v180_v55 }
 0x22a   :  { %v1242_v2 = vadd.f32 %v3154_v36, %v1234_v60  ;;  %v3172_v62 = vadd.f32 %v2641_v58, %v185_v61 }
 0x22c   :  { %1248 = vadd.xlane.f32.xlu0 %v1242_v2  ;;  %v191_v63 = vpack.c.bf16 %v3172_v62, %v3170_v57 }
 0x22e   :  { %268 = vmatmul.bf16.vlgmr.msra.gmra.mxu0 %v191_v63 }
 0x22f   :  { %v1229_v25 = vpop.permute.xlu1 %1228 }
 0x230   :  { %v1237_v0 = vmul.f32 %v3147_v32, %v1229_v25 }
 0x232   :  { %v3178_v1 = vadd.f32 %v3154_v36, %v1237_v0  ;;  %v2642_v36 = vld [vmem:[%s3916_s11] ss:$0 sm:$0xff]  ;;  %s2800_s11 = smov 80  }
 0x234   :  { %1254 = vadd.xlane.f32.xlu0 %v3178_v1 }
 0x239   :  { %v525_v3 = vpop.f32.mrf.mxu1 }
 0x23a   :  { %v526_v18 = vadd.f32 %v525_v3, %v432_v5 }
 0x23f   :  { %v544_v7 = vpop.f32.mrf.mxu2 }
 0x240   :  { %v545_v29 = vadd.f32 %v544_v7, %v433_v16 }
 0x241   :  { %v527_v8 = vpop.f32.mrf.mxu1 }
 0x242   :  { %v528_v6 = vadd.f32 %v527_v8, %v432_v5 }
 0x244   :  { %v3184_v9 = vpack.c.bf16 %v528_v6, %v526_v18 }
 0x246   :  { %630 = vrot.lane.b32.xlu2 %v3184_v9, %s2796_s25  ;;  %v562_v28 = vsel %vm557_vm11, %v3184_v9, 0 }
 0x247   :  { %v546_v10 = vpop.f32.mrf.mxu2 }
 0x248   :  { %v547_v26 = vadd.f32 %v546_v10, %v433_v16 }
 0x249   :  { %v530_v11 = vpop.f32.mrf.mxu1 }
 0x24a   :  { %v531_v14 = vadd.f32 %v530_v11, %v432_v5  ;;  %v3203_v30 = vpack.c.bf16 %v547_v26, %v545_v29  ;;  %v2568_v29 = vld [vmem:[%s3917_s12 + $0x54] sm:$0xf0] }
 0x24f   :  { %v549_v12 = vpop.f32.mrf.mxu2 }
 0x250   :  { %v550_v24 = vadd.f32 %v549_v12, %v433_v16 }
 0x251   :  { %v532_v13 = vpop.f32.mrf.mxu1 }
 0x252   :  { %v533_v17 = vadd.f32 %v532_v13, %v432_v5 }
 0x254   :  { %v3188_v19 = vpack.c.bf16 %v533_v17, %v531_v14 }
 0x256   :  { %710 = vrot.lane.b32.xlu1 %v3188_v19, %s2797_s3  ;;  %632 = vrot.lane.b32.xlu2 %v3188_v19, %s2796_s25  ;;  %v565_v20 = vsel %vm557_vm11, %v3188_v19, 0 }
 0x257   :  { %v551_v22 = vpop.f32.mrf.mxu2  ;;  %573 = vmatpush.bf16.xpose.msra.mxu3 %v565_v20  ;;  %v2572_v20 = vld [vmem:[%s3917_s12 + $0x74] sm:$0xf0] }
 0x258   :  { %v552_v23 = vadd.f32 %v551_v22, %v433_v16 }
 0x25a   :  { %v3196_v27 = vpack.c.bf16 %v552_v23, %v550_v24  ;;  %v2471_v23 = vld [vmem:[%s3917_s12 + $0x60] sm:$0xf]  ;;  %v2570_v24 = vld [vmem:[%s3917_s12 + $0x64] sm:$0xf0] }
 0x25b   :  { %v2472_v26 = vor.u32 %v2570_v24, %v2471_v23 }
 0x25e   :  { %862 = vrot.lane.b32.xlu1 %v3188_v19, %s2798_s26 }
 0x25f   :  { %574 = vmatpush.bf16.xpose.msra.mxu3 %v562_v28  ;;  %v2463_v28 = vld [vmem:[%s3917_s12 + $0x50] sm:$0xf] }
 0x267   :  { %618 = vmatpush.bf16.msrb.mxu3 %v3196_v27 }
 0x26b   :  { %619 = vmatpush.bf16.msrb.mxu3 %v3203_v30 }
 0x27f   :  { %1250 = vadd.xlane.f32.xlu2 %v1243_v34 }
 0x287   :  { %v1253_v47 = vpop.xlane.xlu1 %1252 }
 0x288   :  { %v1258_v50 = vmul.f32 %v1253_v47, %v2928_v21 }
 0x28a   :  { %v3241_v51 = vsub.f32 %v3157_v39, %v1258_v50 }
 0x28c   :  { %v1266_v52 = vmul.f32 %v3241_v51, %v3241_v51 }
 0x297   :  { %708 = vrot.lane.b32.xlu2 %v3184_v9, %s2797_s3 }
 0x29f   :  { %860 = vrot.lane.b32.xlu2 %v3184_v9, %s2798_s26  ;;  %v1249_v15 = vpop.xlane.xlu0 %1248 }
 0x2a0   :  { %v1256_v35 = vmul.f32 %v1249_v15, %v2928_v21  ;;  %v631_v32 = vpop.permute.xlu2 %630  ;;  %v2455_v15 = vld [vmem:[%s3917_s12 + $0x40] sm:$0xf] }
 0x2a1   :  { %v638_v46 = vsel %vm557_vm11, %v631_v32, 0 }
 0x2a2   :  { %v3213_v37 = vsub.f32 %v1242_v2, %v1256_v35  ;;  %v2566_v35 = vld [vmem:[%s3917_s12 + $0x44] sm:$0xf0] }
 0x2a3   :  { %v2456_v32 = vor.u32 %v2566_v35, %v2455_v15 }
 0x2a4   :  { %v1264_v38 = vmul.f32 %v3213_v37, %v3213_v37 }
 0x2a6   :  { %1268 = vadd.xlane.f32.xlu0 %v1264_v38 }
 0x2a7   :  { %1014 = vrot.lane.b32.xlu2 %v3188_v19, %s2799_s27  ;;  %v1255_v53 = vpop.xlane.xlu0 %1254 }
 0x2a8   :  { %v1259_v54 = vmul.f32 %v1255_v53, %v2928_v21 }
 0x2aa   :  { %v3247_v55 = vsub.f32 %v3178_v1, %v1259_v54 }
 0x2ab   :  { %v269_v40 = vpop.f32.mrf.mxu0 }
 0x2ac   :  { %v270_v41 = vadd.f32 %v2642_v36, %v269_v40  ;;  %v1267_v56 = vmul.f32 %v3247_v55, %v3247_v55  ;;  %v2564_v40 = vld [vmem:[%s3917_s12 + $0x34] sm:$0xf0] }
 0x2ae   :  { %v274_v42 = vmul.f32 0.25, %v270_v41 }
 0x2af   :  { %1012 = vrot.lane.b32.xlu2 %v3184_v9, %s2799_s27 }
 0x2b0   :  { %v3224_v43 = vpack.c.bf16 %v274_v42, %v274_v42  ;;  %v633_v44 = vpop.permute.xlu2 %632 }
 0x2b1   :  { %v641_v45 = vsel %vm557_vm11, %v633_v44, 0  ;;  %v2439_v44 = vld [vmem:[%s3917_s12 + $0x20] sm:$0xf] }
 0x2b2   :  { %626 = vrot.lane.b32.xlu1 %v3224_v43, %s2796_s25  ;;  %2401 = vmatmul.msk.bf16.vlgmr.msra.gmra.mxu3 %vm557_vm11, %v3224_v43 }
 0x2b3   :  { %649 = vmatpush.bf16.xpose.msrb.mxu0 %v641_v45  ;;  %v271_v63 = vpop.f32.mrf.mxu0  ;;  %v2562_v45 = vld [vmem:[%s3917_s12 + $0x24] sm:$0xf0] }
 0x2b4   :  { %v272_v0 = vadd.f32 %v2642_v36, %v271_v63  ;;  %v2447_v36 = vld [vmem:[%s3917_s12 + $0x30] sm:$0xf] }
 0x2b6   :  { %v275_v1 = vmul.f32 0.25, %v272_v0 }
 0x2b7   :  { %1010 = vrot.lane.b32.xlu2 %v3224_v43, %s2799_s27 }
 0x2b8   :  { %v3287_v5 = vpack.c.bf16 %v275_v1, %v275_v1 }
 0x2ba   :  { %706 = vrot.lane.b32.xlu0 %v3224_v43, %s2797_s3 }
 0x2bb   :  { %650 = vmatpush.bf16.xpose.msrb.mxu0 %v638_v46  ;;  %v2440_v46 = vor.u32 %v2562_v45, %v2439_v44 }
 0x2c2   :  { %858 = vrot.lane.b32.xlu0 %v3224_v43, %s2798_s26 }
 0x2c8   :  { %v711_v48 = vpop.permute.xlu1 %710 }
 0x2c9   :  { %v719_v49 = vsel %vm557_vm11, %v711_v48, 0  ;;  %v2431_v48 = vld [vmem:[%s3917_s12 + $0x10] sm:$0xf] }
 0x2ca   :  { %727 = vmatpush.bf16.xpose.msra.mxu0 %v719_v49  ;;  %v2560_v49 = vld [vmem:[%s3917_s12 + $0x14] sm:$0xf0] }
 0x2d0   :  { %v863_v25 = vpop.permute.xlu1 %862 }
 0x2d1   :  { %v871_v4 = vsel %vm557_vm11, %v863_v25, 0 }
 0x2e0   :  { %1272 = vadd.xlane.f32.xlu2 %v1266_v52  ;;  %v2432_v52 = vor.u32 %v2560_v49, %v2431_v48 }
 0x2ec   :  { %1274 = vadd.xlane.f32.xlu0 %v1267_v56  ;;  %v2423_v56 = vld [vmem:[%s3917_s12] sm:$0xf] }
 0x2f2   :  { %v1251_v58 = vpop.xlane.xlu2 %1250 }
 0x2f3   :  { %v1257_v59 = vmul.f32 %v1251_v58, %v2928_v21  ;;  %v2558_v58 = vld [vmem:[%s3917_s12 + $0x4] sm:$0xf0] }
 0x2f5   :  { %v3252_v60 = vsub.f32 %v1243_v34, %v1257_v59  ;;  %v2464_v34 = vor.u32 %v2568_v29, %v2463_v28  ;;  %v2424_v59 = vor.u32 %v2558_v58, %v2423_v56  ;;  %v2643_v29 = vld [vmem:[%s3913_s8] ss:$0 sm:$0xff] }
 0x2f7   :  { %v1265_v39 = vmul.f32 %v3252_v60, %v3252_v60 }
 0x2f8   :  { %684 = vrot.lane.b32.xlu2 %v3203_v30, %s2796_s25 }
 0x2f9   :  { %1270 = vadd.xlane.f32.xlu1 %v1265_v39 }
 0x2fa   :  { %v709_v61 = vpop.permute.xlu2 %708 }
 0x2fb   :  { %v716_v2 = vsel %vm557_vm11, %v709_v61, 0 }
 0x2fc   :  { %728 = vmatpush.bf16.xpose.msra.mxu0 %v716_v2 }
 0x300   :  { %762 = vrot.lane.b32.xlu2 %v3196_v27, %s2797_s3  ;;  %786 = vrot.lane.b32.xlu0 %v3188_v19, %s2800_s11 }
 0x302   :  { %v861_v7 = vpop.permute.xlu2 %860 }
 0x303   :  { %v868_v18 = vsel %vm557_vm11, %v861_v7, 0 }
 0x308   :  { %912 = vrot.lane.b32.xlu2 %v3203_v30, %s2798_s26  ;;  %784 = vrot.lane.b32.xlu0 %v3184_v9, %s2800_s11 }
 0x30a   :  { %v1015_v6 = vpop.permute.xlu2 %1014 }
 0x30b   :  { %v1023_v10 = vsel %vm557_vm11, %v1015_v6, 0 }
 0x310   :  { %1066 = vrot.lane.b32.xlu2 %v3196_v27, %s2799_s27  ;;  %938 = vrot.lane.b32.xlu0 %v3188_v19, %s2801_s0 }
 0x312   :  { %686 = vrot.lane.b32.xlu1 %v3196_v27, %s2796_s25  ;;  %v1013_v12 = vpop.permute.xlu2 %1012 }
 0x313   :  { %v1020_v13 = vsel %vm557_vm11, %v1013_v12, 0 }
 0x318   :  { %782 = vrot.lane.b32.xlu2 %v3224_v43, %s2800_s11  ;;  %936 = vrot.lane.b32.xlu0 %v3184_v9, %s2801_s0 }
 0x319   :  { %v1269_v8 = vpop.xlane.xlu0 %1268 }
 0x31a   :  { %1088 = vrot.lane.b32.xlu1 %v3184_v9, %s2802_s30  ;;  %v1011_v22 = vpop.permute.xlu2 %1010  ;;  %v1276_v38 = vmul.f32 %v1269_v8, %v2928_v21 }
 0x31c   :  { %v1280_v41 = vadd.f32 1e-05, %v1276_v38 }
 0x31e   :  { %2666 = vrsqrt.f32 %v1280_v41  ;;  %vm1290_vm14 = vweird.f32 %v1280_v41 }
 0x320   :  { %1086 = vrot.lane.b32.xlu2 %v3224_v43, %s2802_s30  ;;  %1090 = vrot.lane.b32.xlu0 %v3188_v19, %s2802_s30  ;;  %v2479_v19 = vld [vmem:[%s3917_s12 + $0x70] sm:$0xf] }
 0x321   :  { %v2480_v16 = vor.u32 %v2572_v20, %v2479_v19 }
 0x322   :  { %914 = vrot.lane.b32.xlu1 %v3196_v27, %s2798_s26 }
 0x324   :  { %v627_v3 = vpop.permute.xlu1 %626  ;;  %v2667_v53 = vpop.eup %2666 }
 0x325   :  { %2403 = vmatmul.msk.bf16.vlgmr.msrb.gmra.mxu0 %vm557_vm11, %v627_v3  ;;  %v1285_v61 = vmul.f32 %v2667_v53, %v1280_v41  ;;  %vm1291_vm13 = vweird.f32 %v2667_v53 }
 0x326   :  { %879 = vmatpush.bf16.xpose.msrb.mxu0 %v871_v4  ;;  %vm1292_vm15 = vmor %vm1290_vm14, %vm1291_vm13 }
 0x327   :  { %v1286_v25 = vmul.f32 %v2667_v53, %v1285_v61 }
 0x328   :  { %1554 = vrot.lane.b32.xlu2 %v3287_v5, %s2796_s25  ;;  %760 = vrot.lane.b32.xlu0 %v3203_v30, %s2797_s3 }
 0x329   :  { %v1287_v4 = vmul.f32 0.5, %v1286_v25 }
 0x32a   :  { %1634 = vrot.lane.b32.xlu1 %v3287_v5, %s2797_s3 }
 0x32c   :  { %v707_v9 = vpop.permute.xlu0 %706 }
 0x32e   :  { %880 = vmatpush.bf16.xpose.msrb.mxu0 %v868_v18  ;;  %v1288_v18 = vsub.f32 1.5, %v1287_v4 }
 0x330   :  { %1710 = vrot.lane.b32.xlu2 %v3287_v5, %s2800_s11  ;;  %1064 = vrot.lane.b32.xlu0 %v3203_v30, %s2799_s27  ;;  %v1289_v12 = vmul.f32 %v2667_v53, %v1288_v18 }
 0x334   :  { %v859_v17 = vpop.permute.xlu0 %858 }
 0x335   :  { %v3301_v11 = vpop.f32.mrf.mxu3  ;;  %2405 = vmatmul.msk.bf16.vlgmr.msra.gmra.mxu0 %vm557_vm11, %v707_v9 }
 0x336   :  { %1031 = vmatpush.bf16.xpose.msra.mxu0 %v1023_v10  ;;  %v581_v33 = vsel %vm580_vm12, %v3301_v11, -inf }
 0x338   :  { %1786 = vrot.lane.b32.xlu2 %v3287_v5, %s2798_s26  ;;  %934 = vrot.lane.b32.xlu0 %v3224_v43, %s2801_s0  ;;  %v2448_v43 = vor.u32 %v2564_v40, %v2447_v36 }
 0x33d   :  { %v578_v14 = vpop.f32.mrf.mxu3 }
 0x33e   :  { %1032 = vmatpush.bf16.xpose.msra.mxu0 %v1020_v13 }
 0x345   :  { %2409 = vmatmul.msk.bf16.vlgmr.msrb.gmra.mxu0 %vm557_vm11, %v859_v17 }
 0x346   :  { %1446 = vmatpush.bf16.msrb.mxu0 %v2480_v16 }
 0x34a   :  { %1447 = vmatpush.bf16.msrb.mxu0 %v2472_v26 }
 0x34e   :  { %1448 = vmatpush.bf16.msrb.mxu0 %v2464_v34 }
 0x352   :  { %1449 = vmatpush.bf16.msrb.mxu0 %v2456_v32 }
 0x353   :  { %v1273_v31 = vpop.xlane.xlu2 %1272 }
 0x354   :  { %582 = vmax.xlane.f32.xlu1 %v581_v33  ;;  %v1278_v39 = vmul.f32 %v1273_v31, %v2928_v21 }
 0x355   :  { %2413 = vmatmul.msk.bf16.vlgmr.msra.gmra.mxu0 %vm557_vm11, %v1011_v22  ;;  %v1293_v22 = vsel %vm1292_vm15, %v2667_v53, %v1289_v12 }
 0x356   :  { %1450 = vmatpush.bf16.msrb.mxu0 %v2448_v43  ;;  %v3366_v63 = vadd.f32 1e-05, %v1278_v39  ;;  %v1324_v28 = vmul.f32 %v1293_v22, %v3213_v37  ;;  %v2644_v37 = vld [vmem:[%s3914_s9] ss:$0 sm:$0xff] }
 0x358   :  { %v1331_v36 = vmul.f32 %v2643_v29, %v1324_v28  ;;  %vm1310_vm7 = vweird.f32 %v3366_v63 }
 0x35a   :  { %1451 = vmatpush.bf16.msrb.mxu0 %v2440_v46  ;;  %v1338_v45 = vadd.f32 %v2644_v37, %v1331_v36 }
 0x35b   :  { %v3344_v42 = vpop.permute.xlu2 %684 }
 0x35e   :  { %1452 = vmatpush.bf16.msrb.mxu0 %v2432_v52 }
 0x35f   :  { %v1275_v47 = vpop.xlane.xlu0 %1274 }
 0x360   :  { %v1279_v54 = vmul.f32 %v1275_v47, %v2928_v21 }
 0x362   :  { %v1283_v2 = vadd.f32 1e-05, %v1279_v54  ;;  %1453 = vmatpush.bf16.msrb.mxu0 %v2424_v59 }
 0x363   :  { %v763_v50 = vpop.permute.xlu2 %762 }
 0x364   :  { %775 = vmatpush.bf16.msrb.mxu1 %v763_v50  ;;  %2668 = vrsqrt.f32 %v1283_v2  ;;  %vm1320_vm5 = vweird.f32 %v1283_v2 }
 0x365   :  { %2670 = vrsqrt.f32 %v3366_v63 }
 0x36a   :  { %v2669_v8 = vpop.eup %2668 }
 0x36b   :  { %v2671_v6 = vpop.eup %2670  ;;  %v1315_v9 = vmul.f32 %v2669_v8, %v1283_v2  ;;  %vm1321_vm3 = vweird.f32 %v2669_v8 }
 0x36c   :  { %v1271_v0 = vpop.xlane.xlu1 %1270  ;;  %v1305_v13 = vmul.f32 %v2671_v6, %v3366_v63  ;;  %vm1311_vm4 = vweird.f32 %v2671_v6  ;;  %vm1322_vm6 = vmor %vm1320_vm5, %vm1321_vm3 }
 0x36d   :  { %v1277_v1 = vmul.f32 %v1271_v0, %v2928_v21  ;;  %1862 = vrot.lane.b32.xlu1 %v3287_v5, %s2801_s0  ;;  %v1316_v17 = vmul.f32 %v2669_v8, %v1315_v9  ;;  %vm1312_vm8 = vmor %vm1310_vm7, %vm1311_vm4 }
 0x36e   :  { %v1306_v16 = vmul.f32 %v2671_v6, %v1305_v13 }
 0x36f   :  { %v1281_v3 = vadd.f32 1e-05, %v1277_v1  ;;  %v1317_v24 = vmul.f32 0.5, %v1316_v17 }
 0x370   :  { %v1307_v31 = vmul.f32 0.5, %v1306_v16 }
 0x371   :  { %2672 = vrsqrt.f32 %v1281_v3  ;;  %vm1300_vm1 = vweird.f32 %v1281_v3  ;;  %v1318_v34 = vsub.f32 1.5, %v1317_v24 }
 0x372   :  { %v3372_v7 = vpop.permute.xlu0 %786  ;;  %v1308_v40 = vsub.f32 1.5, %v1307_v31 }
 0x373   :  { %v1319_v44 = vmul.f32 %v2669_v8, %v1318_v34 }
 0x374   :  { %v1309_v47 = vmul.f32 %v2671_v6, %v1308_v40 }
 0x375   :  { %v1323_v49 = vsel %vm1322_vm6, %v2669_v8, %v1319_v44 }
 0x376   :  { %v1313_v52 = vsel %vm1312_vm8, %v2671_v6, %v1309_v47  ;;  %v1327_v53 = vmul.f32 %v1323_v49, %v3247_v55  ;;  %v913_v55 = vpop.permute.xlu2 %912 }
 0x377   :  { %v2673_v10 = vpop.eup %2672  ;;  %v1326_v54 = vmul.f32 %v1313_v52, %v3241_v51 }
 0x378   :  { %v1295_v14 = vmul.f32 %v2673_v10, %v1281_v3  ;;  %vm1301_vm0 = vweird.f32 %v2673_v10  ;;  %v1334_v58 = vmul.f32 %v2643_v29, %v1327_v53 }
 0x379   :  { %vm1302_vm2 = vmor %vm1300_vm1, %vm1301_vm0  ;;  %v1333_v39 = vmul.f32 %v2643_v29, %v1326_v54 }
 0x37a   :  { %v1296_v19 = vmul.f32 %v2673_v10, %v1295_v14  ;;  %v3375_v20 = vpop.permute.xlu0 %784  ;;  %v1341_v61 = vadd.f32 %v2644_v37, %v1334_v58 }
 0x37b   :  { %v1340_v2 = vadd.f32 %v2644_v37, %v1333_v39 }
 0x37c   :  { %v1297_v23 = vmul.f32 0.5, %v1296_v19 }
 0x37d   :  { %v3395_v63 = vpack.c.bf16 %v1341_v61, %v1340_v2 }
 0x37e   :  { %v1298_v26 = vsub.f32 1.5, %v1297_v23  ;;  %v3402_v8 = vpop.permute.xlu2 %1066 }
 0x380   :  { %v1299_v33 = vmul.f32 %v2673_v10, %v1298_v26 }
 0x382   :  { %v1303_v15 = vsel %vm1302_vm2, %v2673_v10, %v1299_v33  ;;  %v939_v35 = vpop.permute.xlu0 %938 }
 0x383   :  { %v1325_v38 = vmul.f32 %v1303_v15, %v3252_v60  ;;  %v947_v32 = vsel %vm557_vm11, %v939_v35, 0 }
 0x384   :  { %v687_v41 = vpop.permute.xlu1 %686  ;;  %955 = vmatpush.bf16.xpose.msrb.mxu2 %v947_v32 }
 0x385   :  { %699 = vmatpush.bf16.msra.mxu3 %v687_v41  ;;  %v1332_v43 = vmul.f32 %v2643_v29, %v1325_v38 }
 0x386   :  { %v3405_v9 = vpop.permute.xlu2 %782 }
 0x387   :  { %v1339_v46 = vadd.f32 %v2644_v37, %v1332_v43 }
 0x389   :  { %700 = vmatpush.bf16.msra.mxu3 %v3344_v42  ;;  %v3387_v60 = vpack.c.bf16 %v1339_v46, %v1338_v45 }
 0x38a   :  { %v937_v48 = vpop.permute.xlu0 %936 }
 0x38b   :  { %1454 = vmatmul.bf16.vlgmr.msrb.gmra.mxu0 %v3387_v60  ;;  %v944_v50 = vsel %vm557_vm11, %v937_v48, 0 }
 0x38c   :  { %956 = vmatpush.bf16.xpose.msrb.mxu2 %v944_v50  ;;  %v1089_v56 = vpop.permute.xlu1 %1088 }
 0x38d   :  { %v1096_v0 = vsel %vm557_vm11, %v1089_v56, 0 }
 0x38e   :  { %v1087_v13 = vpop.permute.xlu2 %1086 }
 0x392   :  { %v1091_v42 = vpop.permute.xlu0 %1090 }
 0x393   :  { %v1099_v59 = vsel %vm557_vm11, %v1091_v42, 0 }
 0x394   :  { %1107 = vmatpush.bf16.xpose.msra.mxu2 %v1099_v59  ;;  %v915_v1 = vpop.permute.xlu1 %914 }
 0x39a   :  { %v761_v25 = vpop.permute.xlu0 %760 }
 0x39b   :  { %776 = vmatpush.bf16.msrb.mxu1 %v761_v25  ;;  %1459 = vmatmul.bf16.gmra.mxu0 %v3395_v63 }
 0x39c   :  { %1108 = vmatpush.bf16.xpose.msra.mxu2 %v1096_v0  ;;  %v3412_v17 = vpop.permute.xlu1 %1634  ;;  %v3469_v0 = vpop.permute.xlu2 %1554 }
 0x39f   :  { %927 = vmatpush.bf16.msra.mxu1 %v915_v1 }
 0x3a2   :  { %v652_v51 = vpop.f32.mrf.mxu0  ;;  %v3399_v3 = vpop.permute.xlu0 %1064 }
 0x3a3   :  { %928 = vmatpush.bf16.msra.mxu1 %v913_v55  ;;  %v656_v4 = vsel %vm580_vm12, %v652_v51, -inf }
 0x3a4   :  { %657 = vmax.xlane.f32.xlu0 %v656_v4 }
 0x3aa   :  { %v654_v18 = vpop.f32.mrf.mxu0  ;;  %v935_v6 = vpop.permute.xlu0 %934 }
 0x3ab   :  { %2411 = vmatmul.msk.bf16.vlgmr.msrb.gmra.mxu2 %vm557_vm11, %v935_v6 }
 0x3b2   :  { %v3407_v10 = vpop.f32.mrf.mxu0 }
 0x3b3   :  { %v734_v12 = vsel %vm580_vm12, %v3407_v10, -inf }
 0x3b4   :  { %735 = vmax.xlane.f32.xlu1 %v734_v12 }
 0x3ba   :  { %v732_v14 = vpop.f32.mrf.mxu0 }
 0x3bb   :  { %2415 = vmatmul.msk.bf16.vlgmr.msra.gmra.mxu2 %vm557_vm11, %v1087_v13  ;;  %v3476_v13 = vpop.permute.xlu2 %1710 }
 0x3c2   :  { %v3414_v19 = vpop.f32.mrf.mxu0 }
 0x3c3   :  { %v886_v22 = vsel %vm580_vm12, %v3414_v19, -inf }
 0x3c4   :  { %887 = vmax.xlane.f32.xlu2 %v886_v22 }
 0x3c7   :  { %v583_v16 = vpop.xlane.xlu1 %582 }
 0x3c8   :  { %v584_v23 = vsub.f32 %v3301_v11, %v583_v16  ;;  %v3430_v11 = vld [vmem:[%s3918_s13] sm:$0x3] }
 0x3c9   :  { %v1362_v35 = vperm.slane %v3430_v11, 0 }
 0x3ca   :  { %v585_v24 = vmul.f32 1.442695, %v584_v23  ;;  %v884_v26 = vpop.f32.mrf.mxu0 }
 0x3cc   :  { %2674 = vpow2.f32 %v585_v24 }
 0x3d2   :  { %v3419_v28 = vpop.eup %2674  ;;  %v3421_v29 = vpop.f32.mrf.mxu0 }
 0x3d3   :  { %v587_v31 = vsel %vm580_vm12, %v3419_v28, 0.0  ;;  %v1038_v33 = vsel %vm580_vm12, %v3421_v29, -inf }
 0x3d4   :  { %588 = vadd.xlane.f32.xlu1 %v587_v31  ;;  %1039 = vmax.xlane.f32.xlu0 %v1038_v33  ;;  %v795_v31 = vsel %vm557_vm11, %v3372_v7, 0  ;;  %v792_v33 = vsel %vm557_vm11, %v3375_v20, 0 }
 0x3da   :  { %v1036_v34 = vpop.f32.mrf.mxu0 }
 0x3df   :  { %v3458_v54 = vpop.permute.xlu1 %1862 }
 0x408   :  { %v1455_v15 = vpop.f32.mrf.mxu0 }
 0x409   :  { %v1456_v32 = vadd.f32 %v1455_v15, %v1362_v35 }
 0x410   :  { %v1457_v38 = vpop.f32.mrf.mxu0 }
 0x411   :  { %v1458_v36 = vadd.f32 %v1457_v38, %v1362_v35 }
 0x413   :  { %v3433_v37 = vpack.c.bf16 %v1458_v36, %v1456_v32 }
 0x415   :  { %1940 = vrot.lane.b32.xlu0 %v3433_v37, %s2799_s27  ;;  %1712 = vrot.lane.b32.xlu1 %v3433_v37, %s2800_s11  ;;  %v1491_v49 = vsel %vm557_vm11, %v3433_v37, 0 }
 0x416   :  { %1558 = vrot.lane.b32.xlu2 %v3433_v37, %s2796_s25 }
 0x417   :  { %v658_v47 = vpop.xlane.xlu0 %657 }
 0x418   :  { %v1460_v40 = vpop.f32.mrf.mxu0  ;;  %v659_v48 = vsub.f32 %v652_v51, %v658_v47 }
 0x419   :  { %v1461_v43 = vadd.f32 %v1460_v40, %v1362_v35 }
 0x41a   :  { %v660_v52 = vmul.f32 1.442695, %v659_v48 }
 0x41c   :  { %2676 = vpow2.f32 %v660_v52 }
 0x41d   :  { %1788 = vrot.lane.b32.xlu1 %v3433_v37, %s2798_s26 }
 0x41e   :  { %1636 = vrot.lane.b32.xlu2 %v3433_v37, %s2797_s3 }
 0x420   :  { %v1462_v41 = vpop.f32.mrf.mxu0 }
 0x421   :  { %v1463_v44 = vadd.f32 %v1462_v41, %v1362_v35 }
 0x422   :  { %v3460_v56 = vpop.eup %2676 }
 0x423   :  { %v1486_v45 = vpack.c.bf16 %v1463_v44, %v1461_v43  ;;  %v662_v42 = vsel %vm580_vm12, %v3460_v56, 0.0 }
 0x425   :  { %1866 = vrot.lane.b32.xlu1 %v1486_v45, %s2801_s0  ;;  %v1494_v46 = vsel %vm557_vm11, %v1486_v45, 0 }
 0x426   :  { %1864 = vrot.lane.b32.xlu2 %v3433_v37, %s2801_s0  ;;  %1502 = vmatpush.bf16.xpose.msrb.mxu2 %v1494_v46 }
 0x427   :  { %v736_v59 = vpop.xlane.xlu1 %735 }
 0x428   :  { %v737_v39 = vsub.f32 %v3407_v10, %v736_v59 }
 0x42a   :  { %v738_v25 = vmul.f32 1.442695, %v737_v39 }
 0x42d   :  { %1942 = vrot.lane.b32.xlu1 %v1486_v45, %s2799_s27 }
 0x42e   :  { %1560 = vrot.lane.b32.xlu2 %v1486_v45, %s2796_s25  ;;  %v3453_v50 = vpop.f32.mrf.mxu2  ;;  %1503 = vmatpush.bf16.xpose.msrb.mxu2 %v1491_v49 }
 0x435   :  { %2485 = vmatmul.msk.bf16.vlgmr.msrb.gmra.mxu2 %vm557_vm11, %v3287_v5 }
 0x436   :  { %1638 = vrot.lane.b32.xlu2 %v1486_v45, %s2797_s3  ;;  %v960_v53 = vpop.f32.mrf.mxu2 }
 0x43e   :  { %1714 = vrot.lane.b32.xlu2 %v1486_v45, %s2800_s11  ;;  %v3463_v58 = vpop.f32.mrf.mxu2 }
 0x43f   :  { %663 = vadd.xlane.f32.xlu0 %v662_v42  ;;  %v962_v42 = vsel %vm580_vm12, %v3453_v50, -inf }
 0x446   :  { %1790 = vrot.lane.b32.xlu2 %v1486_v45, %s2798_s26  ;;  %v1112_v61 = vpop.f32.mrf.mxu2 }
 0x447   :  { %v589_v2 = vpop.xlane.xlu1 %588  ;;  %v1040_v35 = vpop.xlane.xlu0 %1039 }
 0x448   :  { %2678 = vrcp.f32 %v589_v2  ;;  %v601_v4 = vand.u32 2147483648, %v589_v2  ;;  %v599_v10 = vand.u32 2147483647, %v589_v2  ;;  %vm595_vm10 = vweird.f32 %v589_v2 }
 0x449   :  { %2680 = vpow2.f32 %v738_v25  ;;  %v1041_v7 = vsub.f32 %v3421_v29, %v1040_v35 }
 0x44a   :  { %v602_v14 = vor.u32 1.1754944e-38, %v601_v4  ;;  %vm600_vm14 = vcmp.eq.f32.partialorder %v599_v10, 8.507059e+37 }
 0x44b   :  { %v1042_v32 = vmul.f32 1.442695, %v1041_v7 }
 0x44e   :  { %v2679_v1 = vpop.eup %2678  ;;  %2018 = vrot.lane.b32.xlu2 %v1486_v45, %s2802_s30 }
 0x44f   :  { %v591_v55 = vmul.f32 %v2679_v1, %v589_v2  ;;  %v3472_v18 = vpop.eup %2680  ;;  %vm596_vm9 = vweird.f32 %v2679_v1 }
 0x450   :  { %vm597_vm13 = vmor %vm595_vm10, %vm596_vm9  ;;  %v740_v22 = vsel %vm580_vm12, %v3472_v18, 0.0 }
 0x451   :  { %v592_v51 = vsub.f32 1.0, %v591_v55 }
 0x453   :  { %v593_v6 = vmul.f32 %v2679_v1, %v592_v51  ;;  %1938 = vrot.lane.b32.xlu0 %v3287_v5, %s2799_s27 }
 0x455   :  { %v594_v12 = vadd.f32 %v2679_v1, %v593_v6 }
 0x456   :  { %2014 = vrot.lane.b32.xlu2 %v3287_v5, %s2802_s30  ;;  %v3490_v5 = vpop.permute.xlu2 %1786 }
 0x457   :  { %v598_v16 = vsel %vm597_vm13, %v2679_v1, %v594_v12  ;;  %741 = vadd.xlane.f32.xlu1 %v740_v22 }
 0x458   :  { %v603_v23 = vsel %vm600_vm14, %v602_v14, %v598_v16 }
 0x459   :  { %v3483_v24 = vmul.f32 %v3419_v28, %v603_v23 }
 0x45b   :  { %v606_v26 = vpack.c.bf16 %v3483_v24, %v3483_v24 }
 0x45d   :  { %2402 = vmatmul.msk.bf16.vlgmr.msrb.gmra.mxu3 %vm580_vm12, %v606_v26 }
 0x45e   :  { %803 = vmatpush.bf16.xpose.msrb.mxu3 %v795_v31  ;;  %v888_v34 = vpop.xlane.xlu2 %887 }
 0x45f   :  { %v889_v15 = vsub.f32 %v3414_v19, %v888_v34  ;;  %v1114_v19 = vsel %vm580_vm12, %v3463_v58, -inf }
 0x461   :  { %v890_v28 = vmul.f32 1.442695, %v889_v15 }
 0x463   :  { %2682 = vpow2.f32 %v890_v28 }
 0x464   :  { %2684 = vpow2.f32 %v1042_v32 }
 0x466   :  { %804 = vmatpush.bf16.xpose.msrb.mxu3 %v792_v33 }
 0x469   :  { %v3498_v40 = vpop.eup %2682 }
 0x46a   :  { %v892_v20 = vsel %vm580_vm12, %v3498_v40, 0.0  ;;  %v3504_v43 = vpop.eup %2684 }
 0x470   :  { %v1559_v38 = vpop.permute.xlu2 %1558  ;;  %2016 = vrot.lane.b32.xlu1 %v3433_v37, %s2802_s30  ;;  %v1044_v37 = vsel %vm580_vm12, %v3504_v43, 0.0 }
 0x471   :  { %v1566_v47 = vsel %vm557_vm11, %v1559_v38, 0 }
 0x478   :  { %v1637_v36 = vpop.permute.xlu2 %1636 }
 0x479   :  { %v1644_v59 = vsel %vm557_vm11, %v1637_v36, 0 }
 0x47d   :  { %893 = vadd.xlane.f32.xlu0 %v892_v20 }
 0x47f   :  { %1115 = vmax.xlane.f32.xlu2 %v1114_v19 }
 0x480   :  { %v1865_v41 = vpop.permute.xlu2 %1864 }
 0x481   :  { %v1872_v4 = vsel %vm557_vm11, %v1865_v41, 0 }
 0x485   :  { %1045 = vadd.xlane.f32.xlu0 %v1044_v37 }
 0x487   :  { %v1713_v44 = vpop.permute.xlu1 %1712  ;;  %v1941_v6 = vpop.permute.xlu0 %1940 }
 0x488   :  { %v1561_v29 = vpop.permute.xlu2 %1560  ;;  %v1720_v2 = vsel %vm557_vm11, %v1713_v44, 0  ;;  %v1948_v14 = vsel %vm557_vm11, %v1941_v6, 0 }
 0x489   :  { %v1569_v45 = vsel %vm557_vm11, %v1561_v29, 0 }
 0x48a   :  { %1577 = vmatpush.bf16.xpose.msra.mxu2 %v1569_v45 }
 0x48f   :  { %v1789_v49 = vpop.permute.xlu1 %1788 }
 0x490   :  { %v1639_v46 = vpop.permute.xlu2 %1638  ;;  %v1796_v51 = vsel %vm557_vm11, %v1789_v49, 0 }
 0x491   :  { %v1647_v48 = vsel %vm557_vm11, %v1639_v46, 0 }
 0x492   :  { %1578 = vmatpush.bf16.xpose.msra.mxu2 %v1566_v47 }
 0x497   :  { %836 = vrot.lane.b32.xlu2 %v3203_v30, %s2800_s11  ;;  %v1867_v39 = vpop.permute.xlu1 %1866 }
 0x498   :  { %v1715_v52 = vpop.permute.xlu2 %1714 }
 0x499   :  { %v1723_v53 = vsel %vm557_vm11, %v1715_v52, 0  ;;  %2487 = vmatmul.msk.bf16.vlgmr.msra.gmra.mxu2 %vm557_vm11, %v3469_v0  ;;  %838 = vrot.lane.b32.xlu0 %v3196_v27, %s2800_s11  ;;  %v1875_v0 = vsel %vm557_vm11, %v1867_v39, 0 }
 0x49a   :  { %1655 = vmatpush.bf16.xpose.msrb.mxu2 %v1647_v48  ;;  %1731 = vmatpush.bf16.xpose.msra.mxu0 %v1723_v53 }
 0x49b   :  { %963 = vmax.xlane.f32.xlu1 %v962_v42 }
 0x49f   :  { %988 = vrot.lane.b32.xlu2 %v3203_v30, %s2801_s0  ;;  %v1943_v1 = vpop.permute.xlu1 %1942 }
 0x4a0   :  { %v1791_v61 = vpop.permute.xlu2 %1790  ;;  %v1951_v10 = vsel %vm557_vm11, %v1943_v1, 0 }
 0x4a1   :  { %v1799_v25 = vsel %vm557_vm11, %v1791_v61, 0 }
 0x4a2   :  { %1656 = vmatpush.bf16.xpose.msrb.mxu2 %v1644_v59  ;;  %1732 = vmatpush.bf16.xpose.msra.mxu0 %v1720_v2 }
 0x4a8   :  { %v2019_v55 = vpop.permute.xlu2 %2018 }
 0x4a9   :  { %2489 = vmatmul.msk.bf16.vlgmr.msrb.gmra.mxu2 %vm557_vm11, %v3412_v17  ;;  %2491 = vmatmul.msk.bf16.vlgmr.msra.gmra.mxu0 %vm557_vm11, %v3476_v13  ;;  %v2027_v12 = vsel %vm557_vm11, %v2019_v55, 0 }
 0x4aa   :  { %1807 = vmatpush.bf16.xpose.msra.mxu2 %v1799_v25  ;;  %1883 = vmatpush.bf16.xpose.msrb.mxu0 %v1875_v0 }
 0x4b0   :  { %v2015_v39 = vpop.permute.xlu2 %2014 }
 0x4b2   :  { %1808 = vmatpush.bf16.xpose.msra.mxu2 %v1796_v51  ;;  %1884 = vmatpush.bf16.xpose.msrb.mxu0 %v1872_v4  ;;  %v664_v22 = vpop.xlane.xlu0 %663 }
 0x4b3   :  { %2686 = vrcp.f32 %v664_v22  ;;  %v676_v26 = vand.u32 2147483648, %v664_v22  ;;  %v674_v33 = vand.u32 2147483647, %v664_v22  ;;  %vm670_vm0 = vweird.f32 %v664_v22 }
 0x4b5   :  { %v677_v28 = vor.u32 1.1754944e-38, %v676_v26  ;;  %vm675_vm2 = vcmp.eq.f32.partialorder %v674_v33, 8.507059e+37 }
 0x4b8   :  { %v3535_v17 = vpop.f32.mrf.mxu2 }
 0x4b9   :  { %v2687_v16 = vpop.eup %2686  ;;  %2493 = vmatmul.msk.bf16.vlgmr.msra.gmra.mxu2 %vm557_vm11, %v3490_v5  ;;  %2495 = vmatmul.msk.bf16.vlgmr.msrb.gmra.mxu0 %vm557_vm11, %v3458_v54 }
 0x4ba   :  { %1959 = vmatpush.bf16.xpose.msrb.mxu2 %v1951_v10  ;;  %2035 = vmatpush.bf16.xpose.msra.mxu0 %v2027_v12  ;;  %v666_v13 = vmul.f32 %v2687_v16, %v664_v22  ;;  %vm671_vm15 = vweird.f32 %v2687_v16 }
 0x4bb   :  { %vm672_vm1 = vmor %vm670_vm0, %vm671_vm15 }
 0x4bc   :  { %v667_v23 = vsub.f32 1.0, %v666_v13  ;;  %v2481_v13 = vld [vmem:[%s3917_s12 + $0x78] sm:$0xf0] }
 0x4be   :  { %v668_v31 = vmul.f32 %v2687_v16, %v667_v23 }
 0x4c0   :  { %v669_v34 = vadd.f32 %v2687_v16, %v668_v31  ;;  %v1507_v15 = vpop.f32.mrf.mxu2 }
 0x4c2   :  { %1960 = vmatpush.bf16.xpose.msrb.mxu2 %v1948_v14  ;;  %v673_v35 = vsel %vm672_vm1, %v2687_v16, %v669_v34  ;;  %v2571_v16 = vld [vmem:[%s3917_s12 + $0x74] sm:$0xf] }
 0x4c3   :  { %v678_v38 = vsel %vm675_vm2, %v677_v28, %v673_v35  ;;  %v2484_v33 = vor.u32 %v2571_v16, %v2481_v13  ;;  %v2569_v28 = vld [vmem:[%s3917_s12 + $0x64] sm:$0xf]  ;;  %v2473_v35 = vld [vmem:[%s3917_s12 + $0x68] sm:$0xf0] }
 0x4c4   :  { %v679_v7 = vmul.f32 %v3460_v56, %v678_v38 }
 0x4c5   :  { %v1939_v32 = vpop.permute.xlu0 %1938 }
 0x4c6   :  { %v681_v5 = vpack.c.bf16 %v679_v7, %v679_v7  ;;  %v680_v47 = vadd.f32 %v679_v7, %v3483_v24  ;;  %v2476_v7 = vor.u32 %v2569_v28, %v2473_v35 }
 0x4c8   :  { %2404 = vmatmul.msk.bf16.vlgmr.msra.gmra.mxu3 %vm580_vm12, %v681_v5 }
 0x4c9   :  { %2497 = vmatmul.msk.bf16.vlgmr.msrb.gmra.mxu2 %vm557_vm11, %v1939_v32  ;;  %v2567_v32 = vld [vmem:[%s3917_s12 + $0x54] sm:$0xf] }
 0x4ca   :  { %v742_v54 = vpop.xlane.xlu1 %741 }
 0x4cb   :  { %2688 = vrcp.f32 %v742_v54  ;;  %v754_v41 = vand.u32 2147483648, %v742_v54  ;;  %v752_v29 = vand.u32 2147483647, %v742_v54  ;;  %vm748_vm4 = vweird.f32 %v742_v54 }
 0x4cd   :  { %v755_v56 = vor.u32 1.1754944e-38, %v754_v41  ;;  %vm753_vm6 = vcmp.eq.f32.partialorder %v752_v29, 8.507059e+37  ;;  %v2457_v29 = vld [vmem:[%s3917_s12 + $0x48] sm:$0xf0] }
 0x4d1   :  { %v2689_v36 = vpop.eup %2688 }
 0x4d2   :  { %v744_v20 = vmul.f32 %v2689_v36, %v742_v54  ;;  %vm749_vm3 = vweird.f32 %v2689_v36  ;;  %v2465_v54 = vld [vmem:[%s3917_s12 + $0x58] sm:$0xf0] }
 0x4d3   :  { %vm750_vm5 = vmor %vm748_vm4, %vm749_vm3  ;;  %v2468_v41 = vor.u32 %v2567_v32, %v2465_v54 }
 0x4d4   :  { %v745_v19 = vsub.f32 1.0, %v744_v20 }
 0x4d6   :  { %v746_v37 = vmul.f32 %v2689_v36, %v745_v19 }
 0x4d8   :  { %v747_v44 = vadd.f32 %v2689_v36, %v746_v37  ;;  %2407 = vmatmul.msk.bf16.vlgmr.msrb.gmra.mxu3 %vm557_vm11, %v3405_v9  ;;  %v2565_v37 = vld [vmem:[%s3917_s12 + $0x44] sm:$0xf] }
 0x4da   :  { %v751_v45 = vsel %vm750_vm5, %v2689_v36, %v747_v44 }
 0x4db   :  { %v756_v46 = vsel %vm753_vm6, %v755_v56, %v751_v45 }
 0x4dc   :  { %v757_v48 = vmul.f32 %v3472_v18, %v756_v46 }
 0x4de   :  { %v3548_v49 = vadd.f32 %v757_v48, %v680_v47  ;;  %v759_v52 = vpack.c.bf16 %v757_v48, %v757_v48  ;;  %v2460_v47 = vor.u32 %v2565_v37, %v2457_v29 }
 0x4e0   :  { %v3550_v53 = vpop.f32.mrf.mxu3  ;;  %2406 = vmatmul.msk.bf16.vlgmr.msrb.gmra.mxu1 %vm580_vm12, %v759_v52 }
 0x4e1   :  { %1079 = vmatpush.bf16.msrb.mxu1 %v3402_v8 }
 0x4e2   :  { %v2017_v42 = vpop.permute.xlu1 %2016 }
 0x4e3   :  { %v2024_v9 = vsel %vm557_vm11, %v2017_v42, 0  ;;  %v2563_v42 = vld [vmem:[%s3917_s12 + $0x34] sm:$0xf] }
 0x4e4   :  { %2036 = vmatpush.bf16.xpose.msra.mxu0 %v2024_v9  ;;  %v2449_v9 = vld [vmem:[%s3917_s12 + $0x38] sm:$0xf0] }
 0x4e5   :  { %1080 = vmatpush.bf16.msrb.mxu1 %v3399_v3 }
 0x4e8   :  { %v623_v59 = vpop.f32.mrf.mxu3 }
 0x4e9   :  { %v2561_v59 = vld [vmem:[%s3917_s12 + $0x24] sm:$0xf] }
 0x4eb   :  { %2499 = vmatmul.msk.bf16.vlgmr.msra.gmra.mxu0 %vm557_vm11, %v2015_v39  ;;  %v2441_v39 = vld [vmem:[%s3917_s12 + $0x28] sm:$0xf0] }
 0x4f0   :  { %v894_v18 = vpop.xlane.xlu0 %893 }
 0x4f1   :  { %2690 = vrcp.f32 %v894_v18  ;;  %v906_v55 = vand.u32 2147483648, %v894_v18  ;;  %v904_v3 = vand.u32 2147483647, %v894_v18  ;;  %vm900_vm8 = vweird.f32 %v894_v18 }
 0x4f2   :  { %v1116_v24 = vpop.xlane.xlu2 %1115 }
 0x4f3   :  { %v1117_v61 = vsub.f32 %v3463_v58, %v1116_v24  ;;  %v907_v58 = vor.u32 1.1754944e-38, %v906_v55  ;;  %vm905_vm10 = vcmp.eq.f32.partialorder %v904_v3, 8.507059e+37  ;;  %v2425_v55 = vld [vmem:[%s3917_s12 + $0x8] sm:$0xf0] }
 0x4f5   :  { %v1118_v2 = vmul.f32 1.442695, %v1117_v61  ;;  %v2559_v61 = vld [vmem:[%s3917_s12 + $0x14] sm:$0xf] }
 0x4f7   :  { %v2691_v25 = vpop.eup %2690  ;;  %2692 = vpow2.f32 %v1118_v2  ;;  %v2433_v2 = vld [vmem:[%s3917_s12 + $0x18] sm:$0xf0] }
 0x4f8   :  { %v896_v0 = vmul.f32 %v2691_v25, %v894_v18  ;;  %v1046_v8 = vpop.xlane.xlu0 %1045  ;;  %vm901_vm7 = vweird.f32 %v2691_v25  ;;  %v2444_v18 = vor.u32 %v2561_v59, %v2441_v39 }
 0x4f9   :  { %2694 = vrcp.f32 %v1046_v8  ;;  %vm902_vm9 = vmor %vm900_vm8, %vm901_vm7  ;;  %vm1052_vm14 = vweird.f32 %v1046_v8  ;;  %v1056_v5 = vand.u32 2147483647, %v1046_v8 }
 0x4fa   :  { %v897_v1 = vsub.f32 1.0, %v896_v0  ;;  %v837_v46 = vpop.permute.xlu2 %836  ;;  %v2436_v0 = vor.u32 %v2559_v61, %v2433_v2 }
 0x4fb   :  { %vm1057_vm0 = vcmp.eq.f32.partialorder %v1056_v5, 8.507059e+37 }
 0x4fc   :  { %v898_v51 = vmul.f32 %v2691_v25, %v897_v1  ;;  %v2557_v1 = vld [vmem:[%s3917_s12 + $0x4] sm:$0xf] }
 0x4fd   :  { %v3558_v4 = vpop.eup %2692 }
 0x4fe   :  { %v899_v6 = vadd.f32 %v2691_v25, %v898_v51  ;;  %v1120_v10 = vsel %vm580_vm12, %v3558_v4, 0.0  ;;  %v2428_v51 = vor.u32 %v2557_v1, %v2425_v55  ;;  %v1363_v1 = vperm.slane %v3430_v11, 1 }
 0x4ff   :  { %v2695_v12 = vpop.eup %2694  ;;  %1121 = vadd.xlane.f32.xlu0 %v1120_v10 }
 0x500   :  { %v903_v14 = vsel %vm902_vm9, %v2691_v25, %v899_v6  ;;  %v1048_v22 = vmul.f32 %v2695_v12, %v1046_v8  ;;  %vm1053_vm13 = vweird.f32 %v2695_v12 }
 0x501   :  { %v908_v23 = vsel %vm905_vm10, %v907_v58, %v903_v14  ;;  %vm1054_vm15 = vmor %vm1052_vm14, %vm1053_vm13 }
 0x502   :  { %v3569_v26 = vmul.f32 %v3498_v40, %v908_v23  ;;  %v1049_v31 = vsub.f32 1.0, %v1048_v22  ;;  %v1058_v40 = vand.u32 2147483648, %v1046_v8  ;;  %v989_v37 = vpop.permute.xlu2 %988 }
 0x504   :  { %v1050_v34 = vmul.f32 %v2695_v12, %v1049_v31  ;;  %v911_v15 = vpack.c.bf16 %v3569_v26, %v3569_v26  ;;  %v1059_v20 = vor.u32 1.1754944e-38, %v1058_v40 }
 0x506   :  { %v1051_v38 = vadd.f32 %v2695_v12, %v1050_v34  ;;  %2410 = vmatmul.msk.bf16.vlgmr.msra.gmra.mxu1 %vm580_vm12, %v911_v15 }
 0x507   :  { %1465 = vmatpush.bf16.msra.mxu1 %v2484_v33 }
 0x508   :  { %v1055_v36 = vsel %vm1054_vm15, %v2695_v12, %v1051_v38 }
 0x509   :  { %v1060_v44 = vsel %vm1057_vm0, %v1059_v20, %v1055_v36 }
 0x50a   :  { %v3594_v48 = vmul.f32 %v3504_v43, %v1060_v44 }
 0x50b   :  { %1466 = vmatpush.bf16.msra.mxu1 %v2476_v7  ;;  %v839_v19 = vpop.permute.xlu0 %838 }
 0x50c   :  { %851 = vmatpush.bf16.msra.mxu3 %v839_v19  ;;  %v1063_v43 = vpack.c.bf16 %v3594_v48, %v3594_v48 }
 0x50e   :  { %v964_v56 = vpop.xlane.xlu1 %963 }
 0x50f   :  { %v965_v45 = vsub.f32 %v3453_v50, %v964_v56  ;;  %1467 = vmatpush.bf16.msra.mxu1 %v2468_v41  ;;  %v2452_v50 = vor.u32 %v2563_v42, %v2449_v9 }
 0x510   :  { %852 = vmatpush.bf16.msra.mxu3 %v837_v46 }
 0x511   :  { %v966_v52 = vmul.f32 1.442695, %v965_v45 }
 0x513   :  { %2696 = vpow2.f32 %v966_v52  ;;  %1142 = vrot.lane.b32.xlu0 %v3196_v27, %s2802_s30  ;;  %1468 = vmatpush.bf16.msra.mxu1 %v2460_v47 }
 0x516   :  { %2414 = vmatmul.msk.bf16.vlgmr.msrb.gmra.mxu1 %vm580_vm12, %v1063_v43 }
 0x517   :  { %1469 = vmatpush.bf16.msra.mxu1 %v2452_v50 }
 0x519   :  { %v3613_v24 = vpop.eup %2696 }
 0x51a   :  { %v968_v25 = vsel %vm580_vm12, %v3613_v24, 0.0 }
 0x51b   :  { %969 = vadd.xlane.f32.xlu1 %v968_v25  ;;  %1470 = vmatpush.bf16.msra.mxu1 %v2444_v18 }
 0x51c   :  { %v1580_v8 = vpop.f32.mrf.mxu2 }
 0x51d   :  { %v1584_v14 = vsel %vm580_vm12, %v1580_v8, -inf }
 0x51f   :  { %1471 = vmatpush.bf16.msra.mxu1 %v2436_v0 }
 0x523   :  { %1472 = vmatpush.bf16.msra.mxu1 %v2428_v51 }
 0x524   :  { %v1582_v3 = vpop.f32.mrf.mxu2 }
 0x526   :  { %v3629_v6 = vpop.f32.mrf.mxu0  ;;  %1473 = vmatmul.bf16.vlgmr.msra.gmra.mxu1 %v3387_v60  ;;  %v1509_v60 = vsel %vm580_vm12, %v3535_v17, -inf }
 0x527   :  { %v1738_v10 = vsel %vm580_vm12, %v3629_v6, -inf }
 0x528   :  { %1739 = vmax.xlane.f32.xlu2 %v1738_v10 }
 0x52c   :  { %v3634_v12 = vpop.f32.mrf.mxu2 }
 0x52d   :  { %v1662_v35 = vsel %vm580_vm12, %v3634_v12, -inf }
 0x52e   :  { %v1736_v58 = vpop.f32.mrf.mxu0 }
 0x530   :  { %1585 = vmax.xlane.f32.xlu2 %v1584_v14 }
 0x534   :  { %990 = vrot.lane.b32.xlu1 %v3196_v27, %s2801_s0  ;;  %v1660_v22 = vpop.f32.mrf.mxu2 }
 0x536   :  { %v3639_v16 = vpop.f32.mrf.mxu0  ;;  %1478 = vmatmul.bf16.gmra.mxu1 %v3395_v63 }
 0x537   :  { %v1890_v54 = vsel %vm580_vm12, %v3639_v16, -inf }
 0x53c   :  { %v3642_v13 = vpop.f32.mrf.mxu2 }
 0x53d   :  { %1510 = vmax.xlane.f32.xlu0 %v1509_v60  ;;  %v1814_v7 = vsel %vm580_vm12, %v3642_v13, -inf }
 0x53e   :  { %v1888_v23 = vpop.f32.mrf.mxu0 }
 0x544   :  { %v1812_v31 = vpop.f32.mrf.mxu2 }
 0x54b   :  { %v3646_v33 = vpop.f32.mrf.mxu3 }
 0x54c   :  { %v3648_v34 = vpop.f32.mrf.mxu2 }
 0x553   :  { %v704_v15 = vpop.f32.mrf.mxu3 }
 0x554   :  { %v1964_v28 = vpop.f32.mrf.mxu2 }
 0x55b   :  { %v3650_v27 = vpop.f32.mrf.mxu3 }
 0x55c   :  { %v810_v63 = vsel %vm580_vm12, %v3650_v27, -inf }
 0x55d   :  { %v3656_v38 = vpop.f32.mrf.mxu1  ;;  %811 = vmax.xlane.f32.xlu0 %v810_v63 }
 0x55e   :  { %1663 = vmax.xlane.f32.xlu1 %v1662_v35 }
 0x563   :  { %v808_v40 = vpop.f32.mrf.mxu3 }
 0x565   :  { %v780_v5 = vpop.f32.mrf.mxu1 }
 0x566   :  { %1815 = vmax.xlane.f32.xlu1 %v1814_v7 }
 0x568   :  { %v3660_v32 = vpop.f32.mrf.mxu0 }
 0x569   :  { %v2042_v20 = vsel %vm580_vm12, %v3660_v32, -inf }
 0x56e   :  { %1891 = vmax.xlane.f32.xlu1 %v1890_v54 }
 0x570   :  { %v2040_v36 = vpop.f32.mrf.mxu0 }
 0x571   :  { %1140 = vrot.lane.b32.xlu0 %v3203_v30, %s2802_s30 }
 0x572   :  { %v3674_v46 = vpop.xlane.xlu0 %1121 }
 0x576   :  { %2043 = vmax.xlane.f32.xlu1 %v2042_v20 }
 0x583   :  { %v3668_v19 = vpop.f32.mrf.mxu1 }
 0x585   :  { %v3676_v50 = vpop.permute.xlu0 %1142 }
 0x58b   :  { %v932_v41 = vpop.f32.mrf.mxu1 }
 0x58e   :  { %v3672_v45 = vpop.xlane.xlu1 %969 }
 0x593   :  { %v3670_v29 = vpop.f32.mrf.mxu1 }
 0x59b   :  { %v1740_v44 = vpop.xlane.xlu2 %1739  ;;  %v1084_v56 = vpop.f32.mrf.mxu1 }
 0x59c   :  { %v1741_v20 = vsub.f32 %v3629_v6, %v1740_v44 }
 0x5a3   :  { %v1586_v47 = vpop.xlane.xlu2 %1585  ;;  %v1474_v52 = vpop.f32.mrf.mxu1 }
 0x5a4   :  { %v1587_v42 = vsub.f32 %v1580_v8, %v1586_v47  ;;  %v1475_v14 = vadd.f32 %v1474_v52, %v1363_v1 }
 0x5a6   :  { %v991_v30 = vpop.permute.xlu1 %990  ;;  %v1588_v9 = vmul.f32 1.442695, %v1587_v42 }
 0x5a7   :  { %1003 = vmatpush.bf16.msrb.mxu3 %v991_v30 }
 0x5a8   :  { %2698 = vpow2.f32 %v1588_v9 }
 0x5ab   :  { %1004 = vmatpush.bf16.msrb.mxu3 %v989_v37  ;;  %v1476_v43 = vpop.f32.mrf.mxu1  ;;  %v1742_v37 = vmul.f32 1.442695, %v1741_v20 }
 0x5ac   :  { %v1477_v58 = vadd.f32 %v1476_v43, %v1363_v1 }
 0x5ae   :  { %v3678_v59 = vpop.eup %2698  ;;  %v3694_v22 = vpack.c.bf16 %v1477_v58, %v1475_v14 }
 0x5af   :  { %v1590_v39 = vsel %vm580_vm12, %v3678_v59, 0.0 }
 0x5b0   :  { %1591 = vadd.xlane.f32.xlu0 %v1590_v39  ;;  %v1511_v18 = vpop.xlane.xlu0 %1510 }
 0x5b1   :  { %v1512_v61 = vsub.f32 %v3535_v17, %v1511_v18  ;;  %v1966_v17 = vsel %vm580_vm12, %v3648_v34, -inf }
 0x5b3   :  { %v1513_v2 = vmul.f32 1.442695, %v1512_v61  ;;  %v1479_v25 = vpop.f32.mrf.mxu1 }
 0x5b4   :  { %v1480_v3 = vadd.f32 %v1479_v25, %v1363_v1 }
 0x5b5   :  { %2700 = vpow2.f32 %v1513_v2 }
 0x5bb   :  { %v3683_v0 = vpop.eup %2700  ;;  %v1481_v8 = vpop.f32.mrf.mxu1 }
 0x5bc   :  { %v1515_v55 = vsel %vm580_vm12, %v3683_v0, 0.0  ;;  %v1482_v51 = vadd.f32 %v1481_v8, %v1363_v1 }
 0x5bd   :  { %1516 = vadd.xlane.f32.xlu2 %v1515_v55 }
 0x5be   :  { %v3688_v10 = vpack.c.bf16 %v1482_v51, %v1480_v3 }
 0x5c4   :  { %1690 = vrot.lane.b32.xlu0 %v3688_v10, %s2797_s3 }
 0x5c5   :  { %1967 = vmax.xlane.f32.xlu2 %v1966_v17 }
 0x5cc   :  { %1688 = vrot.lane.b32.xlu0 %v3694_v22, %s2797_s3 }
 0x5d0   :  { %v812_v60 = vpop.xlane.xlu0 %811 }
 0x5d1   :  { %v1664_v11 = vpop.xlane.xlu1 %1663  ;;  %v813_v15 = vsub.f32 %v3650_v27, %v812_v60 }
 0x5d2   :  { %v1665_v23 = vsub.f32 %v3634_v12, %v1664_v11 }
 0x5d3   :  { %v814_v28 = vmul.f32 1.442695, %v813_v15 }
 0x5d4   :  { %v1666_v31 = vmul.f32 1.442695, %v1665_v23 }
 0x5d6   :  { %2702 = vpow2.f32 %v1666_v31 }
 0x5d7   :  { %2704 = vpow2.f32 %v814_v28 }
 0x5d9   :  { %v1816_v35 = vpop.xlane.xlu1 %1815 }
 0x5da   :  { %v1817_v6 = vsub.f32 %v3642_v13, %v1816_v35 }
 0x5dc   :  { %v3700_v63 = vpop.eup %2702  ;;  %v1818_v44 = vmul.f32 1.442695, %v1817_v6 }
 0x5dd   :  { %v1668_v40 = vsel %vm580_vm12, %v3700_v63, 0.0  ;;  %1614 = vrot.lane.b32.xlu2 %v3688_v10, %s2796_s25  ;;  %v3706_v7 = vpop.eup %2704 }
 0x5de   :  { %1669 = vadd.xlane.f32.xlu1 %v1668_v40  ;;  %v816_v27 = vsel %vm580_vm12, %v3706_v7, 0.0 }
 0x5e1   :  { %v1892_v5 = vpop.xlane.xlu1 %1891 }
 0x5e2   :  { %v1893_v12 = vsub.f32 %v3639_v16, %v1892_v5 }
 0x5e3   :  { %v3729_v47 = vpop.permute.xlu0 %1140 }
 0x5e4   :  { %v1894_v54 = vmul.f32 1.442695, %v1893_v12 }
 0x5e6   :  { %817 = vadd.xlane.f32.xlu1 %v816_v27  ;;  %2706 = vpow2.f32 %v1894_v54 }
 0x5e7   :  { %2708 = vpow2.f32 %v1742_v37 }
 0x5e8   :  { %2710 = vpow2.f32 %v1818_v44 }
 0x5e9   :  { %v2044_v27 = vpop.xlane.xlu1 %2043 }
 0x5ec   :  { %v3711_v36 = vpop.eup %2706 }
 0x5ed   :  { %v1896_v41 = vsel %vm580_vm12, %v3711_v36, 0.0  ;;  %v3718_v16 = vpop.eup %2708 }
 0x5ee   :  { %v1744_v56 = vsel %vm580_vm12, %v3718_v16, 0.0  ;;  %v3735_v42 = vpop.eup %2710 }
 0x5ef   :  { %v1820_v13 = vsel %vm580_vm12, %v3735_v42, 0.0 }
 0x5f6   :  { %1897 = vadd.xlane.f32.xlu0 %v1896_v41 }
 0x5ff   :  { %1612 = vrot.lane.b32.xlu1 %v3694_v22, %s2796_s25 }
 0x606   :  { %1745 = vadd.xlane.f32.xlu2 %v1744_v56 }
 0x60a   :  { %1918 = vrot.lane.b32.xlu0 %v3688_v10, %s2801_s0 }
 0x612   :  { %1916 = vrot.lane.b32.xlu0 %v3694_v22, %s2801_s0 }
 0x61a   :  { %1994 = vrot.lane.b32.xlu0 %v3688_v10, %s2799_s27 }
 0x61e   :  { %1766 = vrot.lane.b32.xlu2 %v3688_v10, %s2800_s11 }
 0x622   :  { %2070 = vrot.lane.b32.xlu0 %v3688_v10, %s2802_s30 }
 0x623   :  { %v1592_v52 = vpop.xlane.xlu0 %1591 }
 0x624   :  { %2712 = vrcp.f32 %v1592_v52  ;;  %v1604_v8 = vand.u32 2147483648, %v1592_v52  ;;  %vm1598_vm2 = vweird.f32 %v1592_v52  ;;  %v1602_v1 = vand.u32 2147483647, %v1592_v52 }
 0x626   :  { %1842 = vrot.lane.b32.xlu2 %v3688_v10, %s2798_s26  ;;  %v1605_v11 = vor.u32 1.1754944e-38, %v1604_v8  ;;  %vm1603_vm5 = vcmp.eq.f32.partialorder %v1602_v1, 8.507059e+37 }
 0x629   :  { %1821 = vadd.xlane.f32.xlu1 %v1820_v13 }
 0x62a   :  { %v2713_v30 = vpop.eup %2712  ;;  %2068 = vrot.lane.b32.xlu0 %v3694_v22, %s2802_s30 }
 0x62b   :  { %v1594_v9 = vmul.f32 %v2713_v30, %v1592_v52  ;;  %vm1599_vm1 = vweird.f32 %v2713_v30 }
 0x62c   :  { %vm1600_vm3 = vmor %vm1598_vm2, %vm1599_vm1  ;;  %vm976_vm1 = vweird.f32 %v3672_v45 }
 0x62d   :  { %v1595_v43 = vsub.f32 1.0, %v1594_v9 }
 0x62f   :  { %v1596_v18 = vmul.f32 %v2713_v30, %v1595_v43 }
 0x630   :  { %v1517_v39 = vpop.xlane.xlu2 %1516 }
 0x631   :  { %2714 = vrcp.f32 %v1517_v39  ;;  %v1597_v2 = vadd.f32 %v2713_v30, %v1596_v18  ;;  %v1529_v3 = vand.u32 2147483648, %v1517_v39  ;;  %v1527_v14 = vand.u32 2147483647, %v1517_v39 }
 0x632   :  { %vm1523_vm6 = vweird.f32 %v1517_v39 }
 0x633   :  { %v1601_v17 = vsel %vm1600_vm3, %v2713_v30, %v1597_v2  ;;  %v1530_v15 = vor.u32 1.1754944e-38, %v1529_v3  ;;  %vm1528_vm8 = vcmp.eq.f32.partialorder %v1527_v14, 8.507059e+37 }
 0x634   :  { %v1606_v31 = vsel %vm1603_vm5, %v1605_v11, %v1601_v17 }
 0x635   :  { %v3747_v5 = vmul.f32 %v3678_v59, %v1606_v31 }
 0x637   :  { %v2715_v61 = vpop.eup %2714 }
 0x638   :  { %v1519_v25 = vmul.f32 %v2715_v61, %v1517_v39  ;;  %v1968_v51 = vpop.xlane.xlu2 %1967  ;;  %vm1524_vm4 = vweird.f32 %v2715_v61 }
 0x639   :  { %v1969_v60 = vsub.f32 %v3648_v34, %v1968_v51  ;;  %vm1525_vm7 = vmor %vm1523_vm6, %vm1524_vm4  ;;  %v2045_v51 = vsub.f32 %v3660_v32, %v2044_v27  ;;  %v982_v32 = vand.u32 2147483648, %v3672_v45 }
 0x63a   :  { %v1520_v55 = vsub.f32 1.0, %v1519_v25 }
 0x63b   :  { %v1970_v40 = vmul.f32 1.442695, %v1969_v60 }
 0x63c   :  { %v1521_v58 = vmul.f32 %v2715_v61, %v1520_v55 }
 0x63d   :  { %2716 = vpow2.f32 %v1970_v40 }
 0x63e   :  { %v1522_v23 = vadd.f32 %v2715_v61, %v1521_v58  ;;  %2718 = vrcp.f32 %v3672_v45 }
 0x640   :  { %v1526_v28 = vsel %vm1525_vm7, %v2715_v61, %v1522_v23  ;;  %vm1128_vm7 = vweird.f32 %v3674_v46 }
 0x641   :  { %v1531_v35 = vsel %vm1528_vm8, %v1530_v15, %v1526_v28  ;;  %v2046_v28 = vmul.f32 1.442695, %v2045_v51 }
 0x642   :  { %1764 = vrot.lane.b32.xlu1 %v3694_v22, %s2800_s11  ;;  %v3750_v12 = vmul.f32 %v3683_v0, %v1531_v35  ;;  %v980_v35 = vand.u32 2147483647, %v3672_v45 }
 0x643   :  { %v3756_v54 = vpop.eup %2716 }
 0x644   :  { %v1608_v34 = vadd.f32 %v3747_v5, %v3750_v12  ;;  %v1972_v20 = vsel %vm580_vm12, %v3756_v54, 0.0  ;;  %v2719_v0 = vpop.eup %2718  ;;  %vm981_vm8 = vcmp.eq.f32.partialorder %v980_v35, 8.507059e+37 }
 0x645   :  { %v972_v37 = vmul.f32 %v2719_v0, %v3672_v45  ;;  %vm977_vm15 = vweird.f32 %v2719_v0 }
 0x646   :  { %vm3777_vm2 = vmor %vm976_vm1, %vm977_vm15 }
 0x647   :  { %v973_v30 = vsub.f32 1.0, %v972_v37  ;;  %v983_v37 = vor.u32 1.1754944e-38, %v982_v32 }
 0x649   :  { %v974_v25 = vmul.f32 %v2719_v0, %v973_v30 }
 0x64a   :  { %1840 = vrot.lane.b32.xlu1 %v3694_v22, %s2798_s26 }
 0x64b   :  { %v975_v11 = vadd.f32 %v2719_v0, %v974_v25 }
 0x64f   :  { %1973 = vadd.xlane.f32.xlu2 %v1972_v20  ;;  %v979_v20 = vsel %vm3777_vm2, %v2719_v0, %v975_v11  ;;  %v1534_v11 = vpack.c.bf16 %v3750_v12, %v3750_v12 }
 0x651   :  { %v1670_v59 = vpop.xlane.xlu1 %1669 }
 0x652   :  { %2720 = vrcp.f32 %v1670_v59  ;;  %v1682_v9 = vand.u32 2147483648, %v1670_v59  ;;  %v1680_v39 = vand.u32 2147483647, %v1670_v59  ;;  %vm1676_vm10 = vweird.f32 %v1670_v59 }
 0x653   :  { %2722 = vrcp.f32 %v3674_v46 }
 0x654   :  { %v1683_v8 = vor.u32 1.1754944e-38, %v1682_v9  ;;  %vm1681_vm14 = vcmp.eq.f32.partialorder %v1680_v39, 8.507059e+37 }
 0x658   :  { %v2721_v41 = vpop.eup %2720 }
 0x659   :  { %v3763_v56 = vpop.eup %2722  ;;  %v1672_v6 = vmul.f32 %v2721_v41, %v1670_v59  ;;  %v818_v44 = vpop.xlane.xlu1 %817  ;;  %vm1677_vm9 = vweird.f32 %v2721_v41 }
 0x65a   :  { %2724 = vrcp.f32 %v818_v44  ;;  %v1124_v13 = vmul.f32 %v3763_v56, %v3674_v46  ;;  %vm1678_vm13 = vmor %vm1676_vm10, %vm1677_vm9  ;;  %v830_v60 = vand.u32 2147483648, %v818_v44  ;;  %v828_v15 = vand.u32 2147483647, %v818_v44 }
 0x65b   :  { %v1673_v52 = vsub.f32 1.0, %v1672_v6  ;;  %vm824_vm3 = vweird.f32 %v818_v44  ;;  %vm1129_vm4 = vweird.f32 %v3763_v56  ;;  %2726 = vpow2.f32 %v2046_v28 }
 0x65c   :  { %v1125_v2 = vsub.f32 1.0, %v1124_v13  ;;  %vm829_vm6 = vcmp.eq.f32.partialorder %v828_v15, 8.507059e+37  ;;  %v1132_v6 = vand.u32 2147483647, %v3674_v46  ;;  %vm1130_vm9 = vmor %vm1128_vm7, %vm1129_vm4 }
 0x65d   :  { %v1674_v43 = vmul.f32 %v2721_v41, %v1673_v52  ;;  %v984_v52 = vsel %vm981_vm8, %v983_v37, %v979_v20 }
 0x65e   :  { %v1126_v14 = vmul.f32 %v3763_v56, %v1125_v2  ;;  %vm1133_vm10 = vcmp.eq.f32.partialorder %v1132_v6, 8.507059e+37 }
 0x65f   :  { %v1675_v18 = vadd.f32 %v2721_v41, %v1674_v43  ;;  %v985_v43 = vmul.f32 %v3613_v24, %v984_v52 }
 0x660   :  { %v2725_v61 = vpop.eup %2724  ;;  %v1127_v27 = vadd.f32 %v3763_v56, %v1126_v14 }
 0x661   :  { %v1679_v1 = vsel %vm1678_vm13, %v2721_v41, %v1675_v18  ;;  %v820_v55 = vmul.f32 %v2725_v61, %v818_v44  ;;  %vm825_vm0 = vweird.f32 %v2725_v61  ;;  %v1134_v41 = vand.u32 2147483648, %v3674_v46  ;;  %v3799_v46 = vpop.eup %2726 }
 0x662   :  { %v1684_v3 = vsel %vm1681_vm14, %v1683_v8, %v1679_v1  ;;  %vm826_vm5 = vmor %vm824_vm3, %vm825_vm0  ;;  %v1131_v0 = vsel %vm1130_vm9, %v3763_v56, %v1127_v27  ;;  %v1691_v1 = vpop.permute.xlu0 %1690  ;;  %v1609_v27 = vpack.c.bf16 %v3747_v5, %v3747_v5 }
 0x663   :  { %v3769_v17 = vmul.f32 %v3700_v63, %v1684_v3  ;;  %v821_v58 = vsub.f32 1.0, %v820_v55  ;;  %v1135_v9 = vor.u32 1.1754944e-38, %v1134_v41 }
 0x665   :  { %v3773_v23 = vadd.f32 %v3769_v17, %v1608_v34  ;;  %v822_v31 = vmul.f32 %v2725_v61, %v821_v58  ;;  %v831_v34 = vor.u32 1.1754944e-38, %v830_v60 }
 0x667   :  { %v823_v40 = vadd.f32 %v2725_v61, %v822_v31  ;;  %1992 = vrot.lane.b32.xlu2 %v3694_v22, %s2799_s27 }
 0x669   :  { %v827_v59 = vsel %vm826_vm5, %v2725_v61, %v823_v40  ;;  %v1615_v61 = vpop.permute.xlu2 %1614 }
 0x66a   :  { %v832_v45 = vsel %vm829_vm6, %v831_v34, %v827_v59 }
 0x66b   :  { %v833_v44 = vmul.f32 %v3706_v7, %v832_v45  ;;  %v1136_v7 = vsel %vm1133_vm10, %v1135_v9, %v1131_v0 }
 0x66c   :  { %v1137_v56 = vmul.f32 %v3558_v4, %v1136_v7 }
 0x66d   :  { %v834_v13 = vadd.f32 %v833_v44, %v3548_v49  ;;  %v835_v30 = vpack.c.bf16 %v833_v44, %v833_v44  ;;  %v2048_v49 = vsel %vm580_vm12, %v3799_v46, 0.0 }
 0x66e   :  { %v1139_v55 = vpack.c.bf16 %v1137_v56, %v1137_v56 }
 0x66f   :  { %v910_v39 = vadd.f32 %v3569_v26, %v834_v13  ;;  %2408 = vmatmul.msk.bf16.vlgmr.msra.gmra.mxu3 %vm580_vm12, %v835_v30 }
 0x670   :  { %1155 = vmatpush.bf16.msra.mxu3 %v3676_v50  ;;  %v987_v50 = vpack.c.bf16 %v985_v43, %v985_v43 }
 0x671   :  { %v986_v18 = vadd.f32 %v985_v43, %v910_v39  ;;  %v1613_v51 = vpop.permute.xlu1 %1612 }
 0x673   :  { %v1062_v2 = vadd.f32 %v3594_v48, %v986_v18  ;;  %v1689_v48 = vpop.permute.xlu0 %1688 }
 0x674   :  { %1156 = vmatpush.bf16.msra.mxu3 %v3729_v47  ;;  %2049 = vadd.xlane.f32.xlu1 %v2048_v49 }
 0x675   :  { %v1138_v26 = vadd.f32 %v1137_v56, %v1062_v2 }
 0x677   :  { %v1202_v24 = vmul.f32 0.125, %v1138_v26 }
 0x679   :  { %v1203_v25 = vsel %vm580_vm12, %v1202_v24, 0.0  ;;  %v1746_v8 = vpop.xlane.xlu2 %1745 }
 0x67a   :  { %1204 = vst [vmem:[#allocation4] sm:$0xff] %v1203_v25  ;;  %2728 = vrcp.f32 %v1746_v8  ;;  %v1758_v28 = vand.u32 2147483648, %v1746_v8  ;;  %vm1752_vm14 = vweird.f32 %v1746_v8  ;;  %v1756_v63 = vand.u32 2147483647, %v1746_v8 }
 0x67b   :  { %v1898_v47 = vpop.xlane.xlu0 %1897 }
 0x67c   :  { %2730 = vrcp.f32 %v1898_v47  ;;  %v1759_v34 = vor.u32 1.1754944e-38, %v1758_v28  ;;  %vm1757_vm0 = vcmp.eq.f32.partialorder %v1756_v63, 8.507059e+37  ;;  %v1910_v9 = vand.u32 2147483648, %v1898_v47 }
 0x67d   :  { %vm1904_vm2 = vweird.f32 %v1898_v47  ;;  %v1908_v43 = vand.u32 2147483647, %v1898_v47 }
 0x67e   :  { %v1911_v18 = vor.u32 1.1754944e-38, %v1910_v9 }
 0x67f   :  { %2412 = vmatmul.msk.bf16.vlgmr.msrb.gmra.mxu3 %vm580_vm12, %v987_v50  ;;  %vm1909_vm4 = vcmp.eq.f32.partialorder %v1908_v43, 8.507059e+37 }
 0x680   :  { %1546 = vmatpush.bf16.msrb.mxu3 %v3688_v10  ;;  %v2729_v58 = vpop.eup %2728 }
 0x681   :  { %v1767_v4 = vpop.permute.xlu2 %1766  ;;  %v1748_v14 = vmul.f32 %v2729_v58, %v1746_v8  ;;  %vm1753_vm13 = vweird.f32 %v2729_v58 }
 0x682   :  { %1779 = vmatpush.bf16.msrb.mxu1 %v1767_v4  ;;  %v2731_v32 = vpop.eup %2730  ;;  %vm1754_vm15 = vmor %vm1752_vm14, %vm1753_vm13 }
 0x683   :  { %v1919_v3 = vpop.permute.xlu0 %1918  ;;  %v1749_v10 = vsub.f32 1.0, %v1748_v14  ;;  %v1900_v40 = vmul.f32 %v2731_v32, %v1898_v47  ;;  %vm1905_vm1 = vweird.f32 %v2731_v32 }
 0x684   :  { %1547 = vmatpush.bf16.msrb.mxu3 %v3694_v22  ;;  %vm1906_vm3 = vmor %vm1904_vm2, %vm1905_vm1 }
 0x685   :  { %v1750_v22 = vmul.f32 %v2729_v58, %v1749_v10  ;;  %v1901_v37 = vsub.f32 1.0, %v1900_v40 }
 0x687   :  { %v1751_v15 = vadd.f32 %v2729_v58, %v1750_v22  ;;  %v1902_v44 = vmul.f32 %v2731_v32, %v1901_v37 }
 0x689   :  { %v1755_v12 = vsel %vm1754_vm15, %v2729_v58, %v1751_v15  ;;  %v1843_v59 = vpop.permute.xlu2 %1842  ;;  %v1903_v30 = vadd.f32 %v2731_v32, %v1902_v44 }
 0x68a   :  { %v1760_v20 = vsel %vm1757_vm0, %v1759_v34, %v1755_v12 }
 0x68b   :  { %v1917_v60 = vpop.permute.xlu0 %1916  ;;  %v3819_v45 = vmul.f32 %v3718_v16, %v1760_v20  ;;  %v1907_v39 = vsel %vm1906_vm3, %v2731_v32, %v1903_v30  ;;  %vm1192_vm3 = vcmask 392192  }
 0x68c   :  { %v1912_v49 = vsel %vm1909_vm4, %v1911_v18, %v1907_v39  ;;  %vm1194_vm4 = vcmask 523264  }
 0x68d   :  { %v1763_v5 = vpack.c.bf16 %v3819_v45, %v3819_v45  ;;  %v1913_v25 = vmul.f32 %v3711_v36, %v1912_v49 }
 0x68f   :  { %2416 = vmatmul.msk.bf16.vlgmr.msra.gmra.mxu3 %vm580_vm12, %v1139_v55  ;;  %v1915_v4 = vpack.c.bf16 %v1913_v25, %v1913_v25 }
 0x690   :  { %1627 = vmatpush.bf16.msra.mxu3 %v1615_v61  ;;  %v1687_v61 = vpack.c.bf16 %v3769_v17, %v3769_v17 }
 0x693   :  { %v1995_v35 = vpop.permute.xlu0 %1994 }
 0x694   :  { %1628 = vmatpush.bf16.msra.mxu3 %v1613_v51 }
 0x69b   :  { %v2071_v52 = vpop.permute.xlu0 %2070 }
 0x69c   :  { %v1822_v31 = vpop.xlane.xlu1 %1821 }
 0x69d   :  { %2732 = vrcp.f32 %v1822_v31  ;;  %v1834_v26 = vand.u32 2147483648, %v1822_v31  ;;  %vm1828_vm6 = vweird.f32 %v1822_v31  ;;  %v1832_v24 = vand.u32 2147483647, %v1822_v31 }
 0x69f   :  { %2486 = vmatmul.msk.bf16.vlgmr.msrb.gmra.mxu3 %vm580_vm12, %v1534_v11  ;;  %v1835_v50 = vor.u32 1.1754944e-38, %v1834_v26  ;;  %vm1833_vm8 = vcmp.eq.f32.partialorder %v1832_v24, 8.507059e+37 }
 0x6a0   :  { %1703 = vmatpush.bf16.msrb.mxu3 %v1691_v1 }
 0x6a3   :  { %v2733_v41 = vpop.eup %2732  ;;  %v2069_v56 = vpop.permute.xlu0 %2068 }
 0x6a4   :  { %1704 = vmatpush.bf16.msrb.mxu3 %v1689_v48  ;;  %v1824_v6 = vmul.f32 %v2733_v41, %v1822_v31  ;;  %vm1829_vm5 = vweird.f32 %v2733_v41 }
 0x6a5   :  { %vm1830_vm7 = vmor %vm1828_vm6, %vm1829_vm5  ;;  %vm1196_vm5 = vcmask 654336   ;;  %vm1198_vm6 = vcmask 785408  }
 0x6a6   :  { %v1825_v13 = vsub.f32 1.0, %v1824_v6 }
 0x6a8   :  { %v1826_v16 = vmul.f32 %v2733_v41, %v1825_v13 }
 0x6aa   :  { %v1827_v2 = vadd.f32 %v2733_v41, %v1826_v16 }
 0x6ac   :  { %v1831_v8 = vsel %vm1830_vm7, %v2733_v41, %v1827_v2 }
 0x6ad   :  { %v1836_v17 = vsel %vm1833_vm8, %v1835_v50, %v1831_v8 }
 0x6ae   :  { %v1837_v48 = vmul.f32 %v3735_v42, %v1836_v17 }
 0x6af   :  { %2488 = vmatmul.msk.bf16.vlgmr.msra.gmra.mxu3 %vm580_vm12, %v1609_v27 }
 0x6b0   :  { %1855 = vmatpush.bf16.msra.mxu3 %v1843_v59  ;;  %v1839_v58 = vpack.c.bf16 %v1837_v48, %v1837_v48 }
 0x6b4   :  { %v1765_v0 = vpop.permute.xlu1 %1764 }
 0x6b5   :  { %1780 = vmatpush.bf16.msrb.mxu1 %v1765_v0 }
 0x6b8   :  { %2492 = vmatmul.msk.bf16.vlgmr.msrb.gmra.mxu1 %vm580_vm12, %v1763_v5 }
 0x6b9   :  { %1931 = vmatpush.bf16.msra.mxu1 %v1919_v3 }
 0x6bc   :  { %v1841_v7 = vpop.permute.xlu1 %1840 }
 0x6bd   :  { %1932 = vmatpush.bf16.msra.mxu1 %v1917_v60  ;;  %1856 = vmatpush.bf16.msra.mxu3 %v1841_v7 }
 0x6bf   :  { %2490 = vmatmul.msk.bf16.vlgmr.msrb.gmra.mxu3 %vm580_vm12, %v1687_v61 }
 0x6c1   :  { %2083 = vmatpush.bf16.msrb.mxu1 %v2071_v52  ;;  %2007 = vmatpush.bf16.msrb.mxu3 %v1995_v35  ;;  %v1762_v35 = vadd.f32 %v3819_v45, %v3773_v23 }
 0x6c2   :  { %v1974_v1 = vpop.xlane.xlu2 %1973 }
 0x6c3   :  { %2734 = vrcp.f32 %v1974_v1  ;;  %v1986_v36 = vand.u32 2147483648, %v1974_v1  ;;  %vm1980_vm10 = vweird.f32 %v1974_v1  ;;  %v1984_v10 = vand.u32 2147483647, %v1974_v1 }
 0x6c4   :  { %v1838_v27 = vadd.f32 %v1837_v48, %v1762_v35 }
 0x6c5   :  { %2084 = vmatpush.bf16.msrb.mxu1 %v2069_v56  ;;  %v1987_v22 = vor.u32 1.1754944e-38, %v1986_v36  ;;  %vm1985_vm14 = vcmp.eq.f32.partialorder %v1984_v10, 8.507059e+37  ;;  %v2577_v36 = vld [vmem:[%s3919_s14 + $0x20] sm:$0xff]  ;;  %v2575_v10 = vld [vmem:[%s3919_s14 + $0x10] sm:$0xff] }
 0x6c6   :  { %v1914_v37 = vadd.f32 %v1913_v25, %v1838_v27 }
 0x6c8   :  { %2496 = vmatmul.msk.bf16.vlgmr.msra.gmra.mxu1 %vm580_vm12, %v1915_v4 }
 0x6c9   :  { %v2735_v55 = vpop.eup %2734 }
 0x6ca   :  { %v1976_v47 = vmul.f32 %v2735_v55, %v1974_v1  ;;  %v1993_v51 = vpop.permute.xlu2 %1992  ;;  %vm1981_vm9 = vweird.f32 %v2735_v55 }
 0x6cb   :  { %2008 = vmatpush.bf16.msrb.mxu3 %v1993_v51  ;;  %vm1982_vm13 = vmor %vm1980_vm10, %vm1981_vm9 }
 0x6cc   :  { %v1977_v3 = vsub.f32 1.0, %v1976_v47 }
 0x6ce   :  { %v1978_v14 = vmul.f32 %v2735_v55, %v1977_v3 }
 0x6cf   :  { %2494 = vmatmul.msk.bf16.vlgmr.msra.gmra.mxu3 %vm580_vm12, %v1839_v58 }
 0x6d0   :  { %v1979_v11 = vadd.f32 %v2735_v55, %v1978_v14  ;;  %v2580_v14 = vld [vmem:[%s3919_s14 + $0x38] sm:$0xff] }
 0x6d1   :  { %2198 = vmatpush.bf16.msra.mxu2 %v2580_v14 }
 0x6d2   :  { %v1983_v60 = vsel %vm1982_vm13, %v2735_v55, %v1979_v11  ;;  %v2576_v11 = vld [vmem:[%s3919_s14 + $0x18] sm:$0xff] }
 0x6d3   :  { %v1988_v31 = vsel %vm1985_vm14, %v1987_v22, %v1983_v60  ;;  %v2574_v60 = vld [vmem:[%s3919_s14 + $0x8] sm:$0xff]  ;;  %v2573_v22 = vld [vmem:[%s3919_s14] sm:$0xff] }
 0x6d4   :  { %v1989_v42 = vmul.f32 %v3756_v54, %v1988_v31 }
 0x6d6   :  { %v1991_v15 = vpack.c.bf16 %v1989_v42, %v1989_v42  ;;  %v1990_v52 = vadd.f32 %v1989_v42, %v1914_v37 }
 0x6df   :  { %2498 = vmatmul.msk.bf16.vlgmr.msrb.gmra.mxu3 %vm580_vm12, %v1991_v15 }
 0x6e7   :  { %v2050_v32 = vpop.xlane.xlu1 %2049 }
 0x6e8   :  { %2736 = vrcp.f32 %v2050_v32  ;;  %v2062_v12 = vand.u32 2147483648, %v2050_v32  ;;  %v2060_v59 = vand.u32 2147483647, %v2050_v32  ;;  %vm2056_vm0 = vweird.f32 %v2050_v32 }
 0x6ea   :  { %v2063_v54 = vor.u32 1.1754944e-38, %v2062_v12  ;;  %vm2061_vm2 = vcmp.eq.f32.partialorder %v2060_v59, 8.507059e+37 }
 0x6ee   :  { %v2737_v28 = vpop.eup %2736 }
 0x6ef   :  { %v2052_v63 = vmul.f32 %v2737_v28, %v2050_v32  ;;  %vm2057_vm15 = vweird.f32 %v2737_v28 }
 0x6f0   :  { %vm2058_vm1 = vmor %vm2056_vm0, %vm2057_vm15 }
 0x6f1   :  { %v2053_v40 = vsub.f32 1.0, %v2052_v63 }
 0x6f2   :  { %v854_v34 = vpop.f32.mrf.mxu3 }
 0x6f3   :  { %v2054_v20 = vmul.f32 %v2737_v28, %v2053_v40 }
 0x6f5   :  { %v2055_v41 = vadd.f32 %v2737_v28, %v2054_v20 }
 0x6f7   :  { %v2059_v6 = vsel %vm2058_vm1, %v2737_v28, %v2055_v41 }
 0x6f8   :  { %v2064_v44 = vsel %vm2061_vm2, %v2063_v54, %v2059_v6 }
 0x6f9   :  { %v2065_v0 = vmul.f32 %v3799_v46, %v2064_v44 }
 0x6fa   :  { %v856_v5 = vpop.f32.mrf.mxu3 }
 0x6fb   :  { %v2066_v23 = vadd.f32 %v2065_v0, %v1990_v52  ;;  %v2067_v45 = vpack.c.bf16 %v2065_v0, %v2065_v0 }
 0x6fd   :  { %2500 = vmatmul.msk.bf16.vlgmr.msrb.gmra.mxu1 %vm580_vm12, %v2067_v45  ;;  %v2125_v13 = vmul.f32 0.125, %v2066_v23 }
 0x6ff   :  { %v2126_v30 = vsel %vm580_vm12, %v2125_v13, 0.0 }
 0x700   :  { %2128 = vst [vmem:[#allocation4 + $0x8] sm:$0xff] %v2126_v30 }
 0x702   :  { %v1006_v9 = vpop.f32.mrf.mxu3 }
 0x70a   :  { %v1008_v43 = vpop.f32.mrf.mxu3 }
 0x712   :  { %v1158_v16 = vpop.f32.mrf.mxu3 }
 0x71a   :  { %v1160_v39 = vpop.f32.mrf.mxu3 }
 0x722   :  { %v1549_v7 = vpop.f32.mrf.mxu3 }
 0x72a   :  { %v1551_v18 = vpop.f32.mrf.mxu3 }
 0x732   :  { %v1630_v61 = vpop.f32.mrf.mxu3 }
 0x733   :  { %v2597_v56 = vpack.i.bf16 %v1630_v61, %v3646_v33 }
 0x735   :  { %v1782_v49 = vpop.f32.mrf.mxu1  ;;  %2598 = vrot.lane.b32.xlu1 %v2597_v56, %s2802_s30 }
 0x736   :  { %v2602_v46 = vpack.i.bf16 %v1782_v49, %v854_v34 }
 0x738   :  { %2603 = vrot.lane.b32.xlu2 %v2602_v46, %s2801_s0 }
 0x73a   :  { %v1632_v2 = vpop.f32.mrf.mxu3 }
 0x73b   :  { %v2645_v2 = vld [vmem:[%s3920_s15] ss:$0 sm:$0xff]  ;;  %s2803_s15 = smov [#allocation4]  }
 0x73c   :  { %s2286_s21 = sshll.u32 %s2803_s15, 4  ;;  %s2287_s21 = int_to_ptr.vmem [resolvable:$true] %s2286_s21 }
 0x73d   :  { %v1784_v26 = vpop.f32.mrf.mxu1  ;;  %2294 = dma.vmem_to_hbm [thread:$0]  %s2287_s21, 256, %s2289_s22, [#allocation5], %s2804_s2, %s2804_s2, %s2805_s23  }
 0x742   :  { %v1706_v24 = vpop.f32.mrf.mxu3 }
 0x743   :  { %v2612_v25 = vpack.i.bf16 %v1706_v24, %v3656_v38 }
 0x745   :  { %2613 = vrot.lane.b32.xlu0 %v2612_v25, %s2799_s27  ;;  %v1934_v8 = vpop.f32.mrf.mxu1  ;;  %s2806_s27 = smov [#allocation2]  }
 0x746   :  { %v2607_v1 = vpack.i.bf16 %v1934_v8, %v1006_v9 }
 0x748   :  { %2608 = vrot.lane.b32.xlu2 %v2607_v1, %s2800_s11 }
 0x74a   :  { %v1708_v50 = vpop.f32.mrf.mxu3 }
 0x74d   :  { %v1936_v17 = vpop.f32.mrf.mxu1 }
 0x752   :  { %v1858_v33 = vpop.f32.mrf.mxu3 }
 0x753   :  { %v2617_v4 = vpack.i.bf16 %v1858_v33, %v3668_v19  ;;  %v2579_v19 = vld [vmem:[%s3919_s14 + $0x30] sm:$0xff] }
 0x754   :  { %2199 = vmatpush.bf16.msra.mxu2 %v2579_v19 }
 0x755   :  { %2618 = vrot.lane.b32.xlu0 %v2617_v4, %s2798_s26  ;;  %s2275_s26 = sshll.u32 %s3923_s18, 4  ;;  %s2276_s26 = int_to_ptr.hbm [resolvable:$true] %s2275_s26 }
 0x75a   :  { %v1860_v48 = vpop.f32.mrf.mxu3 }
 0x762   :  { %v2010_v55 = vpop.f32.mrf.mxu3 }
 0x763   :  { %v2622_v47 = vpack.i.bf16 %v2010_v55, %v3670_v29  ;;  %v2578_v29 = vld [vmem:[%s3919_s14 + $0x28] sm:$0xff] }
 0x764   :  { %2200 = vmatpush.bf16.msra.mxu2 %v2578_v29 }
 0x765   :  { %2623 = vrot.lane.b32.xlu0 %v2622_v47, %s2797_s3 }
 0x768   :  { %2201 = vmatpush.bf16.msra.mxu2 %v2577_v36 }
 0x76a   :  { %v2012_v38 = vpop.f32.mrf.mxu3 }
 0x76c   :  { %2202 = vmatpush.bf16.msra.mxu2 %v2576_v11 }
 0x770   :  { %2203 = vmatpush.bf16.msra.mxu2 %v2575_v10 }
 0x774   :  { %2204 = vmatpush.bf16.msra.mxu2 %v2574_v60 }
 0x778   :  { %2205 = vmatpush.bf16.msra.mxu2 %v2573_v22 }
 0x77a   :  { %v2086_v51 = vpop.f32.mrf.mxu1 }
 0x77b   :  { %v2627_v3 = vpack.i.bf16 %v2086_v51, %v1158_v16 }
 0x77d   :  { %2628 = vrot.lane.b32.xlu2 %v2627_v3, %s2796_s25 }
 0x782   :  { %v2088_v58 = vpop.f32.mrf.mxu1 }
 0x792   :  { %v2604_v31 = vpop.permute.xlu2 %2603 }
 0x793   :  { %v2606_v37 = vunpack.i.h.bf16 %v2604_v31  ;;  %v2605_v6 = vunpack.i.l.bf16 %v2604_v31 }
 0x7a2   :  { %v2609_v40 = vpop.permute.xlu2 %2608 }
 0x7a3   :  { %v2611_v23 = vunpack.i.h.bf16 %v2609_v40  ;;  %v2610_v45 = vunpack.i.l.bf16 %v2609_v40 }
 0x7a7   :  { %v2599_v15 = vpop.permute.xlu1 %2598 }
 0x7a8   :  { %v2601_v32 = vunpack.i.h.bf16 %v2599_v15  ;;  %v2600_v28 = vunpack.i.l.bf16 %v2599_v15  ;;  %v2646_v15 = vld [vmem:[%s3921_s16] ss:$0 sm:$0xff]  ;;  %s2273_s16 = sshll.u32 %s2806_s27, 4  ;;  %s2274_s16 = int_to_ptr.vmem [resolvable:$true] %s2273_s16 }
 0x7aa   :  { %v2118_v34 = vsel %vm557_vm11, %v1549_v7, %v2601_v32  ;;  %v1190_v27 = vsel %vm557_vm11, %v3550_v53, %v2600_v28  ;;  %vm1200_vm11 = vcmask 916480  }
 0x7b7   :  { %v2614_v42 = vpop.permute.xlu0 %2613 }
 0x7b8   :  { %v2616_v63 = vunpack.i.h.bf16 %v2614_v42  ;;  %v2615_v35 = vunpack.i.l.bf16 %v2614_v42 }
 0x7ba   :  { %v2119_v20 = vsel %vm580_vm12, %v2118_v34, %v2616_v63  ;;  %v1191_v59 = vsel %vm580_vm12, %v1190_v27, %v2615_v35  ;;  %v2647_v63 = vld [vmem:[%s3922_s17] ss:$0 sm:$0xff] }
 0x7bb   :  { %v1193_v44 = vsel %vm1192_vm3, %v1191_v59, %v2605_v6  ;;  %v2120_v52 = vsel %vm1192_vm3, %v2119_v20, %v2606_v37 }
 0x7c7   :  { %v2619_v12 = vpop.permute.xlu0 %2618 }
 0x7c8   :  { %v2621_v41 = vunpack.i.h.bf16 %v2619_v12  ;;  %v2620_v54 = vunpack.i.l.bf16 %v2619_v12 }
 0x7ca   :  { %v1195_v0 = vsel %vm1194_vm4, %v1193_v44, %v2620_v54  ;;  %v2121_v5 = vsel %vm1194_vm4, %v2120_v52, %v2621_v41 }
 0x7cb   :  { %v1197_v39 = vsel %vm1196_vm5, %v1195_v0, %v2610_v45  ;;  %v2122_v7 = vsel %vm1196_vm5, %v2121_v5, %v2611_v23 }
 0x7d7   :  { %v2629_v13 = vpop.permute.xlu2 %2628  ;;  %v2624_v53 = vpop.permute.xlu0 %2623 }
 0x7d8   :  { %v2631_v30 = vunpack.i.h.bf16 %v2629_v13  ;;  %v2630_v9 = vunpack.i.l.bf16 %v2629_v13  ;;  %v2626_v43 = vunpack.i.h.bf16 %v2624_v53  ;;  %v2625_v16 = vunpack.i.l.bf16 %v2624_v53 }
 0x7da   :  { %v1199_v18 = vsel %vm1198_vm6, %v1197_v39, %v2625_v16  ;;  %v2123_v61 = vsel %vm1198_vm6, %v2122_v7, %v2626_v43 }
 0x7db   :  { %v1201_v56 = vsel %vm1200_vm11, %v1199_v18, %v2630_v9  ;;  %v2124_v49 = vsel %vm1200_vm11, %v2123_v61, %v2631_v30 }
 0x7dc   :  { %v2129_v46 = vpack.c.bf16 %v2124_v49, %v1201_v56 }
 0x7de   :  { %2206 = vmatmul.bf16.vlgmr.msra.gmra.mxu2 %v2129_v46 }
 0x861   :  { %v2207_v26 = vpop.f32.mrf.mxu2 }
 0x862   :  { %v2208_v24 = vadd.f32 %v2645_v2, %v2207_v26 }
 0x864   :  { %v2212_v25 = vadd.f32 %v2208_v24, %v3170_v57 }
 0x866   :  { %2216 = vadd.xlane.f32.xlu1 %v2212_v25 }
 0x869   :  { %v2209_v8 = vpop.f32.mrf.mxu2 }
 0x86a   :  { %v2210_v1 = vadd.f32 %v2645_v2, %v2209_v8 }
 0x86c   :  { %v2213_v50 = vadd.f32 %v2210_v1, %v3172_v62 }
 0x86e   :  { %2218 = vadd.xlane.f32.xlu0 %v2213_v50 }
 0x8d9   :  { %v2217_v17 = vpop.xlane.xlu1 %2216 }
 0x8da   :  { %v2220_v33 = vmul.f32 %v2217_v17, %v2928_v21 }
 0x8dc   :  { %v2222_v4 = vsub.f32 %v2212_v25, %v2220_v33 }
 0x8de   :  { %v2224_v48 = vmul.f32 %v2222_v4, %v2222_v4 }
 0x8e0   :  { %2226 = vadd.xlane.f32.xlu2 %v2224_v48 }
 0x8e1   :  { %v2219_v55 = vpop.xlane.xlu0 %2218 }
 0x8e2   :  { %v2221_v47 = vmul.f32 %v2219_v55, %v2928_v21 }
 0x8e4   :  { %v2223_v38 = vsub.f32 %v2213_v50, %v2221_v47 }
 0x8e6   :  { %v2225_v51 = vmul.f32 %v2223_v38, %v2223_v38 }
 0x8e8   :  { %2228 = vadd.xlane.f32.xlu1 %v2225_v51 }
 0x953   :  { %v2227_v57 = vpop.xlane.xlu2 %2226 }
 0x954   :  { %v2230_v62 = vmul.f32 %v2227_v57, %v2928_v21 }
 0x956   :  { %v2232_v3 = vadd.f32 1e-05, %v2230_v62 }
 0x958   :  { %2738 = vrsqrt.f32 %v2232_v3  ;;  %vm2240_vm7 = vweird.f32 %v2232_v3 }
 0x95b   :  { %v2229_v58 = vpop.xlane.xlu1 %2228 }
 0x95c   :  { %v2231_v14 = vmul.f32 %v2229_v58, %v2928_v21 }
 0x95e   :  { %v2739_v19 = vpop.eup %2738  ;;  %v2233_v29 = vadd.f32 1e-05, %v2231_v14 }
 0x95f   :  { %v2235_v36 = vmul.f32 %v2739_v19, %v2232_v3  ;;  %vm2241_vm12 = vweird.f32 %v2739_v19 }
 0x960   :  { %2740 = vrsqrt.f32 %v2233_v29  ;;  %vm2242_vm8 = vmor %vm2240_vm7, %vm2241_vm12  ;;  %vm2250_vm10 = vweird.f32 %v2233_v29 }
 0x961   :  { %v2236_v11 = vmul.f32 %v2739_v19, %v2235_v36 }
 0x963   :  { %v2237_v10 = vmul.f32 0.5, %v2236_v11 }
 0x965   :  { %v2238_v60 = vsub.f32 1.5, %v2237_v10 }
 0x966   :  { %v2741_v22 = vpop.eup %2740 }
 0x967   :  { %v2239_v31 = vmul.f32 %v2739_v19, %v2238_v60  ;;  %v2245_v42 = vmul.f32 %v2741_v22, %v2233_v29  ;;  %vm2251_vm9 = vweird.f32 %v2741_v22 }
 0x968   :  { %vm2252_vm13 = vmor %vm2250_vm10, %vm2251_vm9 }
 0x969   :  { %v2243_v32 = vsel %vm2242_vm8, %v2739_v19, %v2239_v31  ;;  %v2246_v28 = vmul.f32 %v2741_v22, %v2245_v42 }
 0x96a   :  { %v2254_v21 = vmul.f32 %v2243_v32, %v2222_v4 }
 0x96b   :  { %v2247_v35 = vmul.f32 0.5, %v2246_v28 }
 0x96c   :  { %v2259_v40 = vmul.f32 %v2646_v15, %v2254_v21 }
 0x96d   :  { %v2248_v12 = vsub.f32 1.5, %v2247_v35 }
 0x96e   :  { %v2264_v34 = vadd.f32 %v2647_v63, %v2259_v40 }
 0x96f   :  { %v2249_v27 = vmul.f32 %v2741_v22, %v2248_v12 }
 0x970   :  { %2266 = vst [vmem:[#allocation2] sm:$0xff] %v2264_v34 }
 0x971   :  { %v2253_v20 = vsel %vm2252_vm13, %v2741_v22, %v2249_v27 }
 0x972   :  { %v2255_v59 = vmul.f32 %v2253_v20, %v2223_v38 }
 0x974   :  { %v2260_v41 = vmul.f32 %v2646_v15, %v2255_v59 }
 0x976   :  { %v2265_v54 = vadd.f32 %v2647_v63, %v2260_v41 }
 0x978   :  { %2268 = vst [vmem:[#allocation2 + $0x8] sm:$0xff] %v2265_v54 }
 0x979   :  { %2281 = dma.vmem_to_hbm [thread:$0]  %s2274_s16, 256, %s2276_s26, [#allocation3], %s2804_s2, %s2804_s2, %s2805_s23  }
 0x97a   :  { %2790 = dma.done.wait [#allocation3], 256  }
 0x97b   :  { %2791 = vsyncadd [#allocation3], 4294967040 }
 0x97c   :  { %2792 = dma.done.wait [#allocation5], 256  }
 0x97d   :  { %2793 = vsyncadd [#allocation5], 4294967040 }
 0x97e   :  { %2303 = vsyncpa [#allocation3], 1 }
 0x97f   :  { %2304 = vsyncpa [#allocation5], 1 }

</bundles_post_ra>
